<compile_context>
chip_gen: v7x
topology: tpu7x:2x2x1
jax: 0.10.0
libtpu: 0.0.40
codegen_flags: <defaults>
</compile_context>

<pallas_src>
import functools
import math

import numpy as np
import jax
import jax.numpy as jnp
from jax.experimental import pallas as pl
from jax.experimental.pallas import tpu as pltpu


# ---------------------------------------------------------------------------
# One fused Pallas kernel: MLP -> deconv1 -> deconv2 -> sigmoid / BCE / log_pz
# ---------------------------------------------------------------------------
def _sup_decoder_kernel(z_ref, y_ref, x_ref,
                        w1z_ref, w1y_ref, b1_ref,
                        w2_ref, b2_ref,
                        g1_ref, gb1_ref,
                        g2_ref, gb2_ref,
                        recon_ref, stats_ref,
                        *, latent_dim):
    f32 = jnp.float32
    z = z_ref[...]                                                     # (SB, L)

    # ---- MLP: relu(cat(z, y) @ W1 + b1) == relu(z @ W1z + y @ W1y + b1) ----
    h1 = (jnp.dot(z, w1z_ref[...], preferred_element_type=f32)
          + jnp.dot(y_ref[...], w1y_ref[...], preferred_element_type=f32)
          + b1_ref[...])
    h1 = jnp.maximum(h1, 0.0)                                          # (SB, 128)
    h2 = jnp.maximum(
        jnp.dot(h1, w2_ref[...], preferred_element_type=f32) + b2_ref[...], 0.0)
    # h2: (SB, 1024) == CHW-flattened (64, 4, 4) deconv input (matches Reshape)

    # ---- deconv1 (ConvT 64->32, k4, s2, p1) + ReLU as a dense CHW->CHW GEMM ----
    h3 = jnp.maximum(
        jnp.dot(h2.astype(jnp.bfloat16), g1_ref[...],
                preferred_element_type=f32) + gb1_ref[...], 0.0)       # (SB, 2048)

    # ---- deconv2 (ConvT 32->C, k4, s2, p1): logits already in CHW order ----
    logits = (jnp.dot(h3.astype(jnp.bfloat16), g2_ref[...],
                      preferred_element_type=f32) + gb2_ref[...])      # (SB, CHW)

    recon_ref[...] = jax.nn.sigmoid(logits)                            # lane-dense 768

    # ---- ll = -BCE(sigmoid(logits), x) summed over pixels, from logits ----
    # TODO(synk): self.binary_cross_entropy is not defined in the torch snippet;
    # assuming the standard element-wise BCE summed over (C,H,W).
    #   x*log(sig(l)) + (1-x)*log(1-sig(l)) == x*l - softplus(l)
    x = x_ref[...]
    softplus = jnp.maximum(logits, 0.0) + jnp.log(1.0 + jnp.exp(-jnp.abs(logits)))
    ll = jnp.sum(x * logits - softplus, axis=-1, keepdims=True)        # (SB, 1)

    # ---- log_pz = Normal(0, 1).log_prob(z).sum(-1) ----
    log_pz = (-0.5 * jnp.sum(z * z, axis=-1, keepdims=True)
              - 0.5 * latent_dim * math.log(2.0 * math.pi))            # (SB, 1)

    # Merge the two per-sample scalars into one (SB, 2) store.
    col = jax.lax.broadcasted_iota(jnp.int32, stats_ref.shape, 1)
    stats_ref[...] = jnp.where(col == 0, ll, log_pz)


# ---------------------------------------------------------------------------
# Forward wrapper: reshapes only, everything else lives in the single kernel
# ---------------------------------------------------------------------------
def sup_decoder_forward(params, z, x, y):
    S, B, C, H, W = x.shape
    SB = S * B
    L = z.shape[-1]
    z_flat = z.reshape(SB, L)
    x_flat = x.reshape(SB, C * H * W)          # CHW order matches the logits layout

    recon_flat, stats = pl.pallas_call(
        functools.partial(_sup_decoder_kernel, latent_dim=L),
        out_shape=(jax.ShapeDtypeStruct((SB, C * H * W), jnp.float32),
                   jax.ShapeDtypeStruct((SB, 2), jnp.float32)),
        compiler_params=pltpu.CompilerParams(vmem_limit_bytes=32 * 1024 * 1024),
    )(z_flat, y, x_flat,
      params["W1z"], params["W1y"], params["b1"],
      params["W2"], params["b2"],
      params["G1"], params["gb1"],
      params["G2"], params["gb2"])

    recon = recon_flat.reshape(S, B, C, H, W)
    ll = stats[:, 0].reshape(S, B)
    log_pz = stats[:, 1].reshape(S, B)
    return recon, ll, log_pz


# ---------------------------------------------------------------------------
# One-time parameter preprocessing (outside jit; pure setup, no per-call work)
# ---------------------------------------------------------------------------
def _expand_conv_transpose(w, ih, iw, stride, pad):
    """Dense operator for PyTorch ConvTranspose2d acting on CHW-flattened vectors.
    w: (Cin, Cout, KH, KW) torch layout. Returns ((Cin*ih*iw, Cout*oh*ow), oh, ow):
      out_flat[co*oh*ow + o_h*ow + o_w] = sum_{ci,i,j} in_flat[ci*ih*iw + i*iw + j]
                                          * w[ci, co, kh, kw]   with o_h = i*s-p+kh.
    """
    w = np.asarray(w, np.float32)
    cin, cout, kh_sz, kw_sz = w.shape
    oh = (ih - 1) * stride - 2 * pad + kh_sz
    ow = (iw - 1) * stride - 2 * pad + kw_sz
    m = np.zeros((cin, ih, iw, cout, oh, ow), np.float32)
    for kh in range(kh_sz):
        for kw in range(kw_sz):
            for i in range(ih):
                o_h = i * stride - pad + kh
                if o_h < 0 or o_h >= oh:
                    continue
                for j in range(iw):
                    o_w = j * stride - pad + kw
                    if o_w < 0 or o_w >= ow:
                        continue
                    m[:, i, j, :, o_h, o_w] += w[:, :, kh, kw]
    return m.reshape(cin * ih * iw, cout * oh * ow), oh, ow


def prepare_params(raw, *, latent_dim, deconv_h, deconv_w):
    """Build the kernel parameter set from torch-layout weights (runs once)."""
    W1 = np.asarray(raw["W1"], np.float32)
    g1, oh1, ow1 = _expand_conv_transpose(raw["dW1"], deconv_h, deconv_w, 2, 1)
    g2, oh2, ow2 = _expand_conv_transpose(raw["dW2"], oh1, ow1, 2, 1)
    gb1 = np.repeat(np.asarray(raw["db1"], np.float32), oh1 * ow1)
    gb2 = np.repeat(np.asarray(raw["db2"], np.float32), oh2 * ow2)
    return {
        "W1z": jnp.asarray(W1[:latent_dim]),
        "W1y": jnp.asarray(W1[latent_dim:]),
        "b1": jnp.asarray(raw["b1"], jnp.float32).reshape(1, -1),
        "W2": jnp.asarray(raw["W2"], jnp.float32),
        "b2": jnp.asarray(raw["b2"], jnp.float32).reshape(1, -1),
        # Expanded deconv operators in bf16 (f32 accumulation on the MXU).
        "G1": jnp.asarray(g1, jnp.bfloat16),
        "gb1": jnp.asarray(gb1, jnp.float32).reshape(1, -1),
        "G2": jnp.asarray(g2, jnp.bfloat16),
        "gb2": jnp.asarray(gb2, jnp.float32).reshape(1, -1),
    }


# ---------------------------------------------------------------------------
# main
# ---------------------------------------------------------------------------
if __name__ == "__main__":
    S, B = 2, 2
    C, H, W = 3, 16, 16
    latent_dim, num_classes = 16, 4
    deconv_c, deconv_h, deconv_w = 64, 4, 4        # cnn_output_shape(16,16)=(4,4)
    hid = 128
    mlp_out = deconv_c * deconv_h * deconv_w       # 1024

    key = jax.random.PRNGKey(0)
    ks = jax.random.split(key, 12)

    raw = {
        "W1": 0.05 * jax.random.normal(ks[0], (latent_dim + num_classes, hid), jnp.float32),
        "b1": 0.01 * jax.random.normal(ks[1], (hid,), jnp.float32),
        "W2": 0.05 * jax.random.normal(ks[2], (hid, mlp_out), jnp.float32),
        "b2": 0.01 * jax.random.normal(ks[3], (mlp_out,), jnp.float32),
        # ConvTranspose2d weights in torch layout (Cin, Cout, KH, KW)
        "dW1": 0.05 * jax.random.normal(ks[4], (deconv_c, 32, 4, 4), jnp.float32),
        "db1": 0.01 * jax.random.normal(ks[5], (32,), jnp.float32),
        "dW2": 0.05 * jax.random.normal(ks[6], (32, C, 4, 4), jnp.float32),
        "db2": 0.01 * jax.random.normal(ks[7], (C,), jnp.float32),
    }
    params = prepare_params(raw, latent_dim=latent_dim,
                            deconv_h=deconv_h, deconv_w=deconv_w)

    z = jax.random.normal(ks[8], (S, B, latent_dim), jnp.float32)
    x = jax.random.uniform(ks[9], (S, B, C, H, W), jnp.float32)      # BCE targets in [0,1]
    labels = jax.random.randint(ks[10], (S * B,), 0, num_classes)
    y = jax.nn.one_hot(labels, num_classes, dtype=jnp.float32)       # (S*B, num_classes)

    fwd = jax.jit(sup_decoder_forward)
    recon, ll, log_pz = fwd(params, z, x, y)
    jax.block_until_ready((recon, ll, log_pz))

    assert recon.shape == (S, B, C, H, W)
    assert ll.shape == (S, B)
    assert log_pz.shape == (S, B)
    assert bool(jnp.all(jnp.isfinite(recon)))
    assert bool(jnp.all(jnp.isfinite(ll)))
    assert bool(jnp.all(jnp.isfinite(log_pz)))
    assert bool(jnp.all((recon >= 0.0) & (recon <= 1.0)))
    print("KERNEL_OK")
</pallas_src>

<mosaic_0001>
module attributes {stable_mosaic.version = 11 : i64} {
  func.func @_sup_decoder_kernel(%arg0: memref<4x16xf32, #tpu.memory_space<vmem>>, %arg1: memref<4x4xf32, #tpu.memory_space<vmem>>, %arg2: memref<4x768xf32, #tpu.memory_space<vmem>>, %arg3: memref<16x128xf32, #tpu.memory_space<vmem>>, %arg4: memref<4x128xf32, #tpu.memory_space<vmem>>, %arg5: memref<1x128xf32, #tpu.memory_space<vmem>>, %arg6: memref<128x1024xf32, #tpu.memory_space<vmem>>, %arg7: memref<1x1024xf32, #tpu.memory_space<vmem>>, %arg8: memref<1024x2048xbf16, #tpu.memory_space<vmem>>, %arg9: memref<1x2048xf32, #tpu.memory_space<vmem>>, %arg10: memref<2048x768xbf16, #tpu.memory_space<vmem>>, %arg11: memref<1x768xf32, #tpu.memory_space<vmem>>, %arg12: memref<4x768xf32, #tpu.memory_space<vmem>>, %arg13: memref<4x2xf32, #tpu.memory_space<vmem>>) attributes {dimension_semantics = [], scalar_prefetch = 0 : i64, scratch_operands = 0 : i64, tpu.core_type = #tpu.core_type<tc>} {
    %c0 = arith.constant 0 : index
    %c0_0 = arith.constant 0 : index
    %0 = vector.load %arg0[%c0, %c0_0] : memref<4x16xf32, #tpu.memory_space<vmem>>, vector<4x16xf32>
    %c0_1 = arith.constant 0 : index
    %c0_2 = arith.constant 0 : index
    %1 = vector.load %arg3[%c0_1, %c0_2] : memref<16x128xf32, #tpu.memory_space<vmem>>, vector<16x128xf32>
    %cst = arith.constant dense<0.000000e+00> : vector<4x128xf32>
    %2 = tpu.matmul %0, %1, %cst {dimension_numbers = #tpu.dot_dimension_numbers<[1], [0], [0], [1], [0, 0, 1, 1], [], []>} : vector<4x16xf32>, vector<16x128xf32>, vector<4x128xf32> -> vector<4x128xf32>
    %c0_3 = arith.constant 0 : index
    %c0_4 = arith.constant 0 : index
    %3 = vector.load %arg1[%c0_3, %c0_4] : memref<4x4xf32, #tpu.memory_space<vmem>>, vector<4x4xf32>
    %c0_5 = arith.constant 0 : index
    %c0_6 = arith.constant 0 : index
    %4 = vector.load %arg4[%c0_5, %c0_6] : memref<4x128xf32, #tpu.memory_space<vmem>>, vector<4x128xf32>
    %cst_7 = arith.constant dense<0.000000e+00> : vector<4x128xf32>
    %5 = tpu.matmul %3, %4, %cst_7 {dimension_numbers = #tpu.dot_dimension_numbers<[1], [0], [0], [1], [0, 0, 1, 1], [], []>} : vector<4x4xf32>, vector<4x128xf32>, vector<4x128xf32> -> vector<4x128xf32>
    %6 = arith.addf %2, %5 : vector<4x128xf32>
    %c0_8 = arith.constant 0 : index
    %c0_9 = arith.constant 0 : index
    %7 = vector.load %arg5[%c0_8, %c0_9] : memref<1x128xf32, #tpu.memory_space<vmem>>, vector<1x128xf32>
    %8 = vector.broadcast %7 : vector<1x128xf32> to vector<4x128xf32>
    %9 = arith.addf %6, %8 : vector<4x128xf32>
    %cst_10 = arith.constant 0.000000e+00 : f32
    %10 = vector.broadcast %cst_10 : f32 to vector<4x128xf32>
    %11 = arith.maximumf %9, %10 : vector<4x128xf32>
    %c0_11 = arith.constant 0 : index
    %c0_12 = arith.constant 0 : index
    %12 = vector.load %arg6[%c0_11, %c0_12] : memref<128x1024xf32, #tpu.memory_space<vmem>>, vector<128x1024xf32>
    %cst_13 = arith.constant dense<0.000000e+00> : vector<4x1024xf32>
    %13 = tpu.matmul %11, %12, %cst_13 {dimension_numbers = #tpu.dot_dimension_numbers<[1], [0], [0], [1], [0, 0, 1, 1], [], []>} : vector<4x128xf32>, vector<128x1024xf32>, vector<4x1024xf32> -> vector<4x1024xf32>
    %c0_14 = arith.constant 0 : index
    %c0_15 = arith.constant 0 : index
    %14 = vector.load %arg7[%c0_14, %c0_15] : memref<1x1024xf32, #tpu.memory_space<vmem>>, vector<1x1024xf32>
    %15 = vector.broadcast %14 : vector<1x1024xf32> to vector<4x1024xf32>
    %16 = arith.addf %13, %15 : vector<4x1024xf32>
    %cst_16 = arith.constant 0.000000e+00 : f32
    %17 = vector.broadcast %cst_16 : f32 to vector<4x1024xf32>
    %18 = arith.maximumf %16, %17 : vector<4x1024xf32>
    %19 = arith.truncf %18 : vector<4x1024xf32> to vector<4x1024xbf16>
    %c0_17 = arith.constant 0 : index
    %c0_18 = arith.constant 0 : index
    %20 = vector.load %arg8[%c0_17, %c0_18] : memref<1024x2048xbf16, #tpu.memory_space<vmem>>, vector<1024x2048xbf16>
    %cst_19 = arith.constant dense<0.000000e+00> : vector<4x2048xf32>
    %21 = tpu.matmul %19, %20, %cst_19 {dimension_numbers = #tpu.dot_dimension_numbers<[1], [0], [0], [1], [0, 0, 1, 1], [], []>} : vector<4x1024xbf16>, vector<1024x2048xbf16>, vector<4x2048xf32> -> vector<4x2048xf32>
    %c0_20 = arith.constant 0 : index
    %c0_21 = arith.constant 0 : index
    %22 = vector.load %arg9[%c0_20, %c0_21] : memref<1x2048xf32, #tpu.memory_space<vmem>>, vector<1x2048xf32>
    %23 = vector.broadcast %22 : vector<1x2048xf32> to vector<4x2048xf32>
    %24 = arith.addf %21, %23 : vector<4x2048xf32>
    %cst_22 = arith.constant 0.000000e+00 : f32
    %25 = vector.broadcast %cst_22 : f32 to vector<4x2048xf32>
    %26 = arith.maximumf %24, %25 : vector<4x2048xf32>
    %27 = arith.truncf %26 : vector<4x2048xf32> to vector<4x2048xbf16>
    %c0_23 = arith.constant 0 : index
    %c0_24 = arith.constant 0 : index
    %28 = vector.load %arg10[%c0_23, %c0_24] : memref<2048x768xbf16, #tpu.memory_space<vmem>>, vector<2048x768xbf16>
    %cst_25 = arith.constant dense<0.000000e+00> : vector<4x768xf32>
    %29 = tpu.matmul %27, %28, %cst_25 {dimension_numbers = #tpu.dot_dimension_numbers<[1], [0], [0], [1], [0, 0, 1, 1], [], []>} : vector<4x2048xbf16>, vector<2048x768xbf16>, vector<4x768xf32> -> vector<4x768xf32>
    %c0_26 = arith.constant 0 : index
    %c0_27 = arith.constant 0 : index
    %30 = vector.load %arg11[%c0_26, %c0_27] : memref<1x768xf32, #tpu.memory_space<vmem>>, vector<1x768xf32>
    %31 = vector.broadcast %30 : vector<1x768xf32> to vector<4x768xf32>
    %32 = arith.addf %29, %31 : vector<4x768xf32>
    %33 = arith.negf %32 : vector<4x768xf32>
    %34 = math.exp %33 : vector<4x768xf32>
    %cst_28 = arith.constant 1.000000e+00 : f32
    %35 = vector.broadcast %cst_28 : f32 to vector<4x768xf32>
    %36 = arith.addf %35, %34 : vector<4x768xf32>
    %37 = arith.divf %35, %36 : vector<4x768xf32>
    %c0_29 = arith.constant 0 : index
    %c0_30 = arith.constant 0 : index
    %38 = vector.load %arg12[%c0_29, %c0_30] : memref<4x768xf32, #tpu.memory_space<vmem>>, vector<4x768xf32>
    tpu.vector_store %arg12[%c0_29, %c0_30], %37 {strides = array<i32>} : memref<4x768xf32, #tpu.memory_space<vmem>>, vector<4x768xf32>,
    %c0_31 = arith.constant 0 : index
    %c0_32 = arith.constant 0 : index
    %39 = vector.load %arg2[%c0_31, %c0_32] : memref<4x768xf32, #tpu.memory_space<vmem>>, vector<4x768xf32>
    %cst_33 = arith.constant 0.000000e+00 : f32
    %40 = vector.broadcast %cst_33 : f32 to vector<4x768xf32>
    %41 = arith.maximumf %32, %40 : vector<4x768xf32>
    %42 = math.absf %32 : vector<4x768xf32>
    %cst_34 = arith.constant 0.000000e+00 : f32
    %43 = vector.broadcast %cst_34 : f32 to vector<4x768xf32>
    %44 = arith.subf %43, %42 : vector<4x768xf32>
    %45 = math.exp %44 : vector<4x768xf32>
    %cst_35 = arith.constant 1.000000e+00 : f32
    %46 = vector.broadcast %cst_35 : f32 to vector<4x768xf32>
    %47 = arith.addf %46, %45 : vector<4x768xf32>
    %48 = math.log %47 : vector<4x768xf32>
    %49 = arith.addf %41, %48 : vector<4x768xf32>
    %50 = arith.mulf %39, %32 : vector<4x768xf32>
    %51 = arith.subf %50, %49 : vector<4x768xf32>
    %cst_36 = arith.constant dense<0.000000e+00> : vector<4xf32>
    %52 = vector.multi_reduction <add>, %51, %cst_36 [1] : vector<4x768xf32> to vector<4xf32>
    %53 = vector.shape_cast %52 : vector<4xf32> to vector<4x1xf32>
    %54 = arith.mulf %0, %0 : vector<4x16xf32>
    %cst_37 = arith.constant dense<0.000000e+00> : vector<4xf32>
    %55 = vector.multi_reduction <add>, %54, %cst_37 [1] : vector<4x16xf32> to vector<4xf32>
    %56 = vector.shape_cast %55 : vector<4xf32> to vector<4x1xf32>
    %cst_38 = arith.constant -5.000000e-01 : f32
    %57 = vector.broadcast %cst_38 : f32 to vector<4x1xf32>
    %58 = arith.mulf %57, %56 : vector<4x1xf32>
    %cst_39 = arith.constant 14.7030163 : f32
    %59 = vector.broadcast %cst_39 : f32 to vector<4x1xf32>
    %60 = arith.subf %58, %59 : vector<4x1xf32>
    %61 = tpu.iota {dimensions = array<i32: 1>} : vector<4x2xi32>
    %c0_i32 = arith.constant 0 : i32
    %62 = vector.broadcast %c0_i32 : i32 to vector<4x2xi32>
    %63 = arith.cmpi eq, %61, %62 : vector<4x2xi32>
    %64 = vector.shape_cast %53 : vector<4x1xf32> to vector<4x1xf32>
    %65 = vector.broadcast %64 : vector<4x1xf32> to vector<4x2xf32>
    %66 = vector.shape_cast %60 : vector<4x1xf32> to vector<4x1xf32>
    %67 = vector.broadcast %66 : vector<4x1xf32> to vector<4x2xf32>
    %68 = arith.select %63, %65, %67 : vector<4x2xi1>, vector<4x2xf32>
    %c0_40 = arith.constant 0 : index
    %c0_41 = arith.constant 0 : index
    %69 = vector.load %arg13[%c0_40, %c0_41] : memref<4x2xf32, #tpu.memory_space<vmem>>, vector<4x2xf32>
    tpu.vector_store %arg13[%c0_40, %c0_41], %68 {strides = array<i32>} : memref<4x2xf32, #tpu.memory_space<vmem>>, vector<4x2xf32>,
    return
  }
}

</mosaic_0001>

<bundles_post_ra>
// kernel: squeeze.3
= control target key start
LH: loop header
LB: loop body
LE: loop exit
PB: predicated region body
PF: predicated region fallthrough
CT: control target
= control target key end

     0   :  { %s85_s0 = inlined_call_operand.vmem [shape: f32[4], index: 0, kind: input, shape index: {}]   ;;  %s86_s1 = inlined_call_operand.hbm [shape: f32[2,2], index: 1, kind: output, shape index: {}]  }
   0x1   :  { %v5_v0 = vld [vmem:[%s85_s0] sm:$0x1] }
   0x2   :  { %2 = vsyncpa [#allocation1], 0  ;;  %6 = vst [vmem:[#allocation3] sm:$0x1] %v5_v0  ;;  %vm8_vm0 = vcmask 15360   ;;  %s58_s0 = smov 126  }
   0x3   :  { %s59_s8 = smov [#allocation0]  }
   0x4   :  { %s26_s9 = sshll.u32 %s59_s8, 4  ;;  %s27_s9 = int_to_ptr.vmem [resolvable:$true] %s26_s9 }
   0x5   :  { %s34_s10 = scalar_lea.vmem %s27_s9, 32  ;;  %p39_p1 = scmp.lt.s32.totalorder %s27_s9, %s27_s9 }
   0x6   :  { %p35_p0 = scmp.ne.s32.totalorder %s27_s9, %s34_s10  ;;  %p40_p2 = scmp.lt.s32.totalorder %s34_s10, %s34_s10 }
   0x8   :  { %p41_p3 = por %p40_p2, %p39_p1 }
   0x9   :  { %v10_v1 = vld [vmem:[#allocation3] sm:$0x1]  }
   0xa   :  { %v7_v2 = vld [vmem:[#allocation3] sm:$0x1]   ;;  %11 = vrot.lane.b32.xlu0 %v10_v1, %s58_s0  ;;  %p42_p4 = pnand %p41_p3, %p35_p0 }
   0xb   :  { %9 = vst.msk [vmem:[#allocation2] sm:$0x1] %vm8_vm0, %v7_v2  }
  0x7c   :  { %v12_v3 = vpop.permute.xlu0 %11  }
  0x7d   :  { %15 = vst.msk [vmem:[#allocation2 + $0x1] sm:$0x1] %vm8_vm0, %v12_v3  }
  0x84   :  { %v19_v4 = vld [vmem:[#allocation2] sm:$0x3] }
  0x85   :  { %21 = vst [vmem:[#allocation0] sm:$0x3] %v19_v4 }
  0x86   :  { %45 = shalt.err (!%p42_p4)
}
  0x87   :  { %s46_s13 = scalar_lea.hbm %s86_s1, 32 }
  0x88   :  { %p47_p5 = scmp.ne.s32.totalorder %s86_s1, %s46_s13  ;;  %p50_p6 = scmp.lt.u32.totalorder %s46_s13, %s86_s1 }
  0x8a   :  { %p52_p7 = pnand %p50_p6, %p47_p5 }
  0x8c   :  { %55 = shalt.err (!%p52_p7)
}
  0x8d   :  { %29 = dma.vmem_to_hbm [thread:$0]  %s27_s9, 32, %s86_s1, [#allocation1]  }
  0x8e   :  { %56 = dma.done.wait [#allocation1], 32  }
  0x8f   :  { %57 = vsyncadd [#allocation1], 4294967264 }
  0x90   :  { %31 = vsyncpa [#allocation1], 1 }

// kernel: sup_decoder_forward.1
= control target key start
LH: loop header
LB: loop body
LE: loop exit
PB: predicated region body
PF: predicated region fallthrough
CT: control target
= control target key end

     0   :  { %19 = vsyncpa [#allocation3], 0  ;;  %s18419_s0 = inlined_call_operand.hbm [shape: f32[4,16], index: 0, kind: input, shape index: {}]   ;;  %s18420_s1 = inlined_call_operand.hbm [shape: f32[4,4], index: 1, kind: input, shape index: {}]   ;;  %s18421_s2 = inlined_call_operand.vmem [shape: f32[4,768], index: 2, kind: input, shape index: {}]   ;;  %s18422_s3 = inlined_call_operand.hbm [shape: f32[16,128], index: 3, kind: input, shape index: {}]   ;;  %s18423_s4 = inlined_call_operand.hbm [shape: f32[4,128], index: 4, kind: input, shape index: {}]   ;;  %s18424_s5 = inlined_call_operand.hbm [shape: f32[1,128], index: 5, kind: input, shape index: {}]   ;;  %s18425_s6 = inlined_call_operand.hbm [shape: f32[128,1024], index: 6, kind: input, shape index: {}]   ;;  %s18426_s7 = inlined_call_operand.hbm [shape: f32[1,1024], index: 7, kind: input, shape index: {}]   ;;  %s18427_s8 = inlined_call_operand.hbm [shape: bf16[1024,2048], index: 8, kind: input, shape index: {}]   ;;  %s18428_s9 = inlined_call_operand.hbm [shape: f32[1,2048], index: 9, kind: input, shape index: {}]   ;;  %s18429_s10 = inlined_call_operand.hbm [shape: bf16[2048,768], index: 10, kind: input, shape index: {}]   ;;  %s18430_s11 = inlined_call_operand.hbm [shape: f32[1,768], index: 11, kind: input, shape index: {}]   ;;  %s18431_s12 = inlined_call_operand.vmem [shape: f32[4,768], index: 12, kind: output, shape index: {0}]   ;;  %s18432_s13 = inlined_call_operand.vmem [shape: f32[4,2], index: 13, kind: output, shape index: {1}]  }
   0x1   :  { %20 = vsyncpa [#allocation5], 0 }
   0x2   :  { %21 = vsyncpa [#allocation8], 0 }
   0x3   :  { %22 = vsyncpa [#allocation11], 0 }
   0x4   :  { %23 = vsyncpa [#allocation14], 0 }
   0x5   :  { %24 = vsyncpa [#allocation17], 0  ;;  %s17828_s25 = smov [#allocation4]   ;;  %s17829_s27 = smov [#allocation7]  }
   0x6   :  { %s41_s26 = sshll.u32 %s17828_s25, 4  ;;  %s65_s28 = sshll.u32 %s17829_s27, 4  ;;  %s42_s26 = int_to_ptr.vmem [resolvable:$true] %s41_s26  ;;  %s66_s28 = int_to_ptr.vmem [resolvable:$true] %s65_s28 }
   0x7   :  { %s17574_s14 = scalar_lea.hbm %s18420_s1, 64 }
   0x8   :  { %p17575_p0 = scmp.ne.s32.totalorder %s18420_s1, %s17574_s14  ;;  %p17578_p1 = scmp.lt.u32.totalorder %s17574_s14, %s18420_s1 }
   0xa   :  { %p17580_p2 = pnand %p17578_p1, %p17575_p0 }
   0xc   :  { %17583 = shalt.err (!%p17580_p2)
}
   0xd   :  { %s17584_s19 = scalar_lea.vmem %s42_s26, 64  ;;  %p17589_p4 = scmp.lt.s32.totalorder %s42_s26, %s42_s26 }
   0xe   :  { %p17585_p3 = scmp.ne.s32.totalorder %s42_s26, %s17584_s19  ;;  %p17590_p5 = scmp.lt.s32.totalorder %s17584_s19, %s17584_s19 }
  0x10   :  { %p17591_p6 = por %p17590_p5, %p17589_p4 }
  0x12   :  { %p17592_p7 = pnand %p17591_p6, %p17585_p3 }
  0x14   :  { %17595 = shalt.err (!%p17592_p7)
}
  0x15   :  { %44 = dma.hbm_to_vmem [thread:$0]  %s18420_s1, 64, %s42_s26, [#allocation5]  }
  0x16   :  { %s17596_s24 = scalar_lea.hbm %s18423_s4, 64 }
  0x17   :  { %p17597_p8 = scmp.ne.s32.totalorder %s18423_s4, %s17596_s24  ;;  %p17600_p9 = scmp.lt.u32.totalorder %s17596_s24, %s18423_s4 }
  0x19   :  { %p17602_p10 = pnand %p17600_p9, %p17597_p8 }
  0x1b   :  { %17605 = shalt.err (!%p17602_p10)
}
  0x1c   :  { %s17606_s14 = scalar_lea.vmem %s66_s28, 64  ;;  %p17611_p12 = scmp.lt.s32.totalorder %s66_s28, %s66_s28 }
  0x1d   :  { %p17607_p11 = scmp.ne.s32.totalorder %s66_s28, %s17606_s14  ;;  %p17612_p13 = scmp.lt.s32.totalorder %s17606_s14, %s17606_s14 }
  0x1f   :  { %p17613_p0 = por %p17612_p13, %p17611_p12 }
  0x21   :  { %p17614_p1 = pnand %p17613_p0, %p17607_p11 }
  0x23   :  { %17617 = shalt.err (!%p17614_p1)
}
  0x24   :  { %68 = dma.hbm_to_vmem [thread:$0]  %s18423_s4, 64, %s66_s28, [#allocation8]  }
  0x25   :  { %s17830_s15 = smov [#allocation10]   ;;  %s17618_s19 = scalar_lea.hbm %s18425_s6, 16384 }
  0x26   :  { %s84_s16 = sshll.u32 %s17830_s15, 4  ;;  %p17619_p2 = scmp.ne.s32.totalorder %s18425_s6, %s17618_s19  ;;  %s85_s16 = int_to_ptr.vmem [resolvable:$true] %s84_s16 }
  0x27   :  { %p17622_p3 = scmp.lt.u32.totalorder %s17618_s19, %s18425_s6 }
  0x29   :  { %p17624_p4 = pnand %p17622_p3, %p17619_p2 }
  0x2b   :  { %17627 = shalt.err (!%p17624_p4)
}
  0x2c   :  { %s17628_s24 = scalar_lea.vmem %s85_s16, 16384  ;;  %p17633_p6 = scmp.lt.s32.totalorder %s85_s16, %s85_s16 }
  0x2d   :  { %p17629_p5 = scmp.ne.s32.totalorder %s85_s16, %s17628_s24  ;;  %p17634_p7 = scmp.lt.s32.totalorder %s17628_s24, %s17628_s24 }
  0x2f   :  { %p17635_p8 = por %p17634_p7, %p17633_p6 }
  0x31   :  { %p17636_p9 = pnand %p17635_p8, %p17629_p5 }
  0x33   :  { %17639 = shalt.err (!%p17636_p9)
}
  0x34   :  { %s17831_s4 = smov 1024   ;;  %s17832_s28 = smov 64  }
  0x35   :  { %90 = dma.hbm_to_vmem [thread:$0]  %s18425_s6, 16384, %s85_s16, [#allocation11], %s17831_s4, %s17831_s4, %s17832_s28  }
  0x36   :  { %s17833_s29 = smov [#allocation13]   ;;  %s17834_s14 = smov [#allocation16]  }
  0x37   :  { %s106_s30 = sshll.u32 %s17833_s29, 4  ;;  %s128_s1 = sshll.u32 %s17834_s14, 4  ;;  %s107_s30 = int_to_ptr.vmem [resolvable:$true] %s106_s30  ;;  %s129_s1 = int_to_ptr.vmem [resolvable:$true] %s128_s1 }
  0x38   :  { %s17640_s17 = scalar_lea.hbm %s18427_s8, 131072 }
  0x39   :  { %p17641_p10 = scmp.ne.s32.totalorder %s18427_s8, %s17640_s17  ;;  %p17644_p11 = scmp.lt.u32.totalorder %s17640_s17, %s18427_s8 }
  0x3b   :  { %p17646_p12 = pnand %p17644_p11, %p17641_p10 }
  0x3d   :  { %17649 = shalt.err (!%p17646_p12)
}
  0x3e   :  { %s17650_s6 = scalar_lea.vmem %s107_s30, 131072  ;;  %p17655_p0 = scmp.lt.s32.totalorder %s107_s30, %s107_s30 }
  0x3f   :  { %p17651_p13 = scmp.ne.s32.totalorder %s107_s30, %s17650_s6  ;;  %p17656_p1 = scmp.lt.s32.totalorder %s17650_s6, %s17650_s6 }
  0x41   :  { %p17657_p2 = por %p17656_p1, %p17655_p0 }
  0x43   :  { %p17658_p3 = pnand %p17657_p2, %p17651_p13 }
  0x45   :  { %17661 = shalt.err (!%p17658_p3)
}
  0x46   :  { %112 = dma.hbm_to_vmem [thread:$0]  %s18427_s8, 131072, %s107_s30, [#allocation14], %s17831_s4, %s17831_s4, %s17832_s28  }
  0x47   :  { %s17662_s25 = scalar_lea.hbm %s18429_s10, 98304 }
  0x48   :  { %p17663_p4 = scmp.ne.s32.totalorder %s18429_s10, %s17662_s25  ;;  %p17666_p5 = scmp.lt.u32.totalorder %s17662_s25, %s18429_s10 }
  0x4a   :  { %p17668_p6 = pnand %p17666_p5, %p17663_p4 }
  0x4c   :  { %17671 = shalt.err (!%p17668_p6)
}
  0x4d   :  { %s17672_s15 = scalar_lea.vmem %s129_s1, 98304  ;;  %p17677_p8 = scmp.lt.s32.totalorder %s129_s1, %s129_s1 }
  0x4e   :  { %p17673_p7 = scmp.ne.s32.totalorder %s129_s1, %s17672_s15  ;;  %p17678_p9 = scmp.lt.s32.totalorder %s17672_s15, %s17672_s15 }
  0x50   :  { %p17679_p10 = por %p17678_p9, %p17677_p8 }
  0x52   :  { %p17680_p11 = pnand %p17679_p10, %p17673_p7 }
  0x54   :  { %17683 = shalt.err (!%p17680_p11)
}
  0x55   :  { %s17835_s8 = smov 384   ;;  %s17836_s4 = smov 24  }
  0x56   :  { %134 = dma.hbm_to_vmem [thread:$0]  %s18429_s10, 98304, %s129_s1, [#allocation17], %s17835_s8, %s17835_s8, %s17836_s4  }
  0x57   :  { %s17837_s17 = smov [#allocation2]   ;;  %s17838_s19 = smov [#allocation6]  }
  0x58   :  { %s31_s18 = sshll.u32 %s17837_s17, 4  ;;  %s52_s20 = sshll.u32 %s17838_s19, 4  ;;  %s32_s18 = int_to_ptr.vmem [resolvable:$true] %s31_s18  ;;  %s53_s20 = int_to_ptr.vmem [resolvable:$true] %s52_s20 }
  0x59   :  { %s17684_s16 = scalar_lea.hbm %s18419_s0, 64 }
  0x5a   :  { %p17685_p12 = scmp.ne.s32.totalorder %s18419_s0, %s17684_s16  ;;  %p17688_p13 = scmp.lt.u32.totalorder %s17684_s16, %s18419_s0 }
  0x5c   :  { %p17690_p0 = pnand %p17688_p13, %p17685_p12 }
  0x5e   :  { %17693 = shalt.err (!%p17690_p0)
}
  0x5f   :  { %s17694_s10 = scalar_lea.vmem %s32_s18, 64  ;;  %p17699_p2 = scmp.lt.s32.totalorder %s32_s18, %s32_s18 }
  0x60   :  { %p17695_p1 = scmp.ne.s32.totalorder %s32_s18, %s17694_s10  ;;  %p17700_p3 = scmp.lt.s32.totalorder %s17694_s10, %s17694_s10 }
  0x62   :  { %p17701_p4 = por %p17700_p3, %p17699_p2 }
  0x64   :  { %p17702_p5 = pnand %p17701_p4, %p17695_p1 }
  0x66   :  { %17705 = shalt.err (!%p17702_p5)
}
  0x67   :  { %34 = dma.hbm_to_vmem [thread:$0]  %s18419_s0, 64, %s32_s18, [#allocation3]  }
  0x68   :  { %s17706_s26 = scalar_lea.hbm %s18422_s3, 256 }
  0x69   :  { %p17707_p6 = scmp.ne.s32.totalorder %s18422_s3, %s17706_s26  ;;  %p17710_p7 = scmp.lt.u32.totalorder %s17706_s26, %s18422_s3 }
  0x6b   :  { %p17712_p8 = pnand %p17710_p7, %p17707_p6 }
  0x6d   :  { %17715 = shalt.err (!%p17712_p8)
}
  0x6e   :  { %s17716_s30 = scalar_lea.vmem %s53_s20, 256  ;;  %p17721_p10 = scmp.lt.s32.totalorder %s53_s20, %s53_s20 }
  0x6f   :  { %p17717_p9 = scmp.ne.s32.totalorder %s53_s20, %s17716_s30  ;;  %p17722_p11 = scmp.lt.s32.totalorder %s17716_s30, %s17716_s30 }
  0x71   :  { %p17723_p12 = por %p17722_p11, %p17721_p10 }
  0x73   :  { %p17724_p13 = pnand %p17723_p12, %p17717_p9 }
  0x75   :  { %17727 = shalt.err (!%p17724_p13)
}
  0x76   :  { %s17839_s0 = smov 128   ;;  %s17840_s17 = smov 8  }
  0x77   :  { %58 = dma.hbm_to_vmem [thread:$0]  %s18422_s3, 256, %s53_s20, [#allocation5], %s17839_s0, %s17839_s0, %s17840_s17  }
  0x78   :  { %s17841_s21 = smov [#allocation9]   ;;  %s17842_s16 = smov [#allocation12]  }
  0x79   :  { %s75_s6 = sshll.u32 %s17841_s21, 4  ;;  %s97_s22 = sshll.u32 %s17842_s16, 4  ;;  %s76_s6 = int_to_ptr.vmem [resolvable:$true] %s75_s6  ;;  %s98_s22 = int_to_ptr.vmem [resolvable:$true] %s97_s22 }
  0x7a   :  { %s17728_s25 = scalar_lea.hbm %s18424_s5, 16 }
  0x7b   :  { %p17729_p0 = scmp.ne.s32.totalorder %s18424_s5, %s17728_s25  ;;  %p17732_p1 = scmp.lt.u32.totalorder %s17728_s25, %s18424_s5 }
  0x7d   :  { %p17734_p2 = pnand %p17732_p1, %p17729_p0 }
  0x7f   :  { %17737 = shalt.err (!%p17734_p2)
}
  0x80   :  { %s17738_s3 = scalar_lea.vmem %s76_s6, 16  ;;  %s17742_s20 = scalar_lea.vmem %s76_s6, 32 }
  0x81   :  { %p17739_p3 = scmp.ne.s32.totalorder %s76_s6, %s17738_s3  ;;  %p17743_p4 = scmp.lt.s32.totalorder %s76_s6, %s76_s6 }
  0x82   :  { %p17744_p5 = scmp.lt.s32.totalorder %s17742_s20, %s17738_s3 }
  0x84   :  { %p17745_p6 = por %p17744_p5, %p17743_p4 }
  0x86   :  { %p17746_p7 = pnand %p17745_p6, %p17739_p3 }
  0x88   :  { %17749 = shalt.err (!%p17746_p7)
}
  0x89   :  { %78 = dma.hbm_to_vmem [thread:$0]  %s18424_s5, 16, %s76_s6, [#allocation8]  }
  0x8a   :  { %s17750_s4 = scalar_lea.hbm %s18426_s7, 128 }
  0x8b   :  { %p17751_p8 = scmp.ne.s32.totalorder %s18426_s7, %s17750_s4  ;;  %p17754_p9 = scmp.lt.u32.totalorder %s17750_s4, %s18426_s7 }
  0x8d   :  { %p17756_p10 = pnand %p17754_p9, %p17751_p8 }
  0x8f   :  { %17759 = shalt.err (!%p17756_p10)
}
  0x90   :  { %s17760_s18 = scalar_lea.vmem %s98_s22, 128  ;;  %p17765_p12 = scmp.lt.s32.totalorder %s98_s22, %s98_s22 }
  0x91   :  { %p17761_p11 = scmp.ne.s32.totalorder %s98_s22, %s17760_s18  ;;  %p17766_p13 = scmp.lt.s32.totalorder %s17760_s18, %s17760_s18 }
  0x93   :  { %p17767_p0 = por %p17766_p13, %p17765_p12 }
  0x95   :  { %p17768_p1 = pnand %p17767_p0, %p17761_p11 }
  0x97   :  { %17771 = shalt.err (!%p17768_p1)
}
  0x98   :  { %100 = dma.hbm_to_vmem [thread:$0]  %s18426_s7, 128, %s98_s22, [#allocation11]  }
  0x99   :  { %s17843_s21 = smov [#allocation15]   ;;  %s17844_s16 = smov [#allocation18]  }
  0x9a   :  { %s119_s6 = sshll.u32 %s17843_s21, 4  ;;  %s141_s23 = sshll.u32 %s17844_s16, 4  ;;  %s120_s6 = int_to_ptr.vmem [resolvable:$true] %s119_s6  ;;  %s142_s23 = int_to_ptr.vmem [resolvable:$true] %s141_s23 }
  0x9b   :  { %s17772_s10 = scalar_lea.hbm %s18428_s9, 256 }
  0x9c   :  { %p17773_p2 = scmp.ne.s32.totalorder %s18428_s9, %s17772_s10  ;;  %p17776_p3 = scmp.lt.u32.totalorder %s17772_s10, %s18428_s9 }
  0x9e   :  { %p17778_p4 = pnand %p17776_p3, %p17773_p2 }
  0xa0   :  { %17781 = shalt.err (!%p17778_p4)
}
  0xa1   :  { %s17782_s7 = scalar_lea.vmem %s120_s6, 256  ;;  %p17787_p6 = scmp.lt.s32.totalorder %s120_s6, %s120_s6 }
  0xa2   :  { %p17783_p5 = scmp.ne.s32.totalorder %s120_s6, %s17782_s7  ;;  %p17788_p7 = scmp.lt.s32.totalorder %s17782_s7, %s17782_s7 }
  0xa4   :  { %p17789_p8 = por %p17788_p7, %p17787_p6 }
  0xa6   :  { %p17790_p9 = pnand %p17789_p8, %p17783_p5 }
  0xa8   :  { %17793 = shalt.err (!%p17790_p9)
}
  0xa9   :  { %122 = dma.hbm_to_vmem [thread:$0]  %s18428_s9, 256, %s120_s6, [#allocation14]  }
  0xaa   :  { %s17794_s15 = scalar_lea.hbm %s18430_s11, 96 }
  0xab   :  { %p17795_p10 = scmp.ne.s32.totalorder %s18430_s11, %s17794_s15  ;;  %p17798_p11 = scmp.lt.u32.totalorder %s17794_s15, %s18430_s11 }
  0xad   :  { %p17800_p12 = pnand %p17798_p11, %p17795_p10 }
  0xaf   :  { %17803 = shalt.err (!%p17800_p12)
}
  0xb0   :  { %s17804_s0 = scalar_lea.vmem %s142_s23, 96  ;;  %p17809_p0 = scmp.lt.s32.totalorder %s142_s23, %s142_s23 }
  0xb1   :  { %p17805_p13 = scmp.ne.s32.totalorder %s142_s23, %s17804_s0  ;;  %p17810_p1 = scmp.lt.s32.totalorder %s17804_s0, %s17804_s0 }
  0xb3   :  { %p17811_p2 = por %p17810_p1, %p17809_p0 }
  0xb5   :  { %p17812_p3 = pnand %p17811_p2, %p17805_p13 }
  0xb7   :  { %17815 = shalt.err (!%p17812_p3)
}
  0xb8   :  { %144 = dma.hbm_to_vmem [thread:$0]  %s18430_s11, 96, %s142_s23, [#allocation17]  }
  0xb9   :  { %17816 = dma.done.wait [#allocation3], 64  }
  0xba   :  { %17817 = vsyncadd [#allocation3], 4294967232 }
  0xbb   :  { %17818 = dma.done.wait [#allocation5], 320  }
  0xbc   :  { %17819 = vsyncadd [#allocation5], 4294966976 }
  0xbd   :  { %17820 = dma.done.wait [#allocation8], 80  }
  0xbe   :  { %17821 = vsyncadd [#allocation8], 4294967216 }
  0xbf   :  { %17822 = dma.done.wait [#allocation11], 16512  }
  0xc0   :  { %17823 = vsyncadd [#allocation11], 4294950784 }
  0xc1   :  { %17824 = dma.done.wait [#allocation14], 131328  }
  0xc2   :  { %17825 = vsyncadd [#allocation14], 4294835968 }
  0xc3   :  { %17826 = dma.done.wait [#allocation17], 98400  }
  0xc4   :  { %17827 = vsyncadd [#allocation17], 4294868896  ;;  %v17845_v0 = vmov 0.0|0.0   ;;  %v17846_v1 = vmov 0.0   ;;  %vm17847_vm0 = vmmov 0   ;;  %vm187_vm1 = vcmask 1043456  }
  0xc5   :  { %16017 = vmatprep.subr.bf16.mxu1 %v17845_v0  ;;  %16005 = vmatprep.subr.mxu0 %v17846_v1  ;;  %vm183_vm2 = vcmask 31744   ;;  %v179_v2 = vld [vmem:[#allocation6] sm:$0xff]  ;;  %v180_v3 = vld [vmem:[#allocation6 + $0x8] sm:$0xff]  ;;  %v182_v4 = vld [vmem:[#allocation7] sm:$0xf]  ;;  %vm261_vm3 = vcmask 130048  }
  0xc6   :  { %16007 = vmatprep.mubr.msk.f32.mxu0 %vm17847_vm0, %v17846_v1  ;;  %16014 = vmatprep.mubr.msk.f32.mxu1 %vm17847_vm0, %v17846_v1  ;;  %v16018_v5 = vpack.c.bf16 %v180_v3, %v179_v2  ;;  %v181_v6 = vld [vmem:[#allocation4] sm:$0xf]  ;;  %v178_v7 = vld [vmem:[#allocation2] sm:$0xf]  ;;  %v347_v10 = vld [vmem:[#allocation10 + $0x18] sm:$0xff]  ;;  %vm14171_vm4 = vcmask 125952  }
  0xc7   :  { %16006 = vmatpush3.msk.msra.mxu0 %vm187_vm1, %v182_v4  ;;  %v345_v8 = vld [vmem:[#allocation10 + $0x8] sm:$0xff]  ;;  %v355_v11 = vld [vmem:[#allocation10 + $0x58] sm:$0xff]  ;;  %v344_v14 = vld [vmem:[#allocation10] sm:$0xff]  ;;  %vm14181_vm6 = vcmask 11264  }
  0xc8   :  { %16008 = vmatmul.mubr.msk.f32.vlgmr.msra.gmra.mrb[0].mxu0 %vm183_vm2, %v181_v6  ;;  %v353_v9 = vld [vmem:[#allocation10 + $0x48] sm:$0xff]  ;;  %16019 = vmatpush3.bf16.msra.mxu1 %v16018_v5  ;;  %v16052_v13 = vpack.c.bf16 %v355_v11, %v347_v10  ;;  %v352_v15 = vld [vmem:[#allocation10 + $0x40] sm:$0xff]  ;;  %v346_v16 = vld [vmem:[#allocation10 + $0x10] sm:$0xff] }
  0xc9   :  { %v16020_v12 = vpack.c.bf16 %v353_v9, %v345_v8  ;;  %578 = vmatprep.mubr.f32.mxu0 %v17846_v1  ;;  %v16022_v17 = vpack.c.bf16 %v352_v15, %v344_v14  ;;  %v354_v18 = vld [vmem:[#allocation10 + $0x50] sm:$0xff]  ;;  %v361_v19 = vld [vmem:[#allocation10 + $0x88] sm:$0xff]  ;;  %v363_v23 = vld [vmem:[#allocation10 + $0x98] sm:$0xff] }
  0xca   :  { %v369_v20 = vld [vmem:[#allocation10 + $0xc8] sm:$0xff]  ;;  %16053 = vmatprep.subr.bf16.mxu1 %v16052_v13  ;;  %v16054_v21 = vpack.c.bf16 %v354_v18, %v346_v16  ;;  %v371_v24 = vld [vmem:[#allocation10 + $0xd8] sm:$0xff]  ;;  %v360_v25 = vld [vmem:[#allocation10 + $0x80] sm:$0xff] }
  0xcb   :  { %16021 = vmatprep.subr.bf16.mxu0 %v16020_v12  ;;  %v16024_v22 = vpack.c.bf16 %v369_v20, %v361_v19  ;;  %16015 = vmatmul.mubr.msk.f32.vlgmr.msra.gmra.mrb[0].mxu1 %vm261_vm3, %v178_v7  ;;  %v16056_v26 = vpack.c.bf16 %v371_v24, %v363_v23  ;;  %v368_v27 = vld [vmem:[#allocation10 + $0xc0] sm:$0xff]  ;;  %v362_v28 = vld [vmem:[#allocation10 + $0x90] sm:$0xff]  ;;  %v377_v32 = vld [vmem:[#allocation10 + $0x108] sm:$0xff] }
  0xcc   :  { %16023 = vmatpush1.bf16.msra.mxu0 %v16022_v17  ;;  %v370_v29 = vld [vmem:[#allocation10 + $0xd0] sm:$0xff]  ;;  %16055 = vmatpush1.bf16.msra.mxu1 %v16054_v21  ;;  %v16026_v30 = vpack.c.bf16 %v368_v27, %v360_v25  ;;  %v385_v33 = vld [vmem:[#allocation10 + $0x148] sm:$0xff]  ;;  %v379_v34 = vld [vmem:[#allocation10 + $0x118] sm:$0xff] }
  0xcd   :  { %16025 = vmatprep.subr.bf16.mxu0 %v16024_v22  ;;  %v16058_v31 = vpack.c.bf16 %v370_v29, %v362_v28  ;;  %16057 = vmatprep.subr.bf16.mxu1 %v16056_v26  ;;  %v16028_v35 = vpack.c.bf16 %v385_v33, %v377_v32  ;;  %v387_v36 = vld [vmem:[#allocation10 + $0x158] sm:$0xff]  ;;  %v376_v37 = vld [vmem:[#allocation10 + $0x100] sm:$0xff]  ;;  %v378_v40 = vld [vmem:[#allocation10 + $0x110] sm:$0xff] }
  0xce   :  { %v384_v38 = vld [vmem:[#allocation10 + $0x140] sm:$0xff]  ;;  %649 = vmatprep.mubr.f32.mxu1 %v17846_v1  ;;  %v16060_v39 = vpack.c.bf16 %v387_v36, %v379_v34  ;;  %v386_v41 = vld [vmem:[#allocation10 + $0x150] sm:$0xff]  ;;  %v393_v42 = vld [vmem:[#allocation10 + $0x188] sm:$0xff] }
  0xcf   :  { %v16030_v43 = vpack.c.bf16 %v384_v38, %v376_v37  ;;  %v401_v44 = vld [vmem:[#allocation10 + $0x1c8] sm:$0xff]  ;;  %v395_v45 = vld [vmem:[#allocation10 + $0x198] sm:$0xff]  ;;  %v16062_v47 = vpack.c.bf16 %v386_v41, %v378_v40  ;;  %v392_v49 = vld [vmem:[#allocation10 + $0x180] sm:$0xff] }
  0xd0   :  { %16027 = vmatpush1.bf16.msra.mxu0 %v16026_v30  ;;  %v403_v46 = vld [vmem:[#allocation10 + $0x1d8] sm:$0xff]  ;;  %16059 = vmatpush1.bf16.msra.mxu1 %v16058_v31  ;;  %v16032_v48 = vpack.c.bf16 %v401_v44, %v393_v42  ;;  %v400_v50 = vld [vmem:[#allocation10 + $0x1c0] sm:$0xff]  ;;  %v394_v51 = vld [vmem:[#allocation10 + $0x190] sm:$0xff] }
  0xd1   :  { %16029 = vmatprep.subr.bf16.mxu0 %v16028_v35  ;;  %16061 = vmatprep.subr.bf16.mxu1 %v16060_v39  ;;  %v16064_v52 = vpack.c.bf16 %v403_v46, %v395_v45  ;;  %v402_v53 = vld [vmem:[#allocation10 + $0x1d0] sm:$0xff]  ;;  %v409_v54 = vld [vmem:[#allocation10 + $0x208] sm:$0xff]  ;;  %v411_v56 = vld [vmem:[#allocation10 + $0x218] sm:$0xff]  ;;  %v16034_v58 = vpack.c.bf16 %v400_v50, %v392_v49 }
  0xd2   :  { %v417_v55 = vld [vmem:[#allocation10 + $0x248] sm:$0xff]  ;;  %v419_v57 = vld [vmem:[#allocation10 + $0x258] sm:$0xff]  ;;  %v408_v59 = vld [vmem:[#allocation10 + $0x200] sm:$0xff]  ;;  %v16066_v60 = vpack.c.bf16 %v402_v53, %v394_v51 }
  0xd3   :  { %v16036_v61 = vpack.c.bf16 %v417_v55, %v409_v54  ;;  %v416_v62 = vld [vmem:[#allocation10 + $0x240] sm:$0xff]  ;;  %v410_v63 = vld [vmem:[#allocation10 + $0x210] sm:$0xff]  ;;  %v16068_v2 = vpack.c.bf16 %v419_v57, %v411_v56  ;;  %v425_v3 = vld [vmem:[#allocation10 + $0x288] sm:$0xff] }
  0xd4   :  { %16031 = vmatpush1.bf16.msra.mxu0 %v16030_v43  ;;  %16063 = vmatpush1.bf16.msra.mxu1 %v16062_v47  ;;  %v418_v0 = vld [vmem:[#allocation10 + $0x250] sm:$0xff]  ;;  %v433_v4 = vld [vmem:[#allocation10 + $0x2c8] sm:$0xff]  ;;  %v427_v5 = vld [vmem:[#allocation10 + $0x298] sm:$0xff]  ;;  %v16038_v9 = vpack.c.bf16 %v416_v62, %v408_v59 }
  0xd5   :  { %16033 = vmatprep.subr.bf16.mxu0 %v16032_v48  ;;  %16065 = vmatprep.subr.bf16.mxu1 %v16064_v52  ;;  %v435_v6 = vld [vmem:[#allocation10 + $0x2d8] sm:$0xff]  ;;  %v424_v7 = vld [vmem:[#allocation10 + $0x280] sm:$0xff]  ;;  %v426_v10 = vld [vmem:[#allocation10 + $0x290] sm:$0xff]  ;;  %v16070_v14 = vpack.c.bf16 %v418_v0, %v410_v63  ;;  %v16040_v15 = vpack.c.bf16 %v433_v4, %v425_v3 }
  0xd6   :  { %v432_v8 = vld [vmem:[#allocation10 + $0x2c0] sm:$0xff]  ;;  %v434_v11 = vld [vmem:[#allocation10 + $0x2d0] sm:$0xff]  ;;  %v441_v12 = vld [vmem:[#allocation10 + $0x308] sm:$0xff]  ;;  %v16072_v18 = vpack.c.bf16 %v435_v6, %v427_v5 }
  0xd7   :  { %v449_v13 = vld [vmem:[#allocation10 + $0x348] sm:$0xff]  ;;  %v443_v16 = vld [vmem:[#allocation10 + $0x318] sm:$0xff]  ;;  %v16042_v19 = vpack.c.bf16 %v432_v8, %v424_v7  ;;  %v16074_v20 = vpack.c.bf16 %v434_v11, %v426_v10  ;;  %v440_v23 = vld [vmem:[#allocation10 + $0x300] sm:$0xff] }
  0xd8   :  { %16035 = vmatpush1.bf16.msra.mxu0 %v16034_v58  ;;  %16067 = vmatpush1.bf16.msra.mxu1 %v16066_v60  ;;  %v451_v17 = vld [vmem:[#allocation10 + $0x358] sm:$0xff]  ;;  %v16044_v21 = vpack.c.bf16 %v449_v13, %v441_v12  ;;  %v448_v24 = vld [vmem:[#allocation10 + $0x340] sm:$0xff]  ;;  %v442_v25 = vld [vmem:[#allocation10 + $0x310] sm:$0xff] }
  0xd9   :  { %16037 = vmatprep.subr.bf16.mxu0 %v16036_v61  ;;  %16069 = vmatprep.subr.bf16.mxu1 %v16068_v2  ;;  %v16076_v22 = vpack.c.bf16 %v451_v17, %v443_v16  ;;  %v16046_v26 = vpack.c.bf16 %v448_v24, %v440_v23  ;;  %v450_v27 = vld [vmem:[#allocation10 + $0x350] sm:$0xff]  ;;  %v457_v29 = vld [vmem:[#allocation10 + $0x388] sm:$0xff]  ;;  %v459_v31 = vld [vmem:[#allocation10 + $0x398] sm:$0xff] }
  0xda   :  { %v16078_v28 = vpack.c.bf16 %v450_v27, %v442_v25  ;;  %v465_v30 = vld [vmem:[#allocation10 + $0x3c8] sm:$0xff]  ;;  %v467_v33 = vld [vmem:[#allocation10 + $0x3d8] sm:$0xff]  ;;  %v456_v34 = vld [vmem:[#allocation10 + $0x380] sm:$0xff] }
  0xdb   :  { %v16048_v32 = vpack.c.bf16 %v465_v30, %v457_v29  ;;  %v464_v35 = vld [vmem:[#allocation10 + $0x3c0] sm:$0xff]  ;;  %v16080_v36 = vpack.c.bf16 %v467_v33, %v459_v31  ;;  %v458_v38 = vld [vmem:[#allocation10 + $0x390] sm:$0xff]  ;;  %v349_v41 = vld [vmem:[#allocation10 + $0x28] sm:$0xff] }
  0xdc   :  { %16039 = vmatpush1.bf16.msra.mxu0 %v16038_v9  ;;  %16071 = vmatpush1.bf16.msra.mxu1 %v16070_v14  ;;  %v16050_v37 = vpack.c.bf16 %v464_v35, %v456_v34  ;;  %v466_v39 = vld [vmem:[#allocation10 + $0x3d0] sm:$0xff]  ;;  %v357_v42 = vld [vmem:[#allocation10 + $0x68] sm:$0xff]  ;;  %v351_v43 = vld [vmem:[#allocation10 + $0x38] sm:$0xff] }
  0xdd   :  { %16041 = vmatprep.subr.bf16.mxu0 %v16040_v15  ;;  %16073 = vmatprep.subr.bf16.mxu1 %v16072_v18  ;;  %v16082_v40 = vpack.c.bf16 %v466_v39, %v458_v38  ;;  %v16084_v44 = vpack.c.bf16 %v357_v42, %v349_v41  ;;  %v359_v45 = vld [vmem:[#allocation10 + $0x78] sm:$0xff]  ;;  %v348_v50 = vld [vmem:[#allocation10 + $0x20] sm:$0xff]  ;;  %v350_v52 = vld [vmem:[#allocation10 + $0x30] sm:$0xff] }
  0xde   :  { %v16116_v46 = vpack.c.bf16 %v359_v45, %v351_v43  ;;  %v14200_v49 = vld [vmem:[#allocation9] ss:$0 sm:$0xff]  ;;  %v356_v51 = vld [vmem:[#allocation10 + $0x60] sm:$0xff]  ;;  %v358_v53 = vld [vmem:[#allocation10 + $0x70] sm:$0xff] }
  0xdf   :  { %v365_v55 = vld [vmem:[#allocation10 + $0xa8] sm:$0xff]  ;;  %v367_v57 = vld [vmem:[#allocation10 + $0xb8] sm:$0xff]  ;;  %v364_v62 = vld [vmem:[#allocation10 + $0xa0] sm:$0xff]  ;;  %v16086_v3 = vpack.c.bf16 %v356_v51, %v348_v50  ;;  %v16118_v4 = vpack.c.bf16 %v358_v53, %v350_v52 }
  0xe0   :  { %16043 = vmatpush1.bf16.msra.mxu0 %v16042_v19  ;;  %16075 = vmatpush1.bf16.msra.mxu1 %v16074_v20  ;;  %v373_v56 = vld [vmem:[#allocation10 + $0xe8] sm:$0xff]  ;;  %v375_v58 = vld [vmem:[#allocation10 + $0xf8] sm:$0xff]  ;;  %v372_v63 = vld [vmem:[#allocation10 + $0xe0] sm:$0xff] }
  0xe1   :  { %16045 = vmatprep.subr.bf16.mxu0 %v16044_v21  ;;  %16077 = vmatprep.subr.bf16.mxu1 %v16076_v22  ;;  %v366_v0 = vld [vmem:[#allocation10 + $0xb0] sm:$0xff]  ;;  %v381_v5 = vld [vmem:[#allocation10 + $0x128] sm:$0xff]  ;;  %v383_v7 = vld [vmem:[#allocation10 + $0x138] sm:$0xff]  ;;  %v16088_v10 = vpack.c.bf16 %v373_v56, %v365_v55  ;;  %v16120_v11 = vpack.c.bf16 %v375_v58, %v367_v57  ;;  %v16090_v16 = vpack.c.bf16 %v372_v63, %v364_v62 }
  0xe2   :  { %v374_v2 = vld [vmem:[#allocation10 + $0xf0] sm:$0xff]  ;;  %v389_v6 = vld [vmem:[#allocation10 + $0x168] sm:$0xff]  ;;  %v391_v8 = vld [vmem:[#allocation10 + $0x178] sm:$0xff] }
  0xe3   :  { %v380_v12 = vld [vmem:[#allocation10 + $0x120] sm:$0xff]  ;;  %v382_v14 = vld [vmem:[#allocation10 + $0x130] sm:$0xff]  ;;  %v16122_v17 = vpack.c.bf16 %v374_v2, %v366_v0  ;;  %v397_v18 = vld [vmem:[#allocation10 + $0x1a8] sm:$0xff]  ;;  %v16092_v22 = vpack.c.bf16 %v389_v6, %v381_v5  ;;  %v16124_v23 = vpack.c.bf16 %v391_v8, %v383_v7 }
  0xe4   :  { %16047 = vmatpush1.bf16.msra.mxu0 %v16046_v26  ;;  %16079 = vmatpush1.bf16.msra.mxu1 %v16078_v28  ;;  %v388_v13 = vld [vmem:[#allocation10 + $0x160] sm:$0xff]  ;;  %v390_v15 = vld [vmem:[#allocation10 + $0x170] sm:$0xff]  ;;  %v405_v19 = vld [vmem:[#allocation10 + $0x1e8] sm:$0xff] }
  0xe5   :  { %16049 = vmatprep.subr.bf16.mxu0 %v16048_v32  ;;  %16081 = vmatprep.subr.bf16.mxu1 %v16080_v36  ;;  %v399_v20 = vld [vmem:[#allocation10 + $0x1b8] sm:$0xff]  ;;  %v396_v24 = vld [vmem:[#allocation10 + $0x1a0] sm:$0xff]  ;;  %v398_v26 = vld [vmem:[#allocation10 + $0x1b0] sm:$0xff]  ;;  %v16094_v28 = vpack.c.bf16 %v388_v13, %v380_v12  ;;  %v16126_v29 = vpack.c.bf16 %v390_v15, %v382_v14  ;;  %v16096_v34 = vpack.c.bf16 %v405_v19, %v397_v18 }
  0xe6   :  { %v407_v21 = vld [vmem:[#allocation10 + $0x1f8] sm:$0xff]  ;;  %v404_v25 = vld [vmem:[#allocation10 + $0x1e0] sm:$0xff]  ;;  %v406_v27 = vld [vmem:[#allocation10 + $0x1f0] sm:$0xff] }
  0xe7   :  { %v413_v30 = vld [vmem:[#allocation10 + $0x228] sm:$0xff]  ;;  %v415_v32 = vld [vmem:[#allocation10 + $0x238] sm:$0xff]  ;;  %v16128_v35 = vpack.c.bf16 %v407_v21, %v399_v20  ;;  %v412_v36 = vld [vmem:[#allocation10 + $0x220] sm:$0xff]  ;;  %v16098_v39 = vpack.c.bf16 %v404_v25, %v396_v24 }
  0xe8   :  { %16051 = vmatpush1.bf16.msra.mxu0 %v16050_v37  ;;  %16083 = vmatpush1.bf16.msra.mxu1 %v16082_v40  ;;  %v421_v31 = vld [vmem:[#allocation10 + $0x268] sm:$0xff]  ;;  %v423_v33 = vld [vmem:[#allocation10 + $0x278] sm:$0xff]  ;;  %v420_v37 = vld [vmem:[#allocation10 + $0x260] sm:$0xff]  ;;  %v16130_v40 = vpack.c.bf16 %v406_v27, %v398_v26 }
  0xe9   :  { %16085 = vmatprep.subr.bf16.mxu0 %v16084_v44  ;;  %16117 = vmatprep.subr.bf16.mxu1 %v16116_v46  ;;  %v414_v38 = vld [vmem:[#allocation10 + $0x230] sm:$0xff]  ;;  %v429_v41 = vld [vmem:[#allocation10 + $0x2a8] sm:$0xff]  ;;  %v431_v43 = vld [vmem:[#allocation10 + $0x2b8] sm:$0xff]  ;;  %v16100_v45 = vpack.c.bf16 %v421_v31, %v413_v30  ;;  %v16132_v46 = vpack.c.bf16 %v423_v33, %v415_v32  ;;  %v16102_v51 = vpack.c.bf16 %v420_v37, %v412_v36 }
  0xea   :  { %v437_v42 = vld [vmem:[#allocation10 + $0x2e8] sm:$0xff]  ;;  %v439_v44 = vld [vmem:[#allocation10 + $0x2f8] sm:$0xff]  ;;  %v438_v50 = vld [vmem:[#allocation10 + $0x2f0] sm:$0xff] }
  0xeb   :  { %v445_v53 = vld [vmem:[#allocation10 + $0x328] sm:$0xff]  ;;  %v447_v55 = vld [vmem:[#allocation10 + $0x338] sm:$0xff]  ;;  %v16104_v57 = vpack.c.bf16 %v437_v42, %v429_v41  ;;  %v16136_v58 = vpack.c.bf16 %v439_v44, %v431_v43  ;;  %v454_v62 = vld [vmem:[#allocation10 + $0x370] sm:$0xff] }
  0xec   :  { %v455_v56 = vld [vmem:[#allocation10 + $0x378] sm:$0xff]  ;;  %v461_v2 = vld [vmem:[#allocation10 + $0x3a8] sm:$0xff]  ;;  %v460_v8 = vld [vmem:[#allocation10 + $0x3a0] sm:$0xff] }
  0xed   :  { %v471_v5 = vld [vmem:[#allocation10 + $0x3f8] sm:$0xff]  ;;  %v16140_v7 = vpack.c.bf16 %v455_v56, %v447_v55  ;;  %v470_v12 = vld [vmem:[#allocation10 + $0x3f0] sm:$0xff]  ;;  %v814_v15 = vld [vmem:[#allocation13] sm:$0xff] }
  0xee   :  { %v824_v18 = vld [vmem:[#allocation13 + $0x50] sm:$0xff]  ;;  %v838_v24 = vld [vmem:[#allocation13 + $0xc0] sm:$0xff] }
  0xef   :  { %v832_v25 = vld [vmem:[#allocation13 + $0x90] sm:$0xff]  ;;  %v846_v31 = vld [vmem:[#allocation13 + $0x100] sm:$0xff] }
  0xf0   :  { %v840_v26 = vld [vmem:[#allocation13 + $0xd0] sm:$0xff]  ;;  %v854_v32 = vld [vmem:[#allocation13 + $0x140] sm:$0xff] }
  0xf1   :  { %v848_v33 = vld [vmem:[#allocation13 + $0x110] sm:$0xff]  ;;  %v14222_v36 = vcombine.high %v832_v25, %v840_v26  ;;  %v14234_v42 = vcombine.high %v846_v31, %v854_v32  ;;  %v14233_v44 = vcombine.low %v846_v31, %v854_v32  ;;  %v974_v31 = vld [vmem:[#allocation13 + $0x500] sm:$0xff] }
  0xf2   :  { %v872_v41 = vld [vmem:[#allocation13 + $0x1d0] sm:$0xff]  ;;  %v982_v32 = vld [vmem:[#allocation13 + $0x540] sm:$0xff] }
  0xf3   :  { %v896_v55 = vld [vmem:[#allocation13 + $0x290] sm:$0xff] }
  0xf4   :  { %v904_v56 = vld [vmem:[#allocation13 + $0x2d0] sm:$0xff] }
 0x19b   :  { %v257_v47 = vpop.f32.mrb[0].mxu0 }
 0x19c   :  { %v16009_v48 = vpop.f32.mrb[1].mxu0 }
 0x19d   :  { %v436_v48 = vld [vmem:[#allocation10 + $0x2e0] sm:$0xff] }
 0x19e   :  { %v331_v54 = vpop.f32.mrb[0].mxu1 }
 0x19f   :  { %v332_v59 = vadd.f32 %v331_v54, %v257_v47  ;;  %v16016_v60 = vpop.f32.mrb[1].mxu1  ;;  %v428_v47 = vld [vmem:[#allocation10 + $0x2a0] sm:$0xff]  ;;  %v453_v54 = vld [vmem:[#allocation10 + $0x368] sm:$0xff] }
 0x1a0   :  { %v452_v60 = vld [vmem:[#allocation10 + $0x360] sm:$0xff]  ;;  %v16106_v63 = vpack.c.bf16 %v436_v48, %v428_v47  ;;  %v16108_v6 = vpack.c.bf16 %v453_v54, %v445_v53  ;;  %v886_v47 = vld [vmem:[#allocation13 + $0x240] sm:$0xff]  ;;  %v880_v48 = vld [vmem:[#allocation13 + $0x210] sm:$0xff] }
 0x1a1   :  { %v342_v61 = vadd.f32 %v14200_v49, %v332_v59  ;;  %v430_v49 = vld [vmem:[#allocation10 + $0x2b0] sm:$0xff]  ;;  %v444_v59 = vld [vmem:[#allocation10 + $0x320] sm:$0xff]  ;;  %v894_v53 = vld [vmem:[#allocation13 + $0x280] sm:$0xff] }
 0x1a2   :  { %v16138_v0 = vpack.c.bf16 %v438_v50, %v430_v49  ;;  %v16110_v13 = vpack.c.bf16 %v452_v60, %v444_v59  ;;  %v902_v54 = vld [vmem:[#allocation13 + $0x2c0] sm:$0xff] }
 0x1a3   :  { %v18057_v9 = vmax.f32 %v342_v61, 0.0  ;;  %v446_v61 = vld [vmem:[#allocation10 + $0x330] sm:$0xff] }
 0x1a4   :  { %v16142_v14 = vpack.c.bf16 %v454_v62, %v446_v61  ;;  %v910_v61 = vld [vmem:[#allocation13 + $0x300] sm:$0xff] }
 0x1a5   :  { %579 = vmatmul.mubr.f32.vlgmr.msra.gmra.mrb[2].mxu0 %v18057_v9  ;;  %650 = vmatmul.mubr.f32.vlgmr.msra.gmra.mrb[2].mxu1 %v18057_v9  ;;  %v918_v62 = vld [vmem:[#allocation13 + $0x340] sm:$0xff] }
 0x1a6   :  { %16087 = vmatpush1.bf16.msra.mxu0 %v16086_v3  ;;  %16119 = vmatpush1.bf16.msra.mxu1 %v16118_v4  ;;  %v469_v3 = vld [vmem:[#allocation10 + $0x3e8] sm:$0xff]  ;;  %v463_v4 = vld [vmem:[#allocation10 + $0x3b8] sm:$0xff] }
 0x1a7   :  { %16089 = vmatprep.subr.bf16.mxu0 %v16088_v10  ;;  %16121 = vmatprep.subr.bf16.mxu1 %v16120_v11  ;;  %v468_v10 = vld [vmem:[#allocation10 + $0x3e0] sm:$0xff]  ;;  %v462_v11 = vld [vmem:[#allocation10 + $0x3b0] sm:$0xff]  ;;  %v16112_v19 = vpack.c.bf16 %v469_v3, %v461_v2  ;;  %v16144_v20 = vpack.c.bf16 %v471_v5, %v463_v4  ;;  %v14282_v2 = vcombine.high %v894_v53, %v902_v54 }
 0x1a8   :  { %720 = vmatprep.mubr.f32.mxu0 %v17846_v1  ;;  %791 = vmatprep.mubr.f32.mxu1 %v17846_v1  ;;  %v422_v1 = vld [vmem:[#allocation10 + $0x270] sm:$0xff]  ;;  %v16114_v21 = vpack.c.bf16 %v468_v10, %v460_v8  ;;  %v14286_v3 = vcombine.high %v896_v55, %v904_v56  ;;  %v14281_v4 = vcombine.low %v894_v53, %v902_v54  ;;  %v928_v8 = vld [vmem:[#allocation13 + $0x390] sm:$0xff]  ;;  %v1022_v53 = vld [vmem:[#allocation13 + $0x680] sm:$0xff] }
 0x1a9   :  { %v16134_v52 = vpack.c.bf16 %v422_v1, %v414_v38  ;;  %v14221_v38 = vcombine.low %v832_v25, %v840_v26  ;;  %v862_v1 = vld [vmem:[#allocation13 + $0x180] sm:$0xff]  ;;  %v14285_v5 = vcombine.low %v896_v55, %v904_v56  ;;  %v936_v10 = vld [vmem:[#allocation13 + $0x3d0] sm:$0xff] }
 0x1aa   :  { %16091 = vmatpush1.bf16.msra.mxu0 %v16090_v16  ;;  %16123 = vmatpush1.bf16.msra.mxu1 %v16122_v17  ;;  %v822_v16 = vld [vmem:[#allocation13 + $0x40] sm:$0xff]  ;;  %v816_v17 = vld [vmem:[#allocation13 + $0x10] sm:$0xff] }
 0x1ab   :  { %16093 = vmatprep.subr.bf16.mxu0 %v16092_v22  ;;  %16125 = vmatprep.subr.bf16.mxu1 %v16124_v23  ;;  %v16146_v22 = vpack.c.bf16 %v470_v12, %v462_v11  ;;  %v830_v23 = vld [vmem:[#allocation13 + $0x80] sm:$0xff]  ;;  %v14202_v27 = vcombine.high %v814_v15, %v822_v16  ;;  %v14205_v30 = vcombine.low %v816_v17, %v824_v18  ;;  %v960_v25 = vld [vmem:[#allocation13 + $0x490] sm:$0xff] }
 0x1ac   :  { %v14217_v37 = vcombine.low %v830_v23, %v838_v24  ;;  %v14298_v11 = vcombine.high %v910_v61, %v918_v62  ;;  %v968_v26 = vld [vmem:[#allocation13 + $0x4d0] sm:$0xff]  ;;  %v1030_v54 = vld [vmem:[#allocation13 + $0x6c0] sm:$0xff] }
 0x1ad   :  { %v1024_v55 = vld [vmem:[#allocation13 + $0x690] sm:$0xff] }
 0x1ae   :  { %16095 = vmatpush1.bf16.msra.mxu0 %v16094_v28  ;;  %16127 = vmatpush1.bf16.msra.mxu1 %v16126_v29  ;;  %v14206_v28 = vcombine.high %v816_v17, %v824_v18  ;;  %v14201_v29 = vcombine.low %v814_v15, %v822_v16  ;;  %v942_v15 = vld [vmem:[#allocation13 + $0x400] sm:$0xff]  ;;  %v944_v17 = vld [vmem:[#allocation13 + $0x410] sm:$0xff] }
 0x1af   :  { %16097 = vmatprep.subr.bf16.mxu0 %v16096_v34  ;;  %16129 = vmatprep.subr.bf16.mxu1 %v16128_v35  ;;  %v856_v34 = vld [vmem:[#allocation13 + $0x150] sm:$0xff]  ;;  %v14218_v35 = vcombine.high %v830_v23, %v838_v24  ;;  %v950_v16 = vld [vmem:[#allocation13 + $0x440] sm:$0xff] }
 0x1b0   :  { %v14238_v43 = vcombine.high %v848_v33, %v856_v34  ;;  %v952_v18 = vld [vmem:[#allocation13 + $0x450] sm:$0xff]  ;;  %v958_v23 = vld [vmem:[#allocation13 + $0x480] sm:$0xff] }
 0x1b1   :  { %v966_v24 = vld [vmem:[#allocation13 + $0x4c0] sm:$0xff]  ;;  %v1032_v56 = vld [vmem:[#allocation13 + $0x6d0] sm:$0xff] }
 0x1b2   :  { %16099 = vmatpush1.bf16.msra.mxu0 %v16098_v39  ;;  %16131 = vmatpush1.bf16.msra.mxu1 %v16130_v40  ;;  %v870_v39 = vld [vmem:[#allocation13 + $0x1c0] sm:$0xff]  ;;  %v864_v40 = vld [vmem:[#allocation13 + $0x190] sm:$0xff] }
 0x1b3   :  { %16101 = vmatprep.subr.bf16.mxu0 %v16100_v45  ;;  %16133 = vmatprep.subr.bf16.mxu1 %v16132_v46  ;;  %v14237_v45 = vcombine.low %v848_v33, %v856_v34  ;;  %v878_v46 = vld [vmem:[#allocation13 + $0x200] sm:$0xff]  ;;  %v14250_v49 = vcombine.high %v862_v1, %v870_v39  ;;  %v14254_v50 = vcombine.high %v864_v40, %v872_v41  ;;  %v976_v33 = vld [vmem:[#allocation13 + $0x510] sm:$0xff] }
 0x1b4   :  { %v14265_v59 = vcombine.low %v878_v46, %v886_v47  ;;  %v984_v34 = vld [vmem:[#allocation13 + $0x550] sm:$0xff] }
 0x1b6   :  { %16103 = vmatpush1.bf16.msra.mxu0 %v16102_v51  ;;  %16135 = vmatpush1.bf16.msra.mxu1 %v16134_v52  ;;  %v14249_v51 = vcombine.low %v862_v1, %v870_v39  ;;  %v14253_v52 = vcombine.low %v864_v40, %v872_v41  ;;  %v990_v1 = vld [vmem:[#allocation13 + $0x580] sm:$0xff]  ;;  %v992_v40 = vld [vmem:[#allocation13 + $0x590] sm:$0xff] }
 0x1b7   :  { %16105 = vmatprep.subr.bf16.mxu0 %v16104_v57  ;;  %16137 = vmatprep.subr.bf16.mxu1 %v16136_v58  ;;  %v14266_v57 = vcombine.high %v878_v46, %v886_v47  ;;  %v998_v39 = vld [vmem:[#allocation13 + $0x5c0] sm:$0xff]  ;;  %v1000_v41 = vld [vmem:[#allocation13 + $0x5d0] sm:$0xff] }
 0x1b8   :  { %v1006_v46 = vld [vmem:[#allocation13 + $0x600] sm:$0xff] }
 0x1b9   :  { %v1014_v47 = vld [vmem:[#allocation13 + $0x640] sm:$0xff] }
 0x1ba   :  { %16107 = vmatpush1.bf16.msra.mxu0 %v16106_v63  ;;  %16139 = vmatpush1.bf16.msra.mxu1 %v16138_v0  ;;  %v912_v63 = vld [vmem:[#allocation13 + $0x310] sm:$0xff] }
 0x1bb   :  { %16109 = vmatprep.subr.bf16.mxu0 %v16108_v6  ;;  %16141 = vmatprep.subr.bf16.mxu1 %v16140_v7  ;;  %v920_v0 = vld [vmem:[#allocation13 + $0x350] sm:$0xff]  ;;  %v926_v6 = vld [vmem:[#allocation13 + $0x380] sm:$0xff] }
 0x1bc   :  { %v934_v7 = vld [vmem:[#allocation13 + $0x3c0] sm:$0xff]  ;;  %v14302_v12 = vcombine.high %v912_v63, %v920_v0 }
 0x1be   :  { %16111 = vmatpush1.bf16.msra.mxu0 %v16110_v13  ;;  %16143 = vmatpush1.bf16.msra.mxu1 %v16142_v14  ;;  %v14297_v13 = vcombine.low %v910_v61, %v918_v62  ;;  %v14301_v14 = vcombine.low %v912_v63, %v920_v0  ;;  %v14410_v61 = vcombine.high %v1022_v53, %v1030_v54 }
 0x1bf   :  { %16113 = vmatprep.subr.bf16.mxu0 %v16112_v19  ;;  %16145 = vmatprep.subr.bf16.mxu1 %v16144_v20  ;;  %v14314_v19 = vcombine.high %v926_v6, %v934_v7  ;;  %v14318_v20 = vcombine.high %v928_v8, %v936_v10  ;;  %v14414_v62 = vcombine.high %v1024_v55, %v1032_v56 }
 0x1c0   :  { %v14409_v63 = vcombine.low %v1022_v53, %v1030_v54  ;;  %v14413_v0 = vcombine.low %v1024_v55, %v1032_v56  ;;  %v1110_v53 = vld [vmem:[#allocation13 + $0x940] sm:$0xff]  ;;  %v1104_v54 = vld [vmem:[#allocation13 + $0x910] sm:$0xff] }
 0x1c1   :  { %v1112_v55 = vld [vmem:[#allocation13 + $0x950] sm:$0xff] }
 0x1c2   :  { %16115 = vmatpush1.bf16.msra.mxu0 %v16114_v21  ;;  %16147 = vmatpush1.bf16.msra.mxu1 %v16146_v22  ;;  %v14313_v21 = vcombine.low %v926_v6, %v934_v7  ;;  %v14317_v22 = vcombine.low %v928_v8, %v936_v10  ;;  %v1048_v6 = vld [vmem:[#allocation13 + $0x750] sm:$0xff] }
 0x1c3   :  { %7042 = vmatprep.subr.bf16.mxu1 %v14202_v27  ;;  %7370 = vmatprep.subr.bf16.mxu0 %v14206_v28  ;;  %v14330_v27 = vcombine.high %v942_v15, %v950_v16  ;;  %v14334_v28 = vcombine.high %v944_v17, %v952_v18 }
 0x1c5   :  { %721 = vmatmul.mubr.f32.vlgmr.msra.gmra.mrb[4].mxu0 %v18057_v9  ;;  %792 = vmatmul.mubr.f32.vlgmr.msra.gmra.mrb[4].mxu1 %v18057_v9  ;;  %v888_v9 = vld [vmem:[#allocation13 + $0x250] sm:$0xff] }
 0x1c6   :  { %7043 = vmatpush1.bf16.msra.mxu1 %v14201_v29  ;;  %7371 = vmatpush1.bf16.msra.mxu0 %v14205_v30  ;;  %v14270_v58 = vcombine.high %v880_v48, %v888_v9  ;;  %v14269_v60 = vcombine.low %v880_v48, %v888_v9  ;;  %v14329_v29 = vcombine.low %v942_v15, %v950_v16  ;;  %v1008_v48 = vld [vmem:[#allocation13 + $0x610] sm:$0xff] }
 0x1c7   :  { %7044 = vmatprep.subr.bf16.mxu1 %v14218_v35  ;;  %7372 = vmatprep.subr.bf16.mxu0 %v14222_v36  ;;  %v14333_v30 = vcombine.low %v944_v17, %v952_v18  ;;  %v14346_v35 = vcombine.high %v958_v23, %v966_v24  ;;  %v14350_v36 = vcombine.high %v960_v25, %v968_v26  ;;  %v1016_v9 = vld [vmem:[#allocation13 + $0x650] sm:$0xff] }
 0x1c8   :  { %v1064_v15 = vld [vmem:[#allocation13 + $0x7d0] sm:$0xff] }
 0x1ca   :  { %7045 = vmatpush1.bf16.msra.mxu1 %v14217_v37  ;;  %7373 = vmatpush1.bf16.msra.mxu0 %v14221_v38  ;;  %v14345_v37 = vcombine.low %v958_v23, %v966_v24  ;;  %v14349_v38 = vcombine.low %v960_v25, %v968_v26  ;;  %v1080_v23 = vld [vmem:[#allocation13 + $0x850] sm:$0xff] }
 0x1cb   :  { %7046 = vmatprep.subr.bf16.mxu1 %v14234_v42  ;;  %7374 = vmatprep.subr.bf16.mxu0 %v14238_v43  ;;  %v14362_v42 = vcombine.high %v974_v31, %v982_v32  ;;  %v14366_v43 = vcombine.high %v976_v33, %v984_v34 }
 0x1ce   :  { %7047 = vmatpush1.bf16.msra.mxu1 %v14233_v44  ;;  %7375 = vmatpush1.bf16.msra.mxu0 %v14237_v45  ;;  %v14361_v44 = vcombine.low %v974_v31, %v982_v32  ;;  %v14365_v45 = vcombine.low %v976_v33, %v984_v34 }
 0x1cf   :  { %7048 = vmatprep.subr.bf16.mxu1 %v14250_v49  ;;  %7376 = vmatprep.subr.bf16.mxu0 %v14254_v50  ;;  %v14378_v49 = vcombine.high %v990_v1, %v998_v39  ;;  %v14382_v50 = vcombine.high %v992_v40, %v1000_v41 }
 0x1d2   :  { %7049 = vmatpush1.bf16.msra.mxu1 %v14249_v51  ;;  %7377 = vmatpush1.bf16.msra.mxu0 %v14253_v52  ;;  %v14377_v51 = vcombine.low %v990_v1, %v998_v39  ;;  %v14381_v52 = vcombine.low %v992_v40, %v1000_v41 }
 0x1d3   :  { %7050 = vmatprep.subr.bf16.mxu1 %v14266_v57  ;;  %7378 = vmatprep.subr.bf16.mxu0 %v14270_v58  ;;  %v14394_v57 = vcombine.high %v1006_v46, %v1014_v47  ;;  %v14398_v58 = vcombine.high %v1008_v48, %v1016_v9 }
 0x1d6   :  { %7051 = vmatpush1.bf16.msra.mxu1 %v14265_v59  ;;  %7379 = vmatpush1.bf16.msra.mxu0 %v14269_v60  ;;  %v14393_v59 = vcombine.low %v1006_v46, %v1014_v47  ;;  %v14397_v60 = vcombine.low %v1008_v48, %v1016_v9  ;;  %v1094_v46 = vld [vmem:[#allocation13 + $0x8c0] sm:$0xff]  ;;  %v1088_v47 = vld [vmem:[#allocation13 + $0x890] sm:$0xff] }
 0x1d7   :  { %7052 = vmatprep.subr.bf16.mxu1 %v14282_v2  ;;  %7380 = vmatprep.subr.bf16.mxu0 %v14286_v3  ;;  %v1038_v2 = vld [vmem:[#allocation13 + $0x700] sm:$0xff]  ;;  %v1096_v48 = vld [vmem:[#allocation13 + $0x8d0] sm:$0xff] }
 0x1d8   :  { %v1046_v3 = vld [vmem:[#allocation13 + $0x740] sm:$0xff] }
 0x1d9   :  { %v14425_v8 = vcombine.low %v1038_v2, %v1046_v3 }
 0x1da   :  { %7053 = vmatpush1.bf16.msra.mxu1 %v14281_v4  ;;  %7381 = vmatpush1.bf16.msra.mxu0 %v14285_v5  ;;  %v1040_v4 = vld [vmem:[#allocation13 + $0x710] sm:$0xff]  ;;  %v14426_v5 = vcombine.high %v1038_v2, %v1046_v3  ;;  %v14493_v3 = vcombine.low %v1104_v54, %v1112_v55 }
 0x1db   :  { %7054 = vmatprep.subr.bf16.mxu1 %v14298_v11  ;;  %7382 = vmatprep.subr.bf16.mxu0 %v14302_v12  ;;  %v14430_v7 = vcombine.high %v1040_v4, %v1048_v6  ;;  %v14429_v10 = vcombine.low %v1040_v4, %v1048_v6  ;;  %v1054_v11 = vld [vmem:[#allocation13 + $0x780] sm:$0xff] }
 0x1dc   :  { %v1062_v12 = vld [vmem:[#allocation13 + $0x7c0] sm:$0xff] }
 0x1dd   :  { %v14441_v17 = vcombine.low %v1054_v11, %v1062_v12  ;;  %v1134_v6 = vld [vmem:[#allocation13 + $0xa00] sm:$0xff] }
 0x1de   :  { %7055 = vmatpush1.bf16.msra.mxu1 %v14297_v13  ;;  %7383 = vmatpush1.bf16.msra.mxu0 %v14301_v14  ;;  %v1056_v13 = vld [vmem:[#allocation13 + $0x790] sm:$0xff]  ;;  %v14442_v14 = vcombine.high %v1054_v11, %v1062_v12 }
 0x1df   :  { %7056 = vmatprep.subr.bf16.mxu1 %v14314_v19  ;;  %7384 = vmatprep.subr.bf16.mxu0 %v14318_v20  ;;  %v14446_v16 = vcombine.high %v1056_v13, %v1064_v15  ;;  %v14445_v18 = vcombine.low %v1056_v13, %v1064_v15  ;;  %v1070_v19 = vld [vmem:[#allocation13 + $0x800] sm:$0xff] }
 0x1e0   :  { %v1078_v20 = vld [vmem:[#allocation13 + $0x840] sm:$0xff] }
 0x1e1   :  { %v14457_v24 = vcombine.low %v1070_v19, %v1078_v20  ;;  %v1150_v15 = vld [vmem:[#allocation13 + $0xa80] sm:$0xff] }
 0x1e2   :  { %7057 = vmatpush1.bf16.msra.mxu1 %v14313_v21  ;;  %7385 = vmatpush1.bf16.msra.mxu0 %v14317_v22  ;;  %v1072_v21 = vld [vmem:[#allocation13 + $0x810] sm:$0xff]  ;;  %v14458_v22 = vcombine.high %v1070_v19, %v1078_v20 }
 0x1e3   :  { %7058 = vmatprep.subr.bf16.mxu1 %v14330_v27  ;;  %7386 = vmatprep.subr.bf16.mxu0 %v14334_v28  ;;  %v14461_v25 = vcombine.low %v1072_v21, %v1080_v23  ;;  %v14462_v26 = vcombine.high %v1072_v21, %v1080_v23  ;;  %v474_v27 = vlaneseq  ;;  %v1166_v23 = vld [vmem:[#allocation13 + $0xb00] sm:$0xff] }
 0x1e5   :  { %v18066_v28 = vshrl.u32 %v474_v27, 7 }
 0x1e6   :  { %7059 = vmatpush1.bf16.msra.mxu1 %v14329_v29  ;;  %7387 = vmatpush1.bf16.msra.mxu0 %v14333_v30  ;;  %v18071_v30 = vld [vmem:[#allocation12] sm:$0xff] }
 0x1e7   :  { %7060 = vmatprep.subr.bf16.mxu1 %v14346_v35  ;;  %7388 = vmatprep.subr.bf16.mxu0 %v14350_v36  ;;  %v18069_v29 = vsub.s32 0, %v18066_v28  ;;  %v18074_v31 = vsub.s32 1, %v18066_v28  ;;  %v18077_v32 = vsub.s32 3, %v18066_v28 }
 0x1e9   :  { %v477_v33 = vrot.slane %v18071_v30, %v18069_v29  ;;  %v481_v34 = vrot.slane %v18071_v30, %v18074_v31  ;;  %v489_v35 = vrot.slane %v18071_v30, %v18077_v32 }
 0x1ea   :  { %7061 = vmatpush1.bf16.msra.mxu1 %v14345_v37  ;;  %7389 = vmatpush1.bf16.msra.mxu0 %v14349_v38 }
 0x1eb   :  { %7062 = vmatprep.subr.bf16.mxu1 %v14362_v42  ;;  %7390 = vmatprep.subr.bf16.mxu0 %v14366_v43 }
 0x1ee   :  { %7063 = vmatpush1.bf16.msra.mxu1 %v14361_v44  ;;  %7391 = vmatpush1.bf16.msra.mxu0 %v14365_v45  ;;  %v1086_v44 = vld [vmem:[#allocation13 + $0x880] sm:$0xff] }
 0x1ef   :  { %7064 = vmatprep.subr.bf16.mxu1 %v14378_v49  ;;  %7392 = vmatprep.subr.bf16.mxu0 %v14382_v50  ;;  %v1102_v50 = vld [vmem:[#allocation13 + $0x900] sm:$0xff] }
 0x1f0   :  { %v14489_v2 = vcombine.low %v1102_v50, %v1110_v53 }
 0x1f2   :  { %7065 = vmatpush1.bf16.msra.mxu1 %v14377_v51  ;;  %7393 = vmatpush1.bf16.msra.mxu0 %v14381_v52  ;;  %v14474_v51 = vcombine.high %v1086_v44, %v1094_v46  ;;  %v14478_v52 = vcombine.high %v1088_v47, %v1096_v48 }
 0x1f3   :  { %7066 = vmatprep.subr.bf16.mxu1 %v14394_v57  ;;  %7394 = vmatprep.subr.bf16.mxu0 %v14398_v58  ;;  %v14473_v57 = vcombine.low %v1086_v44, %v1094_v46  ;;  %v14477_v58 = vcombine.low %v1088_v47, %v1096_v48  ;;  %v1206_v48 = vld [vmem:[#allocation13 + $0xc40] sm:$0xff] }
 0x1f6   :  { %7067 = vmatpush1.bf16.msra.mxu1 %v14393_v59  ;;  %7395 = vmatpush1.bf16.msra.mxu0 %v14397_v60  ;;  %v14490_v59 = vcombine.high %v1102_v50, %v1110_v53  ;;  %v14494_v60 = vcombine.high %v1104_v54, %v1112_v55  ;;  %v1200_v50 = vld [vmem:[#allocation13 + $0xc10] sm:$0xff] }
 0x1f7   :  { %7068 = vmatprep.subr.bf16.mxu1 %v14410_v61  ;;  %7396 = vmatprep.subr.bf16.mxu0 %v14414_v62  ;;  %v1118_v61 = vld [vmem:[#allocation13 + $0x980] sm:$0xff] }
 0x1f8   :  { %v1126_v62 = vld [vmem:[#allocation13 + $0x9c0] sm:$0xff] }
 0x1f9   :  { %v14506_v4 = vcombine.high %v1118_v61, %v1126_v62  ;;  %v14505_v11 = vcombine.low %v1118_v61, %v1126_v62  ;;  %v1216_v61 = vld [vmem:[#allocation13 + $0xc90] sm:$0xff] }
 0x1fa   :  { %7069 = vmatpush1.bf16.msra.mxu1 %v14409_v63  ;;  %7397 = vmatpush1.bf16.msra.mxu0 %v14413_v0  ;;  %v1120_v63 = vld [vmem:[#allocation13 + $0x990] sm:$0xff] }
 0x1fb   :  { %7070 = vmatprep.subr.bf16.mxu1 %v14426_v5  ;;  %7398 = vmatprep.subr.bf16.mxu0 %v14430_v7  ;;  %v1128_v0 = vld [vmem:[#allocation13 + $0x9d0] sm:$0xff]  ;;  %v1142_v7 = vld [vmem:[#allocation13 + $0xa40] sm:$0xff] }
 0x1fc   :  { %v14510_v5 = vcombine.high %v1120_v63, %v1128_v0  ;;  %v14509_v12 = vcombine.low %v1120_v63, %v1128_v0  ;;  %v14522_v13 = vcombine.high %v1134_v6, %v1142_v7  ;;  %v14521_v19 = vcombine.low %v1134_v6, %v1142_v7  ;;  %v1224_v62 = vld [vmem:[#allocation13 + $0xcd0] sm:$0xff] }
 0x1fd   :  { %v1232_v6 = vld [vmem:[#allocation13 + $0xd10] sm:$0xff] }
 0x1fe   :  { %7071 = vmatpush1.bf16.msra.mxu1 %v14425_v8  ;;  %7399 = vmatpush1.bf16.msra.mxu0 %v14429_v10  ;;  %v1136_v8 = vld [vmem:[#allocation13 + $0xa10] sm:$0xff] }
 0x1ff   :  { %7072 = vmatprep.subr.bf16.mxu1 %v14442_v14  ;;  %7400 = vmatprep.subr.bf16.mxu0 %v14446_v16  ;;  %v1144_v10 = vld [vmem:[#allocation13 + $0xa50] sm:$0xff]  ;;  %v1158_v16 = vld [vmem:[#allocation13 + $0xac0] sm:$0xff] }
 0x200   :  { %v14526_v14 = vcombine.high %v1136_v8, %v1144_v10  ;;  %v14525_v20 = vcombine.low %v1136_v8, %v1144_v10  ;;  %v14538_v21 = vcombine.high %v1150_v15, %v1158_v16  ;;  %v1240_v7 = vld [vmem:[#allocation13 + $0xd50] sm:$0xff]  ;;  %v14605_v10 = vcombine.low %v1216_v61, %v1224_v62 }
 0x202   :  { %7073 = vmatpush1.bf16.msra.mxu1 %v14441_v17  ;;  %7401 = vmatpush1.bf16.msra.mxu0 %v14445_v18  ;;  %v1152_v17 = vld [vmem:[#allocation13 + $0xa90] sm:$0xff] }
 0x203   :  { %7083 = vmatprep.subr.bf16.mxu1 %v14458_v22  ;;  %7411 = vmatprep.subr.bf16.mxu0 %v14462_v26  ;;  %v1160_v18 = vld [vmem:[#allocation13 + $0xad0] sm:$0xff] }
 0x204   :  { %v14542_v22 = vcombine.high %v1152_v17, %v1160_v18  ;;  %v1176_v26 = vld [vmem:[#allocation13 + $0xb50] sm:$0xff] }
 0x278   :  { %v580_v36 = vpop.f32.mrb[2].mxu0  ;;  %v18085_v37 = vpop.f32.mrb[2].mxu1 }
 0x279   :  { %v581_v38 = vadd.f32 %v580_v36, %v477_v33  ;;  %v582_v1 = vpop.f32.mrb[3].mxu0  ;;  %v653_v39 = vpop.f32.mrb[3].mxu1  ;;  %v14537_v33 = vcombine.low %v1150_v15, %v1158_v16  ;;  %v1248_v15 = vld [vmem:[#allocation13 + $0xd90] sm:$0xff] }
 0x27a   :  { %v583_v40 = vadd.f32 %v582_v1, %v481_v34  ;;  %v654_v41 = vadd.f32 %v653_v39, %v489_v35  ;;  %v14541_v34 = vcombine.low %v1152_v17, %v1160_v18  ;;  %v1190_v1 = vld [vmem:[#allocation13 + $0xbc0] sm:$0xff]  ;;  %v1184_v39 = vld [vmem:[#allocation13 + $0xb90] sm:$0xff]  ;;  %v14621_v18 = vcombine.low %v1232_v6, %v1240_v7 }
 0x27b   :  { %v798_v42 = vmax.f32 %v581_v38, 0.0  ;;  %v1182_v38 = vld [vmem:[#allocation13 + $0xb80] sm:$0xff]  ;;  %v1256_v16 = vld [vmem:[#allocation13 + $0xdd0] sm:$0xff] }
 0x27c   :  { %v799_v43 = vmax.f32 %v583_v40, 0.0  ;;  %v801_v45 = vmax.f32 %v654_v41, 0.0  ;;  %v1192_v40 = vld [vmem:[#allocation13 + $0xbd0] sm:$0xff]  ;;  %v14569_v54 = vcombine.low %v1182_v38, %v1190_v1 }
 0x27d   :  { %v18089_v49 = vpack.c.bf16 %v798_v42, %v798_v42  ;;  %v14574_v44 = vcombine.high %v1184_v39, %v1192_v40  ;;  %v14573_v55 = vcombine.low %v1184_v39, %v1192_v40 }
 0x27e   :  { %v18087_v9 = vpack.c.bf16 %v799_v43, %v799_v43  ;;  %v18093_v56 = vpack.c.bf16 %v801_v45, %v801_v45  ;;  %v14570_v43 = vcombine.high %v1182_v38, %v1190_v1  ;;  %v1198_v45 = vld [vmem:[#allocation13 + $0xc00] sm:$0xff]  ;;  %v1280_v38 = vld [vmem:[#allocation13 + $0xe90] sm:$0xff] }
 0x27f   :  { %v14585_v63 = vcombine.low %v1198_v45, %v1206_v48  ;;  %v1288_v1 = vld [vmem:[#allocation13 + $0xed0] sm:$0xff] }
 0x280   :  { %7074 = vmatprep.mubr.bf16.mxu1 %v18087_v9  ;;  %7402 = vmatprep.mubr.bf16.mxu0 %v18087_v9 }
 0x281   :  { %7075 = vmatmul.mubr.bf16.vlgmr.msra.gmra.mrb[8].mxu1 %v18089_v49  ;;  %7403 = vmatmul.mubr.bf16.vlgmr.msra.gmra.mrb[8].mxu0 %v18089_v49 }
 0x282   :  { %7084 = vmatpush1.bf16.msra.mxu1 %v14457_v24  ;;  %7412 = vmatpush1.bf16.msra.mxu0 %v14461_v25  ;;  %v1174_v24 = vld [vmem:[#allocation13 + $0xb40] sm:$0xff]  ;;  %v1168_v25 = vld [vmem:[#allocation13 + $0xb10] sm:$0xff] }
 0x283   :  { %7115 = vmatprep.mubr.bf16.mxu1 %v18093_v56  ;;  %7443 = vmatprep.mubr.bf16.mxu0 %v18093_v56  ;;  %v14554_v35 = vcombine.high %v1166_v23, %v1174_v24  ;;  %v14558_v36 = vcombine.high %v1168_v25, %v1176_v26  ;;  %v14553_v41 = vcombine.low %v1166_v23, %v1174_v24  ;;  %v1264_v23 = vld [vmem:[#allocation13 + $0xe10] sm:$0xff] }
 0x284   :  { %7085 = vmatprep.subr.bf16.mxu1 %v14474_v51  ;;  %7413 = vmatprep.subr.bf16.mxu0 %v14478_v52  ;;  %v14557_v42 = vcombine.low %v1168_v25, %v1176_v26  ;;  %v1208_v51 = vld [vmem:[#allocation13 + $0xc50] sm:$0xff]  ;;  %v14637_v26 = vcombine.low %v1248_v15, %v1256_v16 }
 0x285   :  { %v14589_v0 = vcombine.low %v1200_v50, %v1208_v51  ;;  %v1272_v24 = vld [vmem:[#allocation13 + $0xe50] sm:$0xff] }
 0x286   :  { %7086 = vmatpush1.bf16.msra.mxu1 %v14473_v57  ;;  %7414 = vmatpush1.bf16.msra.mxu0 %v14477_v58  ;;  %v14586_v57 = vcombine.high %v1198_v45, %v1206_v48  ;;  %v14590_v58 = vcombine.high %v1200_v50, %v1208_v51  ;;  %v14653_v40 = vcombine.low %v1264_v23, %v1272_v24  ;;  %v18111_v45 = vsub.s32 5, %v18066_v28  ;;  %v1302_v48 = vld [vmem:[#allocation13 + $0xf40] sm:$0xff]  ;;  %v1296_v50 = vld [vmem:[#allocation13 + $0xf10] sm:$0xff] }
 0x287   :  { %7087 = vmatprep.subr.bf16.mxu1 %v14490_v59  ;;  %7415 = vmatprep.subr.bf16.mxu0 %v14494_v60  ;;  %v1214_v59 = vld [vmem:[#allocation13 + $0xc80] sm:$0xff]  ;;  %v1304_v51 = vld [vmem:[#allocation13 + $0xf50] sm:$0xff] }
 0x288   :  { %v1222_v60 = vld [vmem:[#allocation13 + $0xcc0] sm:$0xff] }
 0x289   :  { %v14601_v8 = vcombine.low %v1214_v59, %v1222_v60 }
 0x28a   :  { %7088 = vmatpush1.bf16.msra.mxu1 %v14489_v2  ;;  %7416 = vmatpush1.bf16.msra.mxu0 %v14493_v3  ;;  %v14602_v2 = vcombine.high %v1214_v59, %v1222_v60  ;;  %v14606_v3 = vcombine.high %v1216_v61, %v1224_v62  ;;  %v14686_v59 = vcombine.high %v1296_v50, %v1304_v51  ;;  %v1310_v60 = vld [vmem:[#allocation13 + $0xf80] sm:$0xff] }
 0x28b   :  { %7089 = vmatprep.subr.bf16.mxu1 %v14506_v4  ;;  %7417 = vmatprep.subr.bf16.mxu0 %v14510_v5  ;;  %v1230_v4 = vld [vmem:[#allocation13 + $0xd00] sm:$0xff]  ;;  %v497_v61 = vrot.slane %v18071_v30, %v18111_v45 }
 0x28c   :  { %v1238_v5 = vld [vmem:[#allocation13 + $0xd40] sm:$0xff] }
 0x28d   :  { %v14617_v17 = vcombine.low %v1230_v4, %v1238_v5  ;;  %v1318_v62 = vld [vmem:[#allocation13 + $0xfc0] sm:$0xff] }
 0x28e   :  { %7090 = vmatpush1.bf16.msra.mxu1 %v14505_v11  ;;  %7418 = vmatpush1.bf16.msra.mxu0 %v14509_v12  ;;  %v14618_v11 = vcombine.high %v1230_v4, %v1238_v5  ;;  %v14622_v12 = vcombine.high %v1232_v6, %v1240_v7  ;;  %v14698_v5 = vcombine.high %v1310_v60, %v1318_v62  ;;  %v1326_v7 = vld [vmem:[#allocation13 + $0x1000] sm:$0xff] }
 0x28f   :  { %7091 = vmatprep.subr.bf16.mxu1 %v14522_v13  ;;  %7419 = vmatprep.subr.bf16.mxu0 %v14526_v14  ;;  %v1246_v13 = vld [vmem:[#allocation13 + $0xd80] sm:$0xff] }
 0x290   :  { %v1254_v14 = vld [vmem:[#allocation13 + $0xdc0] sm:$0xff] }
 0x291   :  { %v14633_v25 = vcombine.low %v1246_v13, %v1254_v14 }
 0x292   :  { %7092 = vmatpush1.bf16.msra.mxu1 %v14521_v19  ;;  %7420 = vmatpush1.bf16.msra.mxu0 %v14525_v20  ;;  %v14634_v19 = vcombine.high %v1246_v13, %v1254_v14  ;;  %v14638_v20 = vcombine.high %v1248_v15, %v1256_v16  ;;  %v14697_v13 = vcombine.low %v1310_v60, %v1318_v62  ;;  %v1400_v60 = vld [vmem:[#allocation13 + $0x1250] sm:$0xff] }
 0x293   :  { %7093 = vmatprep.subr.bf16.mxu1 %v14538_v21  ;;  %7421 = vmatprep.subr.bf16.mxu0 %v14542_v22  ;;  %v1262_v21 = vld [vmem:[#allocation13 + $0xe00] sm:$0xff] }
 0x294   :  { %v1270_v22 = vld [vmem:[#allocation13 + $0xe40] sm:$0xff] }
 0x295   :  { %v14649_v39 = vcombine.low %v1262_v21, %v1270_v22 }
 0x296   :  { %7094 = vmatpush1.bf16.msra.mxu1 %v14537_v33  ;;  %7422 = vmatpush1.bf16.msra.mxu0 %v14541_v34  ;;  %v14650_v33 = vcombine.high %v1262_v21, %v1270_v22  ;;  %v14654_v34 = vcombine.high %v1264_v23, %v1272_v24  ;;  %v1352_v21 = vld [vmem:[#allocation13 + $0x10d0] sm:$0xff] }
 0x297   :  { %7095 = vmatprep.subr.bf16.mxu1 %v14554_v35  ;;  %7423 = vmatprep.subr.bf16.mxu0 %v14558_v36  ;;  %v1278_v35 = vld [vmem:[#allocation13 + $0xe80] sm:$0xff] }
 0x298   :  { %v18099_v46 = vpop.f32.mrb[4].mxu0  ;;  %v18101_v47 = vpop.f32.mrb[4].mxu1  ;;  %v1286_v36 = vld [vmem:[#allocation13 + $0xec0] sm:$0xff] }
 0x299   :  { %v18103_v52 = vpop.f32.mrb[5].mxu0  ;;  %v18105_v53 = vpop.f32.mrb[5].mxu1 }
 0x29a   :  { %7096 = vmatpush1.bf16.msra.mxu1 %v14553_v41  ;;  %7424 = vmatpush1.bf16.msra.mxu0 %v14557_v42  ;;  %v18108_v41 = vsub.s32 2, %v18066_v28  ;;  %v14666_v42 = vcombine.high %v1278_v35, %v1286_v36 }
 0x29b   :  { %7097 = vmatprep.subr.bf16.mxu1 %v14570_v43  ;;  %7425 = vmatprep.subr.bf16.mxu0 %v14574_v44  ;;  %v14670_v43 = vcombine.high %v1280_v38, %v1288_v1  ;;  %v1294_v44 = vld [vmem:[#allocation13 + $0xf00] sm:$0xff] }
 0x29e   :  { %7098 = vmatpush1.bf16.msra.mxu1 %v14569_v54  ;;  %7426 = vmatpush1.bf16.msra.mxu0 %v14573_v55  ;;  %v14665_v54 = vcombine.low %v1278_v35, %v1286_v36  ;;  %v14669_v55 = vcombine.low %v1280_v38, %v1288_v1  ;;  %v1360_v35 = vld [vmem:[#allocation13 + $0x1110] sm:$0xff] }
 0x29f   :  { %7099 = vmatprep.subr.bf16.mxu1 %v14586_v57  ;;  %7427 = vmatprep.subr.bf16.mxu0 %v14590_v58  ;;  %v485_v57 = vrot.slane %v18071_v30, %v18108_v41  ;;  %v14682_v58 = vcombine.high %v1294_v44, %v1302_v48  ;;  %v1368_v36 = vld [vmem:[#allocation13 + $0x1150] sm:$0xff] }
 0x2a1   :  { %v652_v4 = vadd.f32 %v18085_v37, %v485_v57  ;;  %v1390_v57 = vld [vmem:[#allocation13 + $0x1200] sm:$0xff] }
 0x2a2   :  { %7100 = vmatpush1.bf16.msra.mxu1 %v14585_v63  ;;  %7428 = vmatpush1.bf16.msra.mxu0 %v14589_v0  ;;  %v1312_v63 = vld [vmem:[#allocation13 + $0xf90] sm:$0xff] }
 0x2a3   :  { %7101 = vmatprep.subr.bf16.mxu1 %v14602_v2  ;;  %7429 = vmatprep.subr.bf16.mxu0 %v14606_v3  ;;  %v1320_v0 = vld [vmem:[#allocation13 + $0xfd0] sm:$0xff]  ;;  %v14681_v2 = vcombine.low %v1294_v44, %v1302_v48  ;;  %v14685_v3 = vcombine.low %v1296_v50, %v1304_v51  ;;  %v800_v15 = vmax.f32 %v652_v4, 0.0  ;;  %v14749_v51 = vcombine.low %v1360_v35, %v1368_v36 }
 0x2a4   :  { %v14702_v6 = vcombine.high %v1312_v63, %v1320_v0  ;;  %v14701_v14 = vcombine.low %v1312_v63, %v1320_v0  ;;  %v1376_v44 = vld [vmem:[#allocation13 + $0x1190] sm:$0xff] }
 0x2a5   :  { %v18119_v22 = vpack.c.bf16 %v800_v15, %v800_v15  ;;  %v1384_v48 = vld [vmem:[#allocation13 + $0x11d0] sm:$0xff] }
 0x2a6   :  { %7102 = vmatpush1.bf16.msra.mxu1 %v14601_v8  ;;  %7430 = vmatpush1.bf16.msra.mxu0 %v14605_v10  ;;  %v725_v8 = vadd.f32 %v18103_v52, %v497_v61  ;;  %v1334_v10 = vld [vmem:[#allocation13 + $0x1040] sm:$0xff]  ;;  %v14765_v62 = vcombine.low %v1376_v44, %v1384_v48  ;;  %v1408_v4 = vld [vmem:[#allocation13 + $0x1290] sm:$0xff] }
 0x2a7   :  { %7103 = vmatprep.subr.bf16.mxu1 %v14618_v11  ;;  %7431 = vmatprep.subr.bf16.mxu0 %v14622_v12  ;;  %v1328_v11 = vld [vmem:[#allocation13 + $0x1010] sm:$0xff]  ;;  %v14714_v16 = vcombine.high %v1326_v7, %v1334_v10  ;;  %v14713_v52 = vcombine.low %v1326_v7, %v1334_v10 }
 0x2a8   :  { %v1336_v12 = vld [vmem:[#allocation13 + $0x1050] sm:$0xff]  ;;  %v803_v37 = vmax.f32 %v725_v8, 0.0 }
 0x2a9   :  { %v14717_v23 = vcombine.low %v1328_v11, %v1336_v12 }
 0x2aa   :  { %7104 = vmatpush1.bf16.msra.mxu1 %v14617_v17  ;;  %7432 = vmatpush1.bf16.msra.mxu0 %v14621_v18  ;;  %v14718_v17 = vcombine.high %v1328_v11, %v1336_v12  ;;  %v1342_v18 = vld [vmem:[#allocation13 + $0x1080] sm:$0xff]  ;;  %v18121_v24 = vpack.c.bf16 %v803_v37, %v803_v37 }
 0x2ab   :  { %7105 = vmatprep.subr.bf16.mxu1 %v14634_v19  ;;  %7433 = vmatprep.subr.bf16.mxu0 %v14638_v20  ;;  %v1350_v19 = vld [vmem:[#allocation13 + $0x10c0] sm:$0xff]  ;;  %v1344_v20 = vld [vmem:[#allocation13 + $0x1090] sm:$0xff] }
 0x2ac   :  { %v14729_v38 = vcombine.low %v1342_v18, %v1350_v19  ;;  %v14733_v1 = vcombine.low %v1344_v20, %v1352_v21  ;;  %v1422_v11 = vld [vmem:[#allocation13 + $0x1300] sm:$0xff] }
 0x2ad   :  { %v1430_v12 = vld [vmem:[#allocation13 + $0x1340] sm:$0xff] }
 0x2ae   :  { %7106 = vmatpush1.bf16.msra.mxu1 %v14633_v25  ;;  %7434 = vmatpush1.bf16.msra.mxu0 %v14637_v26  ;;  %v14730_v25 = vcombine.high %v1342_v18, %v1350_v19  ;;  %v14734_v26 = vcombine.high %v1344_v20, %v1352_v21  ;;  %v1438_v18 = vld [vmem:[#allocation13 + $0x1380] sm:$0xff]  ;;  %v1440_v20 = vld [vmem:[#allocation13 + $0x1390] sm:$0xff] }
 0x2af   :  { %7107 = vmatprep.subr.bf16.mxu1 %v14650_v33  ;;  %7435 = vmatprep.subr.bf16.mxu0 %v14654_v34  ;;  %v1358_v33 = vld [vmem:[#allocation13 + $0x1100] sm:$0xff]  ;;  %v1448_v21 = vld [vmem:[#allocation13 + $0x13d0] sm:$0xff] }
 0x2b0   :  { %v1366_v34 = vld [vmem:[#allocation13 + $0x1140] sm:$0xff] }
 0x2b1   :  { %v14745_v50 = vcombine.low %v1358_v33, %v1366_v34  ;;  %v1446_v19 = vld [vmem:[#allocation13 + $0x13c0] sm:$0xff] }
 0x2b2   :  { %7108 = vmatpush1.bf16.msra.mxu1 %v14649_v39  ;;  %7436 = vmatpush1.bf16.msra.mxu0 %v14653_v40  ;;  %v14746_v39 = vcombine.high %v1358_v33, %v1366_v34  ;;  %v14750_v40 = vcombine.high %v1360_v35, %v1368_v36  ;;  %v1454_v33 = vld [vmem:[#allocation13 + $0x1400] sm:$0xff]  ;;  %v1456_v35 = vld [vmem:[#allocation13 + $0x1410] sm:$0xff] }
 0x2b3   :  { %7109 = vmatprep.subr.bf16.mxu1 %v14666_v42  ;;  %7437 = vmatprep.subr.bf16.mxu0 %v14670_v43  ;;  %v1374_v42 = vld [vmem:[#allocation13 + $0x1180] sm:$0xff]  ;;  %v1464_v36 = vld [vmem:[#allocation13 + $0x1450] sm:$0xff] }
 0x2b4   :  { %v1382_v43 = vld [vmem:[#allocation13 + $0x11c0] sm:$0xff] }
 0x2b5   :  { %v14761_v61 = vcombine.low %v1374_v42, %v1382_v43  ;;  %v1462_v34 = vld [vmem:[#allocation13 + $0x1440] sm:$0xff] }
 0x2b6   :  { %7110 = vmatpush1.bf16.msra.mxu1 %v14665_v54  ;;  %7438 = vmatpush1.bf16.msra.mxu0 %v14669_v55  ;;  %v14762_v54 = vcombine.high %v1374_v42, %v1382_v43  ;;  %v14766_v55 = vcombine.high %v1376_v44, %v1384_v48  ;;  %v1470_v42 = vld [vmem:[#allocation13 + $0x1480] sm:$0xff]  ;;  %v1472_v44 = vld [vmem:[#allocation13 + $0x1490] sm:$0xff] }
 0x2b7   :  { %7111 = vmatprep.subr.bf16.mxu1 %v14682_v58  ;;  %7439 = vmatprep.subr.bf16.mxu0 %v14686_v59  ;;  %v1398_v58 = vld [vmem:[#allocation13 + $0x1240] sm:$0xff]  ;;  %v1392_v59 = vld [vmem:[#allocation13 + $0x1210] sm:$0xff] }
 0x2b8   :  { %v14778_v63 = vcombine.high %v1390_v57, %v1398_v58  ;;  %v14782_v0 = vcombine.high %v1392_v59, %v1400_v60  ;;  %v14781_v7 = vcombine.low %v1392_v59, %v1400_v60  ;;  %v1478_v43 = vld [vmem:[#allocation13 + $0x14c0] sm:$0xff]  ;;  %v1480_v48 = vld [vmem:[#allocation13 + $0x14d0] sm:$0xff] }
 0x2b9   :  { %v1488_v59 = vld [vmem:[#allocation13 + $0x1510] sm:$0xff] }
 0x2ba   :  { %7112 = vmatpush1.bf16.msra.mxu1 %v14681_v2  ;;  %7440 = vmatpush1.bf16.msra.mxu0 %v14685_v3  ;;  %v1406_v2 = vld [vmem:[#allocation13 + $0x1280] sm:$0xff]  ;;  %v1496_v60 = vld [vmem:[#allocation13 + $0x1550] sm:$0xff] }
 0x2bb   :  { %7113 = vmatprep.subr.bf16.mxu1 %v14698_v5  ;;  %7441 = vmatprep.subr.bf16.mxu0 %v14702_v6  ;;  %v1414_v3 = vld [vmem:[#allocation13 + $0x12c0] sm:$0xff]  ;;  %v1416_v5 = vld [vmem:[#allocation13 + $0x12d0] sm:$0xff]  ;;  %v14777_v6 = vcombine.low %v1390_v57, %v1398_v58 }
 0x2bc   :  { %v14794_v8 = vcombine.high %v1406_v2, %v1414_v3  ;;  %v14798_v10 = vcombine.high %v1408_v4, %v1416_v5  ;;  %v14793_v15 = vcombine.low %v1406_v2, %v1414_v3  ;;  %v1486_v57 = vld [vmem:[#allocation13 + $0x1500] sm:$0xff] }
 0x2bd   :  { %v1494_v58 = vld [vmem:[#allocation13 + $0x1540] sm:$0xff] }
 0x2be   :  { %7114 = vmatpush1.bf16.msra.mxu1 %v14697_v13  ;;  %7442 = vmatpush1.bf16.msra.mxu0 %v14701_v14  ;;  %v1424_v13 = vld [vmem:[#allocation13 + $0x1310] sm:$0xff]  ;;  %v1502_v2 = vld [vmem:[#allocation13 + $0x1580] sm:$0xff] }
 0x2bf   :  { %7124 = vmatprep.subr.bf16.mxu1 %v14714_v16  ;;  %7452 = vmatprep.subr.bf16.mxu0 %v14718_v17  ;;  %v1432_v14 = vld [vmem:[#allocation13 + $0x1350] sm:$0xff]  ;;  %v14797_v16 = vcombine.low %v1408_v4, %v1416_v5  ;;  %v14810_v17 = vcombine.high %v1422_v11, %v1430_v12  ;;  %v1510_v3 = vld [vmem:[#allocation13 + $0x15c0] sm:$0xff] }
 0x2c0   :  { %v14814_v37 = vcombine.high %v1424_v13, %v1432_v14  ;;  %v1504_v4 = vld [vmem:[#allocation13 + $0x1590] sm:$0xff] }
 0x2c1   :  { %7116 = vmatmul.mubr.bf16.vlgmr.msra.gmra.mrb[8].mxu1 %v18119_v22  ;;  %7444 = vmatmul.mubr.bf16.vlgmr.msra.gmra.mrb[8].mxu0 %v18119_v22  ;;  %v1512_v5 = vld [vmem:[#allocation13 + $0x15d0] sm:$0xff] }
 0x2c2   :  { %7125 = vmatpush1.bf16.msra.mxu1 %v14713_v52  ;;  %7156 = vmatprep.mubr.bf16.mxu1 %v18121_v24  ;;  %v14809_v52 = vcombine.low %v1422_v11, %v1430_v12  ;;  %v1518_v11 = vld [vmem:[#allocation13 + $0x1600] sm:$0xff] }
 0x2c3   :  { %7453 = vmatpush1.bf16.msra.mxu0 %v14717_v23  ;;  %7484 = vmatprep.mubr.bf16.mxu0 %v18121_v24  ;;  %v14813_v23 = vcombine.low %v1424_v13, %v1432_v14  ;;  %v1526_v12 = vld [vmem:[#allocation13 + $0x1640] sm:$0xff]  ;;  %v1520_v13 = vld [vmem:[#allocation13 + $0x1610] sm:$0xff] }
 0x2c4   :  { %7126 = vmatprep.subr.bf16.mxu1 %v14730_v25  ;;  %7454 = vmatprep.subr.bf16.mxu0 %v14734_v26  ;;  %v14826_v25 = vcombine.high %v1438_v18, %v1446_v19  ;;  %v14830_v26 = vcombine.high %v1440_v20, %v1448_v21  ;;  %v1528_v14 = vld [vmem:[#allocation13 + $0x1650] sm:$0xff] }
 0x2c6   :  { %7127 = vmatpush1.bf16.msra.mxu1 %v14729_v38  ;;  %v14825_v38 = vcombine.low %v1438_v18, %v1446_v19  ;;  %v1534_v18 = vld [vmem:[#allocation13 + $0x1680] sm:$0xff] }
 0x2c7   :  { %7455 = vmatpush1.bf16.msra.mxu0 %v14733_v1  ;;  %7128 = vmatprep.subr.bf16.mxu1 %v14746_v39  ;;  %v14829_v1 = vcombine.low %v1440_v20, %v1448_v21  ;;  %v14842_v39 = vcombine.high %v1454_v33, %v1462_v34  ;;  %v1542_v19 = vld [vmem:[#allocation13 + $0x16c0] sm:$0xff]  ;;  %v1536_v20 = vld [vmem:[#allocation13 + $0x1690] sm:$0xff] }
 0x2c8   :  { %7456 = vmatprep.subr.bf16.mxu0 %v14750_v40  ;;  %v14846_v40 = vcombine.high %v1456_v35, %v1464_v36  ;;  %v1544_v21 = vld [vmem:[#allocation13 + $0x16d0] sm:$0xff] }
 0x2ca   :  { %7129 = vmatpush1.bf16.msra.mxu1 %v14745_v50  ;;  %v14841_v50 = vcombine.low %v1454_v33, %v1462_v34  ;;  %v14926_v33 = vcombine.high %v1536_v20, %v1544_v21  ;;  %v1550_v34 = vld [vmem:[#allocation13 + $0x1700] sm:$0xff] }
 0x2cb   :  { %7457 = vmatpush1.bf16.msra.mxu0 %v14749_v51  ;;  %7130 = vmatprep.subr.bf16.mxu1 %v14762_v54  ;;  %v14845_v51 = vcombine.low %v1456_v35, %v1464_v36  ;;  %v14858_v54 = vcombine.high %v1470_v42, %v1478_v43  ;;  %v1558_v35 = vld [vmem:[#allocation13 + $0x1740] sm:$0xff]  ;;  %v18131_v36 = vsub.s32 7, %v18066_v28 }
 0x2cc   :  { %7458 = vmatprep.subr.bf16.mxu0 %v14766_v55  ;;  %v14862_v55 = vcombine.high %v1472_v44, %v1480_v48 }
 0x2ce   :  { %7131 = vmatpush1.bf16.msra.mxu1 %v14761_v61  ;;  %v14857_v61 = vcombine.low %v1470_v42, %v1478_v43  ;;  %v14925_v42 = vcombine.low %v1536_v20, %v1544_v21  ;;  %v14938_v43 = vcombine.high %v1550_v34, %v1558_v35  ;;  %v1624_v20 = vld [vmem:[#allocation13 + $0x1950] sm:$0xff] }
 0x2cf   :  { %7459 = vmatpush1.bf16.msra.mxu0 %v14765_v62  ;;  %7132 = vmatprep.subr.bf16.mxu1 %v14778_v63  ;;  %v14861_v62 = vcombine.low %v1472_v44, %v1480_v48  ;;  %v14874_v63 = vcombine.high %v1486_v57, %v1494_v58  ;;  %v1566_v48 = vld [vmem:[#allocation13 + $0x1780] sm:$0xff] }
 0x2d0   :  { %7460 = vmatprep.subr.bf16.mxu0 %v14782_v0  ;;  %v14878_v0 = vcombine.high %v1488_v59, %v1496_v60 }
 0x2d2   :  { %7133 = vmatpush1.bf16.msra.mxu1 %v14777_v6  ;;  %v14873_v6 = vcombine.low %v1486_v57, %v1494_v58  ;;  %v14937_v57 = vcombine.low %v1550_v34, %v1558_v35  ;;  %v1638_v34 = vld [vmem:[#allocation13 + $0x19c0] sm:$0xff]  ;;  %v1632_v35 = vld [vmem:[#allocation13 + $0x1990] sm:$0xff] }
 0x2d3   :  { %7461 = vmatpush1.bf16.msra.mxu0 %v14781_v7  ;;  %7134 = vmatprep.subr.bf16.mxu1 %v14794_v8  ;;  %v14877_v7 = vcombine.low %v1488_v59, %v1496_v60  ;;  %v14890_v8 = vcombine.high %v1502_v2, %v1510_v3 }
 0x2d4   :  { %7462 = vmatprep.subr.bf16.mxu0 %v14798_v10  ;;  %v14894_v10 = vcombine.high %v1504_v4, %v1512_v5 }
 0x2d6   :  { %7135 = vmatpush1.bf16.msra.mxu1 %v14793_v15  ;;  %v14889_v15 = vcombine.low %v1502_v2, %v1510_v3  ;;  %v1584_v2 = vld [vmem:[#allocation13 + $0x1810] sm:$0xff] }
 0x2d7   :  { %7463 = vmatpush1.bf16.msra.mxu0 %v14797_v16  ;;  %7136 = vmatprep.subr.bf16.mxu1 %v14810_v17  ;;  %v14893_v16 = vcombine.low %v1504_v4, %v1512_v5  ;;  %v14906_v17 = vcombine.high %v1518_v11, %v1526_v12  ;;  %v1592_v3 = vld [vmem:[#allocation13 + $0x1850] sm:$0xff] }
 0x2d8   :  { %7464 = vmatprep.subr.bf16.mxu0 %v14814_v37  ;;  %v14910_v37 = vcombine.high %v1520_v13, %v1528_v14 }
 0x2da   :  { %7137 = vmatpush1.bf16.msra.mxu1 %v14809_v52  ;;  %v14905_v52 = vcombine.low %v1518_v11, %v1526_v12  ;;  %v1600_v12 = vld [vmem:[#allocation13 + $0x1890] sm:$0xff] }
 0x2db   :  { %7465 = vmatpush1.bf16.msra.mxu0 %v14813_v23  ;;  %7138 = vmatprep.subr.bf16.mxu1 %v14826_v25  ;;  %v18128_v23 = vsub.s32 4, %v18066_v28  ;;  %v14909_v25 = vcombine.low %v1520_v13, %v1528_v14  ;;  %v1608_v13 = vld [vmem:[#allocation13 + $0x18d0] sm:$0xff] }
 0x2dc   :  { %7466 = vmatprep.subr.bf16.mxu0 %v14830_v26  ;;  %v14922_v26 = vcombine.high %v1534_v18, %v1542_v19 }
 0x2de   :  { %7139 = vmatpush1.bf16.msra.mxu1 %v14825_v38  ;;  %v1552_v38 = vld [vmem:[#allocation13 + $0x1710] sm:$0xff] }
 0x2df   :  { %7467 = vmatpush1.bf16.msra.mxu0 %v14829_v1  ;;  %7140 = vmatprep.subr.bf16.mxu1 %v14842_v39  ;;  %v1560_v1 = vld [vmem:[#allocation13 + $0x1750] sm:$0xff]  ;;  %v14921_v39 = vcombine.low %v1534_v18, %v1542_v19  ;;  %v14990_v18 = vcombine.high %v1600_v12, %v1608_v13 }
 0x2e0   :  { %7468 = vmatprep.subr.bf16.mxu0 %v14846_v40  ;;  %v493_v40 = vrot.slane %v18071_v30, %v18128_v23  ;;  %v14942_v44 = vcombine.high %v1552_v38, %v1560_v1  ;;  %v14941_v59 = vcombine.low %v1552_v38, %v1560_v1  ;;  %v1616_v19 = vld [vmem:[#allocation13 + $0x1910] sm:$0xff] }
 0x2e1   :  { %v1640_v38 = vld [vmem:[#allocation13 + $0x19d0] sm:$0xff] }
 0x2e2   :  { %7141 = vmatpush1.bf16.msra.mxu1 %v14841_v50  ;;  %v1574_v50 = vld [vmem:[#allocation13 + $0x17c0] sm:$0xff]  ;;  %v723_v58 = vadd.f32 %v18099_v46, %v493_v40  ;;  %v14974_v46 = vcombine.high %v1584_v2, %v1592_v3 }
 0x2e3   :  { %7469 = vmatpush1.bf16.msra.mxu0 %v14845_v51  ;;  %7142 = vmatprep.subr.bf16.mxu1 %v14858_v54  ;;  %v505_v51 = vrot.slane %v18071_v30, %v18131_v36  ;;  %v1568_v54 = vld [vmem:[#allocation13 + $0x1790] sm:$0xff]  ;;  %v14954_v60 = vcombine.high %v1566_v48, %v1574_v50  ;;  %v14953_v30 = vcombine.low %v1566_v48, %v1574_v50 }
 0x2e4   :  { %7470 = vmatprep.subr.bf16.mxu0 %v14862_v55  ;;  %v1576_v55 = vld [vmem:[#allocation13 + $0x17d0] sm:$0xff]  ;;  %v802_v4 = vmax.f32 %v723_v58, 0.0  ;;  %v1662_v58 = vld [vmem:[#allocation13 + $0x1a80] sm:$0xff] }
 0x2e5   :  { %v14957_v5 = vcombine.low %v1568_v54, %v1576_v55  ;;  %v1648_v48 = vld [vmem:[#allocation13 + $0x1a10] sm:$0xff] }
 0x2e6   :  { %7143 = vmatpush1.bf16.msra.mxu1 %v14857_v61  ;;  %v14958_v61 = vcombine.high %v1568_v54, %v1576_v55  ;;  %v18139_v14 = vpack.c.bf16 %v802_v4, %v802_v4  ;;  %v1656_v50 = vld [vmem:[#allocation13 + $0x1a50] sm:$0xff]  ;;  %v15021_v54 = vcombine.low %v1632_v35, %v1640_v38 }
 0x2e7   :  { %7471 = vmatpush1.bf16.msra.mxu0 %v14861_v62  ;;  %7144 = vmatprep.subr.bf16.mxu1 %v14874_v63  ;;  %v1582_v62 = vld [vmem:[#allocation13 + $0x1800] sm:$0xff]  ;;  %v1680_v4 = vld [vmem:[#allocation13 + $0x1b10] sm:$0xff] }
 0x2e8   :  { %7472 = vmatprep.subr.bf16.mxu0 %v14878_v0  ;;  %v1590_v63 = vld [vmem:[#allocation13 + $0x1840] sm:$0xff]  ;;  %v796_v0 = vadd.f32 %v18105_v53, %v505_v51  ;;  %v14973_v53 = vcombine.low %v1584_v2, %v1592_v3 }
 0x2e9   :  { %v14969_v11 = vcombine.low %v1582_v62, %v1590_v63  ;;  %v1678_v3 = vld [vmem:[#allocation13 + $0x1b00] sm:$0xff] }
 0x2ea   :  { %7145 = vmatpush1.bf16.msra.mxu1 %v14873_v6  ;;  %v14970_v6 = vcombine.high %v1582_v62, %v1590_v63  ;;  %v15037_v63 = vcombine.low %v1648_v48, %v1656_v50 }
 0x2eb   :  { %7473 = vmatpush1.bf16.msra.mxu0 %v14877_v7  ;;  %7146 = vmatprep.subr.bf16.mxu1 %v14890_v8  ;;  %v805_v7 = vmax.f32 %v796_v0, 0.0  ;;  %v1598_v8 = vld [vmem:[#allocation13 + $0x1880] sm:$0xff] }
 0x2ec   :  { %7474 = vmatprep.subr.bf16.mxu0 %v14894_v10  ;;  %v1606_v10 = vld [vmem:[#allocation13 + $0x18c0] sm:$0xff] }
 0x2ed   :  { %v14985_v21 = vcombine.low %v1598_v8, %v1606_v10 }
 0x2ee   :  { %7147 = vmatpush1.bf16.msra.mxu1 %v14889_v15  ;;  %v14986_v15 = vcombine.high %v1598_v8, %v1606_v10  ;;  %v1694_v10 = vld [vmem:[#allocation13 + $0x1b80] sm:$0xff] }
 0x2ef   :  { %7475 = vmatpush1.bf16.msra.mxu0 %v14893_v16  ;;  %7148 = vmatprep.subr.bf16.mxu1 %v14906_v17  ;;  %v1614_v16 = vld [vmem:[#allocation13 + $0x1900] sm:$0xff] }
 0x2f0   :  { %7476 = vmatprep.subr.bf16.mxu0 %v14910_v37  ;;  %v1622_v17 = vld [vmem:[#allocation13 + $0x1940] sm:$0xff]  ;;  %v18141_v37 = vpack.c.bf16 %v805_v7, %v805_v7 }
 0x2f1   :  { %v15001_v1 = vcombine.low %v1614_v16, %v1622_v17 }
 0x2f2   :  { %7149 = vmatpush1.bf16.msra.mxu1 %v14905_v52  ;;  %v14989_v52 = vcombine.low %v1600_v12, %v1608_v13  ;;  %v1696_v12 = vld [vmem:[#allocation13 + $0x1b90] sm:$0xff] }
 0x2f3   :  { %7477 = vmatpush1.bf16.msra.mxu0 %v14909_v25  ;;  %7150 = vmatprep.subr.bf16.mxu1 %v14922_v26  ;;  %v15002_v25 = vcombine.high %v1614_v16, %v1622_v17  ;;  %v15006_v26 = vcombine.high %v1616_v19, %v1624_v20  ;;  %v1704_v13 = vld [vmem:[#allocation13 + $0x1bd0] sm:$0xff] }
 0x2f4   :  { %7478 = vmatprep.subr.bf16.mxu0 %v14926_v33  ;;  %v1630_v33 = vld [vmem:[#allocation13 + $0x1980] sm:$0xff]  ;;  %v15086_v17 = vcombine.high %v1696_v12, %v1704_v13 }
 0x2f5   :  { %v15018_v40 = vcombine.high %v1630_v33, %v1638_v34  ;;  %v15017_v51 = vcombine.low %v1630_v33, %v1638_v34  ;;  %v1726_v34 = vld [vmem:[#allocation13 + $0x1c80] sm:$0xff] }
 0x2f6   :  { %7151 = vmatpush1.bf16.msra.mxu1 %v14921_v39  ;;  %v15005_v39 = vcombine.low %v1616_v19, %v1624_v20  ;;  %v1718_v19 = vld [vmem:[#allocation13 + $0x1c40] sm:$0xff]  ;;  %v1712_v20 = vld [vmem:[#allocation13 + $0x1c10] sm:$0xff] }
 0x2f7   :  { %7479 = vmatpush1.bf16.msra.mxu0 %v14925_v42  ;;  %7152 = vmatprep.subr.bf16.mxu1 %v14938_v43  ;;  %v15022_v42 = vcombine.high %v1632_v35, %v1640_v38  ;;  %v1646_v43 = vld [vmem:[#allocation13 + $0x1a00] sm:$0xff]  ;;  %v1728_v38 = vld [vmem:[#allocation13 + $0x1c90] sm:$0xff] }
 0x2f8   :  { %7480 = vmatprep.subr.bf16.mxu0 %v14942_v44  ;;  %v1654_v44 = vld [vmem:[#allocation13 + $0x1a40] sm:$0xff] }
 0x2f9   :  { %v15034_v55 = vcombine.high %v1646_v43, %v1654_v44  ;;  %v15033_v62 = vcombine.low %v1646_v43, %v1654_v44  ;;  %v1734_v35 = vld [vmem:[#allocation13 + $0x1cc0] sm:$0xff] }
 0x2fa   :  { %7153 = vmatpush1.bf16.msra.mxu1 %v14937_v57  ;;  %v15038_v57 = vcombine.high %v1648_v48, %v1656_v50  ;;  %v1742_v44 = vld [vmem:[#allocation13 + $0x1d00] sm:$0xff]  ;;  %v1744_v50 = vld [vmem:[#allocation13 + $0x1d10] sm:$0xff] }
 0x2fb   :  { %7481 = vmatpush1.bf16.msra.mxu0 %v14941_v59  ;;  %7154 = vmatprep.subr.bf16.mxu1 %v14954_v60  ;;  %v1670_v59 = vld [vmem:[#allocation13 + $0x1ac0] sm:$0xff]  ;;  %v1664_v60 = vld [vmem:[#allocation13 + $0x1a90] sm:$0xff] }
 0x2fc   :  { %7482 = vmatprep.subr.bf16.mxu0 %v14958_v61  ;;  %v1672_v61 = vld [vmem:[#allocation13 + $0x1ad0] sm:$0xff]  ;;  %v15050_v0 = vcombine.high %v1662_v58, %v1670_v59  ;;  %v1750_v48 = vld [vmem:[#allocation13 + $0x1d40] sm:$0xff] }
 0x2fd   :  { %v15054_v2 = vcombine.high %v1664_v60, %v1672_v61 }
 0x2fe   :  { %7155 = vmatpush1.bf16.msra.mxu1 %v14953_v30  ;;  %v1686_v30 = vld [vmem:[#allocation13 + $0x1b40] sm:$0xff] }
 0x2ff   :  { %7483 = vmatpush1.bf16.msra.mxu0 %v14957_v5  ;;  %7165 = vmatprep.subr.bf16.mxu1 %v14970_v6  ;;  %v1688_v5 = vld [vmem:[#allocation13 + $0x1b50] sm:$0xff]  ;;  %v15049_v6 = vcombine.low %v1662_v58, %v1670_v59  ;;  %v15066_v7 = vcombine.high %v1678_v3, %v1686_v30  ;;  %v1758_v59 = vld [vmem:[#allocation13 + $0x1d80] sm:$0xff] }
 0x300   :  { %7493 = vmatprep.subr.bf16.mxu0 %v14974_v46  ;;  %v15053_v46 = vcombine.low %v1664_v60, %v1672_v61  ;;  %v15070_v8 = vcombine.high %v1680_v4, %v1688_v5  ;;  %v1766_v60 = vld [vmem:[#allocation13 + $0x1dc0] sm:$0xff]  ;;  %v1760_v61 = vld [vmem:[#allocation13 + $0x1d90] sm:$0xff] }
 0x301   :  { %7157 = vmatmul.mubr.bf16.vlgmr.msra.gmra.mrb[8].mxu1 %v18139_v14 }
 0x302   :  { %7485 = vmatmul.mubr.bf16.vlgmr.msra.gmra.mrb[8].mxu0 %v18139_v14  ;;  %7166 = vmatpush1.bf16.msra.mxu1 %v14969_v11  ;;  %v1702_v11 = vld [vmem:[#allocation13 + $0x1bc0] sm:$0xff] }
 0x303   :  { %7197 = vmatprep.mubr.bf16.mxu1 %v18141_v37  ;;  %7494 = vmatpush1.bf16.msra.mxu0 %v14973_v53  ;;  %v15065_v53 = vcombine.low %v1678_v3, %v1686_v30  ;;  %v15082_v16 = vcombine.high %v1694_v10, %v1702_v11  ;;  %v1774_v30 = vld [vmem:[#allocation13 + $0x1e00] sm:$0xff] }
 0x304   :  { %7525 = vmatprep.mubr.bf16.mxu0 %v18141_v37  ;;  %7167 = vmatprep.subr.bf16.mxu1 %v14986_v15  ;;  %v15069_v15 = vcombine.low %v1680_v4, %v1688_v5  ;;  %v1782_v4 = vld [vmem:[#allocation13 + $0x1e40] sm:$0xff]  ;;  %v1776_v5 = vld [vmem:[#allocation13 + $0x1e10] sm:$0xff] }
 0x305   :  { %7495 = vmatprep.subr.bf16.mxu0 %v14990_v18  ;;  %v1710_v18 = vld [vmem:[#allocation13 + $0x1c00] sm:$0xff] }
 0x306   :  { %7168 = vmatpush1.bf16.msra.mxu1 %v14985_v21  ;;  %v1720_v21 = vld [vmem:[#allocation13 + $0x1c50] sm:$0xff] }
 0x307   :  { %7496 = vmatpush1.bf16.msra.mxu0 %v14989_v52  ;;  %7169 = vmatprep.subr.bf16.mxu1 %v15002_v25  ;;  %v15081_v52 = vcombine.low %v1694_v10, %v1702_v11  ;;  %v15085_v25 = vcombine.low %v1696_v12, %v1704_v13  ;;  %v15102_v33 = vcombine.high %v1712_v20, %v1720_v21  ;;  %v1790_v11 = vld [vmem:[#allocation13 + $0x1e80] sm:$0xff]  ;;  %v1792_v13 = vld [vmem:[#allocation13 + $0x1e90] sm:$0xff] }
 0x308   :  { %7497 = vmatprep.subr.bf16.mxu0 %v15006_v26  ;;  %v15098_v26 = vcombine.high %v1710_v18, %v1718_v19  ;;  %v1798_v12 = vld [vmem:[#allocation13 + $0x1ec0] sm:$0xff] }
 0x30a   :  { %7170 = vmatpush1.bf16.msra.mxu1 %v15001_v1  ;;  %v1736_v1 = vld [vmem:[#allocation13 + $0x1cd0] sm:$0xff] }
 0x30b   :  { %7498 = vmatpush1.bf16.msra.mxu0 %v15005_v39  ;;  %7171 = vmatprep.subr.bf16.mxu1 %v15018_v40  ;;  %v15097_v39 = vcombine.low %v1710_v18, %v1718_v19  ;;  %v15101_v40 = vcombine.low %v1712_v20, %v1720_v21  ;;  %v15118_v43 = vcombine.high %v1728_v38, %v1736_v1  ;;  %v1806_v20 = vld [vmem:[#allocation13 + $0x1f00] sm:$0xff] }
 0x30c   :  { %7499 = vmatprep.subr.bf16.mxu0 %v15022_v42  ;;  %v15114_v42 = vcombine.high %v1726_v34, %v1734_v35  ;;  %v15178_v18 = vcombine.high %v1790_v11, %v1798_v12  ;;  %v1814_v21 = vld [vmem:[#allocation13 + $0x1f40] sm:$0xff] }
 0x30e   :  { %7172 = vmatpush1.bf16.msra.mxu1 %v15017_v51  ;;  %v1752_v51 = vld [vmem:[#allocation13 + $0x1d50] sm:$0xff] }
 0x30f   :  { %7500 = vmatpush1.bf16.msra.mxu0 %v15021_v54  ;;  %7173 = vmatprep.subr.bf16.mxu1 %v15034_v55  ;;  %v15113_v54 = vcombine.low %v1726_v34, %v1734_v35  ;;  %v15117_v55 = vcombine.low %v1728_v38, %v1736_v1  ;;  %v15134_v58 = vcombine.high %v1744_v50, %v1752_v51  ;;  %v1822_v1 = vld [vmem:[#allocation13 + $0x1f80] sm:$0xff] }
 0x310   :  { %7501 = vmatprep.subr.bf16.mxu0 %v15038_v57  ;;  %v15130_v57 = vcombine.high %v1742_v44, %v1750_v48 }
 0x312   :  { %7174 = vmatpush1.bf16.msra.mxu1 %v15033_v62  ;;  %v1768_v62 = vld [vmem:[#allocation13 + $0x1dd0] sm:$0xff] }
 0x313   :  { %7502 = vmatpush1.bf16.msra.mxu0 %v15037_v63  ;;  %7175 = vmatprep.subr.bf16.mxu1 %v15050_v0  ;;  %v15129_v63 = vcombine.low %v1742_v44, %v1750_v48  ;;  %v15133_v0 = vcombine.low %v1744_v50, %v1752_v51  ;;  %v15150_v3 = vcombine.high %v1760_v61, %v1768_v62 }
 0x314   :  { %7503 = vmatprep.subr.bf16.mxu0 %v15054_v2  ;;  %v15146_v2 = vcombine.high %v1758_v59, %v1766_v60 }
 0x316   :  { %7176 = vmatpush1.bf16.msra.mxu1 %v15049_v6  ;;  %v1784_v6 = vld [vmem:[#allocation13 + $0x1e50] sm:$0xff] }
 0x317   :  { %7504 = vmatpush1.bf16.msra.mxu0 %v15053_v46  ;;  %7177 = vmatprep.subr.bf16.mxu1 %v15066_v7  ;;  %v15145_v46 = vcombine.low %v1758_v59, %v1766_v60  ;;  %v15149_v7 = vcombine.low %v1760_v61, %v1768_v62  ;;  %v15166_v10 = vcombine.high %v1776_v5, %v1784_v6 }
 0x318   :  { %7505 = vmatprep.subr.bf16.mxu0 %v15070_v8  ;;  %v15162_v8 = vcombine.high %v1774_v30, %v1782_v4 }
 0x31a   :  { %7178 = vmatpush1.bf16.msra.mxu1 %v15065_v53  ;;  %v1800_v53 = vld [vmem:[#allocation13 + $0x1ed0] sm:$0xff] }
 0x31b   :  { %7506 = vmatpush1.bf16.msra.mxu0 %v15069_v15  ;;  %7179 = vmatprep.subr.bf16.mxu1 %v15082_v16  ;;  %v15161_v15 = vcombine.low %v1774_v30, %v1782_v4  ;;  %v18148_v16 = vsub.s32 6, %v18066_v28  ;;  %v15182_v19 = vcombine.high %v1792_v13, %v1800_v53  ;;  %v15181_v35 = vcombine.low %v1792_v13, %v1800_v53  ;;  %v842_v30 = vld [vmem:[#allocation13 + $0xe0] sm:$0xff] }
 0x31c   :  { %7507 = vmatprep.subr.bf16.mxu0 %v15086_v17  ;;  %v15165_v17 = vcombine.low %v1776_v5, %v1784_v6  ;;  %v15194_v28 = vcombine.high %v1806_v20, %v1814_v21 }
 0x31e   :  { %7180 = vmatpush1.bf16.msra.mxu1 %v15081_v52  ;;  %v1808_v52 = vld [vmem:[#allocation13 + $0x1f10] sm:$0xff] }
 0x31f   :  { %7508 = vmatpush1.bf16.msra.mxu0 %v15085_v25  ;;  %7181 = vmatprep.subr.bf16.mxu1 %v15098_v26  ;;  %v1816_v25 = vld [vmem:[#allocation13 + $0x1f50] sm:$0xff]  ;;  %v15177_v26 = vcombine.low %v1790_v11, %v1798_v12  ;;  %v858_v11 = vld [vmem:[#allocation13 + $0x160] sm:$0xff] }
 0x320   :  { %7509 = vmatprep.subr.bf16.mxu0 %v15102_v33  ;;  %v17570_v33 = vld [vmem:[#allocation12] sm:$0xff]  ;;  %v15198_v38 = vcombine.high %v1808_v52, %v1816_v25  ;;  %v15197_v48 = vcombine.low %v1808_v52, %v1816_v25 }
 0x321   :  { %v501_v34 = vrot.slane %v17570_v33, %v18148_v16  ;;  %v879_v33 = vld [vmem:[#allocation13 + $0x208] sm:$0xff] }
 0x322   :  { %7182 = vmatpush1.bf16.msra.mxu1 %v15097_v39  ;;  %v1830_v39 = vld [vmem:[#allocation13 + $0x1fc0] sm:$0xff] }
 0x323   :  { %7510 = vmatpush1.bf16.msra.mxu0 %v15101_v40  ;;  %7183 = vmatprep.subr.bf16.mxu1 %v15114_v42  ;;  %v1824_v40 = vld [vmem:[#allocation13 + $0x1f90] sm:$0xff]  ;;  %v794_v44 = vadd.f32 %v18101_v47, %v501_v34  ;;  %v15210_v50 = vcombine.high %v1822_v1, %v1830_v39  ;;  %v15209_v59 = vcombine.low %v1822_v1, %v1830_v39  ;;  %v831_v47 = vld [vmem:[#allocation13 + $0x88] sm:$0xff] }
 0x324   :  { %7511 = vmatprep.subr.bf16.mxu0 %v15118_v43  ;;  %v1832_v42 = vld [vmem:[#allocation13 + $0x1fd0] sm:$0xff]  ;;  %v15193_v43 = vcombine.low %v1806_v20, %v1814_v21  ;;  %v874_v20 = vld [vmem:[#allocation13 + $0x1e0] sm:$0xff]  ;;  %v887_v34 = vld [vmem:[#allocation13 + $0x248] sm:$0xff] }
 0x325   :  { %v15214_v51 = vcombine.high %v1824_v40, %v1832_v42  ;;  %v804_v60 = vmax.f32 %v794_v44, 0.0  ;;  %v15213_v61 = vcombine.low %v1824_v40, %v1832_v42  ;;  %v14268_v39 = vcombine.high %v879_v33, %v887_v34  ;;  %v895_v42 = vld [vmem:[#allocation13 + $0x288] sm:$0xff]  ;;  %v898_v44 = vld [vmem:[#allocation13 + $0x2a0] sm:$0xff] }
 0x326   :  { %7184 = vmatpush1.bf16.msra.mxu1 %v15113_v54  ;;  %v815_v54 = vld [vmem:[#allocation13 + $0x8] sm:$0xff] }
 0x327   :  { %7512 = vmatpush1.bf16.msra.mxu0 %v15117_v55  ;;  %7185 = vmatprep.subr.bf16.mxu1 %v15130_v57  ;;  %v823_v55 = vld [vmem:[#allocation13 + $0x48] sm:$0xff]  ;;  %v818_v57 = vld [vmem:[#allocation13 + $0x20] sm:$0xff]  ;;  %v18152_v4 = vpack.c.bf16 %v804_v60, %v804_v60 }
 0x328   :  { %7513 = vmatprep.subr.bf16.mxu0 %v15134_v58  ;;  %v826_v58 = vld [vmem:[#allocation13 + $0x60] sm:$0xff]  ;;  %v14204_v62 = vcombine.high %v815_v54, %v823_v55 }
 0x329   :  { %v14209_v5 = vcombine.low %v818_v57, %v826_v58  ;;  %v922_v60 = vld [vmem:[#allocation13 + $0x360] sm:$0xff] }
 0x32a   :  { %7186 = vmatpush1.bf16.msra.mxu1 %v15129_v63  ;;  %v14210_v63 = vcombine.high %v818_v57, %v826_v58  ;;  %v911_v57 = vld [vmem:[#allocation13 + $0x308] sm:$0xff] }
 0x32b   :  { %7514 = vmatpush1.bf16.msra.mxu0 %v15133_v0  ;;  %7187 = vmatprep.subr.bf16.mxu1 %v15146_v2  ;;  %v839_v0 = vld [vmem:[#allocation13 + $0xc8] sm:$0xff]  ;;  %v14203_v2 = vcombine.low %v815_v54, %v823_v55 }
 0x32c   :  { %7515 = vmatprep.subr.bf16.mxu0 %v15150_v3  ;;  %v834_v3 = vld [vmem:[#allocation13 + $0xa0] sm:$0xff]  ;;  %v14220_v6 = vcombine.high %v831_v47, %v839_v0  ;;  %v14219_v12 = vcombine.low %v831_v47, %v839_v0  ;;  %v919_v58 = vld [vmem:[#allocation13 + $0x348] sm:$0xff] }
 0x32d   :  { %v14225_v13 = vcombine.low %v834_v3, %v842_v30  ;;  %v927_v0 = vld [vmem:[#allocation13 + $0x388] sm:$0xff] }
 0x32e   :  { %7188 = vmatpush1.bf16.msra.mxu1 %v15145_v46  ;;  %v847_v46 = vld [vmem:[#allocation13 + $0x108] sm:$0xff] }
 0x32f   :  { %7516 = vmatpush1.bf16.msra.mxu0 %v15149_v7  ;;  %7189 = vmatprep.subr.bf16.mxu1 %v15162_v8  ;;  %v855_v7 = vld [vmem:[#allocation13 + $0x148] sm:$0xff]  ;;  %v14226_v8 = vcombine.high %v834_v3, %v842_v30  ;;  %v930_v3 = vld [vmem:[#allocation13 + $0x3a0] sm:$0xff] }
 0x330   :  { %7517 = vmatprep.subr.bf16.mxu0 %v15166_v10  ;;  %v850_v10 = vld [vmem:[#allocation13 + $0x120] sm:$0xff]  ;;  %v14236_v53 = vcombine.high %v847_v46, %v855_v7  ;;  %v14235_v21 = vcombine.low %v847_v46, %v855_v7 }
 0x331   :  { %v14241_v52 = vcombine.low %v850_v10, %v858_v11  ;;  %v938_v30 = vld [vmem:[#allocation13 + $0x3e0] sm:$0xff] }
 0x332   :  { %7190 = vmatpush1.bf16.msra.mxu1 %v15161_v15  ;;  %v14242_v15 = vcombine.high %v850_v10, %v858_v11  ;;  %v14322_v7 = vcombine.high %v930_v3, %v938_v30  ;;  %v951_v10 = vld [vmem:[#allocation13 + $0x448] sm:$0xff]  ;;  %v946_v11 = vld [vmem:[#allocation13 + $0x420] sm:$0xff] }
 0x333   :  { %7518 = vmatpush1.bf16.msra.mxu0 %v15165_v17  ;;  %7191 = vmatprep.subr.bf16.mxu1 %v15178_v18  ;;  %v863_v17 = vld [vmem:[#allocation13 + $0x188] sm:$0xff] }
 0x334   :  { %7519 = vmatprep.subr.bf16.mxu0 %v15182_v19  ;;  %v871_v18 = vld [vmem:[#allocation13 + $0x1c8] sm:$0xff]  ;;  %v866_v19 = vld [vmem:[#allocation13 + $0x1a0] sm:$0xff] }
 0x335   :  { %v14252_v25 = vcombine.high %v863_v17, %v871_v18  ;;  %v14257_v1 = vcombine.low %v866_v19, %v874_v20 }
 0x336   :  { %7192 = vmatpush1.bf16.msra.mxu1 %v15177_v26  ;;  %v14258_v26 = vcombine.high %v866_v19, %v874_v20  ;;  %v967_v19 = vld [vmem:[#allocation13 + $0x4c8] sm:$0xff]  ;;  %v962_v20 = vld [vmem:[#allocation13 + $0x4a0] sm:$0xff] }
 0x337   :  { %7520 = vmatpush1.bf16.msra.mxu0 %v15181_v35  ;;  %7193 = vmatprep.subr.bf16.mxu1 %v15194_v28  ;;  %v882_v35 = vld [vmem:[#allocation13 + $0x220] sm:$0xff] }
 0x338   :  { %7521 = vmatprep.subr.bf16.mxu0 %v15198_v38  ;;  %v890_v28 = vld [vmem:[#allocation13 + $0x260] sm:$0xff]  ;;  %v14251_v38 = vcombine.low %v863_v17, %v871_v18  ;;  %v959_v18 = vld [vmem:[#allocation13 + $0x488] sm:$0xff] }
 0x339   :  { %v14274_v40 = vcombine.high %v882_v35, %v890_v28 }
 0x33a   :  { %7194 = vmatpush1.bf16.msra.mxu1 %v15193_v43  ;;  %v903_v43 = vld [vmem:[#allocation13 + $0x2c8] sm:$0xff] }
 0x33b   :  { %7522 = vmatpush1.bf16.msra.mxu0 %v15197_v48  ;;  %7195 = vmatprep.subr.bf16.mxu1 %v15210_v50  ;;  %v906_v48 = vld [vmem:[#allocation13 + $0x2e0] sm:$0xff]  ;;  %v14267_v50 = vcombine.low %v879_v33, %v887_v34  ;;  %v14284_v54 = vcombine.high %v895_v42, %v903_v43  ;;  %v975_v34 = vld [vmem:[#allocation13 + $0x508] sm:$0xff] }
 0x33c   :  { %7523 = vmatprep.subr.bf16.mxu0 %v15214_v51  ;;  %v14273_v51 = vcombine.low %v882_v35, %v890_v28  ;;  %v14290_v55 = vcombine.high %v898_v44, %v906_v48  ;;  %v983_v35 = vld [vmem:[#allocation13 + $0x548] sm:$0xff]  ;;  %v978_v28 = vld [vmem:[#allocation13 + $0x520] sm:$0xff] }
 0x33e   :  { %7196 = vmatpush1.bf16.msra.mxu1 %v15209_v59  ;;  %v914_v59 = vld [vmem:[#allocation13 + $0x320] sm:$0xff] }
 0x33f   :  { %7524 = vmatpush1.bf16.msra.mxu0 %v15213_v61  ;;  %7206 = vmatprep.subr.bf16.mxu1 %v14204_v62  ;;  %v14283_v61 = vcombine.low %v895_v42, %v903_v43  ;;  %v14289_v62 = vcombine.low %v898_v44, %v906_v48  ;;  %v14306_v47 = vcombine.high %v914_v59, %v922_v60  ;;  %v991_v43 = vld [vmem:[#allocation13 + $0x588] sm:$0xff]  ;;  %v994_v48 = vld [vmem:[#allocation13 + $0x5a0] sm:$0xff] }
 0x340   :  { %7698 = vmatprep.subr.bf16.mxu0 %v14210_v63  ;;  %v14300_v63 = vcombine.high %v911_v57, %v919_v58  ;;  %v999_v44 = vld [vmem:[#allocation13 + $0x5c8] sm:$0xff] }
 0x341   :  { %7198 = vmatmul.mubr.bf16.vlgmr.msra.gmra.mrb[8].mxu1 %v18152_v4 }
 0x342   :  { %7526 = vmatmul.mubr.bf16.vlgmr.msra.gmra.mrb[8].mxu0 %v18152_v4  ;;  %7207 = vmatpush1.bf16.msra.mxu1 %v14203_v2  ;;  %v935_v2 = vld [vmem:[#allocation13 + $0x3c8] sm:$0xff] }
 0x343   :  { %7238 = vmatprep.mubr.bf16.mxu1 %v18087_v9  ;;  %7699 = vmatpush1.bf16.msra.mxu0 %v14209_v5  ;;  %v14299_v5 = vcombine.low %v911_v57, %v919_v58  ;;  %v14316_v46 = vcombine.high %v927_v0, %v935_v2  ;;  %v1007_v58 = vld [vmem:[#allocation13 + $0x608] sm:$0xff] }
 0x344   :  { %7730 = vmatprep.mubr.bf16.mxu0 %v18087_v9  ;;  %7208 = vmatprep.subr.bf16.mxu1 %v14220_v6  ;;  %v14305_v6 = vcombine.low %v914_v59, %v922_v60  ;;  %v1015_v59 = vld [vmem:[#allocation13 + $0x648] sm:$0xff]  ;;  %v1010_v60 = vld [vmem:[#allocation13 + $0x620] sm:$0xff] }
 0x345   :  { %7700 = vmatprep.subr.bf16.mxu0 %v14226_v8  ;;  %v943_v8 = vld [vmem:[#allocation13 + $0x408] sm:$0xff] }
 0x346   :  { %7209 = vmatpush1.bf16.msra.mxu1 %v14219_v12  ;;  %v954_v12 = vld [vmem:[#allocation13 + $0x460] sm:$0xff] }
 0x347   :  { %7701 = vmatpush1.bf16.msra.mxu0 %v14225_v13  ;;  %7210 = vmatprep.subr.bf16.mxu1 %v14236_v53  ;;  %v14315_v13 = vcombine.low %v927_v0, %v935_v2  ;;  %v14321_v53 = vcombine.low %v930_v3, %v938_v30  ;;  %v14338_v17 = vcombine.high %v946_v11, %v954_v12  ;;  %v1023_v2 = vld [vmem:[#allocation13 + $0x688] sm:$0xff]  ;;  %v1026_v30 = vld [vmem:[#allocation13 + $0x6a0] sm:$0xff] }
 0x348   :  { %7702 = vmatprep.subr.bf16.mxu0 %v14242_v15  ;;  %v14332_v15 = vcombine.high %v943_v8, %v951_v10  ;;  %v1031_v3 = vld [vmem:[#allocation13 + $0x6c8] sm:$0xff] }
 0x34a   :  { %7211 = vmatpush1.bf16.msra.mxu1 %v14235_v21  ;;  %v970_v21 = vld [vmem:[#allocation13 + $0x4e0] sm:$0xff] }
 0x34b   :  { %7703 = vmatpush1.bf16.msra.mxu0 %v14241_v52  ;;  %7212 = vmatprep.subr.bf16.mxu1 %v14252_v25  ;;  %v14331_v52 = vcombine.low %v943_v8, %v951_v10  ;;  %v14337_v25 = vcombine.low %v946_v11, %v954_v12  ;;  %v14354_v33 = vcombine.high %v962_v20, %v970_v21  ;;  %v1039_v10 = vld [vmem:[#allocation13 + $0x708] sm:$0xff]  ;;  %v1042_v12 = vld [vmem:[#allocation13 + $0x720] sm:$0xff] }
 0x34c   :  { %7704 = vmatprep.subr.bf16.mxu0 %v14258_v26  ;;  %v14348_v26 = vcombine.high %v959_v18, %v967_v19  ;;  %v1047_v11 = vld [vmem:[#allocation13 + $0x748] sm:$0xff] }
 0x34e   :  { %7213 = vmatpush1.bf16.msra.mxu1 %v14251_v38  ;;  %v986_v38 = vld [vmem:[#allocation13 + $0x560] sm:$0xff] }
 0x34f   :  { %7705 = vmatpush1.bf16.msra.mxu0 %v14257_v1  ;;  %7214 = vmatprep.subr.bf16.mxu1 %v14268_v39  ;;  %v14347_v1 = vcombine.low %v959_v18, %v967_v19  ;;  %v14353_v39 = vcombine.low %v962_v20, %v970_v21  ;;  %v14370_v42 = vcombine.high %v978_v28, %v986_v38  ;;  %v1055_v19 = vld [vmem:[#allocation13 + $0x788] sm:$0xff]  ;;  %v1058_v21 = vld [vmem:[#allocation13 + $0x7a0] sm:$0xff] }
 0x350   :  { %7706 = vmatprep.subr.bf16.mxu0 %v14274_v40  ;;  %v14364_v40 = vcombine.high %v975_v34, %v983_v35  ;;  %v1063_v20 = vld [vmem:[#allocation13 + $0x7c8] sm:$0xff] }
 0x352   :  { %7215 = vmatpush1.bf16.msra.mxu1 %v14267_v50  ;;  %v1002_v50 = vld [vmem:[#allocation13 + $0x5e0] sm:$0xff] }
 0x353   :  { %7707 = vmatpush1.bf16.msra.mxu0 %v14273_v51  ;;  %7216 = vmatprep.subr.bf16.mxu1 %v14284_v54  ;;  %v14363_v51 = vcombine.low %v975_v34, %v983_v35  ;;  %v14369_v54 = vcombine.low %v978_v28, %v986_v38  ;;  %v14386_v57 = vcombine.high %v994_v48, %v1002_v50  ;;  %v1071_v35 = vld [vmem:[#allocation13 + $0x808] sm:$0xff]  ;;  %v1074_v38 = vld [vmem:[#allocation13 + $0x820] sm:$0xff] }
 0x354   :  { %7708 = vmatprep.subr.bf16.mxu0 %v14290_v55  ;;  %v14380_v55 = vcombine.high %v991_v43, %v999_v44  ;;  %v1079_v28 = vld [vmem:[#allocation13 + $0x848] sm:$0xff] }
 0x356   :  { %7217 = vmatpush1.bf16.msra.mxu1 %v14283_v61  ;;  %v1018_v61 = vld [vmem:[#allocation13 + $0x660] sm:$0xff] }
 0x357   :  { %7709 = vmatpush1.bf16.msra.mxu0 %v14289_v62  ;;  %7218 = vmatprep.subr.bf16.mxu1 %v14300_v63  ;;  %v14379_v62 = vcombine.low %v991_v43, %v999_v44  ;;  %v14385_v63 = vcombine.low %v994_v48, %v1002_v50  ;;  %v14402_v0 = vcombine.high %v1010_v60, %v1018_v61  ;;  %v1087_v44 = vld [vmem:[#allocation13 + $0x888] sm:$0xff] }
 0x358   :  { %7710 = vmatprep.subr.bf16.mxu0 %v14306_v47  ;;  %v14396_v47 = vcombine.high %v1007_v58, %v1015_v59  ;;  %v1095_v48 = vld [vmem:[#allocation13 + $0x8c8] sm:$0xff]  ;;  %v14459_v50 = vcombine.low %v1071_v35, %v1079_v28 }
 0x35a   :  { %7219 = vmatpush1.bf16.msra.mxu1 %v14299_v5  ;;  %v1034_v5 = vld [vmem:[#allocation13 + $0x6e0] sm:$0xff] }
 0x35b   :  { %7711 = vmatpush1.bf16.msra.mxu0 %v14305_v6  ;;  %7220 = vmatprep.subr.bf16.mxu1 %v14316_v46  ;;  %v14395_v6 = vcombine.low %v1007_v58, %v1015_v59  ;;  %v14401_v46 = vcombine.low %v1010_v60, %v1018_v61  ;;  %v14418_v8 = vcombine.high %v1026_v30, %v1034_v5  ;;  %v1103_v58 = vld [vmem:[#allocation13 + $0x908] sm:$0xff]  ;;  %v1106_v61 = vld [vmem:[#allocation13 + $0x920] sm:$0xff] }
 0x35c   :  { %7712 = vmatprep.subr.bf16.mxu0 %v14322_v7  ;;  %v14412_v7 = vcombine.high %v1023_v2, %v1031_v3  ;;  %v1111_v59 = vld [vmem:[#allocation13 + $0x948] sm:$0xff] }
 0x35e   :  { %7221 = vmatpush1.bf16.msra.mxu1 %v14315_v13  ;;  %v1050_v13 = vld [vmem:[#allocation13 + $0x760] sm:$0xff] }
 0x35f   :  { %7713 = vmatpush1.bf16.msra.mxu0 %v14321_v53  ;;  %7222 = vmatprep.subr.bf16.mxu1 %v14332_v15  ;;  %v14411_v53 = vcombine.low %v1023_v2, %v1031_v3  ;;  %v14417_v15 = vcombine.low %v1026_v30, %v1034_v5  ;;  %v14434_v18 = vcombine.high %v1042_v12, %v1050_v13  ;;  %v1119_v3 = vld [vmem:[#allocation13 + $0x988] sm:$0xff]  ;;  %v1122_v5 = vld [vmem:[#allocation13 + $0x9a0] sm:$0xff] }
 0x360   :  { %7714 = vmatprep.subr.bf16.mxu0 %v14338_v17  ;;  %v14428_v17 = vcombine.high %v1039_v10, %v1047_v11  ;;  %v1127_v30 = vld [vmem:[#allocation13 + $0x9c8] sm:$0xff] }
 0x362   :  { %7223 = vmatpush1.bf16.msra.mxu1 %v14331_v52  ;;  %v1066_v52 = vld [vmem:[#allocation13 + $0x7e0] sm:$0xff] }
 0x363   :  { %7715 = vmatpush1.bf16.msra.mxu0 %v14337_v25  ;;  %7224 = vmatprep.subr.bf16.mxu1 %v14348_v26  ;;  %v14427_v25 = vcombine.low %v1039_v10, %v1047_v11  ;;  %v14433_v26 = vcombine.low %v1042_v12, %v1050_v13  ;;  %v14450_v34 = vcombine.high %v1058_v21, %v1066_v52  ;;  %v1135_v11 = vld [vmem:[#allocation13 + $0xa08] sm:$0xff]  ;;  %v1138_v13 = vld [vmem:[#allocation13 + $0xa20] sm:$0xff] }
 0x364   :  { %7716 = vmatprep.subr.bf16.mxu0 %v14354_v33  ;;  %v14444_v33 = vcombine.high %v1055_v19, %v1063_v20  ;;  %v1143_v12 = vld [vmem:[#allocation13 + $0xa48] sm:$0xff] }
 0x366   :  { %7225 = vmatpush1.bf16.msra.mxu1 %v14347_v1  ;;  %v1082_v1 = vld [vmem:[#allocation13 + $0x860] sm:$0xff] }
 0x367   :  { %7717 = vmatpush1.bf16.msra.mxu0 %v14353_v39  ;;  %7226 = vmatprep.subr.bf16.mxu1 %v14364_v40  ;;  %v14443_v39 = vcombine.low %v1055_v19, %v1063_v20  ;;  %v14449_v40 = vcombine.low %v1058_v21, %v1066_v52  ;;  %v14466_v43 = vcombine.high %v1074_v38, %v1082_v1  ;;  %v1151_v20 = vld [vmem:[#allocation13 + $0xa88] sm:$0xff]  ;;  %v1154_v52 = vld [vmem:[#allocation13 + $0xaa0] sm:$0xff] }
 0x368   :  { %7718 = vmatprep.subr.bf16.mxu0 %v14370_v42  ;;  %v14460_v42 = vcombine.high %v1071_v35, %v1079_v28  ;;  %v1159_v21 = vld [vmem:[#allocation13 + $0xac8] sm:$0xff] }
 0x369   :  { %v1167_v28 = vld [vmem:[#allocation13 + $0xb08] sm:$0xff] }
 0x36a   :  { %7227 = vmatpush1.bf16.msra.mxu1 %v14363_v51  ;;  %v1090_v51 = vld [vmem:[#allocation13 + $0x8a0] sm:$0xff] }
 0x36b   :  { %7719 = vmatpush1.bf16.msra.mxu0 %v14369_v54  ;;  %7228 = vmatprep.subr.bf16.mxu1 %v14380_v55  ;;  %v1098_v54 = vld [vmem:[#allocation13 + $0x8e0] sm:$0xff]  ;;  %v14465_v55 = vcombine.low %v1074_v38, %v1082_v1  ;;  %v1175_v38 = vld [vmem:[#allocation13 + $0xb48] sm:$0xff] }
 0x36c   :  { %7720 = vmatprep.subr.bf16.mxu0 %v14386_v57  ;;  %v14476_v57 = vcombine.high %v1087_v44, %v1095_v48  ;;  %v14482_v60 = vcombine.high %v1090_v51, %v1098_v54  ;;  %v1170_v1 = vld [vmem:[#allocation13 + $0xb20] sm:$0xff] }
 0x36e   :  { %7229 = vmatpush1.bf16.msra.mxu1 %v14379_v62  ;;  %v1114_v62 = vld [vmem:[#allocation13 + $0x960] sm:$0xff] }
 0x36f   :  { %7721 = vmatpush1.bf16.msra.mxu0 %v14385_v63  ;;  %7230 = vmatprep.subr.bf16.mxu1 %v14396_v47  ;;  %v14475_v63 = vcombine.low %v1087_v44, %v1095_v48  ;;  %v14481_v47 = vcombine.low %v1090_v51, %v1098_v54  ;;  %v14498_v2 = vcombine.high %v1106_v61, %v1114_v62  ;;  %v1183_v48 = vld [vmem:[#allocation13 + $0xb88] sm:$0xff]  ;;  %v1186_v51 = vld [vmem:[#allocation13 + $0xba0] sm:$0xff] }
 0x370   :  { %7722 = vmatprep.subr.bf16.mxu0 %v14402_v0  ;;  %v14492_v0 = vcombine.high %v1103_v58, %v1111_v59  ;;  %v1194_v54 = vld [vmem:[#allocation13 + $0xbe0] sm:$0xff] }
 0x372   :  { %7231 = vmatpush1.bf16.msra.mxu1 %v14395_v6  ;;  %v1130_v6 = vld [vmem:[#allocation13 + $0x9e0] sm:$0xff] }
 0x373   :  { %7723 = vmatpush1.bf16.msra.mxu0 %v14401_v46  ;;  %7232 = vmatprep.subr.bf16.mxu1 %v14412_v7  ;;  %v14491_v46 = vcombine.low %v1103_v58, %v1111_v59  ;;  %v14497_v7 = vcombine.low %v1106_v61, %v1114_v62  ;;  %v14514_v10 = vcombine.high %v1122_v5, %v1130_v6  ;;  %v1207_v61 = vld [vmem:[#allocation13 + $0xc48] sm:$0xff]  ;;  %v1202_v62 = vld [vmem:[#allocation13 + $0xc20] sm:$0xff] }
 0x374   :  { %7724 = vmatprep.subr.bf16.mxu0 %v14418_v8  ;;  %v14508_v8 = vcombine.high %v1119_v3, %v1127_v30  ;;  %v14578_v59 = vcombine.high %v1186_v51, %v1194_v54 }
 0x376   :  { %7233 = vmatpush1.bf16.msra.mxu1 %v14411_v53  ;;  %v1146_v53 = vld [vmem:[#allocation13 + $0xa60] sm:$0xff] }
 0x377   :  { %7725 = vmatpush1.bf16.msra.mxu0 %v14417_v15  ;;  %7234 = vmatprep.subr.bf16.mxu1 %v14428_v17  ;;  %v14507_v15 = vcombine.low %v1119_v3, %v1127_v30  ;;  %v14513_v17 = vcombine.low %v1122_v5, %v1130_v6  ;;  %v14530_v19 = vcombine.high %v1138_v13, %v1146_v53  ;;  %v1215_v30 = vld [vmem:[#allocation13 + $0xc88] sm:$0xff]  ;;  %v1218_v6 = vld [vmem:[#allocation13 + $0xca0] sm:$0xff] }
 0x378   :  { %7726 = vmatprep.subr.bf16.mxu0 %v14434_v18  ;;  %v14524_v18 = vcombine.high %v1135_v11, %v1143_v12  ;;  %v1223_v5 = vld [vmem:[#allocation13 + $0xcc8] sm:$0xff] }
 0x37a   :  { %7235 = vmatpush1.bf16.msra.mxu1 %v14427_v25  ;;  %v1162_v25 = vld [vmem:[#allocation13 + $0xae0] sm:$0xff] }
 0x37b   :  { %7727 = vmatpush1.bf16.msra.mxu0 %v14433_v26  ;;  %7236 = vmatprep.subr.bf16.mxu1 %v14444_v33  ;;  %v14523_v26 = vcombine.low %v1135_v11, %v1143_v12  ;;  %v14529_v33 = vcombine.low %v1138_v13, %v1146_v53  ;;  %v14546_v35 = vcombine.high %v1154_v52, %v1162_v25  ;;  %v1231_v12 = vld [vmem:[#allocation13 + $0xd08] sm:$0xff]  ;;  %v1234_v53 = vld [vmem:[#allocation13 + $0xd20] sm:$0xff] }
 0x37c   :  { %7728 = vmatprep.subr.bf16.mxu0 %v14450_v34  ;;  %v14540_v34 = vcombine.high %v1151_v20, %v1159_v21  ;;  %v1239_v13 = vld [vmem:[#allocation13 + $0xd48] sm:$0xff] }
 0x37e   :  { %7237 = vmatpush1.bf16.msra.mxu1 %v14443_v39  ;;  %v1178_v39 = vld [vmem:[#allocation13 + $0xb60] sm:$0xff] }
 0x37f   :  { %7729 = vmatpush1.bf16.msra.mxu0 %v14449_v40  ;;  %7247 = vmatprep.subr.bf16.mxu1 %v14460_v42  ;;  %v14539_v40 = vcombine.low %v1151_v20, %v1159_v21  ;;  %v14545_v42 = vcombine.low %v1154_v52, %v1162_v25  ;;  %v14562_v44 = vcombine.high %v1170_v1, %v1178_v39  ;;  %v1247_v21 = vld [vmem:[#allocation13 + $0xd88] sm:$0xff]  ;;  %v1250_v25 = vld [vmem:[#allocation13 + $0xda0] sm:$0xff] }
 0x380   :  { %7739 = vmatprep.subr.bf16.mxu0 %v14466_v43  ;;  %v14556_v43 = vcombine.high %v1167_v28, %v1175_v38  ;;  %v1255_v52 = vld [vmem:[#allocation13 + $0xdc8] sm:$0xff] }
 0x381   :  { %7239 = vmatmul.mubr.bf16.vlgmr.msra.gmra.mrb[12].mxu1 %v18089_v49 }
 0x382   :  { %7731 = vmatmul.mubr.bf16.vlgmr.msra.gmra.mrb[12].mxu0 %v18089_v49  ;;  %7248 = vmatpush1.bf16.msra.mxu1 %v14459_v50  ;;  %v1191_v50 = vld [vmem:[#allocation13 + $0xbc8] sm:$0xff] }
 0x383   :  { %7279 = vmatprep.mubr.bf16.mxu1 %v18093_v56  ;;  %7740 = vmatpush1.bf16.msra.mxu0 %v14465_v55  ;;  %v14555_v55 = vcombine.low %v1167_v28, %v1175_v38  ;;  %v14572_v58 = vcombine.high %v1183_v48, %v1191_v50  ;;  %v1263_v38 = vld [vmem:[#allocation13 + $0xe08] sm:$0xff] }
 0x384   :  { %7771 = vmatprep.mubr.bf16.mxu0 %v18093_v56  ;;  %7249 = vmatprep.subr.bf16.mxu1 %v14476_v57  ;;  %v14561_v57 = vcombine.low %v1170_v1, %v1178_v39  ;;  %v1271_v1 = vld [vmem:[#allocation13 + $0xe48] sm:$0xff]  ;;  %v1266_v39 = vld [vmem:[#allocation13 + $0xe20] sm:$0xff] }
 0x385   :  { %7741 = vmatprep.subr.bf16.mxu0 %v14482_v60  ;;  %v1199_v60 = vld [vmem:[#allocation13 + $0xc08] sm:$0xff] }
 0x386   :  { %7250 = vmatpush1.bf16.msra.mxu1 %v14475_v63  ;;  %v1210_v63 = vld [vmem:[#allocation13 + $0xc60] sm:$0xff] }
 0x387   :  { %7742 = vmatpush1.bf16.msra.mxu0 %v14481_v47  ;;  %7251 = vmatprep.subr.bf16.mxu1 %v14492_v0  ;;  %v14571_v47 = vcombine.low %v1183_v48, %v1191_v50  ;;  %v14577_v0 = vcombine.low %v1186_v51, %v1194_v54  ;;  %v14594_v3 = vcombine.high %v1202_v62, %v1210_v63  ;;  %v1279_v50 = vld [vmem:[#allocation13 + $0xe88] sm:$0xff]  ;;  %v1282_v54 = vld [vmem:[#allocation13 + $0xea0] sm:$0xff] }
 0x388   :  { %7743 = vmatprep.subr.bf16.mxu0 %v14498_v2  ;;  %v14588_v2 = vcombine.high %v1199_v60, %v1207_v61  ;;  %v1287_v51 = vld [vmem:[#allocation13 + $0xec8] sm:$0xff] }
 0x38a   :  { %7252 = vmatpush1.bf16.msra.mxu1 %v14491_v46  ;;  %v1226_v46 = vld [vmem:[#allocation13 + $0xce0] sm:$0xff] }
 0x38b   :  { %7744 = vmatpush1.bf16.msra.mxu0 %v14497_v7  ;;  %7253 = vmatprep.subr.bf16.mxu1 %v14508_v8  ;;  %v14587_v7 = vcombine.low %v1199_v60, %v1207_v61  ;;  %v14593_v8 = vcombine.low %v1202_v62, %v1210_v63  ;;  %v14610_v11 = vcombine.high %v1218_v6, %v1226_v46  ;;  %v1295_v61 = vld [vmem:[#allocation13 + $0xf08] sm:$0xff]  ;;  %v1298_v63 = vld [vmem:[#allocation13 + $0xf20] sm:$0xff] }
 0x38c   :  { %7745 = vmatprep.subr.bf16.mxu0 %v14514_v10  ;;  %v14604_v10 = vcombine.high %v1215_v30, %v1223_v5  ;;  %v1303_v62 = vld [vmem:[#allocation13 + $0xf48] sm:$0xff] }
 0x38e   :  { %7254 = vmatpush1.bf16.msra.mxu1 %v14507_v15  ;;  %v1242_v15 = vld [vmem:[#allocation13 + $0xd60] sm:$0xff] }
 0x38f   :  { %7746 = vmatpush1.bf16.msra.mxu0 %v14513_v17  ;;  %7255 = vmatprep.subr.bf16.mxu1 %v14524_v18  ;;  %v14603_v17 = vcombine.low %v1215_v30, %v1223_v5  ;;  %v14609_v18 = vcombine.low %v1218_v6, %v1226_v46  ;;  %v14626_v20 = vcombine.high %v1234_v53, %v1242_v15  ;;  %v1311_v5 = vld [vmem:[#allocation13 + $0xf88] sm:$0xff]  ;;  %v1314_v46 = vld [vmem:[#allocation13 + $0xfa0] sm:$0xff] }
 0x390   :  { %7747 = vmatprep.subr.bf16.mxu0 %v14530_v19  ;;  %v14620_v19 = vcombine.high %v1231_v12, %v1239_v13  ;;  %v1319_v6 = vld [vmem:[#allocation13 + $0xfc8] sm:$0xff] }
 0x392   :  { %7256 = vmatpush1.bf16.msra.mxu1 %v14523_v26  ;;  %v1258_v26 = vld [vmem:[#allocation13 + $0xde0] sm:$0xff] }
 0x393   :  { %7748 = vmatpush1.bf16.msra.mxu0 %v14529_v33  ;;  %7257 = vmatprep.subr.bf16.mxu1 %v14540_v34  ;;  %v14619_v33 = vcombine.low %v1231_v12, %v1239_v13  ;;  %v14625_v34 = vcombine.low %v1234_v53, %v1242_v15  ;;  %v14642_v28 = vcombine.high %v1250_v25, %v1258_v26  ;;  %v1327_v13 = vld [vmem:[#allocation13 + $0x1008] sm:$0xff]  ;;  %v1330_v15 = vld [vmem:[#allocation13 + $0x1020] sm:$0xff] }
 0x394   :  { %7749 = vmatprep.subr.bf16.mxu0 %v14546_v35  ;;  %v14636_v35 = vcombine.high %v1247_v21, %v1255_v52  ;;  %v1335_v53 = vld [vmem:[#allocation13 + $0x1048] sm:$0xff] }
 0x396   :  { %7258 = vmatpush1.bf16.msra.mxu1 %v14539_v40  ;;  %v1274_v40 = vld [vmem:[#allocation13 + $0xe60] sm:$0xff] }
 0x397   :  { %7750 = vmatpush1.bf16.msra.mxu0 %v14545_v42  ;;  %7259 = vmatprep.subr.bf16.mxu1 %v14556_v43  ;;  %v14635_v42 = vcombine.low %v1247_v21, %v1255_v52  ;;  %v14641_v43 = vcombine.low %v1250_v25, %v1258_v26  ;;  %v14658_v48 = vcombine.high %v1266_v39, %v1274_v40  ;;  %v1343_v52 = vld [vmem:[#allocation13 + $0x1088] sm:$0xff] }
 0x398   :  { %7751 = vmatprep.subr.bf16.mxu0 %v14562_v44  ;;  %v14652_v44 = vcombine.high %v1263_v38, %v1271_v1  ;;  %v1351_v25 = vld [vmem:[#allocation13 + $0x10c8] sm:$0xff]  ;;  %v14715_v26 = vcombine.low %v1327_v13, %v1335_v53 }
 0x39a   :  { %7260 = vmatpush1.bf16.msra.mxu1 %v14555_v55  ;;  %v1290_v55 = vld [vmem:[#allocation13 + $0xee0] sm:$0xff] }
 0x39b   :  { %7752 = vmatpush1.bf16.msra.mxu0 %v14561_v57  ;;  %7261 = vmatprep.subr.bf16.mxu1 %v14572_v58  ;;  %v14651_v57 = vcombine.low %v1263_v38, %v1271_v1  ;;  %v14657_v58 = vcombine.low %v1266_v39, %v1274_v40  ;;  %v14674_v60 = vcombine.high %v1282_v54, %v1290_v55  ;;  %v1359_v38 = vld [vmem:[#allocation13 + $0x1108] sm:$0xff]  ;;  %v1362_v40 = vld [vmem:[#allocation13 + $0x1120] sm:$0xff] }
 0x39c   :  { %7753 = vmatprep.subr.bf16.mxu0 %v14578_v59  ;;  %v14668_v59 = vcombine.high %v1279_v50, %v1287_v51  ;;  %v1367_v1 = vld [vmem:[#allocation13 + $0x1148] sm:$0xff] }
 0x39e   :  { %7262 = vmatpush1.bf16.msra.mxu1 %v14571_v47  ;;  %v1306_v47 = vld [vmem:[#allocation13 + $0xf60] sm:$0xff] }
 0x39f   :  { %7754 = vmatpush1.bf16.msra.mxu0 %v14577_v0  ;;  %7263 = vmatprep.subr.bf16.mxu1 %v14588_v2  ;;  %v14667_v0 = vcombine.low %v1279_v50, %v1287_v51  ;;  %v14673_v2 = vcombine.low %v1282_v54, %v1290_v55  ;;  %v14690_v30 = vcombine.high %v1298_v63, %v1306_v47  ;;  %v1375_v51 = vld [vmem:[#allocation13 + $0x1188] sm:$0xff]  ;;  %v1378_v55 = vld [vmem:[#allocation13 + $0x11a0] sm:$0xff] }
 0x3a0   :  { %7755 = vmatprep.subr.bf16.mxu0 %v14594_v3  ;;  %v14684_v3 = vcombine.high %v1295_v61, %v1303_v62  ;;  %v1383_v54 = vld [vmem:[#allocation13 + $0x11c8] sm:$0xff] }
 0x3a2   :  { %7264 = vmatpush1.bf16.msra.mxu1 %v14587_v7  ;;  %v1322_v7 = vld [vmem:[#allocation13 + $0xfe0] sm:$0xff] }
 0x3a3   :  { %7756 = vmatpush1.bf16.msra.mxu0 %v14593_v8  ;;  %7265 = vmatprep.subr.bf16.mxu1 %v14604_v10  ;;  %v14683_v8 = vcombine.low %v1295_v61, %v1303_v62  ;;  %v14689_v10 = vcombine.low %v1298_v63, %v1306_v47  ;;  %v14706_v12 = vcombine.high %v1314_v46, %v1322_v7  ;;  %v1391_v62 = vld [vmem:[#allocation13 + $0x1208] sm:$0xff]  ;;  %v1394_v47 = vld [vmem:[#allocation13 + $0x1220] sm:$0xff] }
 0x3a4   :  { %7757 = vmatprep.subr.bf16.mxu0 %v14610_v11  ;;  %v14700_v11 = vcombine.high %v1311_v5, %v1319_v6  ;;  %v1399_v63 = vld [vmem:[#allocation13 + $0x1248] sm:$0xff] }
 0x3a6   :  { %7266 = vmatpush1.bf16.msra.mxu1 %v14603_v17  ;;  %v1338_v17 = vld [vmem:[#allocation13 + $0x1060] sm:$0xff] }
 0x3a7   :  { %7758 = vmatpush1.bf16.msra.mxu0 %v14609_v18  ;;  %7267 = vmatprep.subr.bf16.mxu1 %v14620_v19  ;;  %v14699_v18 = vcombine.low %v1311_v5, %v1319_v6  ;;  %v14705_v19 = vcombine.low %v1314_v46, %v1322_v7  ;;  %v14722_v21 = vcombine.high %v1330_v15, %v1338_v17  ;;  %v1407_v6 = vld [vmem:[#allocation13 + $0x1288] sm:$0xff]  ;;  %v1410_v7 = vld [vmem:[#allocation13 + $0x12a0] sm:$0xff] }
 0x3a8   :  { %7759 = vmatprep.subr.bf16.mxu0 %v14626_v20  ;;  %v14716_v20 = vcombine.high %v1327_v13, %v1335_v53  ;;  %v1415_v46 = vld [vmem:[#allocation13 + $0x12c8] sm:$0xff] }
 0x3a9   :  { %v1423_v53 = vld [vmem:[#allocation13 + $0x1308] sm:$0xff] }
 0x3aa   :  { %7268 = vmatpush1.bf16.msra.mxu1 %v14619_v33  ;;  %v1346_v33 = vld [vmem:[#allocation13 + $0x10a0] sm:$0xff] }
 0x3ab   :  { %7760 = vmatpush1.bf16.msra.mxu0 %v14625_v34  ;;  %7269 = vmatprep.subr.bf16.mxu1 %v14636_v35  ;;  %v1354_v34 = vld [vmem:[#allocation13 + $0x10e0] sm:$0xff]  ;;  %v14721_v35 = vcombine.low %v1330_v15, %v1338_v17  ;;  %v1431_v15 = vld [vmem:[#allocation13 + $0x1348] sm:$0xff] }
 0x3ac   :  { %7761 = vmatprep.subr.bf16.mxu0 %v14642_v28  ;;  %v14732_v28 = vcombine.high %v1343_v52, %v1351_v25  ;;  %v14738_v39 = vcombine.high %v1346_v33, %v1354_v34  ;;  %v1426_v17 = vld [vmem:[#allocation13 + $0x1320] sm:$0xff] }
 0x3ae   :  { %7270 = vmatpush1.bf16.msra.mxu1 %v14635_v42  ;;  %v1370_v42 = vld [vmem:[#allocation13 + $0x1160] sm:$0xff] }
 0x3af   :  { %7762 = vmatpush1.bf16.msra.mxu0 %v14641_v43  ;;  %7271 = vmatprep.subr.bf16.mxu1 %v14652_v44  ;;  %v14731_v43 = vcombine.low %v1343_v52, %v1351_v25  ;;  %v14737_v44 = vcombine.low %v1346_v33, %v1354_v34  ;;  %v14754_v50 = vcombine.high %v1362_v40, %v1370_v42  ;;  %v1439_v25 = vld [vmem:[#allocation13 + $0x1388] sm:$0xff]  ;;  %v1442_v33 = vld [vmem:[#allocation13 + $0x13a0] sm:$0xff] }
 0x3b0   :  { %7763 = vmatprep.subr.bf16.mxu0 %v14658_v48  ;;  %v14748_v48 = vcombine.high %v1359_v38, %v1367_v1  ;;  %v1450_v34 = vld [vmem:[#allocation13 + $0x13e0] sm:$0xff] }
 0x3b2   :  { %7272 = vmatpush1.bf16.msra.mxu1 %v14651_v57  ;;  %v1386_v57 = vld [vmem:[#allocation13 + $0x11e0] sm:$0xff] }
 0x3b3   :  { %7764 = vmatpush1.bf16.msra.mxu0 %v14657_v58  ;;  %7273 = vmatprep.subr.bf16.mxu1 %v14668_v59  ;;  %v14747_v58 = vcombine.low %v1359_v38, %v1367_v1  ;;  %v14753_v59 = vcombine.low %v1362_v40, %v1370_v42  ;;  %v14770_v61 = vcombine.high %v1378_v55, %v1386_v57  ;;  %v1463_v40 = vld [vmem:[#allocation13 + $0x1448] sm:$0xff]  ;;  %v1458_v42 = vld [vmem:[#allocation13 + $0x1420] sm:$0xff] }
 0x3b4   :  { %7765 = vmatprep.subr.bf16.mxu0 %v14674_v60  ;;  %v14764_v60 = vcombine.high %v1375_v51, %v1383_v54  ;;  %v14834_v1 = vcombine.high %v1442_v33, %v1450_v34 }
 0x3b6   :  { %7274 = vmatpush1.bf16.msra.mxu1 %v14667_v0  ;;  %v1402_v0 = vld [vmem:[#allocation13 + $0x1260] sm:$0xff] }
 0x3b7   :  { %7766 = vmatpush1.bf16.msra.mxu0 %v14673_v2  ;;  %7275 = vmatprep.subr.bf16.mxu1 %v14684_v3  ;;  %v14763_v2 = vcombine.low %v1375_v51, %v1383_v54  ;;  %v14769_v3 = vcombine.low %v1378_v55, %v1386_v57  ;;  %v14786_v5 = vcombine.high %v1394_v47, %v1402_v0  ;;  %v1471_v54 = vld [vmem:[#allocation13 + $0x1488] sm:$0xff]  ;;  %v1474_v57 = vld [vmem:[#allocation13 + $0x14a0] sm:$0xff] }
 0x3b8   :  { %7767 = vmatprep.subr.bf16.mxu0 %v14690_v30  ;;  %v14780_v30 = vcombine.high %v1391_v62, %v1399_v63  ;;  %v1479_v55 = vld [vmem:[#allocation13 + $0x14c8] sm:$0xff] }
 0x3ba   :  { %7276 = vmatpush1.bf16.msra.mxu1 %v14683_v8  ;;  %v1418_v8 = vld [vmem:[#allocation13 + $0x12e0] sm:$0xff] }
 0x3bb   :  { %7768 = vmatpush1.bf16.msra.mxu0 %v14689_v10  ;;  %7277 = vmatprep.subr.bf16.mxu1 %v14700_v11  ;;  %v14779_v10 = vcombine.low %v1391_v62, %v1399_v63  ;;  %v14785_v11 = vcombine.low %v1394_v47, %v1402_v0  ;;  %v14802_v13 = vcombine.high %v1410_v7, %v1418_v8  ;;  %v1487_v63 = vld [vmem:[#allocation13 + $0x1508] sm:$0xff]  ;;  %v1490_v0 = vld [vmem:[#allocation13 + $0x1520] sm:$0xff] }
 0x3bc   :  { %7769 = vmatprep.subr.bf16.mxu0 %v14706_v12  ;;  %v14796_v12 = vcombine.high %v1407_v6, %v1415_v46  ;;  %v1495_v47 = vld [vmem:[#allocation13 + $0x1548] sm:$0xff] }
 0x3be   :  { %7278 = vmatpush1.bf16.msra.mxu1 %v14699_v18  ;;  %v1434_v18 = vld [vmem:[#allocation13 + $0x1360] sm:$0xff] }
 0x3bf   :  { %7770 = vmatpush1.bf16.msra.mxu0 %v14705_v19  ;;  %7288 = vmatprep.subr.bf16.mxu1 %v14716_v20  ;;  %v14795_v19 = vcombine.low %v1407_v6, %v1415_v46  ;;  %v14801_v20 = vcombine.low %v1410_v7, %v1418_v8  ;;  %v14818_v52 = vcombine.high %v1426_v17, %v1434_v18  ;;  %v1503_v46 = vld [vmem:[#allocation13 + $0x1588] sm:$0xff]  ;;  %v1506_v8 = vld [vmem:[#allocation13 + $0x15a0] sm:$0xff] }
 0x3c0   :  { %7780 = vmatprep.subr.bf16.mxu0 %v14722_v21  ;;  %v14812_v21 = vcombine.high %v1423_v53, %v1431_v15  ;;  %v1511_v7 = vld [vmem:[#allocation13 + $0x15c8] sm:$0xff] }
 0x3c1   :  { %7280 = vmatmul.mubr.bf16.vlgmr.msra.gmra.mrb[12].mxu1 %v18119_v22 }
 0x3c2   :  { %7772 = vmatmul.mubr.bf16.vlgmr.msra.gmra.mrb[12].mxu0 %v18119_v22  ;;  %7289 = vmatpush1.bf16.msra.mxu1 %v14715_v26  ;;  %v1447_v26 = vld [vmem:[#allocation13 + $0x13c8] sm:$0xff] }
 0x3c3   :  { %7320 = vmatprep.mubr.bf16.mxu1 %v18121_v24  ;;  %7781 = vmatpush1.bf16.msra.mxu0 %v14721_v35  ;;  %v14811_v35 = vcombine.low %v1423_v53, %v1431_v15  ;;  %v14828_v38 = vcombine.high %v1439_v25, %v1447_v26  ;;  %v1519_v15 = vld [vmem:[#allocation13 + $0x1608] sm:$0xff] }
 0x3c4   :  { %7812 = vmatprep.mubr.bf16.mxu0 %v18121_v24  ;;  %7290 = vmatprep.subr.bf16.mxu1 %v14732_v28  ;;  %v14817_v28 = vcombine.low %v1426_v17, %v1434_v18  ;;  %v1527_v17 = vld [vmem:[#allocation13 + $0x1648] sm:$0xff]  ;;  %v1522_v18 = vld [vmem:[#allocation13 + $0x1620] sm:$0xff] }
 0x3c5   :  { %7782 = vmatprep.subr.bf16.mxu0 %v14738_v39  ;;  %v1455_v39 = vld [vmem:[#allocation13 + $0x1408] sm:$0xff] }
 0x3c6   :  { %7291 = vmatpush1.bf16.msra.mxu1 %v14731_v43  ;;  %v1466_v43 = vld [vmem:[#allocation13 + $0x1460] sm:$0xff] }
 0x3c7   :  { %7783 = vmatpush1.bf16.msra.mxu0 %v14737_v44  ;;  %7292 = vmatprep.subr.bf16.mxu1 %v14748_v48  ;;  %v14827_v44 = vcombine.low %v1439_v25, %v1447_v26  ;;  %v14833_v48 = vcombine.low %v1442_v33, %v1450_v34  ;;  %v14850_v51 = vcombine.high %v1458_v42, %v1466_v43  ;;  %v1535_v26 = vld [vmem:[#allocation13 + $0x1688] sm:$0xff]  ;;  %v1538_v34 = vld [vmem:[#allocation13 + $0x16a0] sm:$0xff] }
 0x3c8   :  { %7784 = vmatprep.subr.bf16.mxu0 %v14754_v50  ;;  %v14844_v50 = vcombine.high %v1455_v39, %v1463_v40  ;;  %v1543_v33 = vld [vmem:[#allocation13 + $0x16c8] sm:$0xff] }
 0x3ca   :  { %7293 = vmatpush1.bf16.msra.mxu1 %v14747_v58  ;;  %v1482_v58 = vld [vmem:[#allocation13 + $0x14e0] sm:$0xff] }
 0x3cb   :  { %7785 = vmatpush1.bf16.msra.mxu0 %v14753_v59  ;;  %7294 = vmatprep.subr.bf16.mxu1 %v14764_v60  ;;  %v14843_v59 = vcombine.low %v1455_v39, %v1463_v40  ;;  %v14849_v60 = vcombine.low %v1458_v42, %v1466_v43  ;;  %v14866_v62 = vcombine.high %v1474_v57, %v1482_v58  ;;  %v1551_v40 = vld [vmem:[#allocation13 + $0x1708] sm:$0xff]  ;;  %v1554_v43 = vld [vmem:[#allocation13 + $0x1720] sm:$0xff] }
 0x3cc   :  { %7786 = vmatprep.subr.bf16.mxu0 %v14770_v61  ;;  %v14860_v61 = vcombine.high %v1471_v54, %v1479_v55  ;;  %v1559_v42 = vld [vmem:[#allocation13 + $0x1748] sm:$0xff] }
 0x3ce   :  { %7295 = vmatpush1.bf16.msra.mxu1 %v14763_v2  ;;  %v1498_v2 = vld [vmem:[#allocation13 + $0x1560] sm:$0xff] }
 0x3cf   :  { %7787 = vmatpush1.bf16.msra.mxu0 %v14769_v3  ;;  %7296 = vmatprep.subr.bf16.mxu1 %v14780_v30  ;;  %v14859_v3 = vcombine.low %v1471_v54, %v1479_v55  ;;  %v14865_v30 = vcombine.low %v1474_v57, %v1482_v58  ;;  %v14882_v6 = vcombine.high %v1490_v0, %v1498_v2  ;;  %v1567_v55 = vld [vmem:[#allocation13 + $0x1788] sm:$0xff]  ;;  %v1570_v58 = vld [vmem:[#allocation13 + $0x17a0] sm:$0xff] }
 0x3d0   :  { %7788 = vmatprep.subr.bf16.mxu0 %v14786_v5  ;;  %v14876_v5 = vcombine.high %v1487_v63, %v1495_v47  ;;  %v1575_v57 = vld [vmem:[#allocation13 + $0x17c8] sm:$0xff] }
 0x3d2   :  { %7297 = vmatpush1.bf16.msra.mxu1 %v14779_v10  ;;  %v1514_v10 = vld [vmem:[#allocation13 + $0x15e0] sm:$0xff] }
 0x3d3   :  { %7789 = vmatpush1.bf16.msra.mxu0 %v14785_v11  ;;  %7298 = vmatprep.subr.bf16.mxu1 %v14796_v12  ;;  %v14875_v11 = vcombine.low %v1487_v63, %v1495_v47  ;;  %v14881_v12 = vcombine.low %v1490_v0, %v1498_v2  ;;  %v14898_v53 = vcombine.high %v1506_v8, %v1514_v10  ;;  %v1583_v47 = vld [vmem:[#allocation13 + $0x1808] sm:$0xff]  ;;  %v1586_v2 = vld [vmem:[#allocation13 + $0x1820] sm:$0xff] }
 0x3d4   :  { %7790 = vmatprep.subr.bf16.mxu0 %v14802_v13  ;;  %v14892_v13 = vcombine.high %v1503_v46, %v1511_v7  ;;  %v1591_v0 = vld [vmem:[#allocation13 + $0x1848] sm:$0xff] }
 0x3d6   :  { %7299 = vmatpush1.bf16.msra.mxu1 %v14795_v19  ;;  %v1530_v19 = vld [vmem:[#allocation13 + $0x1660] sm:$0xff] }
 0x3d7   :  { %7791 = vmatpush1.bf16.msra.mxu0 %v14801_v20  ;;  %7300 = vmatprep.subr.bf16.mxu1 %v14812_v21  ;;  %v14891_v20 = vcombine.low %v1503_v46, %v1511_v7  ;;  %v14897_v21 = vcombine.low %v1506_v8, %v1514_v10  ;;  %v14914_v25 = vcombine.high %v1522_v18, %v1530_v19  ;;  %v1599_v7 = vld [vmem:[#allocation13 + $0x1888] sm:$0xff] }
 0x3d8   :  { %7792 = vmatprep.subr.bf16.mxu0 %v14818_v52  ;;  %v14908_v52 = vcombine.high %v1519_v15, %v1527_v17  ;;  %v1607_v8 = vld [vmem:[#allocation13 + $0x18c8] sm:$0xff]  ;;  %v14971_v10 = vcombine.low %v1583_v47, %v1591_v0 }
 0x3da   :  { %7301 = vmatpush1.bf16.msra.mxu1 %v14811_v35  ;;  %v1546_v35 = vld [vmem:[#allocation13 + $0x16e0] sm:$0xff] }
 0x3db   :  { %7793 = vmatpush1.bf16.msra.mxu0 %v14817_v28  ;;  %7302 = vmatprep.subr.bf16.mxu1 %v14828_v38  ;;  %v14907_v28 = vcombine.low %v1519_v15, %v1527_v17  ;;  %v14913_v38 = vcombine.low %v1522_v18, %v1530_v19  ;;  %v14930_v39 = vcombine.high %v1538_v34, %v1546_v35  ;;  %v1615_v15 = vld [vmem:[#allocation13 + $0x1908] sm:$0xff]  ;;  %v1618_v19 = vld [vmem:[#allocation13 + $0x1920] sm:$0xff] }
 0x3dc   :  { %7794 = vmatprep.subr.bf16.mxu0 %v14834_v1  ;;  %v14924_v1 = vcombine.high %v1535_v26, %v1543_v33  ;;  %v1623_v17 = vld [vmem:[#allocation13 + $0x1948] sm:$0xff] }
 0x3de   :  { %7303 = vmatpush1.bf16.msra.mxu1 %v14827_v44  ;;  %v1562_v44 = vld [vmem:[#allocation13 + $0x1760] sm:$0xff] }
 0x3df   :  { %7795 = vmatpush1.bf16.msra.mxu0 %v14833_v48  ;;  %7304 = vmatprep.subr.bf16.mxu1 %v14844_v50  ;;  %v14923_v48 = vcombine.low %v1535_v26, %v1543_v33  ;;  %v14929_v50 = vcombine.low %v1538_v34, %v1546_v35  ;;  %v14946_v54 = vcombine.high %v1554_v43, %v1562_v44  ;;  %v1631_v33 = vld [vmem:[#allocation13 + $0x1988] sm:$0xff]  ;;  %v1634_v35 = vld [vmem:[#allocation13 + $0x19a0] sm:$0xff] }
 0x3e0   :  { %7796 = vmatprep.subr.bf16.mxu0 %v14850_v51  ;;  %v14940_v51 = vcombine.high %v1551_v40, %v1559_v42  ;;  %v1639_v34 = vld [vmem:[#allocation13 + $0x19c8] sm:$0xff] }
 0x3e2   :  { %7305 = vmatpush1.bf16.msra.mxu1 %v14843_v59  ;;  %v1578_v59 = vld [vmem:[#allocation13 + $0x17e0] sm:$0xff] }
 0x3e3   :  { %7797 = vmatpush1.bf16.msra.mxu0 %v14849_v60  ;;  %7306 = vmatprep.subr.bf16.mxu1 %v14860_v61  ;;  %v14939_v60 = vcombine.low %v1551_v40, %v1559_v42  ;;  %v14945_v61 = vcombine.low %v1554_v43, %v1562_v44  ;;  %v14962_v63 = vcombine.high %v1570_v58, %v1578_v59  ;;  %v1647_v42 = vld [vmem:[#allocation13 + $0x1a08] sm:$0xff]  ;;  %v1650_v44 = vld [vmem:[#allocation13 + $0x1a20] sm:$0xff] }
 0x3e4   :  { %7798 = vmatprep.subr.bf16.mxu0 %v14866_v62  ;;  %v14956_v62 = vcombine.high %v1567_v55, %v1575_v57  ;;  %v1655_v43 = vld [vmem:[#allocation13 + $0x1a48] sm:$0xff] }
 0x3e6   :  { %7307 = vmatpush1.bf16.msra.mxu1 %v14859_v3  ;;  %v1594_v3 = vld [vmem:[#allocation13 + $0x1860] sm:$0xff] }
 0x3e7   :  { %7799 = vmatpush1.bf16.msra.mxu0 %v14865_v30  ;;  %7308 = vmatprep.subr.bf16.mxu1 %v14876_v5  ;;  %v14955_v30 = vcombine.low %v1567_v55, %v1575_v57  ;;  %v14961_v5 = vcombine.low %v1570_v58, %v1578_v59  ;;  %v14978_v46 = vcombine.high %v1586_v2, %v1594_v3  ;;  %v1663_v57 = vld [vmem:[#allocation13 + $0x1a88] sm:$0xff]  ;;  %v1666_v59 = vld [vmem:[#allocation13 + $0x1aa0] sm:$0xff] }
 0x3e8   :  { %7800 = vmatprep.subr.bf16.mxu0 %v14882_v6  ;;  %v14972_v6 = vcombine.high %v1583_v47, %v1591_v0  ;;  %v1671_v58 = vld [vmem:[#allocation13 + $0x1ac8] sm:$0xff] }
 0x3e9   :  { %v1679_v0 = vld [vmem:[#allocation13 + $0x1b08] sm:$0xff] }
 0x3ea   :  { %7309 = vmatpush1.bf16.msra.mxu1 %v14875_v11  ;;  %v1602_v11 = vld [vmem:[#allocation13 + $0x18a0] sm:$0xff] }
 0x3eb   :  { %7801 = vmatpush1.bf16.msra.mxu0 %v14881_v12  ;;  %7310 = vmatprep.subr.bf16.mxu1 %v14892_v13  ;;  %v1610_v12 = vld [vmem:[#allocation13 + $0x18e0] sm:$0xff]  ;;  %v14977_v13 = vcombine.low %v1586_v2, %v1594_v3  ;;  %v1687_v2 = vld [vmem:[#allocation13 + $0x1b48] sm:$0xff] }
 0x3ec   :  { %7802 = vmatprep.subr.bf16.mxu0 %v14898_v53  ;;  %v14988_v53 = vcombine.high %v1599_v7, %v1607_v8  ;;  %v14994_v18 = vcombine.high %v1602_v11, %v1610_v12  ;;  %v1682_v3 = vld [vmem:[#allocation13 + $0x1b20] sm:$0xff] }
 0x3ee   :  { %7311 = vmatpush1.bf16.msra.mxu1 %v14891_v20  ;;  %v1626_v20 = vld [vmem:[#allocation13 + $0x1960] sm:$0xff] }
 0x3ef   :  { %7803 = vmatpush1.bf16.msra.mxu0 %v14897_v21  ;;  %7312 = vmatprep.subr.bf16.mxu1 %v14908_v52  ;;  %v14987_v21 = vcombine.low %v1599_v7, %v1607_v8  ;;  %v14993_v52 = vcombine.low %v1602_v11, %v1610_v12  ;;  %v15010_v26 = vcombine.high %v1618_v19, %v1626_v20  ;;  %v1703_v11 = vld [vmem:[#allocation13 + $0x1bc8] sm:$0xff] }
 0x3f0   :  { %7804 = vmatprep.subr.bf16.mxu0 %v14914_v25  ;;  %v15004_v25 = vcombine.high %v1615_v15, %v1623_v17 }
 0x3f2   :  { %7313 = vmatpush1.bf16.msra.mxu1 %v14907_v28  ;;  %v1642_v28 = vld [vmem:[#allocation13 + $0x19e0] sm:$0xff] }
 0x3f3   :  { %7805 = vmatpush1.bf16.msra.mxu0 %v14913_v38  ;;  %7314 = vmatprep.subr.bf16.mxu1 %v14924_v1  ;;  %v15003_v38 = vcombine.low %v1615_v15, %v1623_v17  ;;  %v15009_v1 = vcombine.low %v1618_v19, %v1626_v20  ;;  %v15026_v40 = vcombine.high %v1634_v35, %v1642_v28  ;;  %v1706_v15 = vld [vmem:[#allocation13 + $0x1be0] sm:$0xff] }
 0x3f4   :  { %7806 = vmatprep.subr.bf16.mxu0 %v14930_v39  ;;  %v15020_v39 = vcombine.high %v1631_v33, %v1639_v34  ;;  %v15067_v19 = vcombine.low %v1679_v0, %v1687_v2 }
 0x3f6   :  { %7315 = vmatpush1.bf16.msra.mxu1 %v14923_v48  ;;  %v1658_v48 = vld [vmem:[#allocation13 + $0x1a60] sm:$0xff] }
 0x3f7   :  { %7807 = vmatpush1.bf16.msra.mxu0 %v14929_v50  ;;  %7316 = vmatprep.subr.bf16.mxu1 %v14940_v51  ;;  %v15019_v50 = vcombine.low %v1631_v33, %v1639_v34  ;;  %v15025_v51 = vcombine.low %v1634_v35, %v1642_v28  ;;  %v15042_v55 = vcombine.high %v1650_v44, %v1658_v48  ;;  %v1711_v34 = vld [vmem:[#allocation13 + $0x1c08] sm:$0xff]  ;;  %v1714_v28 = vld [vmem:[#allocation13 + $0x1c20] sm:$0xff] }
 0x3f8   :  { %7808 = vmatprep.subr.bf16.mxu0 %v14946_v54  ;;  %v15036_v54 = vcombine.high %v1647_v42, %v1655_v43  ;;  %v1719_v35 = vld [vmem:[#allocation13 + $0x1c48] sm:$0xff] }
 0x3fa   :  { %7317 = vmatpush1.bf16.msra.mxu1 %v14939_v60  ;;  %v1674_v60 = vld [vmem:[#allocation13 + $0x1ae0] sm:$0xff] }
 0x3fb   :  { %7809 = vmatpush1.bf16.msra.mxu0 %v14945_v61  ;;  %7318 = vmatprep.subr.bf16.mxu1 %v14956_v62  ;;  %v15035_v61 = vcombine.low %v1647_v42, %v1655_v43  ;;  %v15041_v62 = vcombine.low %v1650_v44, %v1658_v48  ;;  %v15058_v47 = vcombine.high %v1666_v59, %v1674_v60  ;;  %v1727_v43 = vld [vmem:[#allocation13 + $0x1c88] sm:$0xff]  ;;  %v1730_v48 = vld [vmem:[#allocation13 + $0x1ca0] sm:$0xff] }
 0x3fc   :  { %7810 = vmatprep.subr.bf16.mxu0 %v14962_v63  ;;  %v15052_v63 = vcombine.high %v1663_v57, %v1671_v58  ;;  %v1735_v44 = vld [vmem:[#allocation13 + $0x1cc8] sm:$0xff] }
 0x3fe   :  { %7319 = vmatpush1.bf16.msra.mxu1 %v14955_v30  ;;  %v1690_v30 = vld [vmem:[#allocation13 + $0x1b60] sm:$0xff] }
 0x3ff   :  { %7811 = vmatpush1.bf16.msra.mxu0 %v14961_v5  ;;  %7329 = vmatprep.subr.bf16.mxu1 %v14972_v6  ;;  %v15051_v5 = vcombine.low %v1663_v57, %v1671_v58  ;;  %v15057_v6 = vcombine.low %v1666_v59, %v1674_v60  ;;  %v15074_v8 = vcombine.high %v1682_v3, %v1690_v30  ;;  %v1743_v58 = vld [vmem:[#allocation13 + $0x1d08] sm:$0xff]  ;;  %v1746_v60 = vld [vmem:[#allocation13 + $0x1d20] sm:$0xff] }
 0x400   :  { %7821 = vmatprep.subr.bf16.mxu0 %v14978_v46  ;;  %v15068_v46 = vcombine.high %v1679_v0, %v1687_v2  ;;  %v1751_v59 = vld [vmem:[#allocation13 + $0x1d48] sm:$0xff] }
 0x401   :  { %7321 = vmatmul.mubr.bf16.vlgmr.msra.gmra.mrb[12].mxu1 %v18139_v14  ;;  %v1759_v2 = vld [vmem:[#allocation13 + $0x1d88] sm:$0xff] }
 0x402   :  { %7813 = vmatmul.mubr.bf16.vlgmr.msra.gmra.mrb[12].mxu0 %v18139_v14  ;;  %7330 = vmatpush1.bf16.msra.mxu1 %v14971_v10  ;;  %v1695_v10 = vld [vmem:[#allocation13 + $0x1b88] sm:$0xff] }
 0x403   :  { %7361 = vmatprep.mubr.bf16.mxu1 %v18141_v37  ;;  %7822 = vmatpush1.bf16.msra.mxu0 %v14977_v13 }
 0x404   :  { %7853 = vmatprep.mubr.bf16.mxu0 %v18141_v37  ;;  %7331 = vmatprep.subr.bf16.mxu1 %v14988_v53  ;;  %v1698_v53 = vld [vmem:[#allocation13 + $0x1ba0] sm:$0xff] }
 0x405   :  { %7823 = vmatprep.subr.bf16.mxu0 %v14994_v18  ;;  %v15090_v33 = vcombine.high %v1698_v53, %v1706_v15 }
 0x406   :  { %7332 = vmatpush1.bf16.msra.mxu1 %v14987_v21 }
 0x407   :  { %7824 = vmatpush1.bf16.msra.mxu0 %v14993_v52  ;;  %7333 = vmatprep.subr.bf16.mxu1 %v15004_v25  ;;  %v15073_v52 = vcombine.low %v1682_v3, %v1690_v30  ;;  %v15084_v25 = vcombine.high %v1695_v10, %v1703_v11  ;;  %v1767_v3 = vld [vmem:[#allocation13 + $0x1dc8] sm:$0xff]  ;;  %v1762_v30 = vld [vmem:[#allocation13 + $0x1da0] sm:$0xff] }
 0x408   :  { %7825 = vmatprep.subr.bf16.mxu0 %v15010_v26 }
 0x40a   :  { %7334 = vmatpush1.bf16.msra.mxu1 %v15003_v38  ;;  %v1722_v38 = vld [vmem:[#allocation13 + $0x1c60] sm:$0xff] }
 0x40b   :  { %7826 = vmatpush1.bf16.msra.mxu0 %v15009_v1  ;;  %7335 = vmatprep.subr.bf16.mxu1 %v15020_v39  ;;  %v15083_v1 = vcombine.low %v1695_v10, %v1703_v11  ;;  %v15089_v39 = vcombine.low %v1698_v53, %v1706_v15  ;;  %v15106_v42 = vcombine.high %v1714_v28, %v1722_v38  ;;  %v1775_v11 = vld [vmem:[#allocation13 + $0x1e08] sm:$0xff]  ;;  %v1778_v15 = vld [vmem:[#allocation13 + $0x1e20] sm:$0xff] }
 0x40c   :  { %7827 = vmatprep.subr.bf16.mxu0 %v15026_v40  ;;  %v15100_v40 = vcombine.high %v1711_v34, %v1719_v35  ;;  %v1783_v53 = vld [vmem:[#allocation13 + $0x1e48] sm:$0xff] }
 0x40e   :  { %7336 = vmatpush1.bf16.msra.mxu1 %v15019_v50  ;;  %v1738_v50 = vld [vmem:[#allocation13 + $0x1ce0] sm:$0xff] }
 0x40f   :  { %7828 = vmatpush1.bf16.msra.mxu0 %v15025_v51  ;;  %7337 = vmatprep.subr.bf16.mxu1 %v15036_v54  ;;  %v15099_v51 = vcombine.low %v1711_v34, %v1719_v35  ;;  %v15105_v54 = vcombine.low %v1714_v28, %v1722_v38  ;;  %v15122_v57 = vcombine.high %v1730_v48, %v1738_v50  ;;  %v1802_v34 = vld [vmem:[#allocation13 + $0x1ee0] sm:$0xff] }
 0x410   :  { %7829 = vmatprep.subr.bf16.mxu0 %v15042_v55  ;;  %v15116_v55 = vcombine.high %v1727_v43, %v1735_v44  ;;  %v15163_v35 = vcombine.low %v1775_v11, %v1783_v53 }
 0x412   :  { %7338 = vmatpush1.bf16.msra.mxu1 %v15035_v61  ;;  %v1754_v61 = vld [vmem:[#allocation13 + $0x1d60] sm:$0xff] }
 0x413   :  { %7830 = vmatpush1.bf16.msra.mxu0 %v15041_v62  ;;  %7339 = vmatprep.subr.bf16.mxu1 %v15052_v63  ;;  %v15115_v62 = vcombine.low %v1727_v43, %v1735_v44  ;;  %v15121_v63 = vcombine.low %v1730_v48, %v1738_v50  ;;  %v15138_v0 = vcombine.high %v1746_v60, %v1754_v61  ;;  %v1818_v43 = vld [vmem:[#allocation13 + $0x1f60] sm:$0xff] }
 0x414   :  { %v18170_v7 = vpop.f32.mrb[8].mxu1  ;;  %7831 = vmatprep.subr.bf16.mxu0 %v15058_v47  ;;  %v15132_v47 = vcombine.high %v1743_v58, %v1751_v59 }
 0x415   :  { %v18172_v12 = vpop.f32.mrb[8].mxu0  ;;  %v18174_v13 = vpop.f32.mrb[9].mxu1 }
 0x416   :  { %v18176_v17 = vpop.f32.mrb[9].mxu0  ;;  %v7203_v18 = vpop.f32.mrb[10].mxu1  ;;  %7340 = vmatpush1.bf16.msra.mxu1 %v15051_v5  ;;  %v1770_v5 = vld [vmem:[#allocation13 + $0x1de0] sm:$0xff] }
 0x417   :  { %v7531_v20 = vpop.f32.mrb[10].mxu0  ;;  %7832 = vmatpush1.bf16.msra.mxu0 %v15057_v6  ;;  %v7204_v21 = vpop.f32.mrb[11].mxu1  ;;  %7341 = vmatprep.subr.bf16.mxu1 %v15068_v46  ;;  %v15131_v6 = vcombine.low %v1743_v58, %v1751_v59  ;;  %v15137_v46 = vcombine.low %v1746_v60, %v1754_v61  ;;  %v15154_v10 = vcombine.high %v1762_v30, %v1770_v5  ;;  %v1786_v18 = vld [vmem:[#allocation13 + $0x1e60] sm:$0xff] }
 0x418   :  { %v7532_v26 = vpop.f32.mrb[11].mxu0  ;;  %7833 = vmatprep.subr.bf16.mxu0 %v15074_v8  ;;  %v15148_v8 = vcombine.high %v1759_v2, %v1767_v3  ;;  %v15153_v20 = vcombine.low %v1762_v30, %v1770_v5  ;;  %v15164_v21 = vcombine.high %v1775_v11, %v1783_v53  ;;  %v15169_v28 = vcombine.low %v1778_v15, %v1786_v18  ;;  %v1834_v58 = vld [vmem:[#allocation13 + $0x1fe0] sm:$0xff]  ;;  %v836_v11 = vld [vmem:[#allocation13 + $0xb0] sm:$0xff] }
 0x419   :  { %v1799_v26 = vld [vmem:[#allocation13 + $0x1ec8] sm:$0xff]  ;;  %v844_v53 = vld [vmem:[#allocation13 + $0xf0] sm:$0xff] }
 0x41a   :  { %7342 = vmatpush1.bf16.msra.mxu1 %v15067_v19  ;;  %v15147_v19 = vcombine.low %v1759_v2, %v1767_v3  ;;  %v828_v2 = vld [vmem:[#allocation13 + $0x70] sm:$0xff] }
 0x41b   :  { %7834 = vmatpush1.bf16.msra.mxu0 %v15073_v52  ;;  %7343 = vmatprep.subr.bf16.mxu1 %v15084_v25  ;;  %v15170_v52 = vcombine.high %v1778_v15, %v1786_v18  ;;  %v1791_v25 = vld [vmem:[#allocation13 + $0x1e88] sm:$0xff] }
 0x41c   :  { %7835 = vmatprep.subr.bf16.mxu0 %v15090_v33  ;;  %v1794_v33 = vld [vmem:[#allocation13 + $0x1ea0] sm:$0xff]  ;;  %v15180_v38 = vcombine.high %v1791_v25, %v1799_v26  ;;  %v15179_v44 = vcombine.low %v1791_v25, %v1799_v26  ;;  %v860_v25 = vld [vmem:[#allocation13 + $0x170] sm:$0xff] }
 0x41d   :  { %v15185_v48 = vcombine.low %v1794_v33, %v1802_v34 }
 0x41e   :  { %7344 = vmatpush1.bf16.msra.mxu1 %v15083_v1  ;;  %v15186_v1 = vcombine.high %v1794_v33, %v1802_v34  ;;  %v14229_v33 = vcombine.low %v836_v11, %v844_v53 }
 0x41f   :  { %7836 = vmatpush1.bf16.msra.mxu0 %v15089_v39  ;;  %7345 = vmatprep.subr.bf16.mxu1 %v15100_v40  ;;  %v1807_v39 = vld [vmem:[#allocation13 + $0x1f08] sm:$0xff] }
 0x420   :  { %7837 = vmatprep.subr.bf16.mxu0 %v15106_v42  ;;  %v1815_v40 = vld [vmem:[#allocation13 + $0x1f48] sm:$0xff]  ;;  %v1810_v42 = vld [vmem:[#allocation13 + $0x1f20] sm:$0xff] }
 0x421   :  { %v15196_v50 = vcombine.high %v1807_v39, %v1815_v40  ;;  %v15195_v59 = vcombine.low %v1807_v39, %v1815_v40  ;;  %v15201_v60 = vcombine.low %v1810_v42, %v1818_v43  ;;  %v876_v39 = vld [vmem:[#allocation13 + $0x1f0] sm:$0xff] }
 0x422   :  { %7346 = vmatpush1.bf16.msra.mxu1 %v15099_v51  ;;  %v15202_v51 = vcombine.high %v1810_v42, %v1818_v43 }
 0x423   :  { %7838 = vmatpush1.bf16.msra.mxu0 %v15105_v54  ;;  %7347 = vmatprep.subr.bf16.mxu1 %v15116_v55  ;;  %v1823_v54 = vld [vmem:[#allocation13 + $0x1f88] sm:$0xff] }
 0x424   :  { %7839 = vmatprep.subr.bf16.mxu0 %v15122_v57  ;;  %v1831_v55 = vld [vmem:[#allocation13 + $0x1fc8] sm:$0xff]  ;;  %v1826_v57 = vld [vmem:[#allocation13 + $0x1fa0] sm:$0xff] }
 0x425   :  { %v15212_v61 = vcombine.high %v1823_v54, %v1831_v55  ;;  %v15211_v3 = vcombine.low %v1823_v54, %v1831_v55  ;;  %v15217_v30 = vcombine.low %v1826_v57, %v1834_v58  ;;  %v892_v54 = vld [vmem:[#allocation13 + $0x270] sm:$0xff] }
 0x426   :  { %7348 = vmatpush1.bf16.msra.mxu1 %v15115_v62  ;;  %v15218_v62 = vcombine.high %v1826_v57, %v1834_v58 }
 0x427   :  { %7840 = vmatpush1.bf16.msra.mxu0 %v15121_v63  ;;  %7349 = vmatprep.subr.bf16.mxu1 %v15132_v47  ;;  %v817_v63 = vld [vmem:[#allocation13 + $0x18] sm:$0xff] }
 0x428   :  { %7841 = vmatprep.subr.bf16.mxu0 %v15138_v0  ;;  %v825_v47 = vld [vmem:[#allocation13 + $0x58] sm:$0xff]  ;;  %v820_v0 = vld [vmem:[#allocation13 + $0x30] sm:$0xff] }
 0x429   :  { %v14208_v5 = vcombine.high %v817_v63, %v825_v47  ;;  %v14213_v15 = vcombine.low %v820_v0, %v828_v2 }
 0x42a   :  { %7350 = vmatpush1.bf16.msra.mxu1 %v15131_v6  ;;  %v14214_v6 = vcombine.high %v820_v0, %v828_v2 }
 0x42b   :  { %7842 = vmatpush1.bf16.msra.mxu0 %v15137_v46  ;;  %7351 = vmatprep.subr.bf16.mxu1 %v15148_v8  ;;  %v833_v46 = vld [vmem:[#allocation13 + $0x98] sm:$0xff] }
 0x42c   :  { %7843 = vmatprep.subr.bf16.mxu0 %v15154_v10  ;;  %v841_v8 = vld [vmem:[#allocation13 + $0xd8] sm:$0xff]  ;;  %v14207_v10 = vcombine.low %v817_v63, %v825_v47  ;;  %v908_v63 = vld [vmem:[#allocation13 + $0x2f0] sm:$0xff] }
 0x42d   :  { %v14224_v18 = vcombine.high %v833_v46, %v841_v8  ;;  %v14223_v26 = vcombine.low %v833_v46, %v841_v8  ;;  %v924_v46 = vld [vmem:[#allocation13 + $0x370] sm:$0xff] }
 0x42e   :  { %7352 = vmatpush1.bf16.msra.mxu1 %v15147_v19  ;;  %v849_v19 = vld [vmem:[#allocation13 + $0x118] sm:$0xff] }
 0x42f   :  { %7844 = vmatpush1.bf16.msra.mxu0 %v15153_v20  ;;  %7353 = vmatprep.subr.bf16.mxu1 %v15164_v21  ;;  %v857_v20 = vld [vmem:[#allocation13 + $0x158] sm:$0xff]  ;;  %v14230_v21 = vcombine.high %v836_v11, %v844_v53 }
 0x430   :  { %7845 = vmatprep.subr.bf16.mxu0 %v15170_v52  ;;  %v852_v52 = vld [vmem:[#allocation13 + $0x130] sm:$0xff]  ;;  %v14240_v34 = vcombine.high %v849_v19, %v857_v20  ;;  %v14239_v40 = vcombine.low %v849_v19, %v857_v20 }
 0x431   :  { %v14245_v42 = vcombine.low %v852_v52, %v860_v25  ;;  %v932_v19 = vld [vmem:[#allocation13 + $0x3b0] sm:$0xff] }
 0x432   :  { %7354 = vmatpush1.bf16.msra.mxu1 %v15163_v35  ;;  %v14246_v35 = vcombine.high %v852_v52, %v860_v25  ;;  %v940_v20 = vld [vmem:[#allocation13 + $0x3f0] sm:$0xff] }
 0x433   :  { %7846 = vmatpush1.bf16.msra.mxu0 %v15169_v28  ;;  %7355 = vmatprep.subr.bf16.mxu1 %v15180_v38  ;;  %v865_v28 = vld [vmem:[#allocation13 + $0x198] sm:$0xff] }
 0x434   :  { %7847 = vmatprep.subr.bf16.mxu0 %v15186_v1  ;;  %v873_v38 = vld [vmem:[#allocation13 + $0x1d8] sm:$0xff]  ;;  %v868_v1 = vld [vmem:[#allocation13 + $0x1b0] sm:$0xff] }
 0x435   :  { %v14256_v43 = vcombine.high %v865_v28, %v873_v38  ;;  %v14255_v55 = vcombine.low %v865_v28, %v873_v38  ;;  %v14261_v57 = vcombine.low %v868_v1, %v876_v39  ;;  %v956_v28 = vld [vmem:[#allocation13 + $0x470] sm:$0xff] }
 0x436   :  { %7356 = vmatpush1.bf16.msra.mxu1 %v15179_v44  ;;  %v14262_v44 = vcombine.high %v868_v1, %v876_v39  ;;  %v14325_v1 = vcombine.low %v932_v19, %v940_v20 }
 0x437   :  { %7848 = vmatpush1.bf16.msra.mxu0 %v15185_v48  ;;  %7357 = vmatprep.subr.bf16.mxu1 %v15196_v50  ;;  %v881_v48 = vld [vmem:[#allocation13 + $0x218] sm:$0xff] }
 0x438   :  { %7849 = vmatprep.subr.bf16.mxu0 %v15202_v51  ;;  %v889_v50 = vld [vmem:[#allocation13 + $0x258] sm:$0xff]  ;;  %v884_v51 = vld [vmem:[#allocation13 + $0x230] sm:$0xff] }
 0x439   :  { %v14272_v58 = vcombine.high %v881_v48, %v889_v50  ;;  %v14271_v47 = vcombine.low %v881_v48, %v889_v50  ;;  %v14277_v0 = vcombine.low %v884_v51, %v892_v54  ;;  %v972_v48 = vld [vmem:[#allocation13 + $0x4f0] sm:$0xff] }
 0x43a   :  { %7358 = vmatpush1.bf16.msra.mxu1 %v15195_v59  ;;  %v14278_v59 = vcombine.high %v884_v51, %v892_v54 }
 0x43b   :  { %7850 = vmatpush1.bf16.msra.mxu0 %v15201_v60  ;;  %7359 = vmatprep.subr.bf16.mxu1 %v15212_v61  ;;  %v897_v60 = vld [vmem:[#allocation13 + $0x298] sm:$0xff] }
 0x43c   :  { %7851 = vmatprep.subr.bf16.mxu0 %v15218_v62  ;;  %v905_v61 = vld [vmem:[#allocation13 + $0x2d8] sm:$0xff]  ;;  %v900_v62 = vld [vmem:[#allocation13 + $0x2b0] sm:$0xff] }
 0x43d   :  { %v14288_v2 = vcombine.high %v897_v60, %v905_v61  ;;  %v14287_v8 = vcombine.low %v897_v60, %v905_v61  ;;  %v988_v60 = vld [vmem:[#allocation13 + $0x570] sm:$0xff] }
 0x43e   :  { %7360 = vmatpush1.bf16.msra.mxu1 %v15211_v3  ;;  %v14294_v3 = vcombine.high %v900_v62, %v908_v63 }
 0x43f   :  { %7852 = vmatpush1.bf16.msra.mxu0 %v15217_v30  ;;  %7534 = vmatprep.subr.bf16.mxu1 %v14208_v5  ;;  %v913_v30 = vld [vmem:[#allocation13 + $0x318] sm:$0xff] }
 0x440   :  { %8026 = vmatprep.subr.bf16.mxu0 %v14214_v6  ;;  %v921_v5 = vld [vmem:[#allocation13 + $0x358] sm:$0xff]  ;;  %v916_v6 = vld [vmem:[#allocation13 + $0x330] sm:$0xff] }
 0x441   :  { %7362 = vmatmul.mubr.bf16.vlgmr.msra.gmra.mrb[12].mxu1 %v18152_v4  ;;  %v14304_v11 = vcombine.high %v913_v30, %v921_v5  ;;  %v14310_v53 = vcombine.high %v916_v6, %v924_v46  ;;  %v14309_v52 = vcombine.low %v916_v6, %v924_v46 }
 0x442   :  { %7854 = vmatmul.mubr.bf16.vlgmr.msra.gmra.mrb[12].mxu0 %v18152_v4  ;;  %7535 = vmatpush1.bf16.msra.mxu1 %v14207_v10  ;;  %v14293_v10 = vcombine.low %v900_v62, %v908_v63 }
 0x443   :  { %7566 = vmatprep.mubr.bf16.mxu1 %v18087_v9  ;;  %8027 = vmatpush1.bf16.msra.mxu0 %v14213_v15  ;;  %v929_v15 = vld [vmem:[#allocation13 + $0x398] sm:$0xff] }
 0x444   :  { %8058 = vmatprep.mubr.bf16.mxu0 %v18087_v9  ;;  %7536 = vmatprep.subr.bf16.mxu1 %v14224_v18  ;;  %v937_v18 = vld [vmem:[#allocation13 + $0x3d8] sm:$0xff] }
 0x445   :  { %8028 = vmatprep.subr.bf16.mxu0 %v14230_v21  ;;  %v14303_v21 = vcombine.low %v913_v30, %v921_v5  ;;  %v14320_v25 = vcombine.high %v929_v15, %v937_v18  ;;  %v14319_v38 = vcombine.low %v929_v15, %v937_v18  ;;  %v1004_v30 = vld [vmem:[#allocation13 + $0x5f0] sm:$0xff] }
 0x446   :  { %7537 = vmatpush1.bf16.msra.mxu1 %v14223_v26  ;;  %v14326_v26 = vcombine.high %v932_v19, %v940_v20  ;;  %v1020_v15 = vld [vmem:[#allocation13 + $0x670] sm:$0xff] }
 0x447   :  { %8029 = vmatpush1.bf16.msra.mxu0 %v14229_v33  ;;  %7538 = vmatprep.subr.bf16.mxu1 %v14240_v34  ;;  %v945_v33 = vld [vmem:[#allocation13 + $0x418] sm:$0xff] }
 0x448   :  { %8030 = vmatprep.subr.bf16.mxu0 %v14246_v35  ;;  %v953_v34 = vld [vmem:[#allocation13 + $0x458] sm:$0xff]  ;;  %v948_v35 = vld [vmem:[#allocation13 + $0x430] sm:$0xff] }
 0x449   :  { %v14336_v39 = vcombine.high %v945_v33, %v953_v34  ;;  %v14335_v50 = vcombine.low %v945_v33, %v953_v34  ;;  %v14341_v51 = vcombine.low %v948_v35, %v956_v28  ;;  %v1036_v33 = vld [vmem:[#allocation13 + $0x6f0] sm:$0xff] }
 0x44a   :  { %7539 = vmatpush1.bf16.msra.mxu1 %v14239_v40  ;;  %v14342_v40 = vcombine.high %v948_v35, %v956_v28 }
 0x44b   :  { %8031 = vmatpush1.bf16.msra.mxu0 %v14245_v42  ;;  %7540 = vmatprep.subr.bf16.mxu1 %v14256_v43  ;;  %v961_v42 = vld [vmem:[#allocation13 + $0x498] sm:$0xff] }
 0x44c   :  { %8032 = vmatprep.subr.bf16.mxu0 %v14262_v44  ;;  %v969_v43 = vld [vmem:[#allocation13 + $0x4d8] sm:$0xff]  ;;  %v964_v44 = vld [vmem:[#allocation13 + $0x4b0] sm:$0xff] }
 0x44d   :  { %v14352_v54 = vcombine.high %v961_v42, %v969_v43  ;;  %v14351_v61 = vcombine.low %v961_v42, %v969_v43  ;;  %v14357_v62 = vcombine.low %v964_v44, %v972_v48  ;;  %v1052_v42 = vld [vmem:[#allocation13 + $0x770] sm:$0xff] }
 0x44e   :  { %7541 = vmatpush1.bf16.msra.mxu1 %v14255_v55  ;;  %v14358_v55 = vcombine.high %v964_v44, %v972_v48 }
 0x44f   :  { %8033 = vmatpush1.bf16.msra.mxu0 %v14261_v57  ;;  %7542 = vmatprep.subr.bf16.mxu1 %v14272_v58  ;;  %v977_v57 = vld [vmem:[#allocation13 + $0x518] sm:$0xff] }
 0x450   :  { %8034 = vmatprep.subr.bf16.mxu0 %v14278_v59  ;;  %v985_v58 = vld [vmem:[#allocation13 + $0x558] sm:$0xff]  ;;  %v980_v59 = vld [vmem:[#allocation13 + $0x530] sm:$0xff] }
 0x451   :  { %v14368_v63 = vcombine.high %v977_v57, %v985_v58  ;;  %v14367_v5 = vcombine.low %v977_v57, %v985_v58  ;;  %v14373_v6 = vcombine.low %v980_v59, %v988_v60  ;;  %v1068_v57 = vld [vmem:[#allocation13 + $0x7f0] sm:$0xff] }
 0x452   :  { %7543 = vmatpush1.bf16.msra.mxu1 %v14271_v47  ;;  %v14374_v47 = vcombine.high %v980_v59, %v988_v60 }
 0x453   :  { %8035 = vmatpush1.bf16.msra.mxu0 %v14277_v0  ;;  %7544 = vmatprep.subr.bf16.mxu1 %v14288_v2  ;;  %v993_v0 = vld [vmem:[#allocation13 + $0x598] sm:$0xff] }
 0x454   :  { %8036 = vmatprep.subr.bf16.mxu0 %v14294_v3  ;;  %v1001_v2 = vld [vmem:[#allocation13 + $0x5d8] sm:$0xff]  ;;  %v996_v3 = vld [vmem:[#allocation13 + $0x5b0] sm:$0xff] }
 0x455   :  { %v14384_v46 = vcombine.high %v993_v0, %v1001_v2  ;;  %v14383_v18 = vcombine.low %v993_v0, %v1001_v2  ;;  %v14389_v19 = vcombine.low %v996_v3, %v1004_v30  ;;  %v1084_v0 = vld [vmem:[#allocation13 + $0x870] sm:$0xff] }
 0x456   :  { %7545 = vmatpush1.bf16.msra.mxu1 %v14287_v8  ;;  %v14390_v8 = vcombine.high %v996_v3, %v1004_v30 }
 0x457   :  { %8037 = vmatpush1.bf16.msra.mxu0 %v14293_v10  ;;  %7546 = vmatprep.subr.bf16.mxu1 %v14304_v11  ;;  %v1009_v10 = vld [vmem:[#allocation13 + $0x618] sm:$0xff] }
 0x458   :  { %8038 = vmatprep.subr.bf16.mxu0 %v14310_v53  ;;  %v1017_v11 = vld [vmem:[#allocation13 + $0x658] sm:$0xff]  ;;  %v1012_v53 = vld [vmem:[#allocation13 + $0x630] sm:$0xff] }
 0x459   :  { %v14400_v20 = vcombine.high %v1009_v10, %v1017_v11  ;;  %v14399_v34 = vcombine.low %v1009_v10, %v1017_v11  ;;  %v14405_v35 = vcombine.low %v1012_v53, %v1020_v15  ;;  %v1092_v10 = vld [vmem:[#allocation13 + $0x8b0] sm:$0xff] }
 0x45a   :  { %7547 = vmatpush1.bf16.msra.mxu1 %v14303_v21  ;;  %v14406_v21 = vcombine.high %v1012_v53, %v1020_v15  ;;  %v1100_v11 = vld [vmem:[#allocation13 + $0x8f0] sm:$0xff] }
 0x45b   :  { %8039 = vmatpush1.bf16.msra.mxu0 %v14309_v52  ;;  %7548 = vmatprep.subr.bf16.mxu1 %v14320_v25  ;;  %v1025_v52 = vld [vmem:[#allocation13 + $0x698] sm:$0xff] }
 0x45c   :  { %8040 = vmatprep.subr.bf16.mxu0 %v14326_v26  ;;  %v1033_v25 = vld [vmem:[#allocation13 + $0x6d8] sm:$0xff]  ;;  %v1028_v26 = vld [vmem:[#allocation13 + $0x6b0] sm:$0xff] }
 0x45d   :  { %v14416_v28 = vcombine.high %v1025_v52, %v1033_v25  ;;  %v14415_v43 = vcombine.low %v1025_v52, %v1033_v25  ;;  %v14421_v44 = vcombine.low %v1028_v26, %v1036_v33  ;;  %v1116_v52 = vld [vmem:[#allocation13 + $0x970] sm:$0xff] }
 0x45e   :  { %7549 = vmatpush1.bf16.msra.mxu1 %v14319_v38  ;;  %v14422_v38 = vcombine.high %v1028_v26, %v1036_v33  ;;  %v14485_v26 = vcombine.low %v1092_v10, %v1100_v11 }
 0x45f   :  { %8041 = vmatpush1.bf16.msra.mxu0 %v14325_v1  ;;  %7550 = vmatprep.subr.bf16.mxu1 %v14336_v39  ;;  %v1041_v1 = vld [vmem:[#allocation13 + $0x718] sm:$0xff] }
 0x460   :  { %8042 = vmatprep.subr.bf16.mxu0 %v14342_v40  ;;  %v1049_v39 = vld [vmem:[#allocation13 + $0x758] sm:$0xff]  ;;  %v1044_v40 = vld [vmem:[#allocation13 + $0x730] sm:$0xff] }
 0x461   :  { %v14432_v48 = vcombine.high %v1041_v1, %v1049_v39  ;;  %v14431_v58 = vcombine.low %v1041_v1, %v1049_v39  ;;  %v14437_v59 = vcombine.low %v1044_v40, %v1052_v42  ;;  %v1132_v1 = vld [vmem:[#allocation13 + $0x9f0] sm:$0xff] }
 0x462   :  { %7551 = vmatpush1.bf16.msra.mxu1 %v14335_v50  ;;  %v14438_v50 = vcombine.high %v1044_v40, %v1052_v42 }
 0x463   :  { %8043 = vmatpush1.bf16.msra.mxu0 %v14341_v51  ;;  %7552 = vmatprep.subr.bf16.mxu1 %v14352_v54  ;;  %v1057_v51 = vld [vmem:[#allocation13 + $0x798] sm:$0xff] }
 0x464   :  { %8044 = vmatprep.subr.bf16.mxu0 %v14358_v55  ;;  %v1065_v54 = vld [vmem:[#allocation13 + $0x7d8] sm:$0xff]  ;;  %v1060_v55 = vld [vmem:[#allocation13 + $0x7b0] sm:$0xff] }
 0x465   :  { %v14448_v60 = vcombine.high %v1057_v51, %v1065_v54  ;;  %v14447_v2 = vcombine.low %v1057_v51, %v1065_v54  ;;  %v14453_v3 = vcombine.low %v1060_v55, %v1068_v57  ;;  %v1148_v51 = vld [vmem:[#allocation13 + $0xa70] sm:$0xff] }
 0x466   :  { %7553 = vmatpush1.bf16.msra.mxu1 %v14351_v61  ;;  %v14454_v61 = vcombine.high %v1060_v55, %v1068_v57 }
 0x467   :  { %8045 = vmatpush1.bf16.msra.mxu0 %v14357_v62  ;;  %7554 = vmatprep.subr.bf16.mxu1 %v14368_v63  ;;  %v1073_v62 = vld [vmem:[#allocation13 + $0x818] sm:$0xff] }
 0x468   :  { %8046 = vmatprep.subr.bf16.mxu0 %v14374_v47  ;;  %v1081_v63 = vld [vmem:[#allocation13 + $0x858] sm:$0xff]  ;;  %v1076_v47 = vld [vmem:[#allocation13 + $0x830] sm:$0xff] }
 0x469   :  { %v14464_v30 = vcombine.high %v1073_v62, %v1081_v63  ;;  %v14469_v53 = vcombine.low %v1076_v47, %v1084_v0 }
 0x46a   :  { %7555 = vmatpush1.bf16.msra.mxu1 %v14367_v5  ;;  %v14470_v5 = vcombine.high %v1076_v47, %v1084_v0 }
 0x46b   :  { %8047 = vmatpush1.bf16.msra.mxu0 %v14373_v6  ;;  %7556 = vmatprep.subr.bf16.mxu1 %v14384_v46  ;;  %v1089_v6 = vld [vmem:[#allocation13 + $0x898] sm:$0xff] }
 0x46c   :  { %8048 = vmatprep.subr.bf16.mxu0 %v14390_v8  ;;  %v1097_v46 = vld [vmem:[#allocation13 + $0x8d8] sm:$0xff]  ;;  %v14463_v8 = vcombine.low %v1073_v62, %v1081_v63  ;;  %v1164_v62 = vld [vmem:[#allocation13 + $0xaf0] sm:$0xff] }
 0x46d   :  { %v14480_v15 = vcombine.high %v1089_v6, %v1097_v46  ;;  %v14479_v25 = vcombine.low %v1089_v6, %v1097_v46  ;;  %v1180_v6 = vld [vmem:[#allocation13 + $0xb70] sm:$0xff] }
 0x46e   :  { %7557 = vmatpush1.bf16.msra.mxu1 %v14383_v18  ;;  %v1105_v18 = vld [vmem:[#allocation13 + $0x918] sm:$0xff] }
 0x46f   :  { %8049 = vmatpush1.bf16.msra.mxu0 %v14389_v19  ;;  %7558 = vmatprep.subr.bf16.mxu1 %v14400_v20  ;;  %v1113_v19 = vld [vmem:[#allocation13 + $0x958] sm:$0xff]  ;;  %v14486_v20 = vcombine.high %v1092_v10, %v1100_v11 }
 0x470   :  { %8050 = vmatprep.subr.bf16.mxu0 %v14406_v21  ;;  %v1108_v21 = vld [vmem:[#allocation13 + $0x930] sm:$0xff]  ;;  %v14496_v33 = vcombine.high %v1105_v18, %v1113_v19  ;;  %v14495_v39 = vcombine.low %v1105_v18, %v1113_v19 }
 0x471   :  { %v14501_v40 = vcombine.low %v1108_v21, %v1116_v52  ;;  %v1188_v18 = vld [vmem:[#allocation13 + $0xbb0] sm:$0xff] }
 0x472   :  { %7559 = vmatpush1.bf16.msra.mxu1 %v14399_v34  ;;  %v14502_v34 = vcombine.high %v1108_v21, %v1116_v52  ;;  %v1196_v19 = vld [vmem:[#allocation13 + $0xbf0] sm:$0xff] }
 0x473   :  { %8051 = vmatpush1.bf16.msra.mxu0 %v14405_v35  ;;  %7560 = vmatprep.subr.bf16.mxu1 %v14416_v28  ;;  %v1121_v35 = vld [vmem:[#allocation13 + $0x998] sm:$0xff] }
 0x474   :  { %8052 = vmatprep.subr.bf16.mxu0 %v14422_v38  ;;  %v1129_v28 = vld [vmem:[#allocation13 + $0x9d8] sm:$0xff]  ;;  %v1124_v38 = vld [vmem:[#allocation13 + $0x9b0] sm:$0xff] }
 0x475   :  { %v14512_v42 = vcombine.high %v1121_v35, %v1129_v28  ;;  %v14511_v54 = vcombine.low %v1121_v35, %v1129_v28  ;;  %v14517_v55 = vcombine.low %v1124_v38, %v1132_v1  ;;  %v1212_v35 = vld [vmem:[#allocation13 + $0xc70] sm:$0xff] }
 0x476   :  { %7561 = vmatpush1.bf16.msra.mxu1 %v14415_v43  ;;  %v14518_v43 = vcombine.high %v1124_v38, %v1132_v1  ;;  %v14581_v38 = vcombine.low %v1188_v18, %v1196_v19 }
 0x477   :  { %8053 = vmatpush1.bf16.msra.mxu0 %v14421_v44  ;;  %7562 = vmatprep.subr.bf16.mxu1 %v14432_v48  ;;  %v1137_v44 = vld [vmem:[#allocation13 + $0xa18] sm:$0xff] }
 0x478   :  { %8054 = vmatprep.subr.bf16.mxu0 %v14438_v50  ;;  %v1145_v48 = vld [vmem:[#allocation13 + $0xa58] sm:$0xff]  ;;  %v1140_v50 = vld [vmem:[#allocation13 + $0xa30] sm:$0xff] }
 0x479   :  { %v14528_v57 = vcombine.high %v1137_v44, %v1145_v48  ;;  %v14527_v63 = vcombine.low %v1137_v44, %v1145_v48  ;;  %v14533_v47 = vcombine.low %v1140_v50, %v1148_v51  ;;  %v1228_v44 = vld [vmem:[#allocation13 + $0xcf0] sm:$0xff] }
 0x47a   :  { %7563 = vmatpush1.bf16.msra.mxu1 %v14431_v58  ;;  %v14534_v58 = vcombine.high %v1140_v50, %v1148_v51 }
 0x47b   :  { %8055 = vmatpush1.bf16.msra.mxu0 %v14437_v59  ;;  %7564 = vmatprep.subr.bf16.mxu1 %v14448_v60  ;;  %v1153_v59 = vld [vmem:[#allocation13 + $0xa98] sm:$0xff] }
 0x47c   :  { %8056 = vmatprep.subr.bf16.mxu0 %v14454_v61  ;;  %v1161_v60 = vld [vmem:[#allocation13 + $0xad8] sm:$0xff]  ;;  %v1156_v61 = vld [vmem:[#allocation13 + $0xab0] sm:$0xff] }
 0x47d   :  { %v14544_v0 = vcombine.high %v1153_v59, %v1161_v60  ;;  %v14543_v46 = vcombine.low %v1153_v59, %v1161_v60  ;;  %v1244_v59 = vld [vmem:[#allocation13 + $0xd70] sm:$0xff] }
 0x47e   :  { %7565 = vmatpush1.bf16.msra.mxu1 %v14447_v2  ;;  %v14550_v2 = vcombine.high %v1156_v61, %v1164_v62 }
 0x47f   :  { %8057 = vmatpush1.bf16.msra.mxu0 %v14453_v3  ;;  %7575 = vmatprep.subr.bf16.mxu1 %v14464_v30  ;;  %v1169_v3 = vld [vmem:[#allocation13 + $0xb18] sm:$0xff] }
 0x480   :  { %8067 = vmatprep.subr.bf16.mxu0 %v14470_v5  ;;  %v1177_v30 = vld [vmem:[#allocation13 + $0xb58] sm:$0xff]  ;;  %v1172_v5 = vld [vmem:[#allocation13 + $0xb30] sm:$0xff] }
 0x481   :  { %7567 = vmatmul.mubr.bf16.vlgmr.msra.gmra.mrb[16].mxu1 %v18089_v49  ;;  %v14560_v10 = vcombine.high %v1169_v3, %v1177_v30  ;;  %v14566_v11 = vcombine.high %v1172_v5, %v1180_v6  ;;  %v14565_v21 = vcombine.low %v1172_v5, %v1180_v6 }
 0x482   :  { %8059 = vmatmul.mubr.bf16.vlgmr.msra.gmra.mrb[16].mxu0 %v18089_v49  ;;  %7576 = vmatpush1.bf16.msra.mxu1 %v14463_v8  ;;  %v14549_v8 = vcombine.low %v1156_v61, %v1164_v62 }
 0x483   :  { %7607 = vmatprep.mubr.bf16.mxu1 %v18093_v56  ;;  %8068 = vmatpush1.bf16.msra.mxu0 %v14469_v53  ;;  %v1185_v53 = vld [vmem:[#allocation13 + $0xb98] sm:$0xff] }
 0x484   :  { %8099 = vmatprep.mubr.bf16.mxu0 %v18093_v56  ;;  %7577 = vmatprep.subr.bf16.mxu1 %v14480_v15  ;;  %v1193_v15 = vld [vmem:[#allocation13 + $0xbd8] sm:$0xff] }
 0x485   :  { %8069 = vmatprep.subr.bf16.mxu0 %v14486_v20  ;;  %v14559_v20 = vcombine.low %v1169_v3, %v1177_v30  ;;  %v14576_v52 = vcombine.high %v1185_v53, %v1193_v15  ;;  %v14575_v28 = vcombine.low %v1185_v53, %v1193_v15  ;;  %v1260_v3 = vld [vmem:[#allocation13 + $0xdf0] sm:$0xff] }
 0x486   :  { %7578 = vmatpush1.bf16.msra.mxu1 %v14479_v25  ;;  %v14582_v25 = vcombine.high %v1188_v18, %v1196_v19  ;;  %v1276_v53 = vld [vmem:[#allocation13 + $0xe70] sm:$0xff] }
 0x487   :  { %8070 = vmatpush1.bf16.msra.mxu0 %v14485_v26  ;;  %7579 = vmatprep.subr.bf16.mxu1 %v14496_v33  ;;  %v1201_v26 = vld [vmem:[#allocation13 + $0xc18] sm:$0xff] }
 0x488   :  { %8071 = vmatprep.subr.bf16.mxu0 %v14502_v34  ;;  %v1209_v33 = vld [vmem:[#allocation13 + $0xc58] sm:$0xff]  ;;  %v1204_v34 = vld [vmem:[#allocation13 + $0xc30] sm:$0xff] }
 0x489   :  { %v14592_v1 = vcombine.high %v1201_v26, %v1209_v33  ;;  %v14591_v48 = vcombine.low %v1201_v26, %v1209_v33  ;;  %v14597_v50 = vcombine.low %v1204_v34, %v1212_v35  ;;  %v1292_v26 = vld [vmem:[#allocation13 + $0xef0] sm:$0xff] }
 0x48a   :  { %7580 = vmatpush1.bf16.msra.mxu1 %v14495_v39  ;;  %v14598_v39 = vcombine.high %v1204_v34, %v1212_v35 }
 0x48b   :  { %8072 = vmatpush1.bf16.msra.mxu0 %v14501_v40  ;;  %7581 = vmatprep.subr.bf16.mxu1 %v14512_v42  ;;  %v1217_v40 = vld [vmem:[#allocation13 + $0xc98] sm:$0xff] }
 0x48c   :  { %8073 = vmatprep.subr.bf16.mxu0 %v14518_v43  ;;  %v1225_v42 = vld [vmem:[#allocation13 + $0xcd8] sm:$0xff]  ;;  %v1220_v43 = vld [vmem:[#allocation13 + $0xcb0] sm:$0xff] }
 0x48d   :  { %v14608_v51 = vcombine.high %v1217_v40, %v1225_v42  ;;  %v14607_v60 = vcombine.low %v1217_v40, %v1225_v42  ;;  %v14613_v61 = vcombine.low %v1220_v43, %v1228_v44  ;;  %v1308_v40 = vld [vmem:[#allocation13 + $0xf70] sm:$0xff] }
 0x48e   :  { %7582 = vmatpush1.bf16.msra.mxu1 %v14511_v54  ;;  %v14614_v54 = vcombine.high %v1220_v43, %v1228_v44 }
 0x48f   :  { %8074 = vmatpush1.bf16.msra.mxu0 %v14517_v55  ;;  %7583 = vmatprep.subr.bf16.mxu1 %v14528_v57  ;;  %v1233_v55 = vld [vmem:[#allocation13 + $0xd18] sm:$0xff] }
 0x490   :  { %8075 = vmatprep.subr.bf16.mxu0 %v14534_v58  ;;  %v1241_v57 = vld [vmem:[#allocation13 + $0xd58] sm:$0xff]  ;;  %v1236_v58 = vld [vmem:[#allocation13 + $0xd30] sm:$0xff] }
 0x491   :  { %v14624_v62 = vcombine.high %v1233_v55, %v1241_v57  ;;  %v14623_v30 = vcombine.low %v1233_v55, %v1241_v57  ;;  %v14629_v5 = vcombine.low %v1236_v58, %v1244_v59  ;;  %v1324_v55 = vld [vmem:[#allocation13 + $0xff0] sm:$0xff] }
 0x492   :  { %7584 = vmatpush1.bf16.msra.mxu1 %v14527_v63  ;;  %v14630_v63 = vcombine.high %v1236_v58, %v1244_v59 }
 0x493   :  { %8076 = vmatpush1.bf16.msra.mxu0 %v14533_v47  ;;  %7585 = vmatprep.subr.bf16.mxu1 %v14544_v0  ;;  %v1249_v47 = vld [vmem:[#allocation13 + $0xd98] sm:$0xff] }
 0x494   :  { %8077 = vmatprep.subr.bf16.mxu0 %v14550_v2  ;;  %v1257_v0 = vld [vmem:[#allocation13 + $0xdd8] sm:$0xff]  ;;  %v1252_v2 = vld [vmem:[#allocation13 + $0xdb0] sm:$0xff] }
 0x495   :  { %v14640_v6 = vcombine.high %v1249_v47, %v1257_v0  ;;  %v14639_v15 = vcombine.low %v1249_v47, %v1257_v0  ;;  %v14645_v18 = vcombine.low %v1252_v2, %v1260_v3  ;;  %v1340_v47 = vld [vmem:[#allocation13 + $0x1070] sm:$0xff] }
 0x496   :  { %7586 = vmatpush1.bf16.msra.mxu1 %v14543_v46  ;;  %v14646_v46 = vcombine.high %v1252_v2, %v1260_v3 }
 0x497   :  { %8078 = vmatpush1.bf16.msra.mxu0 %v14549_v8  ;;  %7587 = vmatprep.subr.bf16.mxu1 %v14560_v10  ;;  %v1265_v8 = vld [vmem:[#allocation13 + $0xe18] sm:$0xff] }
 0x498   :  { %8079 = vmatprep.subr.bf16.mxu0 %v14566_v11  ;;  %v1273_v10 = vld [vmem:[#allocation13 + $0xe58] sm:$0xff]  ;;  %v1268_v11 = vld [vmem:[#allocation13 + $0xe30] sm:$0xff] }
 0x499   :  { %v14656_v19 = vcombine.high %v1265_v8, %v1273_v10  ;;  %v14655_v33 = vcombine.low %v1265_v8, %v1273_v10  ;;  %v14661_v34 = vcombine.low %v1268_v11, %v1276_v53  ;;  %v1348_v8 = vld [vmem:[#allocation13 + $0x10b0] sm:$0xff] }
 0x49a   :  { %7588 = vmatpush1.bf16.msra.mxu1 %v14559_v20  ;;  %v14662_v20 = vcombine.high %v1268_v11, %v1276_v53  ;;  %v1356_v10 = vld [vmem:[#allocation13 + $0x10f0] sm:$0xff] }
 0x49b   :  { %8080 = vmatpush1.bf16.msra.mxu0 %v14565_v21  ;;  %7589 = vmatprep.subr.bf16.mxu1 %v14576_v52  ;;  %v1281_v21 = vld [vmem:[#allocation13 + $0xe98] sm:$0xff] }
 0x49c   :  { %8081 = vmatprep.subr.bf16.mxu0 %v14582_v25  ;;  %v1289_v52 = vld [vmem:[#allocation13 + $0xed8] sm:$0xff]  ;;  %v1284_v25 = vld [vmem:[#allocation13 + $0xeb0] sm:$0xff] }
 0x49d   :  { %v14672_v35 = vcombine.high %v1281_v21, %v1289_v52  ;;  %v14671_v42 = vcombine.low %v1281_v21, %v1289_v52  ;;  %v14677_v43 = vcombine.low %v1284_v25, %v1292_v26  ;;  %v1372_v21 = vld [vmem:[#allocation13 + $0x1170] sm:$0xff] }
 0x49e   :  { %7590 = vmatpush1.bf16.msra.mxu1 %v14575_v28  ;;  %v14678_v28 = vcombine.high %v1284_v25, %v1292_v26  ;;  %v14741_v25 = vcombine.low %v1348_v8, %v1356_v10 }
 0x49f   :  { %8082 = vmatpush1.bf16.msra.mxu0 %v14581_v38  ;;  %7591 = vmatprep.subr.bf16.mxu1 %v14592_v1  ;;  %v1297_v38 = vld [vmem:[#allocation13 + $0xf18] sm:$0xff] }
 0x4a0   :  { %8083 = vmatprep.subr.bf16.mxu0 %v14598_v39  ;;  %v1305_v1 = vld [vmem:[#allocation13 + $0xf58] sm:$0xff]  ;;  %v1300_v39 = vld [vmem:[#allocation13 + $0xf30] sm:$0xff] }
 0x4a1   :  { %v14688_v44 = vcombine.high %v1297_v38, %v1305_v1  ;;  %v14687_v57 = vcombine.low %v1297_v38, %v1305_v1  ;;  %v14693_v58 = vcombine.low %v1300_v39, %v1308_v40  ;;  %v1388_v38 = vld [vmem:[#allocation13 + $0x11f0] sm:$0xff] }
 0x4a2   :  { %7592 = vmatpush1.bf16.msra.mxu1 %v14591_v48  ;;  %v14694_v48 = vcombine.high %v1300_v39, %v1308_v40 }
 0x4a3   :  { %8084 = vmatpush1.bf16.msra.mxu0 %v14597_v50  ;;  %7593 = vmatprep.subr.bf16.mxu1 %v14608_v51  ;;  %v1313_v50 = vld [vmem:[#allocation13 + $0xf98] sm:$0xff] }
 0x4a4   :  { %8085 = vmatprep.subr.bf16.mxu0 %v14614_v54  ;;  %v1321_v51 = vld [vmem:[#allocation13 + $0xfd8] sm:$0xff]  ;;  %v1316_v54 = vld [vmem:[#allocation13 + $0xfb0] sm:$0xff] }
 0x4a5   :  { %v14704_v59 = vcombine.high %v1313_v50, %v1321_v51  ;;  %v14703_v0 = vcombine.low %v1313_v50, %v1321_v51  ;;  %v14709_v2 = vcombine.low %v1316_v54, %v1324_v55  ;;  %v1404_v50 = vld [vmem:[#allocation13 + $0x1270] sm:$0xff] }
 0x4a6   :  { %7594 = vmatpush1.bf16.msra.mxu1 %v14607_v60  ;;  %v14710_v60 = vcombine.high %v1316_v54, %v1324_v55 }
 0x4a7   :  { %8086 = vmatpush1.bf16.msra.mxu0 %v14613_v61  ;;  %7595 = vmatprep.subr.bf16.mxu1 %v14624_v62  ;;  %v1329_v61 = vld [vmem:[#allocation13 + $0x1018] sm:$0xff] }
 0x4a8   :  { %8087 = vmatprep.subr.bf16.mxu0 %v14630_v63  ;;  %v1337_v62 = vld [vmem:[#allocation13 + $0x1058] sm:$0xff]  ;;  %v1332_v63 = vld [vmem:[#allocation13 + $0x1030] sm:$0xff] }
 0x4a9   :  { %v14720_v3 = vcombine.high %v1329_v61, %v1337_v62  ;;  %v14725_v11 = vcombine.low %v1332_v63, %v1340_v47 }
 0x4aa   :  { %7596 = vmatpush1.bf16.msra.mxu1 %v14623_v30  ;;  %v14726_v30 = vcombine.high %v1332_v63, %v1340_v47 }
 0x4ab   :  { %8088 = vmatpush1.bf16.msra.mxu0 %v14629_v5  ;;  %7597 = vmatprep.subr.bf16.mxu1 %v14640_v6  ;;  %v1345_v5 = vld [vmem:[#allocation13 + $0x1098] sm:$0xff] }
 0x4ac   :  { %8089 = vmatprep.subr.bf16.mxu0 %v14646_v46  ;;  %v1353_v6 = vld [vmem:[#allocation13 + $0x10d8] sm:$0xff]  ;;  %v14719_v46 = vcombine.low %v1329_v61, %v1337_v62  ;;  %v1420_v61 = vld [vmem:[#allocation13 + $0x12f0] sm:$0xff] }
 0x4ad   :  { %v14736_v53 = vcombine.high %v1345_v5, %v1353_v6  ;;  %v14735_v52 = vcombine.low %v1345_v5, %v1353_v6  ;;  %v1436_v5 = vld [vmem:[#allocation13 + $0x1370] sm:$0xff] }
 0x4ae   :  { %7598 = vmatpush1.bf16.msra.mxu1 %v14639_v15  ;;  %v1361_v15 = vld [vmem:[#allocation13 + $0x1118] sm:$0xff] }
 0x4af   :  { %8090 = vmatpush1.bf16.msra.mxu0 %v14645_v18  ;;  %7599 = vmatprep.subr.bf16.mxu1 %v14656_v19  ;;  %v1369_v18 = vld [vmem:[#allocation13 + $0x1158] sm:$0xff]  ;;  %v14742_v19 = vcombine.high %v1348_v8, %v1356_v10 }
 0x4b0   :  { %8091 = vmatprep.subr.bf16.mxu0 %v14662_v20  ;;  %v1364_v20 = vld [vmem:[#allocation13 + $0x1130] sm:$0xff]  ;;  %v14752_v26 = vcombine.high %v1361_v15, %v1369_v18  ;;  %v14751_v1 = vcombine.low %v1361_v15, %v1369_v18 }
 0x4b1   :  { %v14757_v39 = vcombine.low %v1364_v20, %v1372_v21  ;;  %v1444_v15 = vld [vmem:[#allocation13 + $0x13b0] sm:$0xff] }
 0x4b2   :  { %7600 = vmatpush1.bf16.msra.mxu1 %v14655_v33  ;;  %v14758_v33 = vcombine.high %v1364_v20, %v1372_v21  ;;  %v1452_v18 = vld [vmem:[#allocation13 + $0x13f0] sm:$0xff] }
 0x4b3   :  { %8092 = vmatpush1.bf16.msra.mxu0 %v14661_v34  ;;  %7601 = vmatprep.subr.bf16.mxu1 %v14672_v35  ;;  %v1377_v34 = vld [vmem:[#allocation13 + $0x1198] sm:$0xff] }
 0x4b4   :  { %8093 = vmatprep.subr.bf16.mxu0 %v14678_v28  ;;  %v1385_v35 = vld [vmem:[#allocation13 + $0x11d8] sm:$0xff]  ;;  %v1380_v28 = vld [vmem:[#allocation13 + $0x11b0] sm:$0xff] }
 0x4b5   :  { %v14768_v40 = vcombine.high %v1377_v34, %v1385_v35  ;;  %v14767_v51 = vcombine.low %v1377_v34, %v1385_v35  ;;  %v14773_v54 = vcombine.low %v1380_v28, %v1388_v38  ;;  %v1468_v34 = vld [vmem:[#allocation13 + $0x1470] sm:$0xff] }
 0x4b6   :  { %7602 = vmatpush1.bf16.msra.mxu1 %v14671_v42  ;;  %v14774_v42 = vcombine.high %v1380_v28, %v1388_v38  ;;  %v14837_v28 = vcombine.low %v1444_v15, %v1452_v18 }
 0x4b7   :  { %8094 = vmatpush1.bf16.msra.mxu0 %v14677_v43  ;;  %7603 = vmatprep.subr.bf16.mxu1 %v14688_v44  ;;  %v1393_v43 = vld [vmem:[#allocation13 + $0x1218] sm:$0xff] }
 0x4b8   :  { %8095 = vmatprep.subr.bf16.mxu0 %v14694_v48  ;;  %v1401_v44 = vld [vmem:[#allocation13 + $0x1258] sm:$0xff]  ;;  %v1396_v48 = vld [vmem:[#allocation13 + $0x1230] sm:$0xff] }
 0x4b9   :  { %v14784_v55 = vcombine.high %v1393_v43, %v1401_v44  ;;  %v14783_v62 = vcombine.low %v1393_v43, %v1401_v44  ;;  %v14789_v63 = vcombine.low %v1396_v48, %v1404_v50  ;;  %v1484_v43 = vld [vmem:[#allocation13 + $0x14f0] sm:$0xff] }
 0x4ba   :  { %7604 = vmatpush1.bf16.msra.mxu1 %v14687_v57  ;;  %v14790_v57 = vcombine.high %v1396_v48, %v1404_v50 }
 0x4bb   :  { %8096 = vmatpush1.bf16.msra.mxu0 %v14693_v58  ;;  %7605 = vmatprep.subr.bf16.mxu1 %v14704_v59  ;;  %v1409_v58 = vld [vmem:[#allocation13 + $0x1298] sm:$0xff] }
 0x4bc   :  { %8097 = vmatprep.subr.bf16.mxu0 %v14710_v60  ;;  %v1417_v59 = vld [vmem:[#allocation13 + $0x12d8] sm:$0xff]  ;;  %v1412_v60 = vld [vmem:[#allocation13 + $0x12b0] sm:$0xff] }
 0x4bd   :  { %v14800_v47 = vcombine.high %v1409_v58, %v1417_v59  ;;  %v14799_v6 = vcombine.low %v1409_v58, %v1417_v59  ;;  %v1500_v58 = vld [vmem:[#allocation13 + $0x1570] sm:$0xff] }
 0x4be   :  { %7606 = vmatpush1.bf16.msra.mxu1 %v14703_v0  ;;  %v14806_v0 = vcombine.high %v1412_v60, %v1420_v61 }
 0x4bf   :  { %8098 = vmatpush1.bf16.msra.mxu0 %v14709_v2  ;;  %7616 = vmatprep.subr.bf16.mxu1 %v14720_v3  ;;  %v1425_v2 = vld [vmem:[#allocation13 + $0x1318] sm:$0xff] }
 0x4c0   :  { %8108 = vmatprep.subr.bf16.mxu0 %v14726_v30  ;;  %v1433_v3 = vld [vmem:[#allocation13 + $0x1358] sm:$0xff]  ;;  %v1428_v30 = vld [vmem:[#allocation13 + $0x1330] sm:$0xff] }
 0x4c1   :  { %7608 = vmatmul.mubr.bf16.vlgmr.msra.gmra.mrb[16].mxu1 %v18119_v22  ;;  %v14816_v8 = vcombine.high %v1425_v2, %v1433_v3  ;;  %v14822_v10 = vcombine.high %v1428_v30, %v1436_v5  ;;  %v14821_v20 = vcombine.low %v1428_v30, %v1436_v5 }
 0x4c2   :  { %8100 = vmatmul.mubr.bf16.vlgmr.msra.gmra.mrb[16].mxu0 %v18119_v22  ;;  %7617 = vmatpush1.bf16.msra.mxu1 %v14719_v46  ;;  %v14805_v46 = vcombine.low %v1412_v60, %v1420_v61 }
 0x4c3   :  { %7648 = vmatprep.mubr.bf16.mxu1 %v18121_v24  ;;  %8109 = vmatpush1.bf16.msra.mxu0 %v14725_v11  ;;  %v1441_v11 = vld [vmem:[#allocation13 + $0x1398] sm:$0xff] }
 0x4c4   :  { %8140 = vmatprep.mubr.bf16.mxu0 %v18121_v24  ;;  %7618 = vmatprep.subr.bf16.mxu1 %v14736_v53  ;;  %v1449_v53 = vld [vmem:[#allocation13 + $0x13d8] sm:$0xff] }
 0x4c5   :  { %8110 = vmatprep.subr.bf16.mxu0 %v14742_v19  ;;  %v14815_v19 = vcombine.low %v1425_v2, %v1433_v3  ;;  %v14832_v21 = vcombine.high %v1441_v11, %v1449_v53  ;;  %v14831_v35 = vcombine.low %v1441_v11, %v1449_v53  ;;  %v1516_v2 = vld [vmem:[#allocation13 + $0x15f0] sm:$0xff] }
 0x4c6   :  { %7619 = vmatpush1.bf16.msra.mxu1 %v14735_v52  ;;  %v14838_v52 = vcombine.high %v1444_v15, %v1452_v18  ;;  %v1532_v11 = vld [vmem:[#allocation13 + $0x1670] sm:$0xff] }
 0x4c7   :  { %8111 = vmatpush1.bf16.msra.mxu0 %v14741_v25  ;;  %7620 = vmatprep.subr.bf16.mxu1 %v14752_v26  ;;  %v1457_v25 = vld [vmem:[#allocation13 + $0x1418] sm:$0xff] }
 0x4c8   :  { %8112 = vmatprep.subr.bf16.mxu0 %v14758_v33  ;;  %v1465_v26 = vld [vmem:[#allocation13 + $0x1458] sm:$0xff]  ;;  %v1460_v33 = vld [vmem:[#allocation13 + $0x1430] sm:$0xff] }
 0x4c9   :  { %v14848_v38 = vcombine.high %v1457_v25, %v1465_v26  ;;  %v14847_v44 = vcombine.low %v1457_v25, %v1465_v26  ;;  %v14853_v48 = vcombine.low %v1460_v33, %v1468_v34  ;;  %v1548_v25 = vld [vmem:[#allocation13 + $0x16f0] sm:$0xff] }
 0x4ca   :  { %7621 = vmatpush1.bf16.msra.mxu1 %v14751_v1  ;;  %v14854_v1 = vcombine.high %v1460_v33, %v1468_v34 }
 0x4cb   :  { %8113 = vmatpush1.bf16.msra.mxu0 %v14757_v39  ;;  %7622 = vmatprep.subr.bf16.mxu1 %v14768_v40  ;;  %v1473_v39 = vld [vmem:[#allocation13 + $0x1498] sm:$0xff] }
 0x4cc   :  { %8114 = vmatprep.subr.bf16.mxu0 %v14774_v42  ;;  %v1481_v40 = vld [vmem:[#allocation13 + $0x14d8] sm:$0xff]  ;;  %v1476_v42 = vld [vmem:[#allocation13 + $0x14b0] sm:$0xff] }
 0x4cd   :  { %v14864_v50 = vcombine.high %v1473_v39, %v1481_v40  ;;  %v14863_v59 = vcombine.low %v1473_v39, %v1481_v40  ;;  %v14869_v60 = vcombine.low %v1476_v42, %v1484_v43  ;;  %v1564_v39 = vld [vmem:[#allocation13 + $0x1770] sm:$0xff] }
 0x4ce   :  { %7623 = vmatpush1.bf16.msra.mxu1 %v14767_v51  ;;  %v14870_v51 = vcombine.high %v1476_v42, %v1484_v43 }
 0x4cf   :  { %8115 = vmatpush1.bf16.msra.mxu0 %v14773_v54  ;;  %7624 = vmatprep.subr.bf16.mxu1 %v14784_v55  ;;  %v1489_v54 = vld [vmem:[#allocation13 + $0x1518] sm:$0xff] }
 0x4d0   :  { %8116 = vmatprep.subr.bf16.mxu0 %v14790_v57  ;;  %v1497_v55 = vld [vmem:[#allocation13 + $0x1558] sm:$0xff]  ;;  %v1492_v57 = vld [vmem:[#allocation13 + $0x1530] sm:$0xff] }
 0x4d1   :  { %v14880_v61 = vcombine.high %v1489_v54, %v1497_v55  ;;  %v14879_v3 = vcombine.low %v1489_v54, %v1497_v55  ;;  %v14885_v30 = vcombine.low %v1492_v57, %v1500_v58  ;;  %v1580_v54 = vld [vmem:[#allocation13 + $0x17f0] sm:$0xff] }
 0x4d2   :  { %7625 = vmatpush1.bf16.msra.mxu1 %v14783_v62  ;;  %v14886_v62 = vcombine.high %v1492_v57, %v1500_v58 }
 0x4d3   :  { %8117 = vmatpush1.bf16.msra.mxu0 %v14789_v63  ;;  %7626 = vmatprep.subr.bf16.mxu1 %v14800_v47  ;;  %v1505_v63 = vld [vmem:[#allocation13 + $0x1598] sm:$0xff] }
 0x4d4   :  { %8118 = vmatprep.subr.bf16.mxu0 %v14806_v0  ;;  %v1513_v47 = vld [vmem:[#allocation13 + $0x15d8] sm:$0xff]  ;;  %v1508_v0 = vld [vmem:[#allocation13 + $0x15b0] sm:$0xff] }
 0x4d5   :  { %v14896_v5 = vcombine.high %v1505_v63, %v1513_v47  ;;  %v14895_v53 = vcombine.low %v1505_v63, %v1513_v47  ;;  %v14901_v15 = vcombine.low %v1508_v0, %v1516_v2  ;;  %v1596_v63 = vld [vmem:[#allocation13 + $0x1870] sm:$0xff] }
 0x4d6   :  { %7627 = vmatpush1.bf16.msra.mxu1 %v14799_v6  ;;  %v14902_v6 = vcombine.high %v1508_v0, %v1516_v2 }
 0x4d7   :  { %8119 = vmatpush1.bf16.msra.mxu0 %v14805_v46  ;;  %7628 = vmatprep.subr.bf16.mxu1 %v14816_v8  ;;  %v1521_v46 = vld [vmem:[#allocation13 + $0x1618] sm:$0xff] }
 0x4d8   :  { %8120 = vmatprep.subr.bf16.mxu0 %v14822_v10  ;;  %v1529_v8 = vld [vmem:[#allocation13 + $0x1658] sm:$0xff]  ;;  %v1524_v10 = vld [vmem:[#allocation13 + $0x1630] sm:$0xff] }
 0x4d9   :  { %v14912_v18 = vcombine.high %v1521_v46, %v1529_v8  ;;  %v14911_v26 = vcombine.low %v1521_v46, %v1529_v8  ;;  %v14917_v33 = vcombine.low %v1524_v10, %v1532_v11  ;;  %v1604_v46 = vld [vmem:[#allocation13 + $0x18b0] sm:$0xff] }
 0x4da   :  { %7629 = vmatpush1.bf16.msra.mxu1 %v14815_v19  ;;  %v14918_v19 = vcombine.high %v1524_v10, %v1532_v11  ;;  %v1612_v8 = vld [vmem:[#allocation13 + $0x18f0] sm:$0xff] }
 0x4db   :  { %8121 = vmatpush1.bf16.msra.mxu0 %v14821_v20  ;;  %7630 = vmatprep.subr.bf16.mxu1 %v14832_v21  ;;  %v1537_v20 = vld [vmem:[#allocation13 + $0x1698] sm:$0xff] }
 0x4dc   :  { %8122 = vmatprep.subr.bf16.mxu0 %v14838_v52  ;;  %v1545_v21 = vld [vmem:[#allocation13 + $0x16d8] sm:$0xff]  ;;  %v1540_v52 = vld [vmem:[#allocation13 + $0x16b0] sm:$0xff] }
 0x4dd   :  { %v14928_v34 = vcombine.high %v1537_v20, %v1545_v21  ;;  %v14927_v40 = vcombine.low %v1537_v20, %v1545_v21  ;;  %v14933_v42 = vcombine.low %v1540_v52, %v1548_v25  ;;  %v1628_v20 = vld [vmem:[#allocation13 + $0x1970] sm:$0xff] }
 0x4de   :  { %7631 = vmatpush1.bf16.msra.mxu1 %v14831_v35  ;;  %v14934_v35 = vcombine.high %v1540_v52, %v1548_v25  ;;  %v14997_v52 = vcombine.low %v1604_v46, %v1612_v8 }
 0x4df   :  { %8123 = vmatpush1.bf16.msra.mxu0 %v14837_v28  ;;  %7632 = vmatprep.subr.bf16.mxu1 %v14848_v38  ;;  %v1553_v28 = vld [vmem:[#allocation13 + $0x1718] sm:$0xff] }
 0x4e0   :  { %8124 = vmatprep.subr.bf16.mxu0 %v14854_v1  ;;  %v1561_v38 = vld [vmem:[#allocation13 + $0x1758] sm:$0xff]  ;;  %v1556_v1 = vld [vmem:[#allocation13 + $0x1730] sm:$0xff] }
 0x4e1   :  { %v14944_v43 = vcombine.high %v1553_v28, %v1561_v38  ;;  %v14943_v55 = vcombine.low %v1553_v28, %v1561_v38  ;;  %v14949_v57 = vcombine.low %v1556_v1, %v1564_v39  ;;  %v1644_v28 = vld [vmem:[#allocation13 + $0x19f0] sm:$0xff] }
 0x4e2   :  { %7633 = vmatpush1.bf16.msra.mxu1 %v14847_v44  ;;  %v14950_v44 = vcombine.high %v1556_v1, %v1564_v39 }
 0x4e3   :  { %8125 = vmatpush1.bf16.msra.mxu0 %v14853_v48  ;;  %7634 = vmatprep.subr.bf16.mxu1 %v14864_v50  ;;  %v1569_v48 = vld [vmem:[#allocation13 + $0x1798] sm:$0xff] }
 0x4e4   :  { %8126 = vmatprep.subr.bf16.mxu0 %v14870_v51  ;;  %v1577_v50 = vld [vmem:[#allocation13 + $0x17d8] sm:$0xff]  ;;  %v1572_v51 = vld [vmem:[#allocation13 + $0x17b0] sm:$0xff] }
 0x4e5   :  { %v14960_v58 = vcombine.high %v1569_v48, %v1577_v50  ;;  %v14959_v47 = vcombine.low %v1569_v48, %v1577_v50  ;;  %v14965_v0 = vcombine.low %v1572_v51, %v1580_v54  ;;  %v1660_v48 = vld [vmem:[#allocation13 + $0x1a70] sm:$0xff] }
 0x4e6   :  { %7635 = vmatpush1.bf16.msra.mxu1 %v14863_v59  ;;  %v14966_v59 = vcombine.high %v1572_v51, %v1580_v54 }
 0x4e7   :  { %8127 = vmatpush1.bf16.msra.mxu0 %v14869_v60  ;;  %7636 = vmatprep.subr.bf16.mxu1 %v14880_v61  ;;  %v1585_v60 = vld [vmem:[#allocation13 + $0x1818] sm:$0xff] }
 0x4e8   :  { %8128 = vmatprep.subr.bf16.mxu0 %v14886_v62  ;;  %v1593_v61 = vld [vmem:[#allocation13 + $0x1858] sm:$0xff]  ;;  %v1588_v62 = vld [vmem:[#allocation13 + $0x1830] sm:$0xff] }
 0x4e9   :  { %v14976_v2 = vcombine.high %v1585_v60, %v1593_v61  ;;  %v14981_v10 = vcombine.low %v1588_v62, %v1596_v63 }
 0x4ea   :  { %7637 = vmatpush1.bf16.msra.mxu1 %v14879_v3  ;;  %v14982_v3 = vcombine.high %v1588_v62, %v1596_v63 }
 0x4eb   :  { %8129 = vmatpush1.bf16.msra.mxu0 %v14885_v30  ;;  %7638 = vmatprep.subr.bf16.mxu1 %v14896_v5  ;;  %v1601_v30 = vld [vmem:[#allocation13 + $0x1898] sm:$0xff] }
 0x4ec   :  { %8130 = vmatprep.subr.bf16.mxu0 %v14902_v6  ;;  %v1609_v5 = vld [vmem:[#allocation13 + $0x18d8] sm:$0xff]  ;;  %v14975_v6 = vcombine.low %v1585_v60, %v1593_v61  ;;  %v1676_v60 = vld [vmem:[#allocation13 + $0x1af0] sm:$0xff] }
 0x4ed   :  { %v14992_v11 = vcombine.high %v1601_v30, %v1609_v5  ;;  %v14991_v21 = vcombine.low %v1601_v30, %v1609_v5  ;;  %v1692_v30 = vld [vmem:[#allocation13 + $0x1b70] sm:$0xff] }
 0x4ee   :  { %7639 = vmatpush1.bf16.msra.mxu1 %v14895_v53  ;;  %v1617_v53 = vld [vmem:[#allocation13 + $0x1918] sm:$0xff] }
 0x4ef   :  { %8131 = vmatpush1.bf16.msra.mxu0 %v14901_v15  ;;  %7640 = vmatprep.subr.bf16.mxu1 %v14912_v18  ;;  %v1625_v15 = vld [vmem:[#allocation13 + $0x1958] sm:$0xff]  ;;  %v14998_v18 = vcombine.high %v1604_v46, %v1612_v8 }
 0x4f0   :  { %8132 = vmatprep.subr.bf16.mxu0 %v14918_v19  ;;  %v1620_v19 = vld [vmem:[#allocation13 + $0x1930] sm:$0xff]  ;;  %v15008_v25 = vcombine.high %v1617_v53, %v1625_v15  ;;  %v15007_v38 = vcombine.low %v1617_v53, %v1625_v15  ;;  %v1705_v53 = vld [vmem:[#allocation13 + $0x1bd8] sm:$0xff] }
 0x4f1   :  { %v15013_v1 = vcombine.low %v1620_v19, %v1628_v20 }
 0x4f2   :  { %7641 = vmatpush1.bf16.msra.mxu1 %v14911_v26  ;;  %v15014_v26 = vcombine.high %v1620_v19, %v1628_v20  ;;  %v1700_v19 = vld [vmem:[#allocation13 + $0x1bb0] sm:$0xff] }
 0x4f3   :  { %8133 = vmatpush1.bf16.msra.mxu0 %v14917_v33  ;;  %7642 = vmatprep.subr.bf16.mxu1 %v14928_v34  ;;  %v1633_v33 = vld [vmem:[#allocation13 + $0x1998] sm:$0xff]  ;;  %v1708_v20 = vld [vmem:[#allocation13 + $0x1bf0] sm:$0xff] }
 0x4f4   :  { %8134 = vmatprep.subr.bf16.mxu0 %v14934_v35  ;;  %v1641_v34 = vld [vmem:[#allocation13 + $0x19d8] sm:$0xff]  ;;  %v1636_v35 = vld [vmem:[#allocation13 + $0x19b0] sm:$0xff] }
 0x4f5   :  { %v15024_v39 = vcombine.high %v1633_v33, %v1641_v34  ;;  %v15023_v50 = vcombine.low %v1633_v33, %v1641_v34  ;;  %v15029_v51 = vcombine.low %v1636_v35, %v1644_v28 }
 0x4f6   :  { %7643 = vmatpush1.bf16.msra.mxu1 %v14927_v40  ;;  %v15030_v40 = vcombine.high %v1636_v35, %v1644_v28 }
 0x4f7   :  { %8135 = vmatpush1.bf16.msra.mxu0 %v14933_v42  ;;  %7644 = vmatprep.subr.bf16.mxu1 %v14944_v43  ;;  %v1649_v42 = vld [vmem:[#allocation13 + $0x1a18] sm:$0xff] }
 0x4f8   :  { %8136 = vmatprep.subr.bf16.mxu0 %v14950_v44  ;;  %v1657_v43 = vld [vmem:[#allocation13 + $0x1a58] sm:$0xff]  ;;  %v1652_v44 = vld [vmem:[#allocation13 + $0x1a30] sm:$0xff] }
 0x4f9   :  { %v15040_v54 = vcombine.high %v1649_v42, %v1657_v43  ;;  %v15039_v61 = vcombine.low %v1649_v42, %v1657_v43  ;;  %v15045_v62 = vcombine.low %v1652_v44, %v1660_v48  ;;  %v1724_v42 = vld [vmem:[#allocation13 + $0x1c70] sm:$0xff] }
 0x4fa   :  { %7645 = vmatpush1.bf16.msra.mxu1 %v14943_v55  ;;  %v15046_v55 = vcombine.high %v1652_v44, %v1660_v48  ;;  %v15093_v44 = vcombine.low %v1700_v19, %v1708_v20 }
 0x4fb   :  { %8137 = vmatpush1.bf16.msra.mxu0 %v14949_v57  ;;  %7646 = vmatprep.subr.bf16.mxu1 %v14960_v58  ;;  %v1665_v57 = vld [vmem:[#allocation13 + $0x1a98] sm:$0xff] }
 0x4fc   :  { %8138 = vmatprep.subr.bf16.mxu0 %v14966_v59  ;;  %v1673_v58 = vld [vmem:[#allocation13 + $0x1ad8] sm:$0xff]  ;;  %v1668_v59 = vld [vmem:[#allocation13 + $0x1ab0] sm:$0xff] }
 0x4fd   :  { %v15056_v63 = vcombine.high %v1665_v57, %v1673_v58  ;;  %v15055_v5 = vcombine.low %v1665_v57, %v1673_v58  ;;  %v1740_v57 = vld [vmem:[#allocation13 + $0x1cf0] sm:$0xff] }
 0x4fe   :  { %7647 = vmatpush1.bf16.msra.mxu1 %v14959_v47  ;;  %v15062_v47 = vcombine.high %v1668_v59, %v1676_v60 }
 0x4ff   :  { %8139 = vmatpush1.bf16.msra.mxu0 %v14965_v0  ;;  %7657 = vmatprep.subr.bf16.mxu1 %v14976_v2  ;;  %v1681_v0 = vld [vmem:[#allocation13 + $0x1b18] sm:$0xff] }
 0x500   :  { %8149 = vmatprep.subr.bf16.mxu0 %v14982_v3  ;;  %v1689_v2 = vld [vmem:[#allocation13 + $0x1b58] sm:$0xff]  ;;  %v1684_v3 = vld [vmem:[#allocation13 + $0x1b30] sm:$0xff] }
 0x501   :  { %7649 = vmatmul.mubr.bf16.vlgmr.msra.gmra.mrb[16].mxu1 %v18139_v14  ;;  %v15072_v46 = vcombine.high %v1681_v0, %v1689_v2  ;;  %v15077_v34 = vcombine.low %v1684_v3, %v1692_v30 }
 0x502   :  { %8141 = vmatmul.mubr.bf16.vlgmr.msra.gmra.mrb[16].mxu0 %v18139_v14  ;;  %7658 = vmatpush1.bf16.msra.mxu1 %v14975_v6  ;;  %v15061_v6 = vcombine.low %v1668_v59, %v1676_v60 }
 0x503   :  { %7689 = vmatprep.mubr.bf16.mxu1 %v18141_v37  ;;  %8150 = vmatpush1.bf16.msra.mxu0 %v14981_v10  ;;  %v15078_v10 = vcombine.high %v1684_v3, %v1692_v30 }
 0x504   :  { %8181 = vmatprep.mubr.bf16.mxu0 %v18141_v37  ;;  %7659 = vmatprep.subr.bf16.mxu1 %v14992_v11  ;;  %v1697_v11 = vld [vmem:[#allocation13 + $0x1b98] sm:$0xff] }
 0x505   :  { %8151 = vmatprep.subr.bf16.mxu0 %v14998_v18  ;;  %v15088_v35 = vcombine.high %v1697_v11, %v1705_v53  ;;  %v15087_v43 = vcombine.low %v1697_v11, %v1705_v53  ;;  %v1772_v11 = vld [vmem:[#allocation13 + $0x1df0] sm:$0xff] }
 0x506   :  { %7660 = vmatpush1.bf16.msra.mxu1 %v14991_v21 }
 0x507   :  { %8152 = vmatpush1.bf16.msra.mxu0 %v14997_v52  ;;  %7661 = vmatprep.subr.bf16.mxu1 %v15008_v25  ;;  %v15071_v25 = vcombine.low %v1681_v0, %v1689_v2  ;;  %v1756_v0 = vld [vmem:[#allocation13 + $0x1d70] sm:$0xff] }
 0x508   :  { %8153 = vmatprep.subr.bf16.mxu0 %v15014_v26 }
 0x50a   :  { %7662 = vmatpush1.bf16.msra.mxu1 %v15007_v38  ;;  %v15094_v38 = vcombine.high %v1700_v19, %v1708_v20 }
 0x50b   :  { %8154 = vmatpush1.bf16.msra.mxu0 %v15013_v1  ;;  %7663 = vmatprep.subr.bf16.mxu1 %v15024_v39  ;;  %v1713_v1 = vld [vmem:[#allocation13 + $0x1c18] sm:$0xff] }
 0x50c   :  { %8155 = vmatprep.subr.bf16.mxu0 %v15030_v40  ;;  %v1721_v39 = vld [vmem:[#allocation13 + $0x1c58] sm:$0xff]  ;;  %v1716_v40 = vld [vmem:[#allocation13 + $0x1c30] sm:$0xff] }
 0x50d   :  { %v15104_v48 = vcombine.high %v1713_v1, %v1721_v39  ;;  %v15103_v58 = vcombine.low %v1713_v1, %v1721_v39  ;;  %v15109_v59 = vcombine.low %v1716_v40, %v1724_v42  ;;  %v1793_v39 = vld [vmem:[#allocation13 + $0x1e98] sm:$0xff] }
 0x50e   :  { %7664 = vmatpush1.bf16.msra.mxu1 %v15023_v50  ;;  %v15110_v50 = vcombine.high %v1716_v40, %v1724_v42  ;;  %v1801_v40 = vld [vmem:[#allocation13 + $0x1ed8] sm:$0xff]  ;;  %v1796_v42 = vld [vmem:[#allocation13 + $0x1eb0] sm:$0xff] }
 0x50f   :  { %8156 = vmatpush1.bf16.msra.mxu0 %v15029_v51  ;;  %7665 = vmatprep.subr.bf16.mxu1 %v15040_v54  ;;  %v1729_v51 = vld [vmem:[#allocation13 + $0x1c98] sm:$0xff] }
 0x510   :  { %8157 = vmatprep.subr.bf16.mxu0 %v15046_v55  ;;  %v1737_v54 = vld [vmem:[#allocation13 + $0x1cd8] sm:$0xff]  ;;  %v1732_v55 = vld [vmem:[#allocation13 + $0x1cb0] sm:$0xff] }
 0x511   :  { %v15120_v60 = vcombine.high %v1729_v51, %v1737_v54  ;;  %v15119_v2 = vcombine.low %v1729_v51, %v1737_v54  ;;  %v15125_v3 = vcombine.low %v1732_v55, %v1740_v57  ;;  %v1809_v54 = vld [vmem:[#allocation13 + $0x1f18] sm:$0xff] }
 0x512   :  { %7666 = vmatpush1.bf16.msra.mxu1 %v15039_v61  ;;  %v15126_v61 = vcombine.high %v1732_v55, %v1740_v57  ;;  %v1817_v55 = vld [vmem:[#allocation13 + $0x1f58] sm:$0xff]  ;;  %v1812_v57 = vld [vmem:[#allocation13 + $0x1f30] sm:$0xff] }
 0x513   :  { %8158 = vmatpush1.bf16.msra.mxu0 %v15045_v62  ;;  %7667 = vmatprep.subr.bf16.mxu1 %v15056_v63  ;;  %v1745_v62 = vld [vmem:[#allocation13 + $0x1d18] sm:$0xff] }
 0x514   :  { %v18194_v8 = vpop.f32.mrb[12].mxu1  ;;  %8159 = vmatprep.subr.bf16.mxu0 %v15062_v47  ;;  %v1753_v63 = vld [vmem:[#allocation13 + $0x1d58] sm:$0xff]  ;;  %v1748_v47 = vld [vmem:[#allocation13 + $0x1d30] sm:$0xff] }
 0x515   :  { %v18196_v15 = vpop.f32.mrb[12].mxu0  ;;  %v18198_v18 = vpop.f32.mrb[13].mxu1  ;;  %v15136_v30 = vcombine.high %v1745_v62, %v1753_v63  ;;  %v15135_v53 = vcombine.low %v1745_v62, %v1753_v63  ;;  %v15141_v19 = vcombine.low %v1748_v47, %v1756_v0  ;;  %v15200_v62 = vcombine.high %v1809_v54, %v1817_v55 }
 0x516   :  { %v18200_v21 = vpop.f32.mrb[13].mxu0  ;;  %v7367_v52 = vpop.f32.mrb[14].mxu1  ;;  %7668 = vmatpush1.bf16.msra.mxu1 %v15055_v5  ;;  %v15142_v5 = vcombine.high %v1748_v47, %v1756_v0  ;;  %v1825_v47 = vld [vmem:[#allocation13 + $0x1f98] sm:$0xff] }
 0x517   :  { %v7859_v26 = vpop.f32.mrb[14].mxu0  ;;  %8160 = vmatpush1.bf16.msra.mxu0 %v15061_v6  ;;  %v7368_v33 = vpop.f32.mrb[15].mxu1  ;;  %7669 = vmatprep.subr.bf16.mxu1 %v15072_v46  ;;  %v1761_v6 = vld [vmem:[#allocation13 + $0x1d98] sm:$0xff] }
 0x518   :  { %v7860_v28 = vpop.f32.mrb[15].mxu0  ;;  %8161 = vmatprep.subr.bf16.mxu0 %v15078_v10  ;;  %v1769_v46 = vld [vmem:[#allocation13 + $0x1dd8] sm:$0xff]  ;;  %v1764_v10 = vld [vmem:[#allocation13 + $0x1db0] sm:$0xff] }
 0x519   :  { %v15152_v20 = vcombine.high %v1761_v6, %v1769_v46  ;;  %v15158_v52 = vcombine.high %v1764_v10, %v1772_v11  ;;  %v1785_v26 = vld [vmem:[#allocation13 + $0x1e58] sm:$0xff]  ;;  %v1780_v33 = vld [vmem:[#allocation13 + $0x1e30] sm:$0xff]  ;;  %v15157_v28 = vcombine.low %v1764_v10, %v1772_v11  ;;  %v819_v11 = vld [vmem:[#allocation13 + $0x28] sm:$0xff] }
 0x51a   :  { %7670 = vmatpush1.bf16.msra.mxu1 %v15071_v25  ;;  %v1777_v25 = vld [vmem:[#allocation13 + $0x1e18] sm:$0xff] }
 0x51b   :  { %8162 = vmatpush1.bf16.msra.mxu0 %v15077_v34  ;;  %7671 = vmatprep.subr.bf16.mxu1 %v15088_v35  ;;  %v1788_v34 = vld [vmem:[#allocation13 + $0x1e70] sm:$0xff]  ;;  %v15151_v35 = vcombine.low %v1761_v6, %v1769_v46  ;;  %v1833_v0 = vld [vmem:[#allocation13 + $0x1fd8] sm:$0xff] }
 0x51c   :  { %8163 = vmatprep.subr.bf16.mxu0 %v15094_v38  ;;  %v15168_v38 = vcombine.high %v1777_v25, %v1785_v26  ;;  %v15174_v1 = vcombine.high %v1780_v33, %v1788_v34  ;;  %v15216_v46 = vcombine.high %v1825_v47, %v1833_v0 }
 0x51e   :  { %7672 = vmatpush1.bf16.msra.mxu1 %v15087_v43  ;;  %v1804_v43 = vld [vmem:[#allocation13 + $0x1ef0] sm:$0xff] }
 0x51f   :  { %8164 = vmatpush1.bf16.msra.mxu0 %v15093_v44  ;;  %7673 = vmatprep.subr.bf16.mxu1 %v15104_v48  ;;  %v15167_v44 = vcombine.low %v1777_v25, %v1785_v26  ;;  %v15173_v48 = vcombine.low %v1780_v33, %v1788_v34  ;;  %v15190_v51 = vcombine.high %v1796_v42, %v1804_v43  ;;  %v16372_v26 = vld [vmem:[#allocation16 + $0x4] ss:$24 sps:$4 sm:$0xff]  }
 0x520   :  { %8165 = vmatprep.subr.bf16.mxu0 %v15110_v50  ;;  %v15184_v50 = vcombine.high %v1793_v39, %v1801_v40  ;;  %v835_v33 = vld [vmem:[#allocation13 + $0xa8] sm:$0xff] }
 0x521   :  { %v843_v34 = vld [vmem:[#allocation13 + $0xe8] sm:$0xff] }
 0x522   :  { %7674 = vmatpush1.bf16.msra.mxu1 %v15103_v58  ;;  %v1820_v58 = vld [vmem:[#allocation13 + $0x1f70] sm:$0xff] }
 0x523   :  { %8166 = vmatpush1.bf16.msra.mxu0 %v15109_v59  ;;  %7675 = vmatprep.subr.bf16.mxu1 %v15120_v60  ;;  %v15183_v59 = vcombine.low %v1793_v39, %v1801_v40  ;;  %v18202_v60 = vld [vmem:[#allocation15] sm:$0xff]  ;;  %v15206_v63 = vcombine.high %v1812_v57, %v1820_v58  ;;  %v15205_v6 = vcombine.low %v1812_v57, %v1820_v58  ;;  %v851_v39 = vld [vmem:[#allocation13 + $0x128] sm:$0xff] }
 0x524   :  { %8167 = vmatprep.subr.bf16.mxu0 %v15126_v61  ;;  %v15189_v61 = vcombine.low %v1796_v42, %v1804_v43  ;;  %v16375_v40 = vld [vmem:[#allocation16 + $0x34] ss:$24 sps:$4 sm:$0xff]   ;;  %v14227_v43 = vcombine.low %v835_v33, %v843_v34  ;;  %v16376_v57 = vld [vmem:[#allocation16 + $0x60] ss:$24 sps:$4 sm:$0xff]  }
 0x526   :  { %7676 = vmatpush1.bf16.msra.mxu1 %v15119_v2  ;;  %v1828_v2 = vld [vmem:[#allocation13 + $0x1fb0] sm:$0xff] }
 0x527   :  { %8168 = vmatpush1.bf16.msra.mxu0 %v15125_v3  ;;  %7677 = vmatprep.subr.bf16.mxu1 %v15136_v30  ;;  %v1836_v3 = vld [vmem:[#allocation13 + $0x1ff0] sm:$0xff]  ;;  %v1849_v30 = vrot.slane %v18202_v60, %v18074_v31 }
 0x528   :  { %8169 = vmatprep.subr.bf16.mxu0 %v15142_v5  ;;  %v15199_v5 = vcombine.low %v1809_v54, %v1817_v55  ;;  %v15222_v10 = vcombine.high %v1828_v2, %v1836_v3  ;;  %v875_v54 = vld [vmem:[#allocation13 + $0x1e8] sm:$0xff] }
 0x52a   :  { %7678 = vmatpush1.bf16.msra.mxu1 %v15135_v53  ;;  %v827_v53 = vld [vmem:[#allocation13 + $0x68] sm:$0xff] }
 0x52b   :  { %8170 = vmatpush1.bf16.msra.mxu0 %v15141_v19  ;;  %7679 = vmatprep.subr.bf16.mxu1 %v15152_v20  ;;  %v16149_v19 = vadd.f32 %v18174_v13, %v1849_v30  ;;  %v15215_v20 = vcombine.low %v1825_v47, %v1833_v0  ;;  %v14212_v25 = vcombine.high %v819_v11, %v827_v53  ;;  %v859_v13 = vld [vmem:[#allocation13 + $0x168] sm:$0xff]  ;;  %v16379_v47 = vld [vmem:[#allocation16 + $0x90] ss:$24 sps:$4 sm:$0xff]  }
 0x52c   :  { %8171 = vmatprep.subr.bf16.mxu0 %v15158_v52  ;;  %v15221_v52 = vcombine.low %v1828_v2, %v1836_v3  ;;  %v14243_v55 = vcombine.low %v851_v39, %v859_v13  ;;  %v16384_v2 = vld [vmem:[#allocation16 + $0xc4] ss:$24 sps:$4 sm:$0xff]  }
 0x52d   :  { %v899_v3 = vld [vmem:[#allocation13 + $0x2a8] sm:$0xff] }
 0x52e   :  { %7680 = vmatpush1.bf16.msra.mxu1 %v15151_v35  ;;  %v8355_v35 = vmax.f32 %v16149_v19, 0.0  ;;  %v907_v30 = vld [vmem:[#allocation13 + $0x2e8] sm:$0xff] }
 0x52f   :  { %8172 = vmatpush1.bf16.msra.mxu0 %v15157_v28  ;;  %7681 = vmatprep.subr.bf16.mxu1 %v15168_v38  ;;  %v14211_v28 = vcombine.low %v819_v11, %v827_v53  ;;  %v16370_v38 = vld [vmem:[#allocation16] ss:$24 sps:$4 sm:$0xff]   ;;  %v14291_v19 = vcombine.low %v899_v3, %v907_v30 }
 0x530   :  { %8173 = vmatprep.subr.bf16.mxu0 %v15174_v1  ;;  %v14228_v1 = vcombine.high %v835_v33, %v843_v34  ;;  %v18208_v42 = vpack.c.bf16 %v8355_v35, %v8355_v35  ;;  %v915_v11 = vld [vmem:[#allocation13 + $0x328] sm:$0xff] }
 0x531   :  { %v923_v53 = vld [vmem:[#allocation13 + $0x368] sm:$0xff] }
 0x532   :  { %7682 = vmatpush1.bf16.msra.mxu1 %v15167_v44  ;;  %v16373_v44 = vld [vmem:[#allocation16 + $0x30] ss:$24 sps:$4 sm:$0xff]   ;;  %v939_v33 = vld [vmem:[#allocation13 + $0x3e8] sm:$0xff]  ;;  %v14307_v34 = vcombine.low %v915_v11, %v923_v53 }
 0x533   :  { %8174 = vmatpush1.bf16.msra.mxu0 %v15173_v48  ;;  %7683 = vmatprep.subr.bf16.mxu1 %v15184_v50  ;;  %v14244_v48 = vcombine.high %v851_v39, %v859_v13  ;;  %v16378_v50 = vld [vmem:[#allocation16 + $0x64] ss:$24 sps:$4 sm:$0xff]   ;;  %v16388_v35 = vld [vmem:[#allocation16 + $0x120] ss:$24 sps:$4 sm:$0xff]  }
 0x534   :  { %8175 = vmatprep.subr.bf16.mxu0 %v15190_v51  ;;  %v867_v51 = vld [vmem:[#allocation13 + $0x1a8] sm:$0xff] }
 0x535   :  { %v14260_v58 = vcombine.high %v867_v51, %v875_v54  ;;  %v955_v39 = vld [vmem:[#allocation13 + $0x468] sm:$0xff] }
 0x536   :  { %7684 = vmatpush1.bf16.msra.mxu1 %v15183_v59  ;;  %v16381_v59 = vld [vmem:[#allocation16 + $0x94] ss:$24 sps:$4 sm:$0xff]  }
 0x537   :  { %8176 = vmatpush1.bf16.msra.mxu0 %v15189_v61  ;;  %7685 = vmatprep.subr.bf16.mxu1 %v15200_v62  ;;  %v883_v61 = vld [vmem:[#allocation13 + $0x228] sm:$0xff] }
 0x538   :  { %8177 = vmatprep.subr.bf16.mxu0 %v15206_v63  ;;  %v891_v62 = vld [vmem:[#allocation13 + $0x268] sm:$0xff]  ;;  %v14259_v63 = vcombine.low %v867_v51, %v875_v54 }
 0x539   :  { %v14276_v0 = vcombine.high %v883_v61, %v891_v62  ;;  %v16394_v54 = vld [vmem:[#allocation16 + $0x180] ss:$24 sps:$4 sm:$0xff]  }
 0x53a   :  { %7686 = vmatpush1.bf16.msra.mxu1 %v15199_v5  ;;  %v14275_v5 = vcombine.low %v883_v61, %v891_v62  ;;  %v16397_v62 = vld [vmem:[#allocation16 + $0x1b0] ss:$24 sps:$4 sm:$0xff]  }
 0x53b   :  { %8178 = vmatpush1.bf16.msra.mxu0 %v15205_v6  ;;  %7687 = vmatprep.subr.bf16.mxu1 %v15216_v46  ;;  %v16382_v6 = vld [vmem:[#allocation16 + $0xc0] ss:$24 sps:$4 sm:$0xff]   ;;  %v14292_v46 = vcombine.high %v899_v3, %v907_v30 }
 0x53c   :  { %8179 = vmatprep.subr.bf16.mxu0 %v15222_v10  ;;  %v16387_v10 = vld [vmem:[#allocation16 + $0xf4] ss:$24 sps:$4 sm:$0xff]   ;;  %v16400_v30 = vld [vmem:[#allocation16 + $0x1e0] ss:$24 sps:$4 sm:$0xff]  }
 0x53e   :  { %7688 = vmatpush1.bf16.msra.mxu1 %v15215_v20  ;;  %v16385_v20 = vld [vmem:[#allocation16 + $0xf0] ss:$24 sps:$4 sm:$0xff]  }
 0x53f   :  { %8180 = vmatpush1.bf16.msra.mxu0 %v15221_v52  ;;  %7862 = vmatprep.subr.bf16.mxu1 %v14212_v25  ;;  %v14308_v52 = vcombine.high %v915_v11, %v923_v53  ;;  %v16390_v25 = vld [vmem:[#allocation16 + $0x124] ss:$24 sps:$4 sm:$0xff]   ;;  %v16403_v53 = vld [vmem:[#allocation16 + $0x210] ss:$24 sps:$4 sm:$0xff]  }
 0x540   :  { %13026 = vmatprep.subr.bf16.mxu0 %v16372_v26  ;;  %v931_v26 = vld [vmem:[#allocation13 + $0x3a8] sm:$0xff] }
 0x541   :  { %7690 = vmatmul.mubr.bf16.vlgmr.msra.gmra.mrb[16].mxu1 %v18152_v4  ;;  %v14323_v13 = vcombine.low %v931_v26, %v939_v33 }
 0x542   :  { %8182 = vmatmul.mubr.bf16.vlgmr.msra.gmra.mrb[16].mxu0 %v18152_v4  ;;  %7863 = vmatpush1.bf16.msra.mxu1 %v14211_v28  ;;  %v14324_v28 = vcombine.high %v931_v26, %v939_v33  ;;  %v16406_v33 = vld [vmem:[#allocation16 + $0x240] ss:$24 sps:$4 sm:$0xff]  }
 0x543   :  { %7894 = vmatprep.mubr.bf16.mxu1 %v18087_v9  ;;  %13027 = vmatpush1.bf16.msra.mxu0 %v16370_v38  ;;  %v16393_v38 = vld [vmem:[#allocation16 + $0x154] ss:$24 sps:$4 sm:$0xff]  }
 0x544   :  { %13058 = vmatprep.mubr.bf16.mxu0 %v18208_v42  ;;  %7864 = vmatprep.subr.bf16.mxu1 %v14228_v1  ;;  %v947_v1 = vld [vmem:[#allocation13 + $0x428] sm:$0xff] }
 0x545   :  { %13028 = vmatprep.subr.bf16.mxu0 %v16375_v40  ;;  %v16391_v40 = vld [vmem:[#allocation16 + $0x150] ss:$24 sps:$4 sm:$0xff]   ;;  %v14339_v51 = vcombine.low %v947_v1, %v955_v39 }
 0x546   :  { %7865 = vmatpush1.bf16.msra.mxu1 %v14227_v43  ;;  %v14340_v43 = vcombine.high %v947_v1, %v955_v39  ;;  %v16409_v39 = vld [vmem:[#allocation16 + $0x270] ss:$24 sps:$4 sm:$0xff]  }
 0x547   :  { %13029 = vmatpush1.bf16.msra.mxu0 %v16373_v44  ;;  %7866 = vmatprep.subr.bf16.mxu1 %v14244_v48  ;;  %v16396_v44 = vld [vmem:[#allocation16 + $0x184] ss:$24 sps:$4 sm:$0xff]  }
 0x548   :  { %13030 = vmatprep.subr.bf16.mxu0 %v16378_v50  ;;  %v963_v48 = vld [vmem:[#allocation13 + $0x4a8] sm:$0xff] }
 0x549   :  { %v971_v50 = vld [vmem:[#allocation13 + $0x4e8] sm:$0xff] }
 0x54a   :  { %7867 = vmatpush1.bf16.msra.mxu1 %v14243_v55  ;;  %v14356_v55 = vcombine.high %v963_v48, %v971_v50  ;;  %v14355_v61 = vcombine.low %v963_v48, %v971_v50  ;;  %v1067_v48 = vld [vmem:[#allocation13 + $0x7e8] sm:$0xff]  ;;  %v1857_v50 = vrot.slane %v18202_v60, %v18077_v32 }
 0x54b   :  { %13031 = vmatpush1.bf16.msra.mxu0 %v16376_v57  ;;  %7868 = vmatprep.subr.bf16.mxu1 %v14260_v58  ;;  %v16399_v57 = vld [vmem:[#allocation16 + $0x1b4] ss:$24 sps:$4 sm:$0xff]   ;;  %v979_v58 = vld [vmem:[#allocation13 + $0x528] sm:$0xff] }
 0x54c   :  { %13032 = vmatprep.subr.bf16.mxu0 %v16381_v59  ;;  %v987_v59 = vld [vmem:[#allocation13 + $0x568] sm:$0xff] }
 0x54d   :  { %v14371_v3 = vcombine.low %v979_v58, %v987_v59 }
 0x54e   :  { %7869 = vmatpush1.bf16.msra.mxu1 %v14259_v63  ;;  %v14372_v63 = vcombine.high %v979_v58, %v987_v59  ;;  %v16417_v58 = vld [vmem:[#allocation16 + $0x2d4] ss:$24 sps:$4 sm:$0xff]   ;;  %v1075_v59 = vld [vmem:[#allocation13 + $0x828] sm:$0xff] }
 0x54f   :  { %13033 = vmatpush1.bf16.msra.mxu0 %v16379_v47  ;;  %7870 = vmatprep.subr.bf16.mxu1 %v14276_v0  ;;  %v16402_v47 = vld [vmem:[#allocation16 + $0x1e4] ss:$24 sps:$4 sm:$0xff]  }
 0x550   :  { %13034 = vmatprep.subr.bf16.mxu0 %v16384_v2  ;;  %v995_v0 = vld [vmem:[#allocation13 + $0x5a8] sm:$0xff] }
 0x551   :  { %v1003_v2 = vld [vmem:[#allocation13 + $0x5e8] sm:$0xff] }
 0x552   :  { %7871 = vmatpush1.bf16.msra.mxu1 %v14275_v5  ;;  %v14388_v5 = vcombine.high %v995_v0, %v1003_v2  ;;  %v14387_v11 = vcombine.low %v995_v0, %v1003_v2 }
 0x553   :  { %13035 = vmatpush1.bf16.msra.mxu0 %v16382_v6  ;;  %7872 = vmatprep.subr.bf16.mxu1 %v14292_v46  ;;  %v16405_v6 = vld [vmem:[#allocation16 + $0x214] ss:$24 sps:$4 sm:$0xff]   ;;  %v1011_v46 = vld [vmem:[#allocation13 + $0x628] sm:$0xff] }
 0x554   :  { %13036 = vmatprep.subr.bf16.mxu0 %v16387_v10  ;;  %v1019_v10 = vld [vmem:[#allocation13 + $0x668] sm:$0xff] }
 0x555   :  { %v14403_v26 = vcombine.low %v1011_v46, %v1019_v10 }
 0x556   :  { %7873 = vmatpush1.bf16.msra.mxu1 %v14291_v19  ;;  %v14404_v19 = vcombine.high %v1011_v46, %v1019_v10  ;;  %v16418_v46 = vld [vmem:[#allocation16 + $0x300] ss:$24 sps:$4 sm:$0xff]  }
 0x557   :  { %13037 = vmatpush1.bf16.msra.mxu0 %v16385_v20  ;;  %7874 = vmatprep.subr.bf16.mxu1 %v14308_v52  ;;  %v16408_v20 = vld [vmem:[#allocation16 + $0x244] ss:$24 sps:$4 sm:$0xff]  }
 0x558   :  { %13038 = vmatprep.subr.bf16.mxu0 %v16390_v25  ;;  %v1027_v52 = vld [vmem:[#allocation13 + $0x6a8] sm:$0xff] }
 0x559   :  { %v1035_v25 = vld [vmem:[#allocation13 + $0x6e8] sm:$0xff] }
 0x55a   :  { %7875 = vmatpush1.bf16.msra.mxu1 %v14307_v34  ;;  %v14420_v34 = vcombine.high %v1027_v52, %v1035_v25  ;;  %v14419_v1 = vcombine.low %v1027_v52, %v1035_v25  ;;  %v16421_v25 = vld [vmem:[#allocation16 + $0x330] ss:$24 sps:$4 sm:$0xff]  }
 0x55b   :  { %13039 = vmatpush1.bf16.msra.mxu0 %v16388_v35  ;;  %7876 = vmatprep.subr.bf16.mxu1 %v14324_v28  ;;  %v16411_v35 = vld [vmem:[#allocation16 + $0x274] ss:$24 sps:$4 sm:$0xff]   ;;  %v1043_v28 = vld [vmem:[#allocation13 + $0x728] sm:$0xff] }
 0x55c   :  { %13040 = vmatprep.subr.bf16.mxu0 %v16393_v38  ;;  %v1051_v38 = vld [vmem:[#allocation13 + $0x768] sm:$0xff] }
 0x55e   :  { %7877 = vmatpush1.bf16.msra.mxu1 %v14323_v13  ;;  %v14436_v13 = vcombine.high %v1043_v28, %v1051_v38 }
 0x55f   :  { %13041 = vmatpush1.bf16.msra.mxu0 %v16391_v40  ;;  %7878 = vmatprep.subr.bf16.mxu1 %v14340_v43  ;;  %v1845_v40 = vrot.slane %v18202_v60, %v18069_v29  ;;  %v16414_v43 = vld [vmem:[#allocation16 + $0x2a4] ss:$24 sps:$4 sm:$0xff]  }
 0x560   :  { %13042 = vmatprep.subr.bf16.mxu0 %v16396_v44  ;;  %v1059_v44 = vld [vmem:[#allocation13 + $0x7a8] sm:$0xff] }
 0x562   :  { %7879 = vmatpush1.bf16.msra.mxu1 %v14339_v51  ;;  %v14435_v51 = vcombine.low %v1043_v28, %v1051_v38  ;;  %v16424_v38 = vld [vmem:[#allocation16 + $0x360] ss:$24 sps:$4 sm:$0xff]  }
 0x563   :  { %13043 = vmatpush1.bf16.msra.mxu0 %v16394_v54  ;;  %7880 = vmatprep.subr.bf16.mxu1 %v14356_v55  ;;  %v16412_v54 = vld [vmem:[#allocation16 + $0x2a0] ss:$24 sps:$4 sm:$0xff]   ;;  %v14452_v55 = vcombine.high %v1059_v44, %v1067_v48 }
 0x564   :  { %13044 = vmatprep.subr.bf16.mxu0 %v16399_v57  ;;  %v16148_v57 = vadd.f32 %v18170_v7, %v1845_v40  ;;  %v1147_v40 = vld [vmem:[#allocation13 + $0xa68] sm:$0xff] }
 0x566   :  { %7881 = vmatpush1.bf16.msra.mxu1 %v14355_v61  ;;  %v1083_v61 = vld [vmem:[#allocation13 + $0x868] sm:$0xff]  ;;  %v8354_v2 = vmax.f32 %v16148_v57, 0.0 }
 0x567   :  { %13045 = vmatpush1.bf16.msra.mxu0 %v16397_v62  ;;  %7882 = vmatprep.subr.bf16.mxu1 %v14372_v63  ;;  %v16151_v62 = vadd.f32 %v18198_v18, %v1857_v50  ;;  %v14451_v63 = vcombine.low %v1059_v44, %v1067_v48  ;;  %v14468_v0 = vcombine.high %v1075_v59, %v1083_v61  ;;  %v16427_v44 = vld [vmem:[#allocation16 + $0x390] ss:$24 sps:$4 sm:$0xff]   ;;  %v16432_v50 = vld [vmem:[#allocation16 + $0x3c4] ss:$24 sps:$4 sm:$0xff]   ;;  %v16430_v57 = vld [vmem:[#allocation16 + $0x3c0] ss:$24 sps:$4 sm:$0xff]  }
 0x568   :  { %13046 = vmatprep.subr.bf16.mxu0 %v16402_v47  ;;  %v16415_v47 = vld [vmem:[#allocation16 + $0x2d0] ss:$24 sps:$4 sm:$0xff]   ;;  %v14467_v7 = vcombine.low %v1075_v59, %v1083_v61  ;;  %v18219_v10 = vpack.c.bf16 %v8354_v2, %v8354_v2  ;;  %v16435_v59 = vld [vmem:[#allocation16 + $0x3f4] ss:$24 sps:$4 sm:$0xff]   ;;  %v1171_v61 = vld [vmem:[#allocation13 + $0xb28] sm:$0xff] }
 0x569   :  { %v16438_v2 = vld [vmem:[#allocation16 + $0x424] ss:$24 sps:$4 sm:$0xff]  }
 0x56a   :  { %7883 = vmatpush1.bf16.msra.mxu1 %v14371_v3  ;;  %v16420_v3 = vld [vmem:[#allocation16 + $0x304] ss:$24 sps:$4 sm:$0xff]  }
 0x56b   :  { %13047 = vmatpush1.bf16.msra.mxu0 %v16400_v30  ;;  %7884 = vmatprep.subr.bf16.mxu1 %v14388_v5  ;;  %v1091_v30 = vld [vmem:[#allocation13 + $0x8a8] sm:$0xff] }
 0x56c   :  { %13048 = vmatprep.subr.bf16.mxu0 %v16405_v6  ;;  %v1099_v5 = vld [vmem:[#allocation13 + $0x8e8] sm:$0xff]  ;;  %v8357_v6 = vmax.f32 %v16151_v62, 0.0 }
 0x56d   :  { %v14484_v18 = vcombine.high %v1091_v30, %v1099_v5  ;;  %v14483_v52 = vcombine.low %v1091_v30, %v1099_v5  ;;  %v1179_v62 = vld [vmem:[#allocation13 + $0xb68] sm:$0xff] }
 0x56e   :  { %7885 = vmatpush1.bf16.msra.mxu1 %v14387_v11  ;;  %v1107_v11 = vld [vmem:[#allocation13 + $0x928] sm:$0xff]  ;;  %v14563_v5 = vcombine.low %v1171_v61, %v1179_v62 }
 0x56f   :  { %13049 = vmatpush1.bf16.msra.mxu0 %v16403_v53  ;;  %7886 = vmatprep.subr.bf16.mxu1 %v14404_v19  ;;  %v1115_v53 = vld [vmem:[#allocation13 + $0x968] sm:$0xff]  ;;  %v16423_v19 = vld [vmem:[#allocation16 + $0x334] ss:$24 sps:$4 sm:$0xff]  }
 0x570   :  { %13050 = vmatprep.subr.bf16.mxu0 %v16408_v20  ;;  %v18222_v20 = vpack.c.bf16 %v8357_v6, %v8357_v6  ;;  %v14499_v28 = vcombine.low %v1107_v11, %v1115_v53  ;;  %v1195_v30 = vld [vmem:[#allocation13 + $0xbe8] sm:$0xff] }
 0x571   :  { %v16436_v6 = vld [vmem:[#allocation16 + $0x420] ss:$24 sps:$4 sm:$0xff]  }
 0x572   :  { %7887 = vmatpush1.bf16.msra.mxu1 %v14403_v26  ;;  %v14500_v26 = vcombine.high %v1107_v11, %v1115_v53  ;;  %v1211_v11 = vld [vmem:[#allocation13 + $0xc68] sm:$0xff] }
 0x573   :  { %13051 = vmatpush1.bf16.msra.mxu0 %v16406_v33  ;;  %7888 = vmatprep.subr.bf16.mxu1 %v14420_v34  ;;  %v16426_v33 = vld [vmem:[#allocation16 + $0x364] ss:$24 sps:$4 sm:$0xff]  }
 0x574   :  { %13052 = vmatprep.subr.bf16.mxu0 %v16411_v35  ;;  %v1123_v34 = vld [vmem:[#allocation13 + $0x9a8] sm:$0xff] }
 0x575   :  { %v1131_v35 = vld [vmem:[#allocation13 + $0x9e8] sm:$0xff] }
 0x576   :  { %7889 = vmatpush1.bf16.msra.mxu1 %v14419_v1  ;;  %v14516_v1 = vcombine.high %v1123_v34, %v1131_v35 }
 0x577   :  { %13053 = vmatpush1.bf16.msra.mxu0 %v16409_v39  ;;  %7890 = vmatprep.subr.bf16.mxu1 %v14436_v13  ;;  %v16429_v39 = vld [vmem:[#allocation16 + $0x394] ss:$24 sps:$4 sm:$0xff]   ;;  %v1139_v13 = vld [vmem:[#allocation13 + $0xa28] sm:$0xff] }
 0x578   :  { %13054 = vmatprep.subr.bf16.mxu0 %v16414_v43  ;;  %v14515_v43 = vcombine.low %v1123_v34, %v1131_v35  ;;  %v14532_v48 = vcombine.high %v1139_v13, %v1147_v40  ;;  %v16442_v35 = vld [vmem:[#allocation16 + $0x480] ss:$24 sps:$4 sm:$0xff]  }
 0x57a   :  { %7891 = vmatpush1.bf16.msra.mxu1 %v14435_v51  ;;  %v1155_v51 = vld [vmem:[#allocation13 + $0xaa8] sm:$0xff] }
 0x57b   :  { %13055 = vmatpush1.bf16.msra.mxu0 %v16412_v54  ;;  %7892 = vmatprep.subr.bf16.mxu1 %v14452_v55  ;;  %v1163_v54 = vld [vmem:[#allocation13 + $0xae8] sm:$0xff]  ;;  %v14531_v55 = vcombine.low %v1139_v13, %v1147_v40  ;;  %v16445_v40 = vld [vmem:[#allocation16 + $0x4b0] ss:$24 sps:$4 sm:$0xff]  }
 0x57c   :  { %13056 = vmatprep.subr.bf16.mxu0 %v16417_v58  ;;  %v14548_v58 = vcombine.high %v1155_v51, %v1163_v54 }
 0x57e   :  { %7893 = vmatpush1.bf16.msra.mxu1 %v14451_v63  ;;  %v14547_v63 = vcombine.low %v1155_v51, %v1163_v54  ;;  %v16448_v54 = vld [vmem:[#allocation16 + $0x4e0] ss:$24 sps:$4 sm:$0xff]  }
 0x57f   :  { %13057 = vmatpush1.bf16.msra.mxu0 %v16415_v47  ;;  %7903 = vmatprep.subr.bf16.mxu1 %v14468_v0  ;;  %v16433_v47 = vld [vmem:[#allocation16 + $0x3f0] ss:$24 sps:$4 sm:$0xff]   ;;  %v14564_v0 = vcombine.high %v1171_v61, %v1179_v62 }
 0x580   :  { %13067 = vmatprep.subr.bf16.mxu0 %v16420_v3  ;;  %v1187_v3 = vld [vmem:[#allocation13 + $0xba8] sm:$0xff]  ;;  %v16451_v62 = vld [vmem:[#allocation16 + $0x510] ss:$24 sps:$4 sm:$0xff]  }
 0x581   :  { %7895 = vmatmul.mubr.bf16.vlgmr.msra.gmra.mrb[20].mxu1 %v18089_v49  ;;  %v14579_v53 = vcombine.low %v1187_v3, %v1195_v30 }
 0x582   :  { %13059 = vmatmul.mubr.bf16.vlgmr.msra.gmra.mrb[20].mxu0 %v18219_v10  ;;  %7904 = vmatpush1.bf16.msra.mxu1 %v14467_v7  ;;  %v14580_v7 = vcombine.high %v1187_v3, %v1195_v30  ;;  %v16454_v30 = vld [vmem:[#allocation16 + $0x540] ss:$24 sps:$4 sm:$0xff]  }
 0x583   :  { %7935 = vmatprep.mubr.bf16.mxu1 %v18093_v56  ;;  %13068 = vmatpush1.bf16.msra.mxu0 %v16418_v46  ;;  %v16441_v46 = vld [vmem:[#allocation16 + $0x454] ss:$24 sps:$4 sm:$0xff]  }
 0x584   :  { %13099 = vmatprep.mubr.bf16.mxu0 %v18222_v20  ;;  %7905 = vmatprep.subr.bf16.mxu1 %v14484_v18  ;;  %v1203_v18 = vld [vmem:[#allocation13 + $0xc28] sm:$0xff] }
 0x585   :  { %13069 = vmatprep.subr.bf16.mxu0 %v16423_v19  ;;  %v16439_v19 = vld [vmem:[#allocation16 + $0x450] ss:$24 sps:$4 sm:$0xff]   ;;  %v14595_v34 = vcombine.low %v1203_v18, %v1211_v11 }
 0x586   :  { %7906 = vmatpush1.bf16.msra.mxu1 %v14483_v52  ;;  %v14596_v52 = vcombine.high %v1203_v18, %v1211_v11  ;;  %v16457_v11 = vld [vmem:[#allocation16 + $0x570] ss:$24 sps:$4 sm:$0xff]  }
 0x587   :  { %13070 = vmatpush1.bf16.msra.mxu0 %v16421_v25  ;;  %7907 = vmatprep.subr.bf16.mxu1 %v14500_v26  ;;  %v16444_v25 = vld [vmem:[#allocation16 + $0x484] ss:$24 sps:$4 sm:$0xff]  }
 0x588   :  { %13071 = vmatprep.subr.bf16.mxu0 %v16426_v33  ;;  %v1219_v26 = vld [vmem:[#allocation13 + $0xca8] sm:$0xff] }
 0x589   :  { %v1227_v33 = vld [vmem:[#allocation13 + $0xce8] sm:$0xff] }
 0x58a   :  { %7908 = vmatpush1.bf16.msra.mxu1 %v14499_v28  ;;  %v14612_v28 = vcombine.high %v1219_v26, %v1227_v33  ;;  %v14611_v13 = vcombine.low %v1219_v26, %v1227_v33  ;;  %v1323_v26 = vld [vmem:[#allocation13 + $0xfe8] sm:$0xff]  ;;  %v1865_v33 = vrot.slane %v18202_v60, %v18111_v45 }
 0x58b   :  { %13072 = vmatpush1.bf16.msra.mxu0 %v16424_v38  ;;  %7909 = vmatprep.subr.bf16.mxu1 %v14516_v1  ;;  %v16447_v38 = vld [vmem:[#allocation16 + $0x4b4] ss:$24 sps:$4 sm:$0xff]   ;;  %v1235_v1 = vld [vmem:[#allocation13 + $0xd28] sm:$0xff] }
 0x58c   :  { %13073 = vmatprep.subr.bf16.mxu0 %v16429_v39  ;;  %v1243_v39 = vld [vmem:[#allocation13 + $0xd68] sm:$0xff] }
 0x58d   :  { %v14627_v51 = vcombine.low %v1235_v1, %v1243_v39 }
 0x58e   :  { %7910 = vmatpush1.bf16.msra.mxu1 %v14515_v43  ;;  %v14628_v43 = vcombine.high %v1235_v1, %v1243_v39  ;;  %v16465_v1 = vld [vmem:[#allocation16 + $0x5d4] ss:$24 sps:$4 sm:$0xff]   ;;  %v1331_v39 = vld [vmem:[#allocation13 + $0x1028] sm:$0xff] }
 0x58f   :  { %13074 = vmatpush1.bf16.msra.mxu0 %v16427_v44  ;;  %7911 = vmatprep.subr.bf16.mxu1 %v14532_v48  ;;  %v16450_v44 = vld [vmem:[#allocation16 + $0x4e4] ss:$24 sps:$4 sm:$0xff]  }
 0x590   :  { %13075 = vmatprep.subr.bf16.mxu0 %v16432_v50  ;;  %v1251_v48 = vld [vmem:[#allocation13 + $0xda8] sm:$0xff] }
 0x591   :  { %v1259_v50 = vld [vmem:[#allocation13 + $0xde8] sm:$0xff] }
 0x592   :  { %7912 = vmatpush1.bf16.msra.mxu1 %v14531_v55  ;;  %v14644_v55 = vcombine.high %v1251_v48, %v1259_v50  ;;  %v14643_v61 = vcombine.low %v1251_v48, %v1259_v50  ;;  %v16468_v50 = vld [vmem:[#allocation16 + $0x604] ss:$24 sps:$4 sm:$0xff]  }
 0x593   :  { %13076 = vmatpush1.bf16.msra.mxu0 %v16430_v57  ;;  %7913 = vmatprep.subr.bf16.mxu1 %v14548_v58  ;;  %v16453_v57 = vld [vmem:[#allocation16 + $0x514] ss:$24 sps:$4 sm:$0xff]   ;;  %v1267_v58 = vld [vmem:[#allocation13 + $0xe28] sm:$0xff] }
 0x594   :  { %13077 = vmatprep.subr.bf16.mxu0 %v16435_v59  ;;  %v1275_v59 = vld [vmem:[#allocation13 + $0xe68] sm:$0xff] }
 0x595   :  { %v14659_v3 = vcombine.low %v1267_v58, %v1275_v59 }
 0x596   :  { %7914 = vmatpush1.bf16.msra.mxu1 %v14547_v63  ;;  %v14660_v63 = vcombine.high %v1267_v58, %v1275_v59  ;;  %v1363_v59 = vld [vmem:[#allocation13 + $0x1128] sm:$0xff] }
 0x597   :  { %13078 = vmatpush1.bf16.msra.mxu0 %v16433_v47  ;;  %7915 = vmatprep.subr.bf16.mxu1 %v14564_v0  ;;  %v16456_v47 = vld [vmem:[#allocation16 + $0x544] ss:$24 sps:$4 sm:$0xff]  }
 0x598   :  { %13079 = vmatprep.subr.bf16.mxu0 %v16438_v2  ;;  %v1283_v0 = vld [vmem:[#allocation13 + $0xea8] sm:$0xff] }
 0x599   :  { %v1291_v2 = vld [vmem:[#allocation13 + $0xee8] sm:$0xff] }
 0x59a   :  { %7916 = vmatpush1.bf16.msra.mxu1 %v14563_v5  ;;  %v14676_v5 = vcombine.high %v1283_v0, %v1291_v2  ;;  %v14675_v18 = vcombine.low %v1283_v0, %v1291_v2  ;;  %v16469_v0 = vld [vmem:[#allocation16 + $0x630] ss:$24 sps:$4 sm:$0xff]  }
 0x59b   :  { %13080 = vmatpush1.bf16.msra.mxu0 %v16436_v6  ;;  %7917 = vmatprep.subr.bf16.mxu1 %v14580_v7  ;;  %v16459_v6 = vld [vmem:[#allocation16 + $0x574] ss:$24 sps:$4 sm:$0xff]   ;;  %v1299_v7 = vld [vmem:[#allocation13 + $0xf28] sm:$0xff] }
 0x59c   :  { %13081 = vmatprep.subr.bf16.mxu0 %v16441_v46  ;;  %v1307_v46 = vld [vmem:[#allocation13 + $0xf68] sm:$0xff] }
 0x59e   :  { %7918 = vmatpush1.bf16.msra.mxu1 %v14579_v53  ;;  %v14692_v53 = vcombine.high %v1299_v7, %v1307_v46 }
 0x59f   :  { %13082 = vmatpush1.bf16.msra.mxu0 %v16439_v19  ;;  %7919 = vmatprep.subr.bf16.mxu1 %v14596_v52  ;;  %v1853_v19 = vrot.slane %v18202_v60, %v18108_v41  ;;  %v16462_v52 = vld [vmem:[#allocation16 + $0x5a4] ss:$24 sps:$4 sm:$0xff]  }
 0x5a0   :  { %13083 = vmatprep.subr.bf16.mxu0 %v16444_v25  ;;  %v1315_v25 = vld [vmem:[#allocation13 + $0xfa8] sm:$0xff] }
 0x5a2   :  { %7920 = vmatpush1.bf16.msra.mxu1 %v14595_v34  ;;  %v14691_v34 = vcombine.low %v1299_v7, %v1307_v46  ;;  %v16472_v7 = vld [vmem:[#allocation16 + $0x660] ss:$24 sps:$4 sm:$0xff]  }
 0x5a3   :  { %13084 = vmatpush1.bf16.msra.mxu0 %v16442_v35  ;;  %7921 = vmatprep.subr.bf16.mxu1 %v14612_v28  ;;  %v16460_v35 = vld [vmem:[#allocation16 + $0x5a0] ss:$24 sps:$4 sm:$0xff]   ;;  %v14708_v28 = vcombine.high %v1315_v25, %v1323_v26 }
 0x5a4   :  { %13085 = vmatprep.subr.bf16.mxu0 %v16447_v38  ;;  %v16150_v38 = vadd.f32 %v18194_v8, %v1853_v19 }
 0x5a6   :  { %7922 = vmatpush1.bf16.msra.mxu1 %v14611_v13  ;;  %v1339_v13 = vld [vmem:[#allocation13 + $0x1068] sm:$0xff]  ;;  %v8356_v48 = vmax.f32 %v16150_v38, 0.0 }
 0x5a7   :  { %13086 = vmatpush1.bf16.msra.mxu0 %v16445_v40  ;;  %7923 = vmatprep.subr.bf16.mxu1 %v14628_v43  ;;  %v16153_v40 = vadd.f32 %v18176_v17, %v1865_v33  ;;  %v14707_v43 = vcombine.low %v1315_v25, %v1323_v26  ;;  %v14724_v60 = vcombine.high %v1331_v39, %v1339_v13  ;;  %v16480_v26 = vld [vmem:[#allocation16 + $0x6c4] ss:$24 sps:$4 sm:$0xff]  }
 0x5a8   :  { %13087 = vmatprep.subr.bf16.mxu0 %v16450_v44  ;;  %v16463_v44 = vld [vmem:[#allocation16 + $0x5d0] ss:$24 sps:$4 sm:$0xff]   ;;  %v14723_v8 = vcombine.low %v1331_v39, %v1339_v13  ;;  %v18233_v58 = vpack.c.bf16 %v8356_v48, %v8356_v48  ;;  %v1411_v33 = vld [vmem:[#allocation13 + $0x12a8] sm:$0xff] }
 0x5a9   :  { %v1427_v39 = vld [vmem:[#allocation13 + $0x1328] sm:$0xff] }
 0x5aa   :  { %7924 = vmatpush1.bf16.msra.mxu1 %v14627_v51  ;;  %v1347_v51 = vld [vmem:[#allocation13 + $0x10a8] sm:$0xff] }
 0x5ab   :  { %13088 = vmatpush1.bf16.msra.mxu0 %v16448_v54  ;;  %7925 = vmatprep.subr.bf16.mxu1 %v14644_v55  ;;  %v1355_v54 = vld [vmem:[#allocation13 + $0x10e8] sm:$0xff]  ;;  %v8359_v55 = vmax.f32 %v16153_v40, 0.0 }
 0x5ac   :  { %13089 = vmatprep.subr.bf16.mxu0 %v16453_v57  ;;  %v16466_v57 = vld [vmem:[#allocation16 + $0x600] ss:$24 sps:$4 sm:$0xff]   ;;  %v14740_v17 = vcombine.high %v1347_v51, %v1355_v54 }
 0x5ad   :  { %v1435_v13 = vld [vmem:[#allocation13 + $0x1368] sm:$0xff] }
 0x5ae   :  { %7926 = vmatpush1.bf16.msra.mxu1 %v14643_v61  ;;  %v1371_v61 = vld [vmem:[#allocation13 + $0x1168] sm:$0xff] }
 0x5af   :  { %13090 = vmatpush1.bf16.msra.mxu0 %v16451_v62  ;;  %7927 = vmatprep.subr.bf16.mxu1 %v14660_v63  ;;  %v16471_v62 = vld [vmem:[#allocation16 + $0x634] ss:$24 sps:$4 sm:$0xff]   ;;  %v18236_v63 = vpack.c.bf16 %v8359_v55, %v8359_v55  ;;  %v14756_v2 = vcombine.high %v1363_v59, %v1371_v61  ;;  %v1443_v48 = vld [vmem:[#allocation13 + $0x13a8] sm:$0xff] }
 0x5b0   :  { %13091 = vmatprep.subr.bf16.mxu0 %v16456_v47  ;;  %v14739_v47 = vcombine.low %v1347_v51, %v1355_v54  ;;  %v14819_v51 = vcombine.low %v1427_v39, %v1435_v13  ;;  %v16484_v54 = vld [vmem:[#allocation16 + $0x720] ss:$24 sps:$4 sm:$0xff]  }
 0x5b2   :  { %7928 = vmatpush1.bf16.msra.mxu1 %v14659_v3  ;;  %v16474_v3 = vld [vmem:[#allocation16 + $0x664] ss:$24 sps:$4 sm:$0xff]  }
 0x5b3   :  { %13092 = vmatpush1.bf16.msra.mxu0 %v16454_v30  ;;  %7929 = vmatprep.subr.bf16.mxu1 %v14676_v5  ;;  %v1379_v30 = vld [vmem:[#allocation13 + $0x11a8] sm:$0xff] }
 0x5b4   :  { %13093 = vmatprep.subr.bf16.mxu0 %v16459_v6  ;;  %v1387_v5 = vld [vmem:[#allocation13 + $0x11e8] sm:$0xff]  ;;  %v14755_v6 = vcombine.low %v1363_v59, %v1371_v61  ;;  %v16487_v61 = vld [vmem:[#allocation16 + $0x750] ss:$24 sps:$4 sm:$0xff]  }
 0x5b5   :  { %v14772_v46 = vcombine.high %v1379_v30, %v1387_v5  ;;  %v14771_v19 = vcombine.low %v1379_v30, %v1387_v5  ;;  %v16490_v30 = vld [vmem:[#allocation16 + $0x780] ss:$24 sps:$4 sm:$0xff]  }
 0x5b6   :  { %7930 = vmatpush1.bf16.msra.mxu1 %v14675_v18  ;;  %v16477_v18 = vld [vmem:[#allocation16 + $0x694] ss:$24 sps:$4 sm:$0xff]  }
 0x5b7   :  { %13094 = vmatpush1.bf16.msra.mxu0 %v16457_v11  ;;  %7931 = vmatprep.subr.bf16.mxu1 %v14692_v53  ;;  %v1395_v11 = vld [vmem:[#allocation13 + $0x1228] sm:$0xff] }
 0x5b8   :  { %13095 = vmatprep.subr.bf16.mxu0 %v16462_v52  ;;  %v1403_v53 = vld [vmem:[#allocation13 + $0x1268] sm:$0xff]  ;;  %v16475_v52 = vld [vmem:[#allocation16 + $0x690] ss:$24 sps:$4 sm:$0xff]  }
 0x5b9   :  { %v14788_v25 = vcombine.high %v1395_v11, %v1403_v53 }
 0x5ba   :  { %7932 = vmatpush1.bf16.msra.mxu1 %v14691_v34  ;;  %v1419_v34 = vld [vmem:[#allocation13 + $0x12e8] sm:$0xff] }
 0x5bb   :  { %13096 = vmatpush1.bf16.msra.mxu0 %v16460_v35  ;;  %7933 = vmatprep.subr.bf16.mxu1 %v14708_v28  ;;  %v14787_v35 = vcombine.low %v1395_v11, %v1403_v53  ;;  %v16478_v28 = vld [vmem:[#allocation16 + $0x6c0] ss:$24 sps:$4 sm:$0xff]   ;;  %v14804_v38 = vcombine.high %v1411_v33, %v1419_v34  ;;  %v14803_v40 = vcombine.low %v1411_v33, %v1419_v34  ;;  %v16493_v11 = vld [vmem:[#allocation16 + $0x7b0] ss:$24 sps:$4 sm:$0xff]  }
 0x5bc   :  { %13097 = vmatprep.subr.bf16.mxu0 %v16465_v1  ;;  %v16483_v1 = vld [vmem:[#allocation16 + $0x6f4] ss:$24 sps:$4 sm:$0xff]   ;;  %v16496_v33 = vld [vmem:[#allocation16 + $0x7e0] ss:$24 sps:$4 sm:$0xff]  }
 0x5be   :  { %7934 = vmatpush1.bf16.msra.mxu1 %v14707_v43  ;;  %v16481_v43 = vld [vmem:[#allocation16 + $0x6f0] ss:$24 sps:$4 sm:$0xff]  }
 0x5bf   :  { %13098 = vmatpush1.bf16.msra.mxu0 %v16463_v44  ;;  %7944 = vmatprep.subr.bf16.mxu1 %v14724_v60  ;;  %v14820_v44 = vcombine.high %v1427_v39, %v1435_v13  ;;  %v16486_v60 = vld [vmem:[#allocation16 + $0x724] ss:$24 sps:$4 sm:$0xff]   ;;  %v16499_v39 = vld [vmem:[#allocation16 + $0x810] ss:$24 sps:$4 sm:$0xff]  }
 0x5c0   :  { %13108 = vmatprep.subr.bf16.mxu0 %v16468_v50  ;;  %v1451_v50 = vld [vmem:[#allocation13 + $0x13e8] sm:$0xff] }
 0x5c1   :  { %7936 = vmatmul.mubr.bf16.vlgmr.msra.gmra.mrb[20].mxu1 %v18119_v22  ;;  %v14836_v55 = vcombine.high %v1443_v48, %v1451_v50  ;;  %v14835_v59 = vcombine.low %v1443_v48, %v1451_v50  ;;  %v16502_v48 = vld [vmem:[#allocation16 + $0x840] ss:$24 sps:$4 sm:$0xff]  }
 0x5c2   :  { %13100 = vmatmul.mubr.bf16.vlgmr.msra.gmra.mrb[20].mxu0 %v18233_v58  ;;  %7945 = vmatpush1.bf16.msra.mxu1 %v14723_v8  ;;  %v16489_v8 = vld [vmem:[#allocation16 + $0x754] ss:$24 sps:$4 sm:$0xff]  }
 0x5c3   :  { %7976 = vmatprep.mubr.bf16.mxu1 %v18121_v24  ;;  %13109 = vmatpush1.bf16.msra.mxu0 %v16466_v57  ;;  %v1459_v57 = vld [vmem:[#allocation13 + $0x1428] sm:$0xff] }
 0x5c4   :  { %13140 = vmatprep.mubr.bf16.mxu0 %v18236_v63  ;;  %7946 = vmatprep.subr.bf16.mxu1 %v14740_v17  ;;  %v1467_v17 = vld [vmem:[#allocation13 + $0x1468] sm:$0xff] }
 0x5c5   :  { %13110 = vmatprep.subr.bf16.mxu0 %v16471_v62  ;;  %v14852_v62 = vcombine.high %v1459_v57, %v1467_v17 }
 0x5c6   :  { %7947 = vmatpush1.bf16.msra.mxu1 %v14739_v47  ;;  %v16492_v47 = vld [vmem:[#allocation16 + $0x784] ss:$24 sps:$4 sm:$0xff]  }
 0x5c7   :  { %13111 = vmatpush1.bf16.msra.mxu0 %v16469_v0  ;;  %7948 = vmatprep.subr.bf16.mxu1 %v14756_v2  ;;  %v1475_v0 = vld [vmem:[#allocation13 + $0x14a8] sm:$0xff] }
 0x5c8   :  { %13112 = vmatprep.subr.bf16.mxu0 %v16474_v3  ;;  %v1483_v2 = vld [vmem:[#allocation13 + $0x14e8] sm:$0xff]  ;;  %v14851_v3 = vcombine.low %v1459_v57, %v1467_v17  ;;  %v16505_v57 = vld [vmem:[#allocation16 + $0x870] ss:$24 sps:$4 sm:$0xff]  }
 0x5c9   :  { %v14868_v5 = vcombine.high %v1475_v0, %v1483_v2 }
 0x5ca   :  { %7949 = vmatpush1.bf16.msra.mxu1 %v14755_v6  ;;  %v16495_v6 = vld [vmem:[#allocation16 + $0x7b4] ss:$24 sps:$4 sm:$0xff]  }
 0x5cb   :  { %13113 = vmatpush1.bf16.msra.mxu0 %v16472_v7  ;;  %7950 = vmatprep.subr.bf16.mxu1 %v14772_v46  ;;  %v1491_v7 = vld [vmem:[#allocation13 + $0x1528] sm:$0xff] }
 0x5cc   :  { %13114 = vmatprep.subr.bf16.mxu0 %v16477_v18  ;;  %v1499_v46 = vld [vmem:[#allocation13 + $0x1568] sm:$0xff]  ;;  %v14867_v18 = vcombine.low %v1475_v0, %v1483_v2 }
 0x5cd   :  { %v14884_v53 = vcombine.high %v1491_v7, %v1499_v46  ;;  %v1579_v0 = vld [vmem:[#allocation13 + $0x17e8] sm:$0xff] }
 0x5ce   :  { %7951 = vmatpush1.bf16.msra.mxu1 %v14771_v19  ;;  %v16498_v19 = vld [vmem:[#allocation16 + $0x7e4] ss:$24 sps:$4 sm:$0xff]  }
 0x5cf   :  { %13115 = vmatpush1.bf16.msra.mxu0 %v16475_v52  ;;  %7952 = vmatprep.subr.bf16.mxu1 %v14788_v25  ;;  %v1507_v52 = vld [vmem:[#allocation13 + $0x15a8] sm:$0xff] }
 0x5d0   :  { %13116 = vmatprep.subr.bf16.mxu0 %v16480_v26  ;;  %v1515_v25 = vld [vmem:[#allocation13 + $0x15e8] sm:$0xff]  ;;  %v14883_v26 = vcombine.low %v1491_v7, %v1499_v46 }
 0x5d1   :  { %v14900_v34 = vcombine.high %v1507_v52, %v1515_v25  ;;  %v1587_v7 = vld [vmem:[#allocation13 + $0x1828] sm:$0xff] }
 0x5d2   :  { %7953 = vmatpush1.bf16.msra.mxu1 %v14787_v35  ;;  %v16501_v35 = vld [vmem:[#allocation16 + $0x814] ss:$24 sps:$4 sm:$0xff]   ;;  %v1595_v46 = vld [vmem:[#allocation13 + $0x1868] sm:$0xff] }
 0x5d3   :  { %13117 = vmatpush1.bf16.msra.mxu0 %v16478_v28  ;;  %7954 = vmatprep.subr.bf16.mxu1 %v14804_v38  ;;  %v1523_v28 = vld [vmem:[#allocation13 + $0x1628] sm:$0xff] }
 0x5d4   :  { %13118 = vmatprep.subr.bf16.mxu0 %v16483_v1  ;;  %v1531_v38 = vld [vmem:[#allocation13 + $0x1668] sm:$0xff]  ;;  %v14899_v1 = vcombine.low %v1507_v52, %v1515_v25 }
 0x5d5   :  { %v14916_v13 = vcombine.high %v1523_v28, %v1531_v38  ;;  %v16516_v52 = vld [vmem:[#allocation16 + $0x904] ss:$24 sps:$4 sm:$0xff]  }
 0x5d6   :  { %7955 = vmatpush1.bf16.msra.mxu1 %v14803_v40  ;;  %v16504_v40 = vld [vmem:[#allocation16 + $0x844] ss:$24 sps:$4 sm:$0xff]  }
 0x5d7   :  { %13119 = vmatpush1.bf16.msra.mxu0 %v16481_v43  ;;  %7956 = vmatprep.subr.bf16.mxu1 %v14820_v44  ;;  %v1539_v43 = vld [vmem:[#allocation13 + $0x16a8] sm:$0xff] }
 0x5d8   :  { %13120 = vmatprep.subr.bf16.mxu0 %v16486_v60  ;;  %v1547_v44 = vld [vmem:[#allocation13 + $0x16e8] sm:$0xff]  ;;  %v14915_v60 = vcombine.low %v1523_v28, %v1531_v38  ;;  %v16519_v28 = vld [vmem:[#allocation16 + $0x934] ss:$24 sps:$4 sm:$0xff]  }
 0x5d9   :  { %v14932_v50 = vcombine.high %v1539_v43, %v1547_v44  ;;  %v1603_v25 = vld [vmem:[#allocation13 + $0x18a8] sm:$0xff] }
 0x5da   :  { %7957 = vmatpush1.bf16.msra.mxu1 %v14819_v51  ;;  %v16507_v51 = vld [vmem:[#allocation16 + $0x874] ss:$24 sps:$4 sm:$0xff]   ;;  %v1619_v38 = vld [vmem:[#allocation13 + $0x1928] sm:$0xff] }
 0x5db   :  { %13121 = vmatpush1.bf16.msra.mxu0 %v16484_v54  ;;  %7958 = vmatprep.subr.bf16.mxu1 %v14836_v55  ;;  %v1555_v54 = vld [vmem:[#allocation13 + $0x1728] sm:$0xff] }
 0x5dc   :  { %13122 = vmatprep.subr.bf16.mxu0 %v16489_v8  ;;  %v1563_v55 = vld [vmem:[#allocation13 + $0x1768] sm:$0xff]  ;;  %v14931_v8 = vcombine.low %v1539_v43, %v1547_v44 }
 0x5dd   :  { %v14948_v17 = vcombine.high %v1555_v54, %v1563_v55  ;;  %v14947_v2 = vcombine.low %v1555_v54, %v1563_v55  ;;  %v16522_v43 = vld [vmem:[#allocation16 + $0x964] ss:$24 sps:$4 sm:$0xff]   ;;  %v16525_v54 = vld [vmem:[#allocation16 + $0x994] ss:$24 sps:$4 sm:$0xff]  }
 0x5de   :  { %7959 = vmatpush1.bf16.msra.mxu1 %v14835_v59  ;;  %v18241_v59 = vld [vmem:[#allocation15] sm:$0xff]  ;;  %v1635_v44 = vld [vmem:[#allocation13 + $0x19a8] sm:$0xff] }
 0x5df   :  { %13123 = vmatpush1.bf16.msra.mxu0 %v16487_v61  ;;  %7960 = vmatprep.subr.bf16.mxu1 %v14852_v62  ;;  %v1861_v61 = vrot.slane %v18241_v59, %v18128_v23  ;;  %v16510_v62 = vld [vmem:[#allocation16 + $0x8a4] ss:$24 sps:$4 sm:$0xff]  }
 0x5e0   :  { %13124 = vmatprep.subr.bf16.mxu0 %v16492_v47  ;;  %v1571_v47 = vld [vmem:[#allocation13 + $0x17a8] sm:$0xff] }
 0x5e1   :  { %v1651_v55 = vld [vmem:[#allocation13 + $0x1a28] sm:$0xff] }
 0x5e2   :  { %7961 = vmatpush1.bf16.msra.mxu1 %v14851_v3  ;;  %v16508_v3 = vld [vmem:[#allocation16 + $0x8a0] ss:$24 sps:$4 sm:$0xff]  }
 0x5e3   :  { %13125 = vmatpush1.bf16.msra.mxu0 %v16490_v30  ;;  %7962 = vmatprep.subr.bf16.mxu1 %v14868_v5  ;;  %v14964_v30 = vcombine.high %v1571_v47, %v1579_v0  ;;  %v16152_v5 = vadd.f32 %v18172_v12, %v1861_v61  ;;  %v16514_v12 = vld [vmem:[#allocation16 + $0x900] ss:$24 sps:$4 sm:$0xff]  }
 0x5e4   :  { %13126 = vmatprep.subr.bf16.mxu0 %v16495_v6  ;;  %v16513_v6 = vld [vmem:[#allocation16 + $0x8d4] ss:$24 sps:$4 sm:$0xff]  }
 0x5e6   :  { %7963 = vmatpush1.bf16.msra.mxu1 %v14867_v18  ;;  %v14963_v18 = vcombine.low %v1571_v47, %v1579_v0  ;;  %v1667_v47 = vld [vmem:[#allocation13 + $0x1aa8] sm:$0xff] }
 0x5e7   :  { %13127 = vmatpush1.bf16.msra.mxu0 %v16493_v11  ;;  %7964 = vmatprep.subr.bf16.mxu1 %v14884_v53  ;;  %v16511_v11 = vld [vmem:[#allocation16 + $0x8d0] ss:$24 sps:$4 sm:$0xff]   ;;  %v14980_v53 = vcombine.high %v1587_v7, %v1595_v46  ;;  %v1675_v0 = vld [vmem:[#allocation13 + $0x1ae8] sm:$0xff] }
 0x5e8   :  { %13128 = vmatprep.subr.bf16.mxu0 %v16498_v19  ;;  %v8358_v19 = vmax.f32 %v16152_v5, 0.0  ;;  %v16531_v5 = vld [vmem:[#allocation16 + $0x9f4] ss:$24 sps:$4 sm:$0xff]  }
 0x5ea   :  { %7965 = vmatpush1.bf16.msra.mxu1 %v14883_v26  ;;  %v1611_v26 = vld [vmem:[#allocation13 + $0x18e8] sm:$0xff] }
 0x5eb   :  { %13129 = vmatpush1.bf16.msra.mxu0 %v16496_v33  ;;  %7966 = vmatprep.subr.bf16.mxu1 %v14900_v34  ;;  %v14979_v33 = vcombine.low %v1587_v7, %v1595_v46  ;;  %v18246_v34 = vpack.c.bf16 %v8358_v19, %v8358_v19  ;;  %v1691_v7 = vld [vmem:[#allocation13 + $0x1b68] sm:$0xff]  ;;  %v1873_v46 = vrot.slane %v18241_v59, %v18131_v36 }
 0x5ec   :  { %13130 = vmatprep.subr.bf16.mxu0 %v16501_v35  ;;  %v14996_v35 = vcombine.high %v1603_v25, %v1611_v26 }
 0x5ee   :  { %7967 = vmatpush1.bf16.msra.mxu1 %v14899_v1  ;;  %v1627_v1 = vld [vmem:[#allocation13 + $0x1968] sm:$0xff] }
 0x5ef   :  { %13131 = vmatpush1.bf16.msra.mxu0 %v16499_v39  ;;  %7968 = vmatprep.subr.bf16.mxu1 %v14916_v13  ;;  %v14995_v39 = vcombine.low %v1603_v25, %v1611_v26  ;;  %v16517_v13 = vld [vmem:[#allocation16 + $0x930] ss:$24 sps:$4 sm:$0xff]   ;;  %v1699_v25 = vld [vmem:[#allocation13 + $0x1ba8] sm:$0xff] }
 0x5f0   :  { %13132 = vmatprep.subr.bf16.mxu0 %v16504_v40  ;;  %v15012_v40 = vcombine.high %v1619_v38, %v1627_v1  ;;  %v1707_v26 = vld [vmem:[#allocation13 + $0x1be8] sm:$0xff] }
 0x5f2   :  { %7969 = vmatpush1.bf16.msra.mxu1 %v14915_v60  ;;  %v1643_v60 = vld [vmem:[#allocation13 + $0x19e8] sm:$0xff] }
 0x5f3   :  { %13133 = vmatpush1.bf16.msra.mxu0 %v16502_v48  ;;  %7970 = vmatprep.subr.bf16.mxu1 %v14932_v50  ;;  %v15011_v48 = vcombine.low %v1619_v38, %v1627_v1  ;;  %v16520_v50 = vld [vmem:[#allocation16 + $0x960] ss:$24 sps:$4 sm:$0xff]  }
 0x5f4   :  { %13134 = vmatprep.subr.bf16.mxu0 %v16507_v51  ;;  %v15028_v51 = vcombine.high %v1635_v44, %v1643_v60 }
 0x5f6   :  { %7971 = vmatpush1.bf16.msra.mxu1 %v14931_v8  ;;  %v1659_v8 = vld [vmem:[#allocation13 + $0x1a68] sm:$0xff] }
 0x5f7   :  { %13135 = vmatpush1.bf16.msra.mxu0 %v16505_v57  ;;  %7972 = vmatprep.subr.bf16.mxu1 %v14948_v17  ;;  %v15027_v57 = vcombine.low %v1635_v44, %v1643_v60  ;;  %v16523_v17 = vld [vmem:[#allocation16 + $0x990] ss:$24 sps:$4 sm:$0xff]   ;;  %v15044_v61 = vcombine.high %v1651_v55, %v1659_v8 }
 0x5f8   :  { %13136 = vmatprep.subr.bf16.mxu0 %v16510_v62  ;;  %v16528_v62 = vld [vmem:[#allocation16 + $0x9c4] ss:$24 sps:$4 sm:$0xff]  }
 0x5fa   :  { %7973 = vmatpush1.bf16.msra.mxu1 %v14947_v2  ;;  %v15043_v2 = vcombine.low %v1651_v55, %v1659_v8  ;;  %v15091_v55 = vcombine.low %v1699_v25, %v1707_v26  ;;  %v16535_v8 = vld [vmem:[#allocation16 + $0xa50] ss:$24 sps:$4 sm:$0xff]  }
 0x5fb   :  { %13137 = vmatpush1.bf16.msra.mxu0 %v16508_v3  ;;  %7974 = vmatprep.subr.bf16.mxu1 %v14964_v30  ;;  %v16526_v3 = vld [vmem:[#allocation16 + $0x9c0] ss:$24 sps:$4 sm:$0xff]   ;;  %v15060_v30 = vcombine.high %v1667_v47, %v1675_v0 }
 0x5fc   :  { %13138 = vmatprep.subr.bf16.mxu0 %v16513_v6  ;;  %v1683_v6 = vld [vmem:[#allocation13 + $0x1b28] sm:$0xff] }
 0x5fd   :  { %v15075_v1 = vcombine.low %v1683_v6, %v1691_v7 }
 0x5fe   :  { %7975 = vmatpush1.bf16.msra.mxu1 %v14963_v18  ;;  %v15059_v18 = vcombine.low %v1667_v47, %v1675_v0  ;;  %v16538_v0 = vld [vmem:[#allocation16 + $0xa80] ss:$24 sps:$4 sm:$0xff]  }
 0x5ff   :  { %13139 = vmatpush1.bf16.msra.mxu0 %v16511_v11  ;;  %7985 = vmatprep.subr.bf16.mxu1 %v14980_v53  ;;  %v16529_v11 = vld [vmem:[#allocation16 + $0x9f0] ss:$24 sps:$4 sm:$0xff]   ;;  %v15076_v53 = vcombine.high %v1683_v6, %v1691_v7 }
 0x600   :  { %13149 = vmatprep.subr.bf16.mxu0 %v16516_v52  ;;  %v16534_v52 = vld [vmem:[#allocation16 + $0xa24] ss:$24 sps:$4 sm:$0xff]   ;;  %v16541_v7 = vld [vmem:[#allocation16 + $0xab0] ss:$24 sps:$4 sm:$0xff]  }
 0x601   :  { %7977 = vmatmul.mubr.bf16.vlgmr.msra.gmra.mrb[20].mxu1 %v18139_v14 }
 0x602   :  { %13141 = vmatmul.mubr.bf16.vlgmr.msra.gmra.mrb[20].mxu0 %v18246_v34  ;;  %7986 = vmatpush1.bf16.msra.mxu1 %v14979_v33 }
 0x603   :  { %8017 = vmatprep.mubr.bf16.mxu1 %v18141_v37  ;;  %13150 = vmatpush1.bf16.msra.mxu0 %v16514_v12 }
 0x604   :  { %7987 = vmatprep.subr.bf16.mxu1 %v14996_v35  ;;  %13151 = vmatprep.subr.bf16.mxu0 %v16519_v28 }
 0x606   :  { %7988 = vmatpush1.bf16.msra.mxu1 %v14995_v39 }
 0x607   :  { %13152 = vmatpush1.bf16.msra.mxu0 %v16517_v13  ;;  %7989 = vmatprep.subr.bf16.mxu1 %v15012_v40  ;;  %v16532_v40 = vld [vmem:[#allocation16 + $0xa20] ss:$24 sps:$4 sm:$0xff]  }
 0x608   :  { %13153 = vmatprep.subr.bf16.mxu0 %v16522_v43  ;;  %v15092_v43 = vcombine.high %v1699_v25, %v1707_v26  ;;  %v16544_v25 = vld [vmem:[#allocation16 + $0xae0] ss:$24 sps:$4 sm:$0xff]  }
 0x60a   :  { %7990 = vmatpush1.bf16.msra.mxu1 %v15011_v48  ;;  %v16537_v48 = vld [vmem:[#allocation16 + $0xa54] ss:$24 sps:$4 sm:$0xff]  }
 0x60b   :  { %13154 = vmatpush1.bf16.msra.mxu0 %v16520_v50  ;;  %7991 = vmatprep.subr.bf16.mxu1 %v15028_v51  ;;  %v1715_v50 = vld [vmem:[#allocation13 + $0x1c28] sm:$0xff] }
 0x60c   :  { %13155 = vmatprep.subr.bf16.mxu0 %v16525_v54  ;;  %v1723_v51 = vld [vmem:[#allocation13 + $0x1c68] sm:$0xff] }
 0x60d   :  { %v15107_v47 = vcombine.low %v1715_v50, %v1723_v51 }
 0x60e   :  { %7992 = vmatpush1.bf16.msra.mxu1 %v15027_v57  ;;  %v15108_v57 = vcombine.high %v1715_v50, %v1723_v51  ;;  %v16555_v51 = vld [vmem:[#allocation16 + $0xb74] ss:$24 sps:$4 sm:$0xff]  }
 0x60f   :  { %13156 = vmatpush1.bf16.msra.mxu0 %v16523_v17  ;;  %7993 = vmatprep.subr.bf16.mxu1 %v15044_v61  ;;  %v16540_v17 = vld [vmem:[#allocation16 + $0xa84] ss:$24 sps:$4 sm:$0xff]  }
 0x610   :  { %13157 = vmatprep.subr.bf16.mxu0 %v16528_v62  ;;  %v1731_v61 = vld [vmem:[#allocation13 + $0x1ca8] sm:$0xff] }
 0x611   :  { %v1739_v62 = vld [vmem:[#allocation13 + $0x1ce8] sm:$0xff] }
 0x612   :  { %7994 = vmatpush1.bf16.msra.mxu1 %v15043_v2  ;;  %v15124_v2 = vcombine.high %v1731_v61, %v1739_v62  ;;  %v15123_v6 = vcombine.low %v1731_v61, %v1739_v62  ;;  %v16553_v61 = vld [vmem:[#allocation16 + $0xb70] ss:$24 sps:$4 sm:$0xff]  }
 0x613   :  { %13158 = vmatpush1.bf16.msra.mxu0 %v16526_v3  ;;  %7995 = vmatprep.subr.bf16.mxu1 %v15060_v30  ;;  %v16543_v3 = vld [vmem:[#allocation16 + $0xab4] ss:$24 sps:$4 sm:$0xff]   ;;  %v1747_v30 = vld [vmem:[#allocation13 + $0x1d28] sm:$0xff] }
 0x614   :  { %v18253_v19 = vpop.f32.mrb[16].mxu1  ;;  %13159 = vmatprep.subr.bf16.mxu0 %v16531_v5  ;;  %v1755_v5 = vld [vmem:[#allocation13 + $0x1d68] sm:$0xff] }
 0x615   :  { %v18255_v33 = vpop.f32.mrb[16].mxu0  ;;  %v7693_v12 = vpop.f32.mrb[17].mxu1 }
 0x616   :  { %v16155_v35 = vadd.f32 %v7693_v12, %v1873_v46  ;;  %v18257_v28 = vpop.f32.mrb[17].mxu0  ;;  %v7695_v38 = vpop.f32.mrb[18].mxu1  ;;  %7996 = vmatpush1.bf16.msra.mxu1 %v15059_v18  ;;  %v15140_v46 = vcombine.high %v1747_v30, %v1755_v5  ;;  %v16546_v18 = vld [vmem:[#allocation16 + $0xae4] ss:$24 sps:$4 sm:$0xff]   ;;  %v16549_v12 = vld [vmem:[#allocation16 + $0xb14] ss:$24 sps:$4 sm:$0xff]  }
 0x617   :  { %v8187_v39 = vpop.f32.mrb[18].mxu0  ;;  %13160 = vmatpush1.bf16.msra.mxu0 %v16529_v11  ;;  %v7696_v13 = vpop.f32.mrb[19].mxu1  ;;  %7997 = vmatprep.subr.bf16.mxu1 %v15076_v53  ;;  %v1763_v11 = vld [vmem:[#allocation13 + $0x1da8] sm:$0xff] }
 0x618   :  { %v8361_v44 = vmax.f32 %v16155_v35, 0.0  ;;  %v8188_v60 = vpop.f32.mrb[19].mxu0  ;;  %13161 = vmatprep.subr.bf16.mxu0 %v16534_v52  ;;  %v1771_v53 = vld [vmem:[#allocation13 + $0x1de8] sm:$0xff]  ;;  %v15139_v52 = vcombine.low %v1747_v30, %v1755_v5  ;;  %v16547_v39 = vld [vmem:[#allocation16 + $0xb10] ss:$24 sps:$4 sm:$0xff]  }
 0x619   :  { %v15156_v26 = vcombine.high %v1763_v11, %v1771_v53  ;;  %v1779_v35 = vld [vmem:[#allocation13 + $0x1e28] sm:$0xff] }
 0x61a   :  { %v18259_v54 = vpack.c.bf16 %v8361_v44, %v8361_v44  ;;  %7998 = vmatpush1.bf16.msra.mxu1 %v15075_v1  ;;  %v1787_v38 = vld [vmem:[#allocation13 + $0x1e68] sm:$0xff]  ;;  %v15155_v1 = vcombine.low %v1763_v11, %v1771_v53  ;;  %v821_v11 = vld [vmem:[#allocation13 + $0x38] sm:$0xff] }
 0x61b   :  { %13162 = vmatpush1.bf16.msra.mxu0 %v16532_v40  ;;  %7999 = vmatprep.subr.bf16.mxu1 %v15092_v43  ;;  %v15172_v13 = vcombine.high %v1779_v35, %v1787_v38  ;;  %v16552_v40 = vld [vmem:[#allocation16 + $0xb44] ss:$24 sps:$4 sm:$0xff]   ;;  %v15171_v60 = vcombine.low %v1779_v35, %v1787_v38  ;;  %v829_v53 = vld [vmem:[#allocation13 + $0x78] sm:$0xff] }
 0x61c   :  { %13181 = vmatprep.mubr.bf16.mxu0 %v18259_v54  ;;  %13163 = vmatprep.subr.bf16.mxu0 %v16537_v48  ;;  %v1795_v43 = vld [vmem:[#allocation13 + $0x1ea8] sm:$0xff]  ;;  %v837_v38 = vld [vmem:[#allocation13 + $0xb8] sm:$0xff] }
 0x61d   :  { %v1803_v44 = vld [vmem:[#allocation13 + $0x1ee8] sm:$0xff] }
 0x61e   :  { %8000 = vmatpush1.bf16.msra.mxu1 %v15091_v55  ;;  %v16550_v48 = vld [vmem:[#allocation16 + $0xb40] ss:$24 sps:$4 sm:$0xff]   ;;  %v15188_v50 = vcombine.high %v1795_v43, %v1803_v44  ;;  %v16564_v35 = vld [vmem:[#allocation16 + $0xc04] ss:$24 sps:$4 sm:$0xff]  }
 0x61f   :  { %13164 = vmatpush1.bf16.msra.mxu0 %v16535_v8  ;;  %8001 = vmatprep.subr.bf16.mxu1 %v15108_v57  ;;  %v1811_v55 = vld [vmem:[#allocation13 + $0x1f28] sm:$0xff]  ;;  %v15187_v57 = vcombine.low %v1795_v43, %v1803_v44  ;;  %v853_v43 = vld [vmem:[#allocation13 + $0x138] sm:$0xff] }
 0x620   :  { %13165 = vmatprep.subr.bf16.mxu0 %v16540_v17  ;;  %v1819_v8 = vld [vmem:[#allocation13 + $0x1f68] sm:$0xff]  ;;  %v861_v44 = vld [vmem:[#allocation13 + $0x178] sm:$0xff] }
 0x621   :  { %v18262_v17 = vld [vmem:[#allocation15 + $0x8] sm:$0xff]  ;;  %v15204_v62 = vcombine.high %v1811_v55, %v1819_v8  ;;  %v15203_v5 = vcombine.low %v1811_v55, %v1819_v8  ;;  %v14248_v55 = vcombine.high %v853_v43, %v861_v44 }
 0x622   :  { %8002 = vmatpush1.bf16.msra.mxu1 %v15107_v47  ;;  %v1869_v47 = vrot.slane %v18241_v59, %v18148_v16  ;;  %v1881_v30 = vrot.slane %v18262_v17, %v18074_v31  ;;  %v16570_v8 = vld [vmem:[#allocation16 + $0xc64] ss:$24 sps:$4 sm:$0xff]  }
 0x623   :  { %13166 = vmatpush1.bf16.msra.mxu0 %v16538_v0  ;;  %8003 = vmatprep.subr.bf16.mxu1 %v15124_v2  ;;  %v16558_v0 = vld [vmem:[#allocation16 + $0xba4] ss:$24 sps:$4 sm:$0xff]  }
 0x624   :  { %13167 = vmatprep.subr.bf16.mxu0 %v16543_v3  ;;  %v1827_v2 = vld [vmem:[#allocation13 + $0x1fa8] sm:$0xff]  ;;  %v16157_v59 = vadd.f32 %v18200_v21, %v1881_v30 }
 0x625   :  { %v1835_v3 = vld [vmem:[#allocation13 + $0x1fe8] sm:$0xff] }
 0x626   :  { %8004 = vmatpush1.bf16.msra.mxu1 %v15123_v6  ;;  %v16556_v6 = vld [vmem:[#allocation16 + $0xba0] ss:$24 sps:$4 sm:$0xff]  }
 0x627   :  { %13168 = vmatpush1.bf16.msra.mxu0 %v16541_v7  ;;  %8005 = vmatprep.subr.bf16.mxu1 %v15140_v46  ;;  %v15220_v7 = vcombine.high %v1827_v2, %v1835_v3  ;;  %v16154_v46 = vadd.f32 %v18253_v19, %v1869_v47  ;;  %v14215_v19 = vcombine.low %v821_v11, %v829_v53  ;;  %v16568_v47 = vld [vmem:[#allocation16 + $0xc60] ss:$24 sps:$4 sm:$0xff]  }
 0x628   :  { %13169 = vmatprep.subr.bf16.mxu0 %v16546_v18  ;;  %v16561_v18 = vld [vmem:[#allocation16 + $0xbd4] ss:$24 sps:$4 sm:$0xff]  }
 0x62a   :  { %8006 = vmatpush1.bf16.msra.mxu1 %v15139_v52  ;;  %v15219_v52 = vcombine.low %v1827_v2, %v1835_v3  ;;  %v16573_v2 = vld [vmem:[#allocation16 + $0xc94] ss:$24 sps:$4 sm:$0xff]  }
 0x62b   :  { %13170 = vmatpush1.bf16.msra.mxu0 %v16544_v25  ;;  %8007 = vmatprep.subr.bf16.mxu1 %v15156_v26  ;;  %v16559_v25 = vld [vmem:[#allocation16 + $0xbd0] ss:$24 sps:$4 sm:$0xff]   ;;  %v14216_v26 = vcombine.high %v821_v11, %v829_v53  ;;  %v16574_v53 = vld [vmem:[#allocation16 + $0xcc0] ss:$24 sps:$4 sm:$0xff]  }
 0x62c   :  { %13171 = vmatprep.subr.bf16.mxu0 %v16549_v12  ;;  %v8360_v12 = vmax.f32 %v16154_v46, 0.0  ;;  %v885_v3 = vld [vmem:[#allocation13 + $0x238] sm:$0xff] }
 0x62d   :  { %v901_v46 = vld [vmem:[#allocation13 + $0x2b8] sm:$0xff] }
 0x62e   :  { %8008 = vmatpush1.bf16.msra.mxu1 %v15155_v1  ;;  %v845_v1 = vld [vmem:[#allocation13 + $0xf8] sm:$0xff] }
 0x62f   :  { %13172 = vmatpush1.bf16.msra.mxu0 %v16547_v39  ;;  %8009 = vmatprep.subr.bf16.mxu1 %v15172_v13  ;;  %v8363_v39 = vmax.f32 %v16157_v59, 0.0  ;;  %v16562_v13 = vld [vmem:[#allocation16 + $0xc00] ss:$24 sps:$4 sm:$0xff]   ;;  %v14232_v21 = vcombine.high %v837_v38, %v845_v1 }
 0x630   :  { %13173 = vmatprep.subr.bf16.mxu0 %v16552_v40  ;;  %v18270_v40 = vpack.c.bf16 %v8360_v12, %v8360_v12 }
 0x632   :  { %8010 = vmatpush1.bf16.msra.mxu1 %v15171_v60  ;;  %v16567_v60 = vld [vmem:[#allocation16 + $0xc34] ss:$24 sps:$4 sm:$0xff]  }
 0x633   :  { %13174 = vmatpush1.bf16.msra.mxu0 %v16550_v48  ;;  %8011 = vmatprep.subr.bf16.mxu1 %v15188_v50  ;;  %v18273_v48 = vpack.c.bf16 %v8363_v39, %v8363_v39  ;;  %v14231_v50 = vcombine.low %v837_v38, %v845_v1  ;;  %v16582_v1 = vld [vmem:[#allocation16 + $0xd24] ss:$24 sps:$4 sm:$0xff]   ;;  %v933_v39 = vld [vmem:[#allocation13 + $0x3b8] sm:$0xff] }
 0x634   :  { %13175 = vmatprep.subr.bf16.mxu0 %v16555_v51  ;;  %v16565_v51 = vld [vmem:[#allocation16 + $0xc30] ss:$24 sps:$4 sm:$0xff]  }
 0x636   :  { %8012 = vmatpush1.bf16.msra.mxu1 %v15187_v57  ;;  %v869_v57 = vld [vmem:[#allocation13 + $0x1b8] sm:$0xff] }
 0x637   :  { %13176 = vmatpush1.bf16.msra.mxu0 %v16553_v61  ;;  %8013 = vmatprep.subr.bf16.mxu1 %v15204_v62  ;;  %v877_v61 = vld [vmem:[#allocation13 + $0x1f8] sm:$0xff]  ;;  %v14247_v62 = vcombine.low %v853_v43, %v861_v44 }
 0x638   :  { %13177 = vmatprep.subr.bf16.mxu0 %v16558_v0  ;;  %v14264_v0 = vcombine.high %v869_v57, %v877_v61  ;;  %v14263_v30 = vcombine.low %v869_v57, %v877_v61  ;;  %v16585_v44 = vld [vmem:[#allocation16 + $0xd54] ss:$24 sps:$4 sm:$0xff]   ;;  %v16588_v57 = vld [vmem:[#allocation16 + $0xd84] ss:$24 sps:$4 sm:$0xff]  }
 0x639   :  { %v965_v61 = vld [vmem:[#allocation13 + $0x4b8] sm:$0xff] }
 0x63a   :  { %8014 = vmatpush1.bf16.msra.mxu1 %v15203_v5  ;;  %v16571_v5 = vld [vmem:[#allocation16 + $0xc90] ss:$24 sps:$4 sm:$0xff]  }
 0x63b   :  { %13178 = vmatpush1.bf16.msra.mxu0 %v16556_v6  ;;  %8015 = vmatprep.subr.bf16.mxu1 %v15220_v7  ;;  %v16576_v7 = vld [vmem:[#allocation16 + $0xcc4] ss:$24 sps:$4 sm:$0xff]  }
 0x63c   :  { %13179 = vmatprep.subr.bf16.mxu0 %v16561_v18  ;;  %v909_v18 = vld [vmem:[#allocation13 + $0x2f8] sm:$0xff] }
 0x63d   :  { %v14296_v59 = vcombine.high %v901_v46, %v909_v18  ;;  %v14295_v12 = vcombine.low %v901_v46, %v909_v18  ;;  %v16594_v46 = vld [vmem:[#allocation16 + $0xde4] ss:$24 sps:$4 sm:$0xff]   ;;  %v997_v18 = vld [vmem:[#allocation13 + $0x5b8] sm:$0xff] }
 0x63e   :  { %8016 = vmatpush1.bf16.msra.mxu1 %v15219_v52  ;;  %v16579_v52 = vld [vmem:[#allocation16 + $0xcf4] ss:$24 sps:$4 sm:$0xff]  }
 0x63f   :  { %13180 = vmatpush1.bf16.msra.mxu0 %v16559_v25  ;;  %8190 = vmatprep.subr.bf16.mxu1 %v14216_v26  ;;  %v917_v25 = vld [vmem:[#allocation13 + $0x338] sm:$0xff] }
 0x640   :  { %13190 = vmatprep.subr.bf16.mxu0 %v16564_v35  ;;  %v925_v26 = vld [vmem:[#allocation13 + $0x378] sm:$0xff] }
 0x641   :  { %8018 = vmatmul.mubr.bf16.vlgmr.msra.gmra.mrb[20].mxu1 %v18152_v4  ;;  %v16577_v35 = vld [vmem:[#allocation16 + $0xcf0] ss:$24 sps:$4 sm:$0xff]   ;;  %v14312_v38 = vcombine.high %v917_v25, %v925_v26 }
 0x642   :  { %13182 = vmatmul.mubr.bf16.vlgmr.msra.gmra.mrb[20].mxu0 %v18270_v40  ;;  %8191 = vmatpush1.bf16.msra.mxu1 %v14215_v19  ;;  %v941_v19 = vld [vmem:[#allocation13 + $0x3f8] sm:$0xff] }
 0x643   :  { %8222 = vmatprep.mubr.bf16.mxu1 %v18087_v9  ;;  %13191 = vmatpush1.bf16.msra.mxu0 %v16562_v13  ;;  %v893_v9 = vld [vmem:[#allocation13 + $0x278] sm:$0xff]  ;;  %v14311_v13 = vcombine.low %v917_v25, %v925_v26  ;;  %v14328_v43 = vcombine.high %v933_v39, %v941_v19 }
 0x644   :  { %13222 = vmatprep.mubr.bf16.mxu0 %v18273_v48  ;;  %8192 = vmatprep.subr.bf16.mxu1 %v14232_v21  ;;  %v14280_v6 = vcombine.high %v885_v3, %v893_v9  ;;  %v14279_v11 = vcombine.low %v885_v3, %v893_v9  ;;  %v16580_v21 = vld [vmem:[#allocation16 + $0xd20] ss:$24 sps:$4 sm:$0xff]   ;;  %v16591_v3 = vld [vmem:[#allocation16 + $0xdb4] ss:$24 sps:$4 sm:$0xff]  }
 0x645   :  { %13192 = vmatprep.subr.bf16.mxu0 %v16567_v60  ;;  %v949_v60 = vld [vmem:[#allocation13 + $0x438] sm:$0xff] }
 0x646   :  { %8193 = vmatpush1.bf16.msra.mxu1 %v14231_v50  ;;  %v957_v50 = vld [vmem:[#allocation13 + $0x478] sm:$0xff] }
 0x647   :  { %13193 = vmatpush1.bf16.msra.mxu0 %v16565_v51  ;;  %8194 = vmatprep.subr.bf16.mxu1 %v14248_v55  ;;  %v14327_v51 = vcombine.low %v933_v39, %v941_v19  ;;  %v16583_v55 = vld [vmem:[#allocation16 + $0xd50] ss:$24 sps:$4 sm:$0xff]   ;;  %v16597_v25 = vld [vmem:[#allocation16 + $0xe14] ss:$24 sps:$4 sm:$0xff]   ;;  %v16600_v39 = vld [vmem:[#allocation16 + $0xe44] ss:$24 sps:$4 sm:$0xff]  }
 0x648   :  { %13194 = vmatprep.subr.bf16.mxu0 %v16570_v8  ;;  %v14344_v8 = vcombine.high %v949_v60, %v957_v50  ;;  %v981_v9 = vld [vmem:[#allocation13 + $0x538] sm:$0xff] }
 0x649   :  { %v1013_v26 = vld [vmem:[#allocation13 + $0x638] sm:$0xff] }
 0x64a   :  { %8195 = vmatpush1.bf16.msra.mxu1 %v14247_v62  ;;  %v973_v62 = vld [vmem:[#allocation13 + $0x4f8] sm:$0xff] }
 0x64b   :  { %13195 = vmatpush1.bf16.msra.mxu0 %v16568_v47  ;;  %8196 = vmatprep.subr.bf16.mxu1 %v14264_v0  ;;  %v14343_v47 = vcombine.low %v949_v60, %v957_v50  ;;  %v16586_v0 = vld [vmem:[#allocation16 + $0xd80] ss:$24 sps:$4 sm:$0xff]   ;;  %v1029_v19 = vld [vmem:[#allocation13 + $0x6b8] sm:$0xff] }
 0x64c   :  { %13196 = vmatprep.subr.bf16.mxu0 %v16573_v2  ;;  %v14360_v2 = vcombine.high %v965_v61, %v973_v62  ;;  %v16603_v60 = vld [vmem:[#allocation16 + $0xe74] ss:$24 sps:$4 sm:$0xff]  }
 0x64d   :  { %v1045_v50 = vld [vmem:[#allocation13 + $0x738] sm:$0xff] }
 0x64e   :  { %8197 = vmatpush1.bf16.msra.mxu1 %v14263_v30  ;;  %v989_v30 = vld [vmem:[#allocation13 + $0x578] sm:$0xff] }
 0x64f   :  { %13197 = vmatpush1.bf16.msra.mxu0 %v16571_v5  ;;  %8198 = vmatprep.subr.bf16.mxu1 %v14280_v6  ;;  %v14359_v5 = vcombine.low %v965_v61, %v973_v62  ;;  %v16589_v6 = vld [vmem:[#allocation16 + $0xdb0] ss:$24 sps:$4 sm:$0xff]   ;;  %v1877_v61 = vrot.slane %v18262_v17, %v18069_v29  ;;  %v16606_v62 = vld [vmem:[#allocation16 + $0xea4] ss:$24 sps:$4 sm:$0xff]  }
 0x650   :  { %13198 = vmatprep.subr.bf16.mxu0 %v16576_v7  ;;  %v14376_v7 = vcombine.high %v981_v9, %v989_v30 }
 0x652   :  { %8199 = vmatpush1.bf16.msra.mxu1 %v14279_v11  ;;  %v1005_v11 = vld [vmem:[#allocation13 + $0x5f8] sm:$0xff] }
 0x653   :  { %13199 = vmatpush1.bf16.msra.mxu0 %v16574_v53  ;;  %8200 = vmatprep.subr.bf16.mxu1 %v14296_v59  ;;  %v14375_v53 = vcombine.low %v981_v9, %v989_v30  ;;  %v16592_v59 = vld [vmem:[#allocation16 + $0xde0] ss:$24 sps:$4 sm:$0xff]   ;;  %v16156_v30 = vadd.f32 %v18196_v15, %v1877_v61 }
 0x654   :  { %13200 = vmatprep.subr.bf16.mxu0 %v16579_v52  ;;  %v14392_v52 = vcombine.high %v997_v18, %v1005_v11 }
 0x656   :  { %8201 = vmatpush1.bf16.msra.mxu1 %v14295_v12  ;;  %v1021_v12 = vld [vmem:[#allocation13 + $0x678] sm:$0xff] }
 0x657   :  { %13201 = vmatpush1.bf16.msra.mxu0 %v16577_v35  ;;  %8202 = vmatprep.subr.bf16.mxu1 %v14312_v38  ;;  %v14391_v35 = vcombine.low %v997_v18, %v1005_v11  ;;  %v16595_v38 = vld [vmem:[#allocation16 + $0xe10] ss:$24 sps:$4 sm:$0xff]  }
 0x658   :  { %13202 = vmatprep.subr.bf16.mxu0 %v16582_v1  ;;  %v14408_v1 = vcombine.high %v1013_v26, %v1021_v12  ;;  %v16607_v18 = vld [vmem:[#allocation16 + $0xed0] ss:$24 sps:$4 sm:$0xff]  }
 0x65a   :  { %8203 = vmatpush1.bf16.msra.mxu1 %v14311_v13  ;;  %v1037_v13 = vld [vmem:[#allocation13 + $0x6f8] sm:$0xff] }
 0x65b   :  { %13203 = vmatpush1.bf16.msra.mxu0 %v16580_v21  ;;  %8204 = vmatprep.subr.bf16.mxu1 %v14328_v43  ;;  %v14407_v21 = vcombine.low %v1013_v26, %v1021_v12  ;;  %v16598_v43 = vld [vmem:[#allocation16 + $0xe40] ss:$24 sps:$4 sm:$0xff]  }
 0x65c   :  { %13204 = vmatprep.subr.bf16.mxu0 %v16585_v44  ;;  %v14424_v44 = vcombine.high %v1029_v19, %v1037_v13 }
 0x65e   :  { %8205 = vmatpush1.bf16.msra.mxu1 %v14327_v51  ;;  %v1053_v51 = vld [vmem:[#allocation13 + $0x778] sm:$0xff] }
 0x65f   :  { %13205 = vmatpush1.bf16.msra.mxu0 %v16583_v55  ;;  %8206 = vmatprep.subr.bf16.mxu1 %v14344_v8  ;;  %v14423_v55 = vcombine.low %v1029_v19, %v1037_v13  ;;  %v16601_v8 = vld [vmem:[#allocation16 + $0xe70] ss:$24 sps:$4 sm:$0xff]  }
 0x660   :  { %13206 = vmatprep.subr.bf16.mxu0 %v16588_v57  ;;  %v14440_v57 = vcombine.high %v1045_v50, %v1053_v51 }
 0x662   :  { %8207 = vmatpush1.bf16.msra.mxu1 %v14343_v47  ;;  %v1061_v47 = vld [vmem:[#allocation13 + $0x7b8] sm:$0xff] }
 0x663   :  { %13207 = vmatpush1.bf16.msra.mxu0 %v16586_v0  ;;  %8208 = vmatprep.subr.bf16.mxu1 %v14360_v2  ;;  %v1069_v0 = vld [vmem:[#allocation13 + $0x7f8] sm:$0xff]  ;;  %v14439_v2 = vcombine.low %v1045_v50, %v1053_v51 }
 0x664   :  { %13208 = vmatprep.subr.bf16.mxu0 %v16591_v3  ;;  %v16604_v3 = vld [vmem:[#allocation16 + $0xea0] ss:$24 sps:$4 sm:$0xff]   ;;  %v14456_v9 = vcombine.high %v1061_v47, %v1069_v0 }
 0x666   :  { %8209 = vmatpush1.bf16.msra.mxu1 %v14359_v5  ;;  %v16609_v5 = vld [vmem:[#allocation16 + $0xed4] ss:$24 sps:$4 sm:$0xff]  }
 0x667   :  { %13209 = vmatpush1.bf16.msra.mxu0 %v16589_v6  ;;  %8210 = vmatprep.subr.bf16.mxu1 %v14376_v7  ;;  %v1077_v6 = vld [vmem:[#allocation13 + $0x838] sm:$0xff] }
 0x668   :  { %13210 = vmatprep.subr.bf16.mxu0 %v16594_v46  ;;  %v1085_v7 = vld [vmem:[#allocation13 + $0x878] sm:$0xff]  ;;  %v14455_v46 = vcombine.low %v1061_v47, %v1069_v0 }
 0x669   :  { %v14472_v11 = vcombine.high %v1077_v6, %v1085_v7  ;;  %v14471_v26 = vcombine.low %v1077_v6, %v1085_v7  ;;  %v1165_v47 = vld [vmem:[#allocation13 + $0xaf8] sm:$0xff]  ;;  %v16622_v6 = vld [vmem:[#allocation16 + $0xfc0] ss:$24 sps:$4 sm:$0xff]  }
 0x66a   :  { %8211 = vmatpush1.bf16.msra.mxu1 %v14375_v53  ;;  %v8362_v53 = vmax.f32 %v16156_v30, 0.0  ;;  %v16619_v0 = vld [vmem:[#allocation16 + $0xf90] ss:$24 sps:$4 sm:$0xff]   ;;  %v16627_v7 = vld [vmem:[#allocation16 + $0xff4] ss:$24 sps:$4 sm:$0xff]  }
 0x66b   :  { %13211 = vmatpush1.bf16.msra.mxu0 %v16592_v59  ;;  %8212 = vmatprep.subr.bf16.mxu1 %v14392_v52  ;;  %v1093_v59 = vld [vmem:[#allocation13 + $0x8b8] sm:$0xff] }
 0x66c   :  { %13212 = vmatprep.subr.bf16.mxu0 %v16597_v25  ;;  %v1101_v52 = vld [vmem:[#allocation13 + $0x8f8] sm:$0xff]  ;;  %v16612_v25 = vld [vmem:[#allocation16 + $0xf04] ss:$24 sps:$4 sm:$0xff]   ;;  %v18281_v12 = vpack.c.bf16 %v8362_v53, %v8362_v53 }
 0x66d   :  { %v14488_v15 = vcombine.high %v1093_v59, %v1101_v52  ;;  %v14487_v19 = vcombine.low %v1093_v59, %v1101_v52  ;;  %v1173_v30 = vld [vmem:[#allocation13 + $0xb38] sm:$0xff]  ;;  %v16630_v52 = vld [vmem:[#allocation16 + $0x1024] ss:$24 sps:$4 sm:$0xff]  }
 0x66e   :  { %8213 = vmatpush1.bf16.msra.mxu1 %v14391_v35  ;;  %v1109_v35 = vld [vmem:[#allocation13 + $0x938] sm:$0xff] }
 0x66f   :  { %13213 = vmatpush1.bf16.msra.mxu0 %v16595_v38  ;;  %8214 = vmatprep.subr.bf16.mxu1 %v14408_v1  ;;  %v1117_v38 = vld [vmem:[#allocation13 + $0x978] sm:$0xff]  ;;  %v16610_v1 = vld [vmem:[#allocation16 + $0xf00] ss:$24 sps:$4 sm:$0xff]  }
 0x670   :  { %13214 = vmatprep.subr.bf16.mxu0 %v16600_v39  ;;  %v16615_v39 = vld [vmem:[#allocation16 + $0xf34] ss:$24 sps:$4 sm:$0xff]   ;;  %v14504_v13 = vcombine.high %v1109_v35, %v1117_v38  ;;  %v14503_v50 = vcombine.low %v1109_v35, %v1117_v38  ;;  %v16625_v59 = vld [vmem:[#allocation16 + $0xff0] ss:$24 sps:$4 sm:$0xff]   ;;  %v16628_v38 = vld [vmem:[#allocation16 + $0x1020] ss:$24 sps:$4 sm:$0xff]  }
 0x671   :  { %v1197_v53 = vld [vmem:[#allocation13 + $0xbf8] sm:$0xff] }
 0x672   :  { %8215 = vmatpush1.bf16.msra.mxu1 %v14407_v21  ;;  %v1125_v21 = vld [vmem:[#allocation13 + $0x9b8] sm:$0xff] }
 0x673   :  { %13215 = vmatpush1.bf16.msra.mxu0 %v16598_v43  ;;  %8216 = vmatprep.subr.bf16.mxu1 %v14424_v44  ;;  %v1133_v43 = vld [vmem:[#allocation13 + $0x9f8] sm:$0xff] }
 0x674   :  { %13216 = vmatprep.subr.bf16.mxu0 %v16603_v60  ;;  %v16613_v44 = vld [vmem:[#allocation16 + $0xf30] ss:$24 sps:$4 sm:$0xff]   ;;  %v16618_v60 = vld [vmem:[#allocation16 + $0xf64] ss:$24 sps:$4 sm:$0xff]   ;;  %v14520_v51 = vcombine.high %v1125_v21, %v1133_v43 }
 0x675   :  { %v1213_v35 = vld [vmem:[#allocation13 + $0xc78] sm:$0xff] }
 0x676   :  { %8217 = vmatpush1.bf16.msra.mxu1 %v14423_v55  ;;  %v1149_v55 = vld [vmem:[#allocation13 + $0xa78] sm:$0xff] }
 0x677   :  { %13217 = vmatpush1.bf16.msra.mxu0 %v16601_v8  ;;  %8218 = vmatprep.subr.bf16.mxu1 %v14440_v57  ;;  %v16616_v8 = vld [vmem:[#allocation16 + $0xf60] ss:$24 sps:$4 sm:$0xff]   ;;  %v16621_v57 = vld [vmem:[#allocation16 + $0xf94] ss:$24 sps:$4 sm:$0xff]  }
 0x678   :  { %13218 = vmatprep.subr.bf16.mxu0 %v16606_v62  ;;  %v1157_v62 = vld [vmem:[#allocation13 + $0xab8] sm:$0xff] }
 0x67a   :  { %8219 = vmatpush1.bf16.msra.mxu1 %v14439_v2  ;;  %v16624_v2 = vld [vmem:[#allocation16 + $0xfc4] ss:$24 sps:$4 sm:$0xff]  }
 0x67b   :  { %13219 = vmatpush1.bf16.msra.mxu0 %v16604_v3  ;;  %8220 = vmatprep.subr.bf16.mxu1 %v14456_v9  ;;  %v14552_v9 = vcombine.high %v1157_v62, %v1165_v47 }
 0x67c   :  { %13220 = vmatprep.subr.bf16.mxu0 %v16609_v5  ;;  %v1181_v5 = vld [vmem:[#allocation13 + $0xb78] sm:$0xff] }
 0x67e   :  { %8221 = vmatpush1.bf16.msra.mxu1 %v14455_v46  ;;  %v14551_v46 = vcombine.low %v1157_v62, %v1165_v47  ;;  %v1261_v62 = vld [vmem:[#allocation13 + $0xdf8] sm:$0xff] }
 0x67f   :  { %13221 = vmatpush1.bf16.msra.mxu0 %v16607_v18  ;;  %8231 = vmatprep.subr.bf16.mxu1 %v14472_v11  ;;  %v14568_v18 = vcombine.high %v1173_v30, %v1181_v5  ;;  %v1189_v11 = vld [vmem:[#allocation13 + $0xbb8] sm:$0xff] }
 0x680   :  { %13231 = vmatprep.subr.bf16.mxu0 %v16612_v25  ;;  %v14567_v25 = vcombine.low %v1173_v30, %v1181_v5  ;;  %v16637_v47 = vld [vmem:[#allocation16 + $0x10b0] ss:$24 sps:$4 sm:$0xff]   ;;  %v16640_v5 = vld [vmem:[#allocation16 + $0x10e0] ss:$24 sps:$4 sm:$0xff]  }
 0x681   :  { %8223 = vmatmul.mubr.bf16.vlgmr.msra.gmra.mrb[24].mxu1 %v18089_v49  ;;  %v1141_v49 = vld [vmem:[#allocation13 + $0xa38] sm:$0xff] }
 0x682   :  { %13223 = vmatmul.mubr.bf16.vlgmr.msra.gmra.mrb[20].mxu0 %v18281_v12  ;;  %8232 = vmatpush1.bf16.msra.mxu1 %v14471_v26  ;;  %v14536_v61 = vcombine.high %v1141_v49, %v1149_v55  ;;  %v14535_v3 = vcombine.low %v1141_v49, %v1149_v55  ;;  %v14584_v26 = vcombine.high %v1189_v11, %v1197_v53  ;;  %v1245_v49 = vld [vmem:[#allocation13 + $0xd78] sm:$0xff]  ;;  %v16634_v55 = vld [vmem:[#allocation16 + $0x1080] ss:$24 sps:$4 sm:$0xff]  }
 0x683   :  { %8263 = vmatprep.mubr.bf16.mxu1 %v18093_v56  ;;  %8233 = vmatprep.subr.bf16.mxu1 %v14488_v15  ;;  %v14519_v56 = vcombine.low %v1125_v21, %v1133_v43  ;;  %v1205_v15 = vld [vmem:[#allocation13 + $0xc38] sm:$0xff] }
 0x684   :  { %13232 = vmatpush1.bf16.msra.mxu0 %v16610_v1  ;;  %v16633_v1 = vld [vmem:[#allocation16 + $0x1054] ss:$24 sps:$4 sm:$0xff]   ;;  %v16631_v43 = vld [vmem:[#allocation16 + $0x1050] ss:$24 sps:$4 sm:$0xff]  }
 0x685   :  { %13233 = vmatprep.subr.bf16.mxu0 %v16615_v39  ;;  %v14583_v39 = vcombine.low %v1189_v11, %v1197_v53  ;;  %v1229_v21 = vld [vmem:[#allocation13 + $0xcf8] sm:$0xff] }
 0x686   :  { %8234 = vmatpush1.bf16.msra.mxu1 %v14487_v19  ;;  %v14600_v19 = vcombine.high %v1205_v15, %v1213_v35  ;;  %v1277_v30 = vld [vmem:[#allocation13 + $0xe78] sm:$0xff] }
 0x687   :  { %8235 = vmatprep.subr.bf16.mxu1 %v14504_v13  ;;  %v1221_v13 = vld [vmem:[#allocation13 + $0xcb8] sm:$0xff] }
 0x688   :  { %13234 = vmatpush1.bf16.msra.mxu0 %v16613_v44  ;;  %v16636_v44 = vld [vmem:[#allocation16 + $0x1084] ss:$24 sps:$4 sm:$0xff]   ;;  %v1293_v11 = vld [vmem:[#allocation13 + $0xef8] sm:$0xff] }
 0x689   :  { %13235 = vmatprep.subr.bf16.mxu0 %v16618_v60  ;;  %v14599_v60 = vcombine.low %v1205_v15, %v1213_v35  ;;  %v16643_v53 = vld [vmem:[#allocation16 + $0x1110] ss:$24 sps:$4 sm:$0xff]   ;;  %v16646_v35 = vld [vmem:[#allocation16 + $0x1140] ss:$24 sps:$4 sm:$0xff]  }
 0x68a   :  { %8236 = vmatpush1.bf16.msra.mxu1 %v14503_v50  ;;  %v14616_v50 = vcombine.high %v1221_v13, %v1229_v21  ;;  %v1309_v15 = vld [vmem:[#allocation13 + $0xf78] sm:$0xff] }
 0x68b   :  { %8237 = vmatprep.subr.bf16.mxu1 %v14520_v51  ;;  %v1237_v51 = vld [vmem:[#allocation13 + $0xd38] sm:$0xff] }
 0x68c   :  { %13236 = vmatpush1.bf16.msra.mxu0 %v16616_v8  ;;  %v16639_v8 = vld [vmem:[#allocation16 + $0x10b4] ss:$24 sps:$4 sm:$0xff]  }
 0x68d   :  { %13237 = vmatprep.subr.bf16.mxu0 %v16621_v57  ;;  %v14615_v57 = vcombine.low %v1221_v13, %v1229_v21  ;;  %v1325_v13 = vld [vmem:[#allocation13 + $0xff8] sm:$0xff] }
 0x68e   :  { %8238 = vmatpush1.bf16.msra.mxu1 %v14519_v56  ;;  %v14632_v56 = vcombine.high %v1237_v51, %v1245_v49  ;;  %v16649_v21 = vld [vmem:[#allocation16 + $0x1170] ss:$24 sps:$4 sm:$0xff]  }
 0x68f   :  { %8239 = vmatprep.subr.bf16.mxu1 %v14536_v61  ;;  %v1253_v61 = vld [vmem:[#allocation13 + $0xdb8] sm:$0xff] }
 0x690   :  { %13238 = vmatpush1.bf16.msra.mxu0 %v16619_v0  ;;  %v16642_v0 = vld [vmem:[#allocation16 + $0x10e4] ss:$24 sps:$4 sm:$0xff]  }
 0x691   :  { %13239 = vmatprep.subr.bf16.mxu0 %v16624_v2  ;;  %v14631_v2 = vcombine.low %v1237_v51, %v1245_v49  ;;  %v1341_v51 = vld [vmem:[#allocation13 + $0x1078] sm:$0xff]  ;;  %v16652_v49 = vld [vmem:[#allocation16 + $0x11a0] ss:$24 sps:$4 sm:$0xff]  }
 0x692   :  { %8240 = vmatpush1.bf16.msra.mxu1 %v14535_v3  ;;  %v14648_v3 = vcombine.high %v1253_v61, %v1261_v62 }
 0x693   :  { %8241 = vmatprep.subr.bf16.mxu1 %v14552_v9  ;;  %v1269_v9 = vld [vmem:[#allocation13 + $0xe38] sm:$0xff] }
 0x694   :  { %13240 = vmatpush1.bf16.msra.mxu0 %v16622_v6  ;;  %v16645_v6 = vld [vmem:[#allocation16 + $0x1114] ss:$24 sps:$4 sm:$0xff]  }
 0x695   :  { %13241 = vmatprep.subr.bf16.mxu0 %v16627_v7  ;;  %v14647_v7 = vcombine.low %v1253_v61, %v1261_v62  ;;  %v1357_v61 = vld [vmem:[#allocation13 + $0x10f8] sm:$0xff] }
 0x696   :  { %8242 = vmatpush1.bf16.msra.mxu1 %v14551_v46  ;;  %v14664_v46 = vcombine.high %v1269_v9, %v1277_v30  ;;  %v16655_v62 = vld [vmem:[#allocation16 + $0x11d0] ss:$24 sps:$4 sm:$0xff]  }
 0x697   :  { %8243 = vmatprep.subr.bf16.mxu1 %v14568_v18  ;;  %v1285_v18 = vld [vmem:[#allocation13 + $0xeb8] sm:$0xff] }
 0x698   :  { %13242 = vmatpush1.bf16.msra.mxu0 %v16625_v59  ;;  %v16648_v59 = vld [vmem:[#allocation16 + $0x1144] ss:$24 sps:$4 sm:$0xff]  }
 0x699   :  { %13243 = vmatprep.subr.bf16.mxu0 %v16630_v52  ;;  %v14663_v52 = vcombine.low %v1269_v9, %v1277_v30  ;;  %v1373_v9 = vld [vmem:[#allocation13 + $0x1178] sm:$0xff] }
 0x69a   :  { %8244 = vmatpush1.bf16.msra.mxu1 %v14567_v25  ;;  %v14680_v25 = vcombine.high %v1285_v18, %v1293_v11 }
 0x69b   :  { %8245 = vmatprep.subr.bf16.mxu1 %v14584_v26  ;;  %v1301_v26 = vld [vmem:[#allocation13 + $0xf38] sm:$0xff] }
 0x69c   :  { %13244 = vmatpush1.bf16.msra.mxu0 %v16628_v38  ;;  %v16651_v38 = vld [vmem:[#allocation16 + $0x1174] ss:$24 sps:$4 sm:$0xff]  }
 0x69d   :  { %13245 = vmatprep.subr.bf16.mxu0 %v16633_v1  ;;  %v14679_v1 = vcombine.low %v1285_v18, %v1293_v11  ;;  %v1397_v11 = vld [vmem:[#allocation13 + $0x1238] sm:$0xff] }
 0x69e   :  { %8246 = vmatpush1.bf16.msra.mxu1 %v14583_v39  ;;  %v14696_v39 = vcombine.high %v1301_v26, %v1309_v15 }
 0x69f   :  { %8247 = vmatprep.subr.bf16.mxu1 %v14600_v19  ;;  %v1317_v19 = vld [vmem:[#allocation13 + $0xfb8] sm:$0xff] }
 0x6a0   :  { %13246 = vmatpush1.bf16.msra.mxu0 %v16631_v43  ;;  %v16654_v43 = vld [vmem:[#allocation16 + $0x11a4] ss:$24 sps:$4 sm:$0xff]  }
 0x6a1   :  { %13247 = vmatprep.subr.bf16.mxu0 %v16636_v44  ;;  %v14695_v44 = vcombine.low %v1301_v26, %v1309_v15  ;;  %v1429_v15 = vld [vmem:[#allocation13 + $0x1338] sm:$0xff] }
 0x6a2   :  { %8248 = vmatpush1.bf16.msra.mxu1 %v14599_v60  ;;  %v14712_v60 = vcombine.high %v1317_v19, %v1325_v13 }
 0x6a3   :  { %8249 = vmatprep.subr.bf16.mxu1 %v14616_v50  ;;  %v1333_v50 = vld [vmem:[#allocation13 + $0x1038] sm:$0xff] }
 0x6a4   :  { %13248 = vmatpush1.bf16.msra.mxu0 %v16634_v55  ;;  %v16657_v55 = vld [vmem:[#allocation16 + $0x11d4] ss:$24 sps:$4 sm:$0xff]  }
 0x6a5   :  { %13249 = vmatprep.subr.bf16.mxu0 %v16639_v8  ;;  %v14711_v8 = vcombine.low %v1317_v19, %v1325_v13  ;;  %v1453_v19 = vld [vmem:[#allocation13 + $0x13f8] sm:$0xff] }
 0x6a6   :  { %8250 = vmatpush1.bf16.msra.mxu1 %v14615_v57  ;;  %v14728_v57 = vcombine.high %v1333_v50, %v1341_v51 }
 0x6a7   :  { %8251 = vmatprep.subr.bf16.mxu1 %v14632_v56  ;;  %v1349_v56 = vld [vmem:[#allocation13 + $0x10b8] sm:$0xff] }
 0x6a8   :  { %13250 = vmatpush1.bf16.msra.mxu0 %v16637_v47  ;;  %v16660_v47 = vld [vmem:[#allocation16 + $0x1204] ss:$24 sps:$4 sm:$0xff]   ;;  %v14743_v30 = vcombine.low %v1349_v56, %v1357_v61 }
 0x6a9   :  { %13251 = vmatprep.subr.bf16.mxu0 %v16642_v0  ;;  %v14727_v0 = vcombine.low %v1333_v50, %v1341_v51  ;;  %v1477_v51 = vld [vmem:[#allocation13 + $0x14b8] sm:$0xff] }
 0x6aa   :  { %8252 = vmatpush1.bf16.msra.mxu1 %v14631_v2  ;;  %v14744_v2 = vcombine.high %v1349_v56, %v1357_v61  ;;  %v1501_v56 = vld [vmem:[#allocation13 + $0x1578] sm:$0xff] }
 0x6ab   :  { %8253 = vmatprep.subr.bf16.mxu1 %v14648_v3  ;;  %v1365_v3 = vld [vmem:[#allocation13 + $0x1138] sm:$0xff] }
 0x6ac   :  { %13252 = vmatpush1.bf16.msra.mxu0 %v16640_v5  ;;  %v14760_v5 = vcombine.high %v1365_v3, %v1373_v9 }
 0x6ad   :  { %13253 = vmatprep.subr.bf16.mxu0 %v16645_v6  ;;  %v1381_v6 = vld [vmem:[#allocation13 + $0x11b8] sm:$0xff] }
 0x6ae   :  { %8254 = vmatpush1.bf16.msra.mxu1 %v14647_v7  ;;  %v1389_v7 = vld [vmem:[#allocation13 + $0x11f8] sm:$0xff] }
 0x6af   :  { %8255 = vmatprep.subr.bf16.mxu1 %v14664_v46  ;;  %v14759_v46 = vcombine.low %v1365_v3, %v1373_v9  ;;  %v14776_v18 = vcombine.high %v1381_v6, %v1389_v7  ;;  %v1525_v9 = vld [vmem:[#allocation13 + $0x1638] sm:$0xff] }
 0x6b0   :  { %13254 = vmatpush1.bf16.msra.mxu0 %v16643_v53  ;;  %v1405_v53 = vld [vmem:[#allocation13 + $0x1278] sm:$0xff] }
 0x6b1   :  { %13255 = vmatprep.subr.bf16.mxu0 %v16648_v59  ;;  %v14775_v59 = vcombine.low %v1381_v6, %v1389_v7  ;;  %v14791_v26 = vcombine.low %v1397_v11, %v1405_v53  ;;  %v1541_v7 = vld [vmem:[#allocation13 + $0x16b8] sm:$0xff] }
 0x6b2   :  { %8256 = vmatpush1.bf16.msra.mxu1 %v14663_v52  ;;  %v14792_v52 = vcombine.high %v1397_v11, %v1405_v53  ;;  %v1557_v53 = vld [vmem:[#allocation13 + $0x1738] sm:$0xff] }
 0x6b3   :  { %8257 = vmatprep.subr.bf16.mxu1 %v14680_v25  ;;  %v1421_v25 = vld [vmem:[#allocation13 + $0x12f8] sm:$0xff] }
 0x6b4   :  { %13256 = vmatpush1.bf16.msra.mxu0 %v16646_v35  ;;  %v1437_v35 = vld [vmem:[#allocation13 + $0x1378] sm:$0xff] }
 0x6b5   :  { %13257 = vmatprep.subr.bf16.mxu0 %v16651_v38  ;;  %v14823_v13 = vcombine.low %v1429_v15, %v1437_v35 }
 0x6b6   :  { %8258 = vmatpush1.bf16.msra.mxu1 %v14679_v1  ;;  %v14824_v1 = vcombine.high %v1429_v15, %v1437_v35  ;;  %v1589_v35 = vld [vmem:[#allocation13 + $0x1838] sm:$0xff] }
 0x6b7   :  { %8259 = vmatprep.subr.bf16.mxu1 %v14696_v39  ;;  %v1445_v39 = vld [vmem:[#allocation13 + $0x13b8] sm:$0xff] }
 0x6b8   :  { %13258 = vmatpush1.bf16.msra.mxu0 %v16649_v21  ;;  %v14840_v21 = vcombine.high %v1445_v39, %v1453_v19 }
 0x6b9   :  { %13259 = vmatprep.subr.bf16.mxu0 %v16654_v43  ;;  %v1461_v43 = vld [vmem:[#allocation13 + $0x1438] sm:$0xff] }
 0x6ba   :  { %8260 = vmatpush1.bf16.msra.mxu1 %v14695_v44  ;;  %v1469_v44 = vld [vmem:[#allocation13 + $0x1478] sm:$0xff] }
 0x6bb   :  { %8261 = vmatprep.subr.bf16.mxu1 %v14712_v60  ;;  %v14839_v60 = vcombine.low %v1445_v39, %v1453_v19  ;;  %v14856_v50 = vcombine.high %v1461_v43, %v1469_v44  ;;  %v1605_v19 = vld [vmem:[#allocation13 + $0x18b8] sm:$0xff] }
 0x6bc   :  { %13260 = vmatpush1.bf16.msra.mxu0 %v16652_v49  ;;  %v1485_v49 = vld [vmem:[#allocation13 + $0x14f8] sm:$0xff] }
 0x6bd   :  { %13261 = vmatprep.subr.bf16.mxu0 %v16657_v55  ;;  %v14855_v55 = vcombine.low %v1461_v43, %v1469_v44  ;;  %v14871_v61 = vcombine.low %v1477_v51, %v1485_v49  ;;  %v1621_v44 = vld [vmem:[#allocation13 + $0x1938] sm:$0xff] }
 0x6be   :  { %8262 = vmatpush1.bf16.msra.mxu1 %v14711_v8  ;;  %v14872_v8 = vcombine.high %v1477_v51, %v1485_v49  ;;  %v1637_v49 = vld [vmem:[#allocation13 + $0x19b8] sm:$0xff] }
 0x6bf   :  { %8272 = vmatprep.subr.bf16.mxu1 %v14728_v57  ;;  %v1493_v57 = vld [vmem:[#allocation13 + $0x1538] sm:$0xff] }
 0x6c0   :  { %13262 = vmatpush1.bf16.msra.mxu0 %v16655_v62  ;;  %v14888_v62 = vcombine.high %v1493_v57, %v1501_v56 }
 0x6c1   :  { %8264 = vmatmul.mubr.bf16.vlgmr.msra.gmra.mrb[24].mxu1 %v18119_v22  ;;  %13272 = vmatprep.subr.bf16.mxu0 %v16660_v47  ;;  %v1413_v22 = vld [vmem:[#allocation13 + $0x12b8] sm:$0xff] }
 0x6c2   :  { %8273 = vmatpush1.bf16.msra.mxu1 %v14727_v0  ;;  %8304 = vmatprep.mubr.bf16.mxu1 %v18121_v24  ;;  %v14808_v24 = vcombine.high %v1413_v22, %v1421_v25  ;;  %v14807_v38 = vcombine.low %v1413_v22, %v1421_v25  ;;  %v1509_v47 = vld [vmem:[#allocation13 + $0x15b8] sm:$0xff] }
 0x6c3   :  { %8274 = vmatprep.subr.bf16.mxu1 %v14744_v2  ;;  %v1517_v0 = vld [vmem:[#allocation13 + $0x15f8] sm:$0xff]  ;;  %v14887_v2 = vcombine.low %v1493_v57, %v1501_v56 }
 0x6c4   :  { %v14904_v3 = vcombine.high %v1509_v47, %v1517_v0  ;;  %v1573_v25 = vld [vmem:[#allocation13 + $0x17b8] sm:$0xff] }
 0x6c5   :  { %v1653_v56 = vld [vmem:[#allocation13 + $0x1a38] sm:$0xff] }
 0x6c6   :  { %8275 = vmatpush1.bf16.msra.mxu1 %v14743_v30  ;;  %v1533_v30 = vld [vmem:[#allocation13 + $0x1678] sm:$0xff] }
 0x6c7   :  { %8276 = vmatprep.subr.bf16.mxu1 %v14760_v5  ;;  %v14903_v5 = vcombine.low %v1509_v47, %v1517_v0  ;;  %v14920_v6 = vcombine.high %v1525_v9, %v1533_v30  ;;  %v1669_v0 = vld [vmem:[#allocation13 + $0x1ab8] sm:$0xff] }
 0x6ca   :  { %8277 = vmatpush1.bf16.msra.mxu1 %v14759_v46  ;;  %v1549_v46 = vld [vmem:[#allocation13 + $0x16f8] sm:$0xff] }
 0x6cb   :  { %8278 = vmatprep.subr.bf16.mxu1 %v14776_v18  ;;  %v14919_v18 = vcombine.low %v1525_v9, %v1533_v30  ;;  %v14936_v11 = vcombine.high %v1541_v7, %v1549_v46  ;;  %v1693_v9 = vld [vmem:[#allocation13 + $0x1b78] sm:$0xff]  ;;  %v1897_v30 = vrot.slane %v18262_v17, %v18111_v45 }
 0x6ce   :  { %8279 = vmatpush1.bf16.msra.mxu1 %v14775_v59  ;;  %v1565_v59 = vld [vmem:[#allocation13 + $0x1778] sm:$0xff] }
 0x6cf   :  { %8280 = vmatprep.subr.bf16.mxu1 %v14792_v52  ;;  %v14935_v52 = vcombine.low %v1541_v7, %v1549_v46  ;;  %v14952_v22 = vcombine.high %v1557_v53, %v1565_v59 }
 0x6d2   :  { %8281 = vmatpush1.bf16.msra.mxu1 %v14791_v26  ;;  %v1581_v26 = vld [vmem:[#allocation13 + $0x17f8] sm:$0xff] }
 0x6d3   :  { %8282 = vmatprep.subr.bf16.mxu1 %v14808_v24  ;;  %v14951_v24 = vcombine.low %v1557_v53, %v1565_v59  ;;  %v14968_v15 = vcombine.high %v1573_v25, %v1581_v26  ;;  %v1709_v53 = vld [vmem:[#allocation13 + $0x1bf8] sm:$0xff]  ;;  %v16161_v59 = vadd.f32 %v18257_v28, %v1897_v30 }
 0x6d6   :  { %8283 = vmatpush1.bf16.msra.mxu1 %v14807_v38  ;;  %v1597_v38 = vld [vmem:[#allocation13 + $0x1878] sm:$0xff] }
 0x6d7   :  { %8284 = vmatprep.subr.bf16.mxu1 %v14824_v1  ;;  %v14967_v1 = vcombine.low %v1573_v25, %v1581_v26  ;;  %v14984_v39 = vcombine.high %v1589_v35, %v1597_v38 }
 0x6da   :  { %8285 = vmatpush1.bf16.msra.mxu1 %v14823_v13  ;;  %v1613_v13 = vld [vmem:[#allocation13 + $0x18f8] sm:$0xff] }
 0x6db   :  { %8286 = vmatprep.subr.bf16.mxu1 %v14840_v21  ;;  %v14983_v21 = vcombine.low %v1589_v35, %v1597_v38  ;;  %v15000_v43 = vcombine.high %v1605_v19, %v1613_v13 }
 0x6de   :  { %8287 = vmatpush1.bf16.msra.mxu1 %v14839_v60  ;;  %v1629_v60 = vld [vmem:[#allocation13 + $0x1978] sm:$0xff] }
 0x6df   :  { %8288 = vmatprep.subr.bf16.mxu1 %v14856_v50  ;;  %v14999_v50 = vcombine.low %v1605_v19, %v1613_v13  ;;  %v15016_v51 = vcombine.high %v1621_v44, %v1629_v60  ;;  %v1725_v19 = vld [vmem:[#allocation13 + $0x1c78] sm:$0xff] }
 0x6e2   :  { %8289 = vmatpush1.bf16.msra.mxu1 %v14855_v55  ;;  %v1645_v55 = vld [vmem:[#allocation13 + $0x19f8] sm:$0xff] }
 0x6e3   :  { %8290 = vmatprep.subr.bf16.mxu1 %v14872_v8  ;;  %v15015_v8 = vcombine.low %v1621_v44, %v1629_v60  ;;  %v15032_v57 = vcombine.high %v1637_v49, %v1645_v55  ;;  %v16663_v44 = vld [vmem:[#allocation16 + $0x1234] ss:$24 sps:$4 sm:$0xff]  }
 0x6e6   :  { %8291 = vmatpush1.bf16.msra.mxu1 %v14871_v61  ;;  %v1661_v61 = vld [vmem:[#allocation13 + $0x1a78] sm:$0xff] }
 0x6e7   :  { %8292 = vmatprep.subr.bf16.mxu1 %v14888_v62  ;;  %v15031_v62 = vcombine.low %v1637_v49, %v1645_v55  ;;  %v15048_v47 = vcombine.high %v1653_v56, %v1661_v61  ;;  %v16661_v55 = vld [vmem:[#allocation16 + $0x1230] ss:$24 sps:$4 sm:$0xff]  }
 0x6ea   :  { %8293 = vmatpush1.bf16.msra.mxu1 %v14887_v2  ;;  %v15047_v2 = vcombine.low %v1653_v56, %v1661_v61  ;;  %v1749_v61 = vld [vmem:[#allocation13 + $0x1d38] sm:$0xff] }
 0x6eb   :  { %8294 = vmatprep.subr.bf16.mxu1 %v14904_v3  ;;  %v1685_v3 = vld [vmem:[#allocation13 + $0x1b38] sm:$0xff] }
 0x6ec   :  { %v15080_v46 = vcombine.high %v1685_v3, %v1693_v9 }
 0x6ee   :  { %8295 = vmatpush1.bf16.msra.mxu1 %v14903_v5  ;;  %v1885_v5 = vrot.slane %v18262_v17, %v18108_v41 }
 0x6ef   :  { %8296 = vmatprep.subr.bf16.mxu1 %v14920_v6  ;;  %v1889_v6 = vrot.slane %v18262_v17, %v18077_v32  ;;  %v8367_v17 = vmax.f32 %v16161_v59, 0.0 }
 0x6f1   :  { %v18302_v49 = vpack.c.bf16 %v8367_v17, %v8367_v17 }
 0x6f2   :  { %8297 = vmatpush1.bf16.msra.mxu1 %v14919_v18 }
 0x6f3   :  { %8298 = vmatprep.subr.bf16.mxu1 %v14936_v11  ;;  %v1701_v11 = vld [vmem:[#allocation13 + $0x1bb8] sm:$0xff] }
 0x6f4   :  { %v15096_v38 = vcombine.high %v1701_v11, %v1709_v53 }
 0x6f6   :  { %8299 = vmatpush1.bf16.msra.mxu1 %v14935_v52 }
 0x6f7   :  { %8300 = vmatprep.subr.bf16.mxu1 %v14952_v22 }
 0x6fa   :  { %8301 = vmatpush1.bf16.msra.mxu1 %v14951_v24  ;;  %v15079_v24 = vcombine.low %v1685_v3, %v1693_v9  ;;  %v1773_v3 = vld [vmem:[#allocation13 + $0x1df8] sm:$0xff] }
 0x6fb   :  { %8302 = vmatprep.subr.bf16.mxu1 %v14968_v15  ;;  %v16667_v9 = vld [vmem:[#allocation16 + $0x1290] ss:$24 sps:$4 sm:$0xff]  }
 0x6fe   :  { %8303 = vmatpush1.bf16.msra.mxu1 %v14967_v1 }
 0x6ff   :  { %8313 = vmatprep.subr.bf16.mxu1 %v14984_v39  ;;  %v1717_v39 = vld [vmem:[#allocation13 + $0x1c38] sm:$0xff] }
 0x700   :  { %v15112_v60 = vcombine.high %v1717_v39, %v1725_v19 }
 0x701   :  { %8305 = vmatmul.mubr.bf16.vlgmr.msra.gmra.mrb[24].mxu1 %v18139_v14  ;;  %v1677_v14 = vld [vmem:[#allocation13 + $0x1af8] sm:$0xff] }
 0x702   :  { %8314 = vmatpush1.bf16.msra.mxu1 %v14983_v21  ;;  %8345 = vmatprep.mubr.bf16.mxu1 %v18141_v37  ;;  %v15064_v37 = vcombine.high %v1669_v0, %v1677_v14  ;;  %v15063_v7 = vcombine.low %v1669_v0, %v1677_v14  ;;  %v16658_v21 = vld [vmem:[#allocation16 + $0x1200] ss:$24 sps:$4 sm:$0xff]   ;;  %v16669_v14 = vld [vmem:[#allocation16 + $0x1294] ss:$24 sps:$4 sm:$0xff]  }
 0x703   :  { %8315 = vmatprep.subr.bf16.mxu1 %v15000_v43  ;;  %v15095_v43 = vcombine.low %v1701_v11, %v1709_v53  ;;  %v16675_v53 = vld [vmem:[#allocation16 + $0x12f4] ss:$24 sps:$4 sm:$0xff]  }
 0x706   :  { %8316 = vmatpush1.bf16.msra.mxu1 %v14999_v50  ;;  %v1733_v50 = vld [vmem:[#allocation13 + $0x1cb8] sm:$0xff] }
 0x707   :  { %8317 = vmatprep.subr.bf16.mxu1 %v15016_v51  ;;  %v1741_v51 = vld [vmem:[#allocation13 + $0x1cf8] sm:$0xff] }
 0x708   :  { %v15128_v56 = vcombine.high %v1733_v50, %v1741_v51  ;;  %v15127_v0 = vcombine.low %v1733_v50, %v1741_v51  ;;  %v16684_v50 = vld [vmem:[#allocation16 + $0x1384] ss:$24 sps:$4 sm:$0xff]  }
 0x70a   :  { %8318 = vmatpush1.bf16.msra.mxu1 %v15015_v8  ;;  %v15111_v8 = vcombine.low %v1717_v39, %v1725_v19  ;;  %v16681_v39 = vld [vmem:[#allocation16 + $0x1354] ss:$24 sps:$4 sm:$0xff]  }
 0x70b   :  { %8319 = vmatprep.subr.bf16.mxu1 %v15032_v57  ;;  %v16666_v57 = vld [vmem:[#allocation16 + $0x1264] ss:$24 sps:$4 sm:$0xff]  }
 0x70e   :  { %8320 = vmatpush1.bf16.msra.mxu1 %v15031_v62  ;;  %v1757_v62 = vld [vmem:[#allocation13 + $0x1d78] sm:$0xff] }
 0x70f   :  { %8321 = vmatprep.subr.bf16.mxu1 %v15048_v47  ;;  %v16664_v47 = vld [vmem:[#allocation16 + $0x1260] ss:$24 sps:$4 sm:$0xff]   ;;  %v15143_v30 = vcombine.low %v1749_v61, %v1757_v62 }
 0x712   :  { %8322 = vmatpush1.bf16.msra.mxu1 %v15047_v2  ;;  %v15144_v2 = vcombine.high %v1749_v61, %v1757_v62  ;;  %v16685_v61 = vld [vmem:[#allocation16 + $0x13b0] ss:$24 sps:$4 sm:$0xff]  }
 0x713   :  { %8323 = vmatprep.subr.bf16.mxu1 %v15064_v37  ;;  %v1765_v37 = vld [vmem:[#allocation13 + $0x1db8] sm:$0xff] }
 0x714   :  { %v8019_v18 = vpop.f32.mrb[20].mxu1  ;;  %v15159_v11 = vcombine.low %v1765_v37, %v1773_v3  ;;  %v16688_v62 = vld [vmem:[#allocation16 + $0x8] ss:$24 sps:$4 sm:$0xff]  }
 0x715   :  { %v16158_v52 = vadd.f32 %v8019_v18, %v1885_v5  ;;  %v8021_v22 = vpop.f32.mrb[21].mxu1  ;;  %v16672_v5 = vld [vmem:[#allocation16 + $0x12c4] ss:$24 sps:$4 sm:$0xff]   ;;  %v16670_v18 = vld [vmem:[#allocation16 + $0x12c0] ss:$24 sps:$4 sm:$0xff]  }
 0x716   :  { %v16159_v25 = vadd.f32 %v8021_v22, %v1889_v6  ;;  %v8023_v26 = vpop.f32.mrb[22].mxu1  ;;  %8324 = vmatpush1.bf16.msra.mxu1 %v15063_v7  ;;  %v15160_v6 = vcombine.high %v1765_v37, %v1773_v3  ;;  %v1781_v7 = vld [vmem:[#allocation13 + $0x1e38] sm:$0xff] }
 0x717   :  { %v8364_v15 = vmax.f32 %v16158_v52, 0.0  ;;  %v8024_v35 = vpop.f32.mrb[23].mxu1  ;;  %8325 = vmatprep.subr.bf16.mxu1 %v15080_v46  ;;  %v1789_v46 = vld [vmem:[#allocation13 + $0x1e78] sm:$0xff] }
 0x718   :  { %v8365_v1 = vmax.f32 %v16159_v25, 0.0  ;;  %v15176_v59 = vcombine.high %v1781_v7, %v1789_v46  ;;  %v1797_v52 = vld [vmem:[#allocation13 + $0x1eb8] sm:$0xff]  ;;  %v15175_v26 = vcombine.low %v1781_v7, %v1789_v46  ;;  %v16706_v7 = vld [vmem:[#allocation16 + $0x98] ss:$24 sps:$4 sm:$0xff]  }
 0x719   :  { %v18299_v28 = vpack.c.bf16 %v8364_v15, %v8364_v15  ;;  %v1805_v22 = vld [vmem:[#allocation13 + $0x1ef8] sm:$0xff] }
 0x71a   :  { %v18297_v13 = vpack.c.bf16 %v8365_v1, %v8365_v1  ;;  %8326 = vmatpush1.bf16.msra.mxu1 %v15079_v24  ;;  %v16673_v25 = vld [vmem:[#allocation16 + $0x12f0] ss:$24 sps:$4 sm:$0xff]   ;;  %v16678_v24 = vld [vmem:[#allocation16 + $0x1324] ss:$24 sps:$4 sm:$0xff]   ;;  %v15192_v15 = vcombine.high %v1797_v52, %v1805_v22  ;;  %v16676_v1 = vld [vmem:[#allocation16 + $0x1320] ss:$24 sps:$4 sm:$0xff]   ;;  %v15191_v17 = vcombine.low %v1797_v52, %v1805_v22 }
 0x71b   :  { %8327 = vmatprep.subr.bf16.mxu1 %v15096_v38  ;;  %v1813_v35 = vld [vmem:[#allocation13 + $0x1f38] sm:$0xff]  ;;  %v16717_v22 = vld [vmem:[#allocation16 + $0x14a4] ss:$24 sps:$4 sm:$0xff]  }
 0x71c   :  { %13263 = vmatprep.mubr.bf16.mxu0 %v18297_v13  ;;  %v1821_v38 = vld [vmem:[#allocation13 + $0x1f78] sm:$0xff] }
 0x71d   :  { %13264 = vmatmul.mubr.bf16.vlgmr.msra.gmra.mrb[20].mxu0 %v18299_v28  ;;  %v15208_v19 = vcombine.high %v1813_v35, %v1821_v38  ;;  %v16699_v37 = vld [vmem:[#allocation16 + $0x1414] ss:$24 sps:$4 sm:$0xff]  }
 0x71e   :  { %13273 = vmatpush1.bf16.msra.mxu0 %v16658_v21  ;;  %8328 = vmatpush1.bf16.msra.mxu1 %v15095_v43  ;;  %v1829_v21 = vld [vmem:[#allocation13 + $0x1fb8] sm:$0xff] }
 0x71f   :  { %13304 = vmatprep.mubr.bf16.mxu0 %v18302_v49  ;;  %13274 = vmatprep.subr.bf16.mxu0 %v16663_v44  ;;  %v1837_v43 = vld [vmem:[#allocation13 + $0x1ff8] sm:$0xff] }
 0x720   :  { %8329 = vmatprep.subr.bf16.mxu1 %v15112_v60  ;;  %v16679_v44 = vld [vmem:[#allocation16 + $0x1350] ss:$24 sps:$4 sm:$0xff]   ;;  %v15207_v60 = vcombine.low %v1813_v35, %v1821_v38  ;;  %v15224_v51 = vcombine.high %v1829_v21, %v1837_v43  ;;  %v16702_v3 = vld [vmem:[#allocation16 + $0x6c] ss:$24 sps:$4 sm:$0xff]  }
 0x721   :  { %v16711_v46 = vld [vmem:[#allocation16 + $0x1474] ss:$24 sps:$4 sm:$0xff]  }
 0x722   :  { %13275 = vmatpush1.bf16.msra.mxu0 %v16661_v55  ;;  %8330 = vmatpush1.bf16.msra.mxu1 %v15111_v8  ;;  %v16682_v55 = vld [vmem:[#allocation16 + $0x1380] ss:$24 sps:$4 sm:$0xff]   ;;  %v15223_v8 = vcombine.low %v1829_v21, %v1837_v43  ;;  %v16723_v35 = vld [vmem:[#allocation16 + $0x14d4] ss:$24 sps:$4 sm:$0xff]  }
 0x723   :  { %13276 = vmatprep.subr.bf16.mxu0 %v16666_v57  ;;  %8331 = vmatprep.subr.bf16.mxu1 %v15128_v56  ;;  %v16687_v57 = vld [vmem:[#allocation16 + $0x13b4] ss:$24 sps:$4 sm:$0xff]   ;;  %v16727_v21 = vld [vmem:[#allocation16 + $0x158] ss:$24 sps:$4 sm:$0xff]  }
 0x724   :  { %v16690_v56 = vld [vmem:[#allocation16 + $0xc] ss:$24 sps:$4 sm:$0xff]   ;;  %v16823_v43 = vld [vmem:[#allocation16 + $0x1500] ss:$24 sps:$4 sm:$0xff]  }
 0x725   :  { %v16726_v38 = vld [vmem:[#allocation16 + $0x12c] ss:$24 sps:$4 sm:$0xff]  }
 0x726   :  { %13277 = vmatpush1.bf16.msra.mxu0 %v16664_v47  ;;  %8332 = vmatpush1.bf16.msra.mxu1 %v15127_v0  ;;  %v16693_v47 = vld [vmem:[#allocation16 + $0x13e4] ss:$24 sps:$4 sm:$0xff]  }
 0x727   :  { %13278 = vmatprep.subr.bf16.mxu0 %v16669_v14  ;;  %8333 = vmatprep.subr.bf16.mxu1 %v15144_v2  ;;  %v16696_v0 = vld [vmem:[#allocation16 + $0x3c] ss:$24 sps:$4 sm:$0xff]   ;;  %v16691_v14 = vld [vmem:[#allocation16 + $0x13e0] ss:$24 sps:$4 sm:$0xff]  }
 0x728   :  { %v16694_v2 = vld [vmem:[#allocation16 + $0x38] ss:$24 sps:$4 sm:$0xff]  }
 0x72a   :  { %13279 = vmatpush1.bf16.msra.mxu0 %v16667_v9  ;;  %8334 = vmatpush1.bf16.msra.mxu1 %v15143_v30  ;;  %v16697_v9 = vld [vmem:[#allocation16 + $0x1410] ss:$24 sps:$4 sm:$0xff]  }
 0x72b   :  { %13280 = vmatprep.subr.bf16.mxu0 %v16672_v5  ;;  %8335 = vmatprep.subr.bf16.mxu1 %v15160_v6  ;;  %v16700_v30 = vld [vmem:[#allocation16 + $0x68] ss:$24 sps:$4 sm:$0xff]   ;;  %v16705_v5 = vld [vmem:[#allocation16 + $0x1444] ss:$24 sps:$4 sm:$0xff]  }
 0x72c   :  { %v16708_v6 = vld [vmem:[#allocation16 + $0x9c] ss:$24 sps:$4 sm:$0xff]  }
 0x72e   :  { %13281 = vmatpush1.bf16.msra.mxu0 %v16670_v18  ;;  %8336 = vmatpush1.bf16.msra.mxu1 %v15159_v11  ;;  %v16714_v18 = vld [vmem:[#allocation16 + $0xcc] ss:$24 sps:$4 sm:$0xff]   ;;  %v16709_v11 = vld [vmem:[#allocation16 + $0x1470] ss:$24 sps:$4 sm:$0xff]  }
 0x72f   :  { %13282 = vmatprep.subr.bf16.mxu0 %v16675_v53  ;;  %8337 = vmatprep.subr.bf16.mxu1 %v15176_v59  ;;  %v16712_v53 = vld [vmem:[#allocation16 + $0xc8] ss:$24 sps:$4 sm:$0xff]   ;;  %v18308_v59 = vld [vmem:[#allocation15 + $0x8] sm:$0xff] }
 0x730   :  { %v1893_v52 = vrot.slane %v18308_v59, %v18128_v23 }
 0x732   :  { %13283 = vmatpush1.bf16.msra.mxu0 %v16673_v25  ;;  %8338 = vmatpush1.bf16.msra.mxu1 %v15175_v26  ;;  %v16720_v25 = vld [vmem:[#allocation16 + $0xfc] ss:$24 sps:$4 sm:$0xff]   ;;  %v16715_v26 = vld [vmem:[#allocation16 + $0x14a0] ss:$24 sps:$4 sm:$0xff]  }
 0x733   :  { %13284 = vmatprep.subr.bf16.mxu0 %v16678_v24  ;;  %8339 = vmatprep.subr.bf16.mxu1 %v15192_v15  ;;  %v16718_v24 = vld [vmem:[#allocation16 + $0xf8] ss:$24 sps:$4 sm:$0xff]   ;;  %v16160_v15 = vadd.f32 %v18255_v33, %v1893_v52  ;;  %v16732_v33 = vld [vmem:[#allocation16 + $0x18c] ss:$24 sps:$4 sm:$0xff]   ;;  %v16748_v52 = vld [vmem:[#allocation16 + $0x2a8] ss:$24 sps:$4 sm:$0xff]  }
 0x736   :  { %13285 = vmatpush1.bf16.msra.mxu0 %v16676_v1  ;;  %8340 = vmatpush1.bf16.msra.mxu1 %v15191_v17  ;;  %v16721_v1 = vld [vmem:[#allocation16 + $0x14d0] ss:$24 sps:$4 sm:$0xff]  }
 0x737   :  { %13286 = vmatprep.subr.bf16.mxu0 %v16681_v39  ;;  %8341 = vmatprep.subr.bf16.mxu1 %v15208_v19  ;;  %v16724_v17 = vld [vmem:[#allocation16 + $0x128] ss:$24 sps:$4 sm:$0xff]   ;;  %v8366_v39 = vmax.f32 %v16160_v15, 0.0  ;;  %v16729_v19 = vld [vmem:[#allocation16 + $0x15c] ss:$24 sps:$4 sm:$0xff]  }
 0x738   :  { %v16871_v15 = vld [vmem:[#allocation16 + $0x1680] ss:$24 sps:$4 sm:$0xff]  }
 0x73a   :  { %13287 = vmatpush1.bf16.msra.mxu0 %v16679_v44  ;;  %8342 = vmatpush1.bf16.msra.mxu1 %v15207_v60  ;;  %v16825_v44 = vld [vmem:[#allocation16 + $0x1504] ss:$24 sps:$4 sm:$0xff]   ;;  %v18313_v60 = vpack.c.bf16 %v8366_v39, %v8366_v39 }
 0x73b   :  { %13288 = vmatprep.subr.bf16.mxu0 %v16684_v50  ;;  %8343 = vmatprep.subr.bf16.mxu1 %v15224_v51  ;;  %v16730_v50 = vld [vmem:[#allocation16 + $0x188] ss:$24 sps:$4 sm:$0xff]   ;;  %v16759_v39 = vld [vmem:[#allocation16 + $0x33c] ss:$24 sps:$4 sm:$0xff]  }
 0x73c   :  { %v16829_v51 = vld [vmem:[#allocation16 + $0x1530] ss:$24 sps:$4 sm:$0xff]  }
 0x73e   :  { %13289 = vmatpush1.bf16.msra.mxu0 %v16682_v55  ;;  %8344 = vmatpush1.bf16.msra.mxu1 %v15223_v8  ;;  %v16831_v55 = vld [vmem:[#allocation16 + $0x1534] ss:$24 sps:$4 sm:$0xff]  }
 0x73f   :  { %13290 = vmatprep.subr.bf16.mxu0 %v16687_v57  ;;  %13354 = vmatprep.subr.bf16.mxu1 %v16690_v56  ;;  %v16735_v8 = vld [vmem:[#allocation16 + $0x1bc] ss:$24 sps:$4 sm:$0xff]   ;;  %v16733_v57 = vld [vmem:[#allocation16 + $0x1b8] ss:$24 sps:$4 sm:$0xff]  }
 0x740   :  { %v16835_v56 = vld [vmem:[#allocation16 + $0x1560] ss:$24 sps:$4 sm:$0xff]  }
 0x741   :  { %8346 = vmatmul.mubr.bf16.vlgmr.msra.gmra.mrb[24].mxu1 %v18152_v4  ;;  %v16703_v4 = vld [vmem:[#allocation16 + $0x1440] ss:$24 sps:$4 sm:$0xff]  }
 0x742   :  { %13291 = vmatpush1.bf16.msra.mxu0 %v16685_v61  ;;  %13355 = vmatpush1.bf16.msra.mxu1 %v16688_v62  ;;  %v16837_v61 = vld [vmem:[#allocation16 + $0x1564] ss:$24 sps:$4 sm:$0xff]  }
 0x743   :  { %13386 = vmatprep.mubr.bf16.mxu1 %v18208_v42  ;;  %13292 = vmatprep.subr.bf16.mxu0 %v16693_v47  ;;  %v16738_v62 = vld [vmem:[#allocation16 + $0x1ec] ss:$24 sps:$4 sm:$0xff]   ;;  %v16736_v47 = vld [vmem:[#allocation16 + $0x1e8] ss:$24 sps:$4 sm:$0xff]  }
 0x744   :  { %13356 = vmatprep.subr.bf16.mxu1 %v16696_v0  ;;  %v16841_v0 = vld [vmem:[#allocation16 + $0x1590] ss:$24 sps:$4 sm:$0xff]  }
 0x746   :  { %13293 = vmatpush1.bf16.msra.mxu0 %v16691_v14  ;;  %13357 = vmatpush1.bf16.msra.mxu1 %v16694_v2  ;;  %v16843_v14 = vld [vmem:[#allocation16 + $0x1594] ss:$24 sps:$4 sm:$0xff]  }
 0x747   :  { %13294 = vmatprep.subr.bf16.mxu0 %v16699_v37  ;;  %13358 = vmatprep.subr.bf16.mxu1 %v16702_v3  ;;  %v16741_v2 = vld [vmem:[#allocation16 + $0x21c] ss:$24 sps:$4 sm:$0xff]   ;;  %v16739_v37 = vld [vmem:[#allocation16 + $0x218] ss:$24 sps:$4 sm:$0xff]  }
 0x748   :  { %v16847_v3 = vld [vmem:[#allocation16 + $0x15c0] ss:$24 sps:$4 sm:$0xff]  }
 0x74a   :  { %13295 = vmatpush1.bf16.msra.mxu0 %v16697_v9  ;;  %13359 = vmatpush1.bf16.msra.mxu1 %v16700_v30  ;;  %v16849_v9 = vld [vmem:[#allocation16 + $0x15c4] ss:$24 sps:$4 sm:$0xff]  }
 0x74b   :  { %13296 = vmatprep.subr.bf16.mxu0 %v16705_v5  ;;  %13360 = vmatprep.subr.bf16.mxu1 %v16708_v6  ;;  %v16744_v30 = vld [vmem:[#allocation16 + $0x24c] ss:$24 sps:$4 sm:$0xff]   ;;  %v16742_v5 = vld [vmem:[#allocation16 + $0x248] ss:$24 sps:$4 sm:$0xff]  }
 0x74c   :  { %v16853_v6 = vld [vmem:[#allocation16 + $0x15f0] ss:$24 sps:$4 sm:$0xff]  }
 0x74e   :  { %13297 = vmatpush1.bf16.msra.mxu0 %v16703_v4  ;;  %13361 = vmatpush1.bf16.msra.mxu1 %v16706_v7  ;;  %v16855_v4 = vld [vmem:[#allocation16 + $0x15f4] ss:$24 sps:$4 sm:$0xff]  }
 0x74f   :  { %13298 = vmatprep.subr.bf16.mxu0 %v16711_v46  ;;  %13362 = vmatprep.subr.bf16.mxu1 %v16714_v18  ;;  %v16747_v7 = vld [vmem:[#allocation16 + $0x27c] ss:$24 sps:$4 sm:$0xff]   ;;  %v16745_v46 = vld [vmem:[#allocation16 + $0x278] ss:$24 sps:$4 sm:$0xff]  }
 0x750   :  { %v16859_v18 = vld [vmem:[#allocation16 + $0x1620] ss:$24 sps:$4 sm:$0xff]  }
 0x752   :  { %13299 = vmatpush1.bf16.msra.mxu0 %v16709_v11  ;;  %13363 = vmatpush1.bf16.msra.mxu1 %v16712_v53  ;;  %v16861_v11 = vld [vmem:[#allocation16 + $0x1624] ss:$24 sps:$4 sm:$0xff]  }
 0x753   :  { %13300 = vmatprep.subr.bf16.mxu0 %v16717_v22  ;;  %13364 = vmatprep.subr.bf16.mxu1 %v16720_v25  ;;  %v16750_v53 = vld [vmem:[#allocation16 + $0x2ac] ss:$24 sps:$4 sm:$0xff]   ;;  %v16865_v22 = vld [vmem:[#allocation16 + $0x1650] ss:$24 sps:$4 sm:$0xff]  }
 0x754   :  { %v16867_v25 = vld [vmem:[#allocation16 + $0x1654] ss:$24 sps:$4 sm:$0xff]  }
 0x756   :  { %13301 = vmatpush1.bf16.msra.mxu0 %v16715_v26  ;;  %13365 = vmatpush1.bf16.msra.mxu1 %v16718_v24  ;;  %v16753_v26 = vld [vmem:[#allocation16 + $0x2dc] ss:$24 sps:$4 sm:$0xff]   ;;  %v16751_v24 = vld [vmem:[#allocation16 + $0x2d8] ss:$24 sps:$4 sm:$0xff]  }
 0x757   :  { %13302 = vmatprep.subr.bf16.mxu0 %v16723_v35  ;;  %13366 = vmatprep.subr.bf16.mxu1 %v16726_v38  ;;  %v16873_v35 = vld [vmem:[#allocation16 + $0x1684] ss:$24 sps:$4 sm:$0xff]  }
 0x758   :  { %v16756_v38 = vld [vmem:[#allocation16 + $0x30c] ss:$24 sps:$4 sm:$0xff]  }
 0x75a   :  { %13303 = vmatpush1.bf16.msra.mxu0 %v16721_v1  ;;  %13367 = vmatpush1.bf16.msra.mxu1 %v16724_v17  ;;  %v16754_v1 = vld [vmem:[#allocation16 + $0x308] ss:$24 sps:$4 sm:$0xff]   ;;  %v16879_v17 = vld [vmem:[#allocation16 + $0x16b4] ss:$24 sps:$4 sm:$0xff]  }
 0x75b   :  { %13368 = vmatprep.subr.bf16.mxu1 %v16729_v19  ;;  %13313 = vmatprep.subr.bf16.mxu0 %v16825_v44  ;;  %v16877_v19 = vld [vmem:[#allocation16 + $0x16b0] ss:$24 sps:$4 sm:$0xff]   ;;  %v16762_v44 = vld [vmem:[#allocation16 + $0x36c] ss:$24 sps:$4 sm:$0xff]  }
 0x75d   :  { %13305 = vmatmul.mubr.bf16.vlgmr.msra.gmra.mrb[20].mxu0 %v18313_v60 }
 0x75e   :  { %13369 = vmatpush1.bf16.msra.mxu1 %v16727_v21  ;;  %13314 = vmatpush1.bf16.msra.mxu0 %v16823_v43  ;;  %v16757_v21 = vld [vmem:[#allocation16 + $0x338] ss:$24 sps:$4 sm:$0xff]   ;;  %v16885_v43 = vld [vmem:[#allocation16 + $0x16e4] ss:$24 sps:$4 sm:$0xff]  }
 0x75f   :  { %13370 = vmatprep.subr.bf16.mxu1 %v16732_v33  ;;  %13315 = vmatprep.subr.bf16.mxu0 %v16831_v55  ;;  %v16883_v33 = vld [vmem:[#allocation16 + $0x16e0] ss:$24 sps:$4 sm:$0xff]   ;;  %v16765_v55 = vld [vmem:[#allocation16 + $0x39c] ss:$24 sps:$4 sm:$0xff]  }
 0x762   :  { %13371 = vmatpush1.bf16.msra.mxu1 %v16730_v50  ;;  %13316 = vmatpush1.bf16.msra.mxu0 %v16829_v51  ;;  %v16760_v50 = vld [vmem:[#allocation16 + $0x368] ss:$24 sps:$4 sm:$0xff]   ;;  %v16891_v51 = vld [vmem:[#allocation16 + $0x1714] ss:$24 sps:$4 sm:$0xff]  }
 0x763   :  { %13372 = vmatprep.subr.bf16.mxu1 %v16735_v8  ;;  %13317 = vmatprep.subr.bf16.mxu0 %v16837_v61  ;;  %v16889_v8 = vld [vmem:[#allocation16 + $0x1710] ss:$24 sps:$4 sm:$0xff]   ;;  %v16768_v61 = vld [vmem:[#allocation16 + $0x3cc] ss:$24 sps:$4 sm:$0xff]  }
 0x766   :  { %13373 = vmatpush1.bf16.msra.mxu1 %v16733_v57  ;;  %13318 = vmatpush1.bf16.msra.mxu0 %v16835_v56  ;;  %v16763_v57 = vld [vmem:[#allocation16 + $0x398] ss:$24 sps:$4 sm:$0xff]   ;;  %v16897_v56 = vld [vmem:[#allocation16 + $0x1744] ss:$24 sps:$4 sm:$0xff]  }
 0x767   :  { %13374 = vmatprep.subr.bf16.mxu1 %v16738_v62  ;;  %13319 = vmatprep.subr.bf16.mxu0 %v16843_v14  ;;  %v16895_v62 = vld [vmem:[#allocation16 + $0x1740] ss:$24 sps:$4 sm:$0xff]   ;;  %v16771_v14 = vld [vmem:[#allocation16 + $0x3fc] ss:$24 sps:$4 sm:$0xff]  }
 0x76a   :  { %13375 = vmatpush1.bf16.msra.mxu1 %v16736_v47  ;;  %13320 = vmatpush1.bf16.msra.mxu0 %v16841_v0  ;;  %v16766_v47 = vld [vmem:[#allocation16 + $0x3c8] ss:$24 sps:$4 sm:$0xff]   ;;  %v16903_v0 = vld [vmem:[#allocation16 + $0x1774] ss:$24 sps:$4 sm:$0xff]  }
 0x76b   :  { %13376 = vmatprep.subr.bf16.mxu1 %v16741_v2  ;;  %13321 = vmatprep.subr.bf16.mxu0 %v16849_v9  ;;  %v16901_v2 = vld [vmem:[#allocation16 + $0x1770] ss:$24 sps:$4 sm:$0xff]   ;;  %v16909_v9 = vld [vmem:[#allocation16 + $0x17a4] ss:$24 sps:$4 sm:$0xff]  }
 0x76e   :  { %13377 = vmatpush1.bf16.msra.mxu1 %v16739_v37  ;;  %13322 = vmatpush1.bf16.msra.mxu0 %v16847_v3  ;;  %v16769_v37 = vld [vmem:[#allocation16 + $0x3f8] ss:$24 sps:$4 sm:$0xff]   ;;  %v16774_v3 = vld [vmem:[#allocation16 + $0x42c] ss:$24 sps:$4 sm:$0xff]  }
 0x76f   :  { %13378 = vmatprep.subr.bf16.mxu1 %v16744_v30  ;;  %13323 = vmatprep.subr.bf16.mxu0 %v16855_v4  ;;  %v16907_v30 = vld [vmem:[#allocation16 + $0x17a0] ss:$24 sps:$4 sm:$0xff]   ;;  %v16915_v4 = vld [vmem:[#allocation16 + $0x17d4] ss:$24 sps:$4 sm:$0xff]  }
 0x772   :  { %13379 = vmatpush1.bf16.msra.mxu1 %v16742_v5  ;;  %13324 = vmatpush1.bf16.msra.mxu0 %v16853_v6  ;;  %v16772_v5 = vld [vmem:[#allocation16 + $0x428] ss:$24 sps:$4 sm:$0xff]   ;;  %v16777_v6 = vld [vmem:[#allocation16 + $0x45c] ss:$24 sps:$4 sm:$0xff]  }
 0x773   :  { %13380 = vmatprep.subr.bf16.mxu1 %v16747_v7  ;;  %13325 = vmatprep.subr.bf16.mxu0 %v16861_v11  ;;  %v16913_v7 = vld [vmem:[#allocation16 + $0x17d0] ss:$24 sps:$4 sm:$0xff]   ;;  %v16921_v11 = vld [vmem:[#allocation16 + $0x14] ss:$24 sps:$4 sm:$0xff]  }
 0x776   :  { %13381 = vmatpush1.bf16.msra.mxu1 %v16745_v46  ;;  %13326 = vmatpush1.bf16.msra.mxu0 %v16859_v18  ;;  %v16775_v46 = vld [vmem:[#allocation16 + $0x458] ss:$24 sps:$4 sm:$0xff]   ;;  %v16780_v18 = vld [vmem:[#allocation16 + $0x48c] ss:$24 sps:$4 sm:$0xff]  }
 0x777   :  { %13382 = vmatprep.subr.bf16.mxu1 %v16750_v53  ;;  %13327 = vmatprep.subr.bf16.mxu0 %v16867_v25  ;;  %v16778_v53 = vld [vmem:[#allocation16 + $0x488] ss:$24 sps:$4 sm:$0xff]   ;;  %v16786_v25 = vld [vmem:[#allocation16 + $0x4ec] ss:$24 sps:$4 sm:$0xff]  }
 0x77a   :  { %13383 = vmatpush1.bf16.msra.mxu1 %v16748_v52  ;;  %13328 = vmatpush1.bf16.msra.mxu0 %v16865_v22  ;;  %v16783_v52 = vld [vmem:[#allocation16 + $0x4bc] ss:$24 sps:$4 sm:$0xff]   ;;  %v16781_v22 = vld [vmem:[#allocation16 + $0x4b8] ss:$24 sps:$4 sm:$0xff]  }
 0x77b   :  { %13384 = vmatprep.subr.bf16.mxu1 %v16753_v26  ;;  %13329 = vmatprep.subr.bf16.mxu0 %v16873_v35  ;;  %v16784_v26 = vld [vmem:[#allocation16 + $0x4e8] ss:$24 sps:$4 sm:$0xff]   ;;  %v16792_v35 = vld [vmem:[#allocation16 + $0x54c] ss:$24 sps:$4 sm:$0xff]  }
 0x77e   :  { %13385 = vmatpush1.bf16.msra.mxu1 %v16751_v24  ;;  %13330 = vmatpush1.bf16.msra.mxu0 %v16871_v15  ;;  %v16789_v24 = vld [vmem:[#allocation16 + $0x51c] ss:$24 sps:$4 sm:$0xff]   ;;  %v16787_v15 = vld [vmem:[#allocation16 + $0x518] ss:$24 sps:$4 sm:$0xff]  }
 0x77f   :  { %13395 = vmatprep.subr.bf16.mxu1 %v16756_v38  ;;  %13331 = vmatprep.subr.bf16.mxu0 %v16879_v17  ;;  %v16790_v38 = vld [vmem:[#allocation16 + $0x548] ss:$24 sps:$4 sm:$0xff]   ;;  %v16793_v17 = vld [vmem:[#allocation16 + $0x578] ss:$24 sps:$4 sm:$0xff]  }
 0x781   :  { %13387 = vmatmul.mubr.bf16.vlgmr.msra.gmra.mrb[28].mxu1 %v18219_v10 }
 0x782   :  { %13396 = vmatpush1.bf16.msra.mxu1 %v16754_v1  ;;  %13427 = vmatprep.mubr.bf16.mxu1 %v18222_v20  ;;  %v16795_v1 = vld [vmem:[#allocation16 + $0x57c] ss:$24 sps:$4 sm:$0xff]  }
 0x783   :  { %13397 = vmatprep.subr.bf16.mxu1 %v16759_v39  ;;  %13332 = vmatpush1.bf16.msra.mxu0 %v16877_v19  ;;  %v16798_v39 = vld [vmem:[#allocation16 + $0x5ac] ss:$24 sps:$4 sm:$0xff]   ;;  %v16796_v19 = vld [vmem:[#allocation16 + $0x5a8] ss:$24 sps:$4 sm:$0xff]  }
 0x784   :  { %13333 = vmatprep.subr.bf16.mxu0 %v16885_v43  ;;  %v16799_v43 = vld [vmem:[#allocation16 + $0x5d8] ss:$24 sps:$4 sm:$0xff]  }
 0x786   :  { %13398 = vmatpush1.bf16.msra.mxu1 %v16757_v21  ;;  %v16801_v21 = vld [vmem:[#allocation16 + $0x5dc] ss:$24 sps:$4 sm:$0xff]  }
 0x787   :  { %13399 = vmatprep.subr.bf16.mxu1 %v16762_v44  ;;  %13334 = vmatpush1.bf16.msra.mxu0 %v16883_v33  ;;  %v16804_v44 = vld [vmem:[#allocation16 + $0x60c] ss:$24 sps:$4 sm:$0xff]   ;;  %v16802_v33 = vld [vmem:[#allocation16 + $0x608] ss:$24 sps:$4 sm:$0xff]  }
 0x788   :  { %13335 = vmatprep.subr.bf16.mxu0 %v16891_v51  ;;  %v16805_v51 = vld [vmem:[#allocation16 + $0x638] ss:$24 sps:$4 sm:$0xff]  }
 0x78a   :  { %13400 = vmatpush1.bf16.msra.mxu1 %v16760_v50  ;;  %v16807_v50 = vld [vmem:[#allocation16 + $0x63c] ss:$24 sps:$4 sm:$0xff]  }
 0x78b   :  { %13401 = vmatprep.subr.bf16.mxu1 %v16765_v55  ;;  %13336 = vmatpush1.bf16.msra.mxu0 %v16889_v8  ;;  %v16810_v55 = vld [vmem:[#allocation16 + $0x66c] ss:$24 sps:$4 sm:$0xff]   ;;  %v16808_v8 = vld [vmem:[#allocation16 + $0x668] ss:$24 sps:$4 sm:$0xff]  }
 0x78c   :  { %13337 = vmatprep.subr.bf16.mxu0 %v16897_v56  ;;  %v16811_v56 = vld [vmem:[#allocation16 + $0x698] ss:$24 sps:$4 sm:$0xff]  }
 0x78e   :  { %13402 = vmatpush1.bf16.msra.mxu1 %v16763_v57  ;;  %v16813_v57 = vld [vmem:[#allocation16 + $0x69c] ss:$24 sps:$4 sm:$0xff]  }
 0x78f   :  { %13403 = vmatprep.subr.bf16.mxu1 %v16768_v61  ;;  %13338 = vmatpush1.bf16.msra.mxu0 %v16895_v62  ;;  %v16816_v61 = vld [vmem:[#allocation16 + $0x6cc] ss:$24 sps:$4 sm:$0xff]   ;;  %v16814_v62 = vld [vmem:[#allocation16 + $0x6c8] ss:$24 sps:$4 sm:$0xff]  }
 0x790   :  { %13339 = vmatprep.subr.bf16.mxu0 %v16903_v0  ;;  %v16817_v0 = vld [vmem:[#allocation16 + $0x6f8] ss:$24 sps:$4 sm:$0xff]  }
 0x792   :  { %13404 = vmatpush1.bf16.msra.mxu1 %v16766_v47  ;;  %v16819_v47 = vld [vmem:[#allocation16 + $0x6fc] ss:$24 sps:$4 sm:$0xff]  }
 0x793   :  { %13405 = vmatprep.subr.bf16.mxu1 %v16771_v14  ;;  %13340 = vmatpush1.bf16.msra.mxu0 %v16901_v2  ;;  %v16822_v14 = vld [vmem:[#allocation16 + $0x72c] ss:$24 sps:$4 sm:$0xff]   ;;  %v16820_v2 = vld [vmem:[#allocation16 + $0x728] ss:$24 sps:$4 sm:$0xff]  }
 0x794   :  { %13341 = vmatprep.subr.bf16.mxu0 %v16909_v9  ;;  %v16834_v9 = vld [vmem:[#allocation16 + $0x78c] ss:$24 sps:$4 sm:$0xff]  }
 0x796   :  { %13406 = vmatpush1.bf16.msra.mxu1 %v16769_v37  ;;  %v16828_v37 = vld [vmem:[#allocation16 + $0x75c] ss:$24 sps:$4 sm:$0xff]  }
 0x797   :  { %13407 = vmatprep.subr.bf16.mxu1 %v16774_v3  ;;  %13342 = vmatpush1.bf16.msra.mxu0 %v16907_v30  ;;  %v16826_v3 = vld [vmem:[#allocation16 + $0x758] ss:$24 sps:$4 sm:$0xff]   ;;  %v16832_v30 = vld [vmem:[#allocation16 + $0x788] ss:$24 sps:$4 sm:$0xff]  }
 0x798   :  { %13343 = vmatprep.subr.bf16.mxu0 %v16915_v4  ;;  %v16846_v4 = vld [vmem:[#allocation16 + $0x7ec] ss:$24 sps:$4 sm:$0xff]  }
 0x79a   :  { %13408 = vmatpush1.bf16.msra.mxu1 %v16772_v5  ;;  %v16840_v5 = vld [vmem:[#allocation16 + $0x7bc] ss:$24 sps:$4 sm:$0xff]  }
 0x79b   :  { %13409 = vmatprep.subr.bf16.mxu1 %v16777_v6  ;;  %13344 = vmatpush1.bf16.msra.mxu0 %v16913_v7  ;;  %v16838_v6 = vld [vmem:[#allocation16 + $0x7b8] ss:$24 sps:$4 sm:$0xff]   ;;  %v16844_v7 = vld [vmem:[#allocation16 + $0x7e8] ss:$24 sps:$4 sm:$0xff]  }
 0x79c   :  { %13682 = vmatprep.subr.bf16.mxu0 %v16921_v11  ;;  %v16858_v11 = vld [vmem:[#allocation16 + $0x84c] ss:$24 sps:$4 sm:$0xff]  }
 0x79e   :  { %13410 = vmatpush1.bf16.msra.mxu1 %v16775_v46  ;;  %v16852_v46 = vld [vmem:[#allocation16 + $0x81c] ss:$24 sps:$4 sm:$0xff]  }
 0x79f   :  { %13411 = vmatprep.subr.bf16.mxu1 %v16780_v18  ;;  %v16850_v18 = vld [vmem:[#allocation16 + $0x818] ss:$24 sps:$4 sm:$0xff]  }
 0x7a2   :  { %13412 = vmatpush1.bf16.msra.mxu1 %v16778_v53  ;;  %v16856_v53 = vld [vmem:[#allocation16 + $0x848] ss:$24 sps:$4 sm:$0xff]  }
 0x7a3   :  { %13413 = vmatprep.subr.bf16.mxu1 %v16783_v52  ;;  %v16864_v52 = vld [vmem:[#allocation16 + $0x87c] ss:$24 sps:$4 sm:$0xff]  }
 0x7a6   :  { %13414 = vmatpush1.bf16.msra.mxu1 %v16781_v22  ;;  %v16862_v22 = vld [vmem:[#allocation16 + $0x878] ss:$24 sps:$4 sm:$0xff]  }
 0x7a7   :  { %13415 = vmatprep.subr.bf16.mxu1 %v16786_v25  ;;  %v16870_v25 = vld [vmem:[#allocation16 + $0x8ac] ss:$24 sps:$4 sm:$0xff]  }
 0x7aa   :  { %13416 = vmatpush1.bf16.msra.mxu1 %v16784_v26  ;;  %v16868_v26 = vld [vmem:[#allocation16 + $0x8a8] ss:$24 sps:$4 sm:$0xff]  }
 0x7ab   :  { %13417 = vmatprep.subr.bf16.mxu1 %v16789_v24  ;;  %v16876_v24 = vld [vmem:[#allocation16 + $0x8dc] ss:$24 sps:$4 sm:$0xff]  }
 0x7ae   :  { %13418 = vmatpush1.bf16.msra.mxu1 %v16787_v15  ;;  %v16874_v15 = vld [vmem:[#allocation16 + $0x8d8] ss:$24 sps:$4 sm:$0xff]  }
 0x7af   :  { %13419 = vmatprep.subr.bf16.mxu1 %v16792_v35  ;;  %v16882_v35 = vld [vmem:[#allocation16 + $0x90c] ss:$24 sps:$4 sm:$0xff]  }
 0x7b2   :  { %13420 = vmatpush1.bf16.msra.mxu1 %v16790_v38  ;;  %v16880_v38 = vld [vmem:[#allocation16 + $0x908] ss:$24 sps:$4 sm:$0xff]  }
 0x7b3   :  { %13421 = vmatprep.subr.bf16.mxu1 %v16795_v1  ;;  %v16888_v1 = vld [vmem:[#allocation16 + $0x93c] ss:$24 sps:$4 sm:$0xff]  }
 0x7b6   :  { %13422 = vmatpush1.bf16.msra.mxu1 %v16793_v17  ;;  %v16886_v17 = vld [vmem:[#allocation16 + $0x938] ss:$24 sps:$4 sm:$0xff]  }
 0x7b7   :  { %13423 = vmatprep.subr.bf16.mxu1 %v16798_v39  ;;  %v16894_v39 = vld [vmem:[#allocation16 + $0x96c] ss:$24 sps:$4 sm:$0xff]  }
 0x7ba   :  { %13424 = vmatpush1.bf16.msra.mxu1 %v16796_v19  ;;  %v16892_v19 = vld [vmem:[#allocation16 + $0x968] ss:$24 sps:$4 sm:$0xff]  }
 0x7bb   :  { %13425 = vmatprep.subr.bf16.mxu1 %v16801_v21  ;;  %v16900_v21 = vld [vmem:[#allocation16 + $0x99c] ss:$24 sps:$4 sm:$0xff]  }
 0x7be   :  { %13426 = vmatpush1.bf16.msra.mxu1 %v16799_v43  ;;  %v16898_v43 = vld [vmem:[#allocation16 + $0x998] ss:$24 sps:$4 sm:$0xff]  }
 0x7bf   :  { %13436 = vmatprep.subr.bf16.mxu1 %v16804_v44  ;;  %v16906_v44 = vld [vmem:[#allocation16 + $0x9cc] ss:$24 sps:$4 sm:$0xff]  }
 0x7c1   :  { %13428 = vmatmul.mubr.bf16.vlgmr.msra.gmra.mrb[28].mxu1 %v18233_v58 }
 0x7c2   :  { %13437 = vmatpush1.bf16.msra.mxu1 %v16802_v33  ;;  %13468 = vmatprep.mubr.bf16.mxu1 %v18236_v63  ;;  %v16904_v33 = vld [vmem:[#allocation16 + $0x9c8] ss:$24 sps:$4 sm:$0xff]  }
 0x7c3   :  { %13438 = vmatprep.subr.bf16.mxu1 %v16807_v50  ;;  %v16912_v50 = vld [vmem:[#allocation16 + $0x9fc] ss:$24 sps:$4 sm:$0xff]  }
 0x7c6   :  { %13439 = vmatpush1.bf16.msra.mxu1 %v16805_v51  ;;  %v1901_v51 = vrot.slane %v18308_v59, %v18148_v16 }
 0x7c7   :  { %13440 = vmatprep.subr.bf16.mxu1 %v16810_v55  ;;  %v1905_v55 = vrot.slane %v18308_v59, %v18131_v36  ;;  %v16922_v36 = vld [vmem:[#allocation16 + $0xa58] ss:$24 sps:$4 sm:$0xff]  }
 0x7ca   :  { %13441 = vmatpush1.bf16.msra.mxu1 %v16808_v8  ;;  %v16910_v8 = vld [vmem:[#allocation16 + $0x9f8] ss:$24 sps:$4 sm:$0xff]  }
 0x7cb   :  { %13442 = vmatprep.subr.bf16.mxu1 %v16813_v57  ;;  %v16918_v57 = vld [vmem:[#allocation16 + $0xa2c] ss:$24 sps:$4 sm:$0xff]  }
 0x7ce   :  { %13443 = vmatpush1.bf16.msra.mxu1 %v16811_v56 }
 0x7cf   :  { %13444 = vmatprep.subr.bf16.mxu1 %v16816_v61 }
 0x7d2   :  { %13445 = vmatpush1.bf16.msra.mxu1 %v16814_v62 }
 0x7d3   :  { %13446 = vmatprep.subr.bf16.mxu1 %v16819_v47 }
 0x7d6   :  { %13447 = vmatpush1.bf16.msra.mxu1 %v16817_v0 }
 0x7d7   :  { %13448 = vmatprep.subr.bf16.mxu1 %v16822_v14  ;;  %v16916_v14 = vld [vmem:[#allocation16 + $0xa28] ss:$24 sps:$4 sm:$0xff]  }
 0x7da   :  { %13449 = vmatpush1.bf16.msra.mxu1 %v16820_v2 }
 0x7db   :  { %13450 = vmatprep.subr.bf16.mxu1 %v16828_v37 }
 0x7de   :  { %13451 = vmatpush1.bf16.msra.mxu1 %v16826_v3  ;;  %v16924_v3 = vld [vmem:[#allocation16 + $0xa5c] ss:$24 sps:$4 sm:$0xff]  }
 0x7df   :  { %13452 = vmatprep.subr.bf16.mxu1 %v16834_v9 }
 0x7e2   :  { %13453 = vmatpush1.bf16.msra.mxu1 %v16832_v30  ;;  %v16919_v30 = vld [vmem:[#allocation16 + $0x10] ss:$24 sps:$4 sm:$0xff]  }
 0x7e3   :  { %13454 = vmatprep.subr.bf16.mxu1 %v16840_v5  ;;  %v16927_v5 = vld [vmem:[#allocation16 + $0x44] ss:$24 sps:$4 sm:$0xff]  }
 0x7e6   :  { %13455 = vmatpush1.bf16.msra.mxu1 %v16838_v6  ;;  %v16930_v6 = vld [vmem:[#allocation16 + $0xa8c] ss:$24 sps:$4 sm:$0xff]  }
 0x7e7   :  { %13456 = vmatprep.subr.bf16.mxu1 %v16846_v4  ;;  %v16925_v4 = vld [vmem:[#allocation16 + $0x40] ss:$24 sps:$4 sm:$0xff]  }
 0x7ea   :  { %13457 = vmatpush1.bf16.msra.mxu1 %v16844_v7  ;;  %v16928_v7 = vld [vmem:[#allocation16 + $0xa88] ss:$24 sps:$4 sm:$0xff]  }
 0x7eb   :  { %13458 = vmatprep.subr.bf16.mxu1 %v16852_v46  ;;  %v16933_v46 = vld [vmem:[#allocation16 + $0x74] ss:$24 sps:$4 sm:$0xff]  }
 0x7ee   :  { %13459 = vmatpush1.bf16.msra.mxu1 %v16850_v18  ;;  %v16936_v18 = vld [vmem:[#allocation16 + $0xabc] ss:$24 sps:$4 sm:$0xff]  }
 0x7ef   :  { %13460 = vmatprep.subr.bf16.mxu1 %v16858_v11  ;;  %v16931_v11 = vld [vmem:[#allocation16 + $0x70] ss:$24 sps:$4 sm:$0xff]  }
 0x7f2   :  { %13461 = vmatpush1.bf16.msra.mxu1 %v16856_v53  ;;  %v16934_v53 = vld [vmem:[#allocation16 + $0xab8] ss:$24 sps:$4 sm:$0xff]  }
 0x7f3   :  { %13462 = vmatprep.subr.bf16.mxu1 %v16864_v52  ;;  %v16939_v52 = vld [vmem:[#allocation16 + $0xa4] ss:$24 sps:$4 sm:$0xff]  }
 0x7f6   :  { %13463 = vmatpush1.bf16.msra.mxu1 %v16862_v22  ;;  %v16942_v22 = vld [vmem:[#allocation16 + $0xaec] ss:$24 sps:$4 sm:$0xff]  }
 0x7f7   :  { %13464 = vmatprep.subr.bf16.mxu1 %v16870_v25  ;;  %v16937_v25 = vld [vmem:[#allocation16 + $0xa0] ss:$24 sps:$4 sm:$0xff]  }
 0x7fa   :  { %13465 = vmatpush1.bf16.msra.mxu1 %v16868_v26  ;;  %v16940_v26 = vld [vmem:[#allocation16 + $0xae8] ss:$24 sps:$4 sm:$0xff]  }
 0x7fb   :  { %13466 = vmatprep.subr.bf16.mxu1 %v16876_v24  ;;  %v16945_v24 = vld [vmem:[#allocation16 + $0xd4] ss:$24 sps:$4 sm:$0xff]  }
 0x7fe   :  { %13467 = vmatpush1.bf16.msra.mxu1 %v16874_v15  ;;  %v16943_v15 = vld [vmem:[#allocation16 + $0xd0] ss:$24 sps:$4 sm:$0xff]  }
 0x7ff   :  { %13477 = vmatprep.subr.bf16.mxu1 %v16882_v35  ;;  %v16946_v35 = vld [vmem:[#allocation16 + $0xb18] ss:$24 sps:$4 sm:$0xff]  }
 0x801   :  { %13469 = vmatmul.mubr.bf16.vlgmr.msra.gmra.mrb[28].mxu1 %v18246_v34 }
 0x802   :  { %13478 = vmatpush1.bf16.msra.mxu1 %v16880_v38  ;;  %13509 = vmatprep.mubr.bf16.mxu1 %v18259_v54  ;;  %v16951_v38 = vld [vmem:[#allocation16 + $0x104] ss:$24 sps:$4 sm:$0xff]  }
 0x803   :  { %13479 = vmatprep.subr.bf16.mxu1 %v16888_v1  ;;  %v16954_v1 = vld [vmem:[#allocation16 + $0xb4c] ss:$24 sps:$4 sm:$0xff]  }
 0x806   :  { %13480 = vmatpush1.bf16.msra.mxu1 %v16886_v17  ;;  %v16949_v17 = vld [vmem:[#allocation16 + $0x100] ss:$24 sps:$4 sm:$0xff]  }
 0x807   :  { %13481 = vmatprep.subr.bf16.mxu1 %v16894_v39  ;;  %v16952_v39 = vld [vmem:[#allocation16 + $0xb48] ss:$24 sps:$4 sm:$0xff]  }
 0x80a   :  { %13482 = vmatpush1.bf16.msra.mxu1 %v16892_v19  ;;  %v16957_v19 = vld [vmem:[#allocation16 + $0x134] ss:$24 sps:$4 sm:$0xff]  }
 0x80b   :  { %13483 = vmatprep.subr.bf16.mxu1 %v16900_v21  ;;  %v16960_v21 = vld [vmem:[#allocation16 + $0xb7c] ss:$24 sps:$4 sm:$0xff]  }
 0x80e   :  { %13484 = vmatpush1.bf16.msra.mxu1 %v16898_v43  ;;  %v16955_v43 = vld [vmem:[#allocation16 + $0x130] ss:$24 sps:$4 sm:$0xff]  }
 0x80f   :  { %13485 = vmatprep.subr.bf16.mxu1 %v16906_v44  ;;  %v16958_v44 = vld [vmem:[#allocation16 + $0xb78] ss:$24 sps:$4 sm:$0xff]  }
 0x812   :  { %13486 = vmatpush1.bf16.msra.mxu1 %v16904_v33  ;;  %v16963_v33 = vld [vmem:[#allocation16 + $0x164] ss:$24 sps:$4 sm:$0xff]  }
 0x813   :  { %13487 = vmatprep.subr.bf16.mxu1 %v16912_v50  ;;  %v16966_v50 = vld [vmem:[#allocation16 + $0xbac] ss:$24 sps:$4 sm:$0xff]  }
 0x814   :  { %v8347_v56 = vpop.f32.mrb[24].mxu1 }
 0x815   :  { %v16162_v61 = vadd.f32 %v8347_v56, %v1901_v51  ;;  %v8349_v62 = vpop.f32.mrb[25].mxu1  ;;  %v16961_v51 = vld [vmem:[#allocation16 + $0x160] ss:$24 sps:$4 sm:$0xff]   ;;  %v16967_v56 = vld [vmem:[#allocation16 + $0x190] ss:$24 sps:$4 sm:$0xff]  }
 0x816   :  { %v16163_v47 = vadd.f32 %v8349_v62, %v1905_v55  ;;  %v8351_v0 = vpop.f32.mrb[26].mxu1  ;;  %13488 = vmatpush1.bf16.msra.mxu1 %v16910_v8  ;;  %v16964_v55 = vld [vmem:[#allocation16 + $0xba8] ss:$24 sps:$4 sm:$0xff]   ;;  %v16969_v8 = vld [vmem:[#allocation16 + $0x194] ss:$24 sps:$4 sm:$0xff]  }
 0x817   :  { %v8368_v2 = vmax.f32 %v16162_v61, 0.0  ;;  %v8352_v37 = vpop.f32.mrb[27].mxu1  ;;  %13489 = vmatprep.subr.bf16.mxu1 %v16918_v57  ;;  %v16972_v57 = vld [vmem:[#allocation16 + $0xbdc] ss:$24 sps:$4 sm:$0xff]   ;;  %v16970_v61 = vld [vmem:[#allocation16 + $0xbd8] ss:$24 sps:$4 sm:$0xff]  }
 0x818   :  { %v8369_v9 = vmax.f32 %v16163_v47, 0.0  ;;  %v16975_v62 = vld [vmem:[#allocation16 + $0x1c4] ss:$24 sps:$4 sm:$0xff]   ;;  %v16973_v0 = vld [vmem:[#allocation16 + $0x1c0] ss:$24 sps:$4 sm:$0xff]  }
 0x819   :  { %v18328_v59 = vpack.c.bf16 %v8368_v2, %v8368_v2  ;;  %v16978_v47 = vld [vmem:[#allocation16 + $0xc0c] ss:$24 sps:$4 sm:$0xff]   ;;  %v16984_v37 = vld [vmem:[#allocation16 + $0xc3c] ss:$24 sps:$4 sm:$0xff]  }
 0x81a   :  { %v18326_v16 = vpack.c.bf16 %v8369_v9, %v8369_v9  ;;  %13490 = vmatpush1.bf16.msra.mxu1 %v16916_v14  ;;  %v16976_v14 = vld [vmem:[#allocation16 + $0xc08] ss:$24 sps:$4 sm:$0xff]   ;;  %v16981_v2 = vld [vmem:[#allocation16 + $0x1f4] ss:$24 sps:$4 sm:$0xff]   ;;  %v16982_v9 = vld [vmem:[#allocation16 + $0xc38] ss:$24 sps:$4 sm:$0xff]  }
 0x81b   :  { %13491 = vmatprep.subr.bf16.mxu1 %v16924_v3  ;;  %v16979_v3 = vld [vmem:[#allocation16 + $0x1f0] ss:$24 sps:$4 sm:$0xff]  }
 0x81c   :  { %13345 = vmatprep.mubr.bf16.mxu0 %v18326_v16 }
 0x81d   :  { %13346 = vmatmul.mubr.bf16.vlgmr.msra.gmra.mrb[20].mxu0 %v18328_v59 }
 0x81e   :  { %13683 = vmatpush1.bf16.msra.mxu0 %v16919_v30  ;;  %13492 = vmatpush1.bf16.msra.mxu1 %v16922_v36  ;;  %v16987_v30 = vld [vmem:[#allocation16 + $0x224] ss:$24 sps:$4 sm:$0xff]  }
 0x81f   :  { %13714 = vmatprep.mubr.bf16.mxu0 %v18208_v42  ;;  %13684 = vmatprep.subr.bf16.mxu0 %v16927_v5  ;;  %v16948_v42 = vld [vmem:[#allocation16 + $0xb1c] ss:$24 sps:$4 sm:$0xff]   ;;  %v16990_v36 = vld [vmem:[#allocation16 + $0xc6c] ss:$24 sps:$4 sm:$0xff]   ;;  %v16985_v5 = vld [vmem:[#allocation16 + $0x220] ss:$24 sps:$4 sm:$0xff]  }
 0x820   :  { %13493 = vmatprep.subr.bf16.mxu1 %v16930_v6  ;;  %v16988_v6 = vld [vmem:[#allocation16 + $0xc68] ss:$24 sps:$4 sm:$0xff]  }
 0x822   :  { %13685 = vmatpush1.bf16.msra.mxu0 %v16925_v4  ;;  %13494 = vmatpush1.bf16.msra.mxu1 %v16928_v7  ;;  %v16993_v4 = vld [vmem:[#allocation16 + $0x254] ss:$24 sps:$4 sm:$0xff]  }
 0x823   :  { %13686 = vmatprep.subr.bf16.mxu0 %v16933_v46  ;;  %13495 = vmatprep.subr.bf16.mxu1 %v16936_v18  ;;  %v16996_v7 = vld [vmem:[#allocation16 + $0xc9c] ss:$24 sps:$4 sm:$0xff]   ;;  %v16991_v46 = vld [vmem:[#allocation16 + $0x250] ss:$24 sps:$4 sm:$0xff]  }
 0x824   :  { %v16994_v18 = vld [vmem:[#allocation16 + $0xc98] ss:$24 sps:$4 sm:$0xff]  }
 0x826   :  { %13687 = vmatpush1.bf16.msra.mxu0 %v16931_v11  ;;  %13496 = vmatpush1.bf16.msra.mxu1 %v16934_v53  ;;  %v16999_v11 = vld [vmem:[#allocation16 + $0x284] ss:$24 sps:$4 sm:$0xff]  }
 0x827   :  { %13688 = vmatprep.subr.bf16.mxu0 %v16939_v52  ;;  %13497 = vmatprep.subr.bf16.mxu1 %v16942_v22  ;;  %v17002_v53 = vld [vmem:[#allocation16 + $0xccc] ss:$24 sps:$4 sm:$0xff]   ;;  %v16997_v52 = vld [vmem:[#allocation16 + $0x280] ss:$24 sps:$4 sm:$0xff]  }
 0x828   :  { %v17000_v22 = vld [vmem:[#allocation16 + $0xcc8] ss:$24 sps:$4 sm:$0xff]  }
 0x82a   :  { %13689 = vmatpush1.bf16.msra.mxu0 %v16937_v25  ;;  %13498 = vmatpush1.bf16.msra.mxu1 %v16940_v26  ;;  %v17005_v25 = vld [vmem:[#allocation16 + $0x2b4] ss:$24 sps:$4 sm:$0xff]  }
 0x82b   :  { %13690 = vmatprep.subr.bf16.mxu0 %v16945_v24  ;;  %13499 = vmatprep.subr.bf16.mxu1 %v16948_v42  ;;  %v17008_v26 = vld [vmem:[#allocation16 + $0xcfc] ss:$24 sps:$4 sm:$0xff]   ;;  %v17003_v24 = vld [vmem:[#allocation16 + $0x2b0] ss:$24 sps:$4 sm:$0xff]  }
 0x82c   :  { %v17006_v42 = vld [vmem:[#allocation16 + $0xcf8] ss:$24 sps:$4 sm:$0xff]  }
 0x82e   :  { %13691 = vmatpush1.bf16.msra.mxu0 %v16943_v15  ;;  %13500 = vmatpush1.bf16.msra.mxu1 %v16946_v35  ;;  %v17011_v15 = vld [vmem:[#allocation16 + $0x2e4] ss:$24 sps:$4 sm:$0xff]  }
 0x82f   :  { %13692 = vmatprep.subr.bf16.mxu0 %v16951_v38  ;;  %13501 = vmatprep.subr.bf16.mxu1 %v16954_v1  ;;  %v17014_v35 = vld [vmem:[#allocation16 + $0xd2c] ss:$24 sps:$4 sm:$0xff]   ;;  %v17009_v38 = vld [vmem:[#allocation16 + $0x2e0] ss:$24 sps:$4 sm:$0xff]  }
 0x830   :  { %v17012_v1 = vld [vmem:[#allocation16 + $0xd28] ss:$24 sps:$4 sm:$0xff]  }
 0x832   :  { %13693 = vmatpush1.bf16.msra.mxu0 %v16949_v17  ;;  %13502 = vmatpush1.bf16.msra.mxu1 %v16952_v39  ;;  %v17017_v17 = vld [vmem:[#allocation16 + $0x314] ss:$24 sps:$4 sm:$0xff]  }
 0x833   :  { %13694 = vmatprep.subr.bf16.mxu0 %v16957_v19  ;;  %13503 = vmatprep.subr.bf16.mxu1 %v16960_v21  ;;  %v17020_v39 = vld [vmem:[#allocation16 + $0xd5c] ss:$24 sps:$4 sm:$0xff]   ;;  %v17015_v19 = vld [vmem:[#allocation16 + $0x310] ss:$24 sps:$4 sm:$0xff]  }
 0x834   :  { %v17018_v21 = vld [vmem:[#allocation16 + $0xd58] ss:$24 sps:$4 sm:$0xff]  }
 0x836   :  { %13695 = vmatpush1.bf16.msra.mxu0 %v16955_v43  ;;  %13504 = vmatpush1.bf16.msra.mxu1 %v16958_v44  ;;  %v17023_v43 = vld [vmem:[#allocation16 + $0x344] ss:$24 sps:$4 sm:$0xff]  }
 0x837   :  { %13696 = vmatprep.subr.bf16.mxu0 %v16963_v33  ;;  %13505 = vmatprep.subr.bf16.mxu1 %v16966_v50  ;;  %v17026_v44 = vld [vmem:[#allocation16 + $0xd8c] ss:$24 sps:$4 sm:$0xff]   ;;  %v17021_v33 = vld [vmem:[#allocation16 + $0x340] ss:$24 sps:$4 sm:$0xff]  }
 0x838   :  { %v17024_v50 = vld [vmem:[#allocation16 + $0xd88] ss:$24 sps:$4 sm:$0xff]  }
 0x83a   :  { %13697 = vmatpush1.bf16.msra.mxu0 %v16961_v51  ;;  %13506 = vmatpush1.bf16.msra.mxu1 %v16964_v55  ;;  %v17029_v51 = vld [vmem:[#allocation16 + $0x374] ss:$24 sps:$4 sm:$0xff]  }
 0x83b   :  { %13698 = vmatprep.subr.bf16.mxu0 %v16969_v8  ;;  %13507 = vmatprep.subr.bf16.mxu1 %v16972_v57  ;;  %v17032_v55 = vld [vmem:[#allocation16 + $0xdbc] ss:$24 sps:$4 sm:$0xff]   ;;  %v17027_v8 = vld [vmem:[#allocation16 + $0x370] ss:$24 sps:$4 sm:$0xff]  }
 0x83c   :  { %v17030_v57 = vld [vmem:[#allocation16 + $0xdb8] ss:$24 sps:$4 sm:$0xff]  }
 0x83e   :  { %13699 = vmatpush1.bf16.msra.mxu0 %v16967_v56  ;;  %13508 = vmatpush1.bf16.msra.mxu1 %v16970_v61  ;;  %v17035_v56 = vld [vmem:[#allocation16 + $0x3a4] ss:$24 sps:$4 sm:$0xff]  }
 0x83f   :  { %13700 = vmatprep.subr.bf16.mxu0 %v16975_v62  ;;  %13518 = vmatprep.subr.bf16.mxu1 %v16978_v47  ;;  %v17038_v61 = vld [vmem:[#allocation16 + $0xdec] ss:$24 sps:$4 sm:$0xff]   ;;  %v17044_v47 = vld [vmem:[#allocation16 + $0xe1c] ss:$24 sps:$4 sm:$0xff]  }
 0x840   :  { %v17041_v62 = vld [vmem:[#allocation16 + $0x3d4] ss:$24 sps:$4 sm:$0xff]  }
 0x841   :  { %13510 = vmatmul.mubr.bf16.vlgmr.msra.gmra.mrb[28].mxu1 %v18270_v40 }
 0x842   :  { %13701 = vmatpush1.bf16.msra.mxu0 %v16973_v0  ;;  %13519 = vmatpush1.bf16.msra.mxu1 %v16976_v14  ;;  %v17039_v0 = vld [vmem:[#allocation16 + $0x3d0] ss:$24 sps:$4 sm:$0xff]  }
 0x843   :  { %13550 = vmatprep.mubr.bf16.mxu1 %v18273_v48  ;;  %13702 = vmatprep.subr.bf16.mxu0 %v16981_v2  ;;  %v17042_v14 = vld [vmem:[#allocation16 + $0xe18] ss:$24 sps:$4 sm:$0xff]   ;;  %v17047_v2 = vld [vmem:[#allocation16 + $0x404] ss:$24 sps:$4 sm:$0xff]  }
 0x844   :  { %13520 = vmatprep.subr.bf16.mxu1 %v16984_v37  ;;  %v17050_v37 = vld [vmem:[#allocation16 + $0xe4c] ss:$24 sps:$4 sm:$0xff]  }
 0x846   :  { %13703 = vmatpush1.bf16.msra.mxu0 %v16979_v3  ;;  %13521 = vmatpush1.bf16.msra.mxu1 %v16982_v9  ;;  %v17045_v3 = vld [vmem:[#allocation16 + $0x400] ss:$24 sps:$4 sm:$0xff]  }
 0x847   :  { %13704 = vmatprep.subr.bf16.mxu0 %v16987_v30  ;;  %13522 = vmatprep.subr.bf16.mxu1 %v16990_v36  ;;  %v17048_v9 = vld [vmem:[#allocation16 + $0xe48] ss:$24 sps:$4 sm:$0xff]   ;;  %v17053_v30 = vld [vmem:[#allocation16 + $0x434] ss:$24 sps:$4 sm:$0xff]  }
 0x848   :  { %v17056_v36 = vld [vmem:[#allocation16 + $0xe7c] ss:$24 sps:$4 sm:$0xff]  }
 0x84a   :  { %13705 = vmatpush1.bf16.msra.mxu0 %v16985_v5  ;;  %13523 = vmatpush1.bf16.msra.mxu1 %v16988_v6  ;;  %v17051_v5 = vld [vmem:[#allocation16 + $0x430] ss:$24 sps:$4 sm:$0xff]  }
 0x84b   :  { %13706 = vmatprep.subr.bf16.mxu0 %v16993_v4  ;;  %13524 = vmatprep.subr.bf16.mxu1 %v16996_v7  ;;  %v17054_v6 = vld [vmem:[#allocation16 + $0xe78] ss:$24 sps:$4 sm:$0xff]   ;;  %v17059_v4 = vld [vmem:[#allocation16 + $0x464] ss:$24 sps:$4 sm:$0xff]  }
 0x84c   :  { %v17062_v7 = vld [vmem:[#allocation16 + $0xeac] ss:$24 sps:$4 sm:$0xff]  }
 0x84e   :  { %13707 = vmatpush1.bf16.msra.mxu0 %v16991_v46  ;;  %13525 = vmatpush1.bf16.msra.mxu1 %v16994_v18  ;;  %v17057_v46 = vld [vmem:[#allocation16 + $0x460] ss:$24 sps:$4 sm:$0xff]  }
 0x84f   :  { %13708 = vmatprep.subr.bf16.mxu0 %v16999_v11  ;;  %13526 = vmatprep.subr.bf16.mxu1 %v17002_v53  ;;  %v17060_v18 = vld [vmem:[#allocation16 + $0xea8] ss:$24 sps:$4 sm:$0xff]   ;;  %v17065_v11 = vld [vmem:[#allocation16 + $0x494] ss:$24 sps:$4 sm:$0xff]  }
 0x850   :  { %v17068_v53 = vld [vmem:[#allocation16 + $0xedc] ss:$24 sps:$4 sm:$0xff]  }
 0x852   :  { %13709 = vmatpush1.bf16.msra.mxu0 %v16997_v52  ;;  %13527 = vmatpush1.bf16.msra.mxu1 %v17000_v22  ;;  %v17063_v52 = vld [vmem:[#allocation16 + $0x490] ss:$24 sps:$4 sm:$0xff]  }
 0x853   :  { %13710 = vmatprep.subr.bf16.mxu0 %v17005_v25  ;;  %13528 = vmatprep.subr.bf16.mxu1 %v17008_v26  ;;  %v17066_v22 = vld [vmem:[#allocation16 + $0xed8] ss:$24 sps:$4 sm:$0xff]   ;;  %v17071_v25 = vld [vmem:[#allocation16 + $0x4c4] ss:$24 sps:$4 sm:$0xff]  }
 0x854   :  { %v17074_v26 = vld [vmem:[#allocation16 + $0xf0c] ss:$24 sps:$4 sm:$0xff]  }
 0x856   :  { %13711 = vmatpush1.bf16.msra.mxu0 %v17003_v24  ;;  %13529 = vmatpush1.bf16.msra.mxu1 %v17006_v42  ;;  %v17069_v24 = vld [vmem:[#allocation16 + $0x4c0] ss:$24 sps:$4 sm:$0xff]  }
 0x857   :  { %13712 = vmatprep.subr.bf16.mxu0 %v17011_v15  ;;  %13530 = vmatprep.subr.bf16.mxu1 %v17014_v35  ;;  %v17072_v42 = vld [vmem:[#allocation16 + $0xf08] ss:$24 sps:$4 sm:$0xff]   ;;  %v17077_v15 = vld [vmem:[#allocation16 + $0x4f4] ss:$24 sps:$4 sm:$0xff]  }
 0x858   :  { %v17080_v35 = vld [vmem:[#allocation16 + $0xf3c] ss:$24 sps:$4 sm:$0xff]  }
 0x85a   :  { %13713 = vmatpush1.bf16.msra.mxu0 %v17009_v38  ;;  %13531 = vmatpush1.bf16.msra.mxu1 %v17012_v1  ;;  %v17075_v38 = vld [vmem:[#allocation16 + $0x4f0] ss:$24 sps:$4 sm:$0xff]  }
 0x85b   :  { %13723 = vmatprep.subr.bf16.mxu0 %v17017_v17  ;;  %13532 = vmatprep.subr.bf16.mxu1 %v17020_v39  ;;  %v17078_v1 = vld [vmem:[#allocation16 + $0xf38] ss:$24 sps:$4 sm:$0xff]   ;;  %v17083_v17 = vld [vmem:[#allocation16 + $0x524] ss:$24 sps:$4 sm:$0xff]  }
 0x85c   :  { %v17086_v39 = vld [vmem:[#allocation16 + $0xf6c] ss:$24 sps:$4 sm:$0xff]  }
 0x85d   :  { %13715 = vmatmul.mubr.bf16.vlgmr.msra.gmra.mrb[24].mxu0 %v18219_v10  ;;  %v17033_v10 = vld [vmem:[#allocation16 + $0x3a0] ss:$24 sps:$4 sm:$0xff]  }
 0x85e   :  { %13724 = vmatpush1.bf16.msra.mxu0 %v17015_v19  ;;  %13755 = vmatprep.mubr.bf16.mxu0 %v18222_v20  ;;  %v17036_v20 = vld [vmem:[#allocation16 + $0xde8] ss:$24 sps:$4 sm:$0xff]  }
 0x85f   :  { %13533 = vmatpush1.bf16.msra.mxu1 %v17018_v21  ;;  %13725 = vmatprep.subr.bf16.mxu0 %v17023_v43  ;;  %v17081_v19 = vld [vmem:[#allocation16 + $0x520] ss:$24 sps:$4 sm:$0xff]   ;;  %v17089_v43 = vld [vmem:[#allocation16 + $0x554] ss:$24 sps:$4 sm:$0xff]  }
 0x860   :  { %13534 = vmatprep.subr.bf16.mxu1 %v17026_v44  ;;  %v17084_v21 = vld [vmem:[#allocation16 + $0xf68] ss:$24 sps:$4 sm:$0xff]   ;;  %v17092_v44 = vld [vmem:[#allocation16 + $0xf9c] ss:$24 sps:$4 sm:$0xff]  }
 0x862   :  { %13726 = vmatpush1.bf16.msra.mxu0 %v17021_v33  ;;  %v17087_v33 = vld [vmem:[#allocation16 + $0x550] ss:$24 sps:$4 sm:$0xff]  }
 0x863   :  { %13535 = vmatpush1.bf16.msra.mxu1 %v17024_v50  ;;  %13727 = vmatprep.subr.bf16.mxu0 %v17029_v51  ;;  %v17090_v50 = vld [vmem:[#allocation16 + $0xf98] ss:$24 sps:$4 sm:$0xff]   ;;  %v17095_v51 = vld [vmem:[#allocation16 + $0x584] ss:$24 sps:$4 sm:$0xff]  }
 0x864   :  { %13536 = vmatprep.subr.bf16.mxu1 %v17032_v55  ;;  %v17098_v55 = vld [vmem:[#allocation16 + $0xfcc] ss:$24 sps:$4 sm:$0xff]  }
 0x866   :  { %13728 = vmatpush1.bf16.msra.mxu0 %v17027_v8  ;;  %v17093_v8 = vld [vmem:[#allocation16 + $0x580] ss:$24 sps:$4 sm:$0xff]  }
 0x867   :  { %13537 = vmatpush1.bf16.msra.mxu1 %v17030_v57  ;;  %13729 = vmatprep.subr.bf16.mxu0 %v17035_v56  ;;  %v17096_v57 = vld [vmem:[#allocation16 + $0xfc8] ss:$24 sps:$4 sm:$0xff]   ;;  %v17101_v56 = vld [vmem:[#allocation16 + $0x5b4] ss:$24 sps:$4 sm:$0xff]  }
 0x868   :  { %13538 = vmatprep.subr.bf16.mxu1 %v17038_v61  ;;  %v17104_v61 = vld [vmem:[#allocation16 + $0xffc] ss:$24 sps:$4 sm:$0xff]  }
 0x86a   :  { %13730 = vmatpush1.bf16.msra.mxu0 %v17033_v10  ;;  %v17099_v10 = vld [vmem:[#allocation16 + $0x5b0] ss:$24 sps:$4 sm:$0xff]  }
 0x86b   :  { %13539 = vmatpush1.bf16.msra.mxu1 %v17036_v20  ;;  %13731 = vmatprep.subr.bf16.mxu0 %v17041_v62  ;;  %v17102_v20 = vld [vmem:[#allocation16 + $0xff8] ss:$24 sps:$4 sm:$0xff]   ;;  %v17107_v62 = vld [vmem:[#allocation16 + $0x5e4] ss:$24 sps:$4 sm:$0xff]  }
 0x86c   :  { %13540 = vmatprep.subr.bf16.mxu1 %v17044_v47  ;;  %v17110_v47 = vld [vmem:[#allocation16 + $0x102c] ss:$24 sps:$4 sm:$0xff]  }
 0x86e   :  { %13732 = vmatpush1.bf16.msra.mxu0 %v17039_v0  ;;  %v17105_v0 = vld [vmem:[#allocation16 + $0x5e0] ss:$24 sps:$4 sm:$0xff]  }
 0x86f   :  { %13541 = vmatpush1.bf16.msra.mxu1 %v17042_v14  ;;  %13733 = vmatprep.subr.bf16.mxu0 %v17047_v2  ;;  %v17108_v14 = vld [vmem:[#allocation16 + $0x1028] ss:$24 sps:$4 sm:$0xff]   ;;  %v17113_v2 = vld [vmem:[#allocation16 + $0x614] ss:$24 sps:$4 sm:$0xff]  }
 0x870   :  { %13542 = vmatprep.subr.bf16.mxu1 %v17050_v37  ;;  %v17116_v37 = vld [vmem:[#allocation16 + $0x105c] ss:$24 sps:$4 sm:$0xff]  }
 0x872   :  { %13734 = vmatpush1.bf16.msra.mxu0 %v17045_v3  ;;  %v17111_v3 = vld [vmem:[#allocation16 + $0x610] ss:$24 sps:$4 sm:$0xff]  }
 0x873   :  { %13543 = vmatpush1.bf16.msra.mxu1 %v17048_v9  ;;  %13735 = vmatprep.subr.bf16.mxu0 %v17053_v30  ;;  %v17114_v9 = vld [vmem:[#allocation16 + $0x1058] ss:$24 sps:$4 sm:$0xff]   ;;  %v17119_v30 = vld [vmem:[#allocation16 + $0x644] ss:$24 sps:$4 sm:$0xff]  }
 0x874   :  { %13544 = vmatprep.subr.bf16.mxu1 %v17056_v36  ;;  %v17122_v36 = vld [vmem:[#allocation16 + $0x108c] ss:$24 sps:$4 sm:$0xff]  }
 0x876   :  { %13736 = vmatpush1.bf16.msra.mxu0 %v17051_v5  ;;  %v17117_v5 = vld [vmem:[#allocation16 + $0x640] ss:$24 sps:$4 sm:$0xff]  }
 0x877   :  { %13545 = vmatpush1.bf16.msra.mxu1 %v17054_v6  ;;  %13737 = vmatprep.subr.bf16.mxu0 %v17059_v4  ;;  %v17120_v6 = vld [vmem:[#allocation16 + $0x1088] ss:$24 sps:$4 sm:$0xff]   ;;  %v17125_v4 = vld [vmem:[#allocation16 + $0x674] ss:$24 sps:$4 sm:$0xff]  }
 0x878   :  { %13546 = vmatprep.subr.bf16.mxu1 %v17062_v7  ;;  %v17128_v7 = vld [vmem:[#allocation16 + $0x10bc] ss:$24 sps:$4 sm:$0xff]  }
 0x87a   :  { %13738 = vmatpush1.bf16.msra.mxu0 %v17057_v46  ;;  %v17123_v46 = vld [vmem:[#allocation16 + $0x670] ss:$24 sps:$4 sm:$0xff]  }
 0x87b   :  { %13547 = vmatpush1.bf16.msra.mxu1 %v17060_v18  ;;  %13739 = vmatprep.subr.bf16.mxu0 %v17065_v11  ;;  %v17126_v18 = vld [vmem:[#allocation16 + $0x10b8] ss:$24 sps:$4 sm:$0xff]   ;;  %v17131_v11 = vld [vmem:[#allocation16 + $0x6a4] ss:$24 sps:$4 sm:$0xff]  }
 0x87c   :  { %13548 = vmatprep.subr.bf16.mxu1 %v17068_v53  ;;  %v17134_v53 = vld [vmem:[#allocation16 + $0x10ec] ss:$24 sps:$4 sm:$0xff]  }
 0x87e   :  { %13740 = vmatpush1.bf16.msra.mxu0 %v17063_v52  ;;  %v17137_v52 = vld [vmem:[#allocation16 + $0x6d4] ss:$24 sps:$4 sm:$0xff]  }
 0x87f   :  { %13549 = vmatpush1.bf16.msra.mxu1 %v17066_v22  ;;  %13741 = vmatprep.subr.bf16.mxu0 %v17071_v25  ;;  %v17140_v22 = vld [vmem:[#allocation16 + $0x111c] ss:$24 sps:$4 sm:$0xff]   ;;  %v17135_v25 = vld [vmem:[#allocation16 + $0x6d0] ss:$24 sps:$4 sm:$0xff]  }
 0x880   :  { %13559 = vmatprep.subr.bf16.mxu1 %v17074_v26  ;;  %v17138_v26 = vld [vmem:[#allocation16 + $0x1118] ss:$24 sps:$4 sm:$0xff]  }
 0x882   :  { %13551 = vmatmul.mubr.bf16.vlgmr.msra.gmra.mrb[28].mxu1 %v18281_v12  ;;  %13742 = vmatpush1.bf16.msra.mxu0 %v17069_v24  ;;  %v17143_v24 = vld [vmem:[#allocation16 + $0x704] ss:$24 sps:$4 sm:$0xff]  }
 0x883   :  { %13560 = vmatpush1.bf16.msra.mxu1 %v17072_v42  ;;  %13591 = vmatprep.mubr.bf16.mxu1 %v18297_v13  ;;  %v17146_v42 = vld [vmem:[#allocation16 + $0x114c] ss:$24 sps:$4 sm:$0xff]  }
 0x884   :  { %13743 = vmatprep.subr.bf16.mxu0 %v17077_v15  ;;  %13561 = vmatprep.subr.bf16.mxu1 %v17080_v35  ;;  %v17141_v15 = vld [vmem:[#allocation16 + $0x700] ss:$24 sps:$4 sm:$0xff]  }
 0x885   :  { %v17144_v35 = vld [vmem:[#allocation16 + $0x1148] ss:$24 sps:$4 sm:$0xff]  }
 0x886   :  { %13744 = vmatpush1.bf16.msra.mxu0 %v17075_v38  ;;  %v17149_v38 = vld [vmem:[#allocation16 + $0x734] ss:$24 sps:$4 sm:$0xff]  }
 0x887   :  { %13562 = vmatpush1.bf16.msra.mxu1 %v17078_v1  ;;  %13745 = vmatprep.subr.bf16.mxu0 %v17083_v17  ;;  %v17152_v1 = vld [vmem:[#allocation16 + $0x117c] ss:$24 sps:$4 sm:$0xff]   ;;  %v17147_v17 = vld [vmem:[#allocation16 + $0x730] ss:$24 sps:$4 sm:$0xff]  }
 0x888   :  { %13563 = vmatprep.subr.bf16.mxu1 %v17086_v39  ;;  %v17150_v39 = vld [vmem:[#allocation16 + $0x1178] ss:$24 sps:$4 sm:$0xff]  }
 0x88a   :  { %13746 = vmatpush1.bf16.msra.mxu0 %v17081_v19  ;;  %v17155_v19 = vld [vmem:[#allocation16 + $0x764] ss:$24 sps:$4 sm:$0xff]  }
 0x88b   :  { %13564 = vmatpush1.bf16.msra.mxu1 %v17084_v21  ;;  %13747 = vmatprep.subr.bf16.mxu0 %v17089_v43  ;;  %v17158_v21 = vld [vmem:[#allocation16 + $0x11ac] ss:$24 sps:$4 sm:$0xff]   ;;  %v17153_v43 = vld [vmem:[#allocation16 + $0x760] ss:$24 sps:$4 sm:$0xff]  }
 0x88c   :  { %13565 = vmatprep.subr.bf16.mxu1 %v17092_v44  ;;  %v17156_v44 = vld [vmem:[#allocation16 + $0x11a8] ss:$24 sps:$4 sm:$0xff]  }
 0x88e   :  { %13748 = vmatpush1.bf16.msra.mxu0 %v17087_v33  ;;  %v17161_v33 = vld [vmem:[#allocation16 + $0x794] ss:$24 sps:$4 sm:$0xff]  }
 0x88f   :  { %13566 = vmatpush1.bf16.msra.mxu1 %v17090_v50  ;;  %13749 = vmatprep.subr.bf16.mxu0 %v17095_v51  ;;  %v17164_v50 = vld [vmem:[#allocation16 + $0x11dc] ss:$24 sps:$4 sm:$0xff]   ;;  %v17159_v51 = vld [vmem:[#allocation16 + $0x790] ss:$24 sps:$4 sm:$0xff]  }
 0x890   :  { %13567 = vmatprep.subr.bf16.mxu1 %v17098_v55  ;;  %v17162_v55 = vld [vmem:[#allocation16 + $0x11d8] ss:$24 sps:$4 sm:$0xff]  }
 0x892   :  { %13750 = vmatpush1.bf16.msra.mxu0 %v17093_v8  ;;  %v17167_v8 = vld [vmem:[#allocation16 + $0x7c4] ss:$24 sps:$4 sm:$0xff]  }
 0x893   :  { %13568 = vmatpush1.bf16.msra.mxu1 %v17096_v57  ;;  %13751 = vmatprep.subr.bf16.mxu0 %v17101_v56  ;;  %v17170_v57 = vld [vmem:[#allocation16 + $0x120c] ss:$24 sps:$4 sm:$0xff]   ;;  %v17165_v56 = vld [vmem:[#allocation16 + $0x7c0] ss:$24 sps:$4 sm:$0xff]  }
 0x894   :  { %13569 = vmatprep.subr.bf16.mxu1 %v17104_v61  ;;  %v17168_v61 = vld [vmem:[#allocation16 + $0x1208] ss:$24 sps:$4 sm:$0xff]  }
 0x896   :  { %13752 = vmatpush1.bf16.msra.mxu0 %v17099_v10  ;;  %v17173_v10 = vld [vmem:[#allocation16 + $0x7f4] ss:$24 sps:$4 sm:$0xff]  }
 0x897   :  { %13570 = vmatpush1.bf16.msra.mxu1 %v17102_v20  ;;  %13753 = vmatprep.subr.bf16.mxu0 %v17107_v62  ;;  %v17176_v20 = vld [vmem:[#allocation16 + $0x123c] ss:$24 sps:$4 sm:$0xff]   ;;  %v17171_v62 = vld [vmem:[#allocation16 + $0x7f0] ss:$24 sps:$4 sm:$0xff]  }
 0x898   :  { %13571 = vmatprep.subr.bf16.mxu1 %v17110_v47  ;;  %v17174_v47 = vld [vmem:[#allocation16 + $0x1238] ss:$24 sps:$4 sm:$0xff]  }
 0x89a   :  { %13754 = vmatpush1.bf16.msra.mxu0 %v17105_v0  ;;  %v17179_v0 = vld [vmem:[#allocation16 + $0x824] ss:$24 sps:$4 sm:$0xff]  }
 0x89b   :  { %13572 = vmatpush1.bf16.msra.mxu1 %v17108_v14  ;;  %13764 = vmatprep.subr.bf16.mxu0 %v17113_v2  ;;  %v17182_v14 = vld [vmem:[#allocation16 + $0x126c] ss:$24 sps:$4 sm:$0xff]   ;;  %v17177_v2 = vld [vmem:[#allocation16 + $0x820] ss:$24 sps:$4 sm:$0xff]  }
 0x89c   :  { %13573 = vmatprep.subr.bf16.mxu1 %v17116_v37  ;;  %v17180_v37 = vld [vmem:[#allocation16 + $0x1268] ss:$24 sps:$4 sm:$0xff]  }
 0x89d   :  { %13756 = vmatmul.mubr.bf16.vlgmr.msra.gmra.mrb[24].mxu0 %v18233_v58  ;;  %v17129_v58 = vld [vmem:[#allocation16 + $0x6a0] ss:$24 sps:$4 sm:$0xff]  }
 0x89e   :  { %13765 = vmatpush1.bf16.msra.mxu0 %v17111_v3  ;;  %13796 = vmatprep.mubr.bf16.mxu0 %v18236_v63  ;;  %v17132_v63 = vld [vmem:[#allocation16 + $0x10e8] ss:$24 sps:$4 sm:$0xff]   ;;  %v17185_v3 = vld [vmem:[#allocation16 + $0x854] ss:$24 sps:$4 sm:$0xff]  }
 0x89f   :  { %13574 = vmatpush1.bf16.msra.mxu1 %v17114_v9  ;;  %13766 = vmatprep.subr.bf16.mxu0 %v17119_v30  ;;  %v17188_v9 = vld [vmem:[#allocation16 + $0x129c] ss:$24 sps:$4 sm:$0xff]   ;;  %v17183_v30 = vld [vmem:[#allocation16 + $0x850] ss:$24 sps:$4 sm:$0xff]  }
 0x8a0   :  { %13575 = vmatprep.subr.bf16.mxu1 %v17122_v36  ;;  %v17186_v36 = vld [vmem:[#allocation16 + $0x1298] ss:$24 sps:$4 sm:$0xff]  }
 0x8a2   :  { %13767 = vmatpush1.bf16.msra.mxu0 %v17117_v5  ;;  %v17191_v5 = vld [vmem:[#allocation16 + $0x884] ss:$24 sps:$4 sm:$0xff]  }
 0x8a3   :  { %13576 = vmatpush1.bf16.msra.mxu1 %v17120_v6  ;;  %13768 = vmatprep.subr.bf16.mxu0 %v17125_v4  ;;  %v17194_v6 = vld [vmem:[#allocation16 + $0x12cc] ss:$24 sps:$4 sm:$0xff]   ;;  %v17189_v4 = vld [vmem:[#allocation16 + $0x880] ss:$24 sps:$4 sm:$0xff]  }
 0x8a4   :  { %13577 = vmatprep.subr.bf16.mxu1 %v17128_v7  ;;  %v17192_v7 = vld [vmem:[#allocation16 + $0x12c8] ss:$24 sps:$4 sm:$0xff]  }
 0x8a6   :  { %13769 = vmatpush1.bf16.msra.mxu0 %v17123_v46  ;;  %v17197_v46 = vld [vmem:[#allocation16 + $0x8b4] ss:$24 sps:$4 sm:$0xff]  }
 0x8a7   :  { %13578 = vmatpush1.bf16.msra.mxu1 %v17126_v18  ;;  %13770 = vmatprep.subr.bf16.mxu0 %v17131_v11  ;;  %v17200_v18 = vld [vmem:[#allocation16 + $0x12fc] ss:$24 sps:$4 sm:$0xff]   ;;  %v17195_v11 = vld [vmem:[#allocation16 + $0x8b0] ss:$24 sps:$4 sm:$0xff]  }
 0x8a8   :  { %13579 = vmatprep.subr.bf16.mxu1 %v17134_v53  ;;  %v17198_v53 = vld [vmem:[#allocation16 + $0x12f8] ss:$24 sps:$4 sm:$0xff]  }
 0x8aa   :  { %13771 = vmatpush1.bf16.msra.mxu0 %v17129_v58  ;;  %v17203_v58 = vld [vmem:[#allocation16 + $0x8e4] ss:$24 sps:$4 sm:$0xff]  }
 0x8ab   :  { %13580 = vmatpush1.bf16.msra.mxu1 %v17132_v63  ;;  %13772 = vmatprep.subr.bf16.mxu0 %v17137_v52  ;;  %v17206_v63 = vld [vmem:[#allocation16 + $0x132c] ss:$24 sps:$4 sm:$0xff]   ;;  %v17201_v52 = vld [vmem:[#allocation16 + $0x8e0] ss:$24 sps:$4 sm:$0xff]  }
 0x8ac   :  { %13581 = vmatprep.subr.bf16.mxu1 %v17140_v22  ;;  %v17204_v22 = vld [vmem:[#allocation16 + $0x1328] ss:$24 sps:$4 sm:$0xff]  }
 0x8ae   :  { %13773 = vmatpush1.bf16.msra.mxu0 %v17135_v25  ;;  %v17209_v25 = vld [vmem:[#allocation16 + $0x914] ss:$24 sps:$4 sm:$0xff]  }
 0x8af   :  { %13582 = vmatpush1.bf16.msra.mxu1 %v17138_v26  ;;  %13774 = vmatprep.subr.bf16.mxu0 %v17143_v24  ;;  %v17212_v26 = vld [vmem:[#allocation16 + $0x135c] ss:$24 sps:$4 sm:$0xff]   ;;  %v17207_v24 = vld [vmem:[#allocation16 + $0x910] ss:$24 sps:$4 sm:$0xff]  }
 0x8b0   :  { %13583 = vmatprep.subr.bf16.mxu1 %v17146_v42  ;;  %v17210_v42 = vld [vmem:[#allocation16 + $0x1358] ss:$24 sps:$4 sm:$0xff]  }
 0x8b2   :  { %13775 = vmatpush1.bf16.msra.mxu0 %v17141_v15  ;;  %v17215_v15 = vld [vmem:[#allocation16 + $0x944] ss:$24 sps:$4 sm:$0xff]  }
 0x8b3   :  { %13584 = vmatpush1.bf16.msra.mxu1 %v17144_v35  ;;  %13776 = vmatprep.subr.bf16.mxu0 %v17149_v38  ;;  %v17218_v35 = vld [vmem:[#allocation16 + $0x138c] ss:$24 sps:$4 sm:$0xff]   ;;  %v17213_v38 = vld [vmem:[#allocation16 + $0x940] ss:$24 sps:$4 sm:$0xff]  }
 0x8b4   :  { %13585 = vmatprep.subr.bf16.mxu1 %v17152_v1  ;;  %v17216_v1 = vld [vmem:[#allocation16 + $0x1388] ss:$24 sps:$4 sm:$0xff]  }
 0x8b6   :  { %13777 = vmatpush1.bf16.msra.mxu0 %v17147_v17  ;;  %v17221_v17 = vld [vmem:[#allocation16 + $0x974] ss:$24 sps:$4 sm:$0xff]  }
 0x8b7   :  { %13586 = vmatpush1.bf16.msra.mxu1 %v17150_v39  ;;  %13778 = vmatprep.subr.bf16.mxu0 %v17155_v19  ;;  %v17224_v39 = vld [vmem:[#allocation16 + $0x13bc] ss:$24 sps:$4 sm:$0xff]   ;;  %v17219_v19 = vld [vmem:[#allocation16 + $0x970] ss:$24 sps:$4 sm:$0xff]  }
 0x8b8   :  { %13587 = vmatprep.subr.bf16.mxu1 %v17158_v21  ;;  %v17222_v21 = vld [vmem:[#allocation16 + $0x13b8] ss:$24 sps:$4 sm:$0xff]  }
 0x8ba   :  { %13779 = vmatpush1.bf16.msra.mxu0 %v17153_v43  ;;  %v17227_v43 = vld [vmem:[#allocation16 + $0x9a4] ss:$24 sps:$4 sm:$0xff]  }
 0x8bb   :  { %13588 = vmatpush1.bf16.msra.mxu1 %v17156_v44  ;;  %13780 = vmatprep.subr.bf16.mxu0 %v17161_v33  ;;  %v17230_v44 = vld [vmem:[#allocation16 + $0x13ec] ss:$24 sps:$4 sm:$0xff]  }
 0x8bc   :  { %13589 = vmatprep.subr.bf16.mxu1 %v17164_v50  ;;  %v17233_v33 = vld [vmem:[#allocation16 + $0x9d4] ss:$24 sps:$4 sm:$0xff]  }
 0x8bd   :  { %v17236_v50 = vld [vmem:[#allocation16 + $0x141c] ss:$24 sps:$4 sm:$0xff]  }
 0x8be   :  { %13781 = vmatpush1.bf16.msra.mxu0 %v17159_v51  ;;  %v17231_v51 = vld [vmem:[#allocation16 + $0x9d0] ss:$24 sps:$4 sm:$0xff]  }
 0x8bf   :  { %13590 = vmatpush1.bf16.msra.mxu1 %v17162_v55  ;;  %13782 = vmatprep.subr.bf16.mxu0 %v17167_v8  ;;  %v18345_v55 = vld [vmem:[#allocation18] sm:$0x3f]  ;;  %v17234_v8 = vld [vmem:[#allocation16 + $0x1418] ss:$24 sps:$4 sm:$0xff]  }
 0x8c0   :  { %13600 = vmatprep.subr.bf16.mxu1 %v17170_v57  ;;  %v17239_v57 = vld [vmem:[#allocation16 + $0xa04] ss:$24 sps:$4 sm:$0xff]  }
 0x8c2   :  { %13592 = vmatmul.mubr.bf16.vlgmr.msra.gmra.mrb[28].mxu1 %v18299_v28  ;;  %13783 = vmatpush1.bf16.msra.mxu0 %v17165_v56  ;;  %v17242_v56 = vld [vmem:[#allocation16 + $0x144c] ss:$24 sps:$4 sm:$0xff]  }
 0x8c3   :  { %13601 = vmatpush1.bf16.msra.mxu1 %v17168_v61  ;;  %13632 = vmatprep.mubr.bf16.mxu1 %v18302_v49  ;;  %v9159_v61 = vrot.slane %v18345_v55, %v18069_v29 }
 0x8c4   :  { %13784 = vmatprep.subr.bf16.mxu0 %v17173_v10  ;;  %13602 = vmatprep.subr.bf16.mxu1 %v17176_v20  ;;  %v17237_v10 = vld [vmem:[#allocation16 + $0xa00] ss:$24 sps:$4 sm:$0xff]   ;;  %v9163_v20 = vrot.slane %v18345_v55, %v18074_v31 }
 0x8c6   :  { %13785 = vmatpush1.bf16.msra.mxu0 %v17171_v62  ;;  %v17240_v62 = vld [vmem:[#allocation16 + $0x1448] ss:$24 sps:$4 sm:$0xff]  }
 0x8c7   :  { %13603 = vmatpush1.bf16.msra.mxu1 %v17174_v47  ;;  %13786 = vmatprep.subr.bf16.mxu0 %v17179_v0  ;;  %v17245_v47 = vld [vmem:[#allocation16 + $0xa34] ss:$24 sps:$4 sm:$0xff]  }
 0x8c8   :  { %13604 = vmatprep.subr.bf16.mxu1 %v17182_v14  ;;  %v17248_v14 = vld [vmem:[#allocation16 + $0x147c] ss:$24 sps:$4 sm:$0xff]  }
 0x8ca   :  { %13787 = vmatpush1.bf16.msra.mxu0 %v17177_v2 }
 0x8cb   :  { %13605 = vmatpush1.bf16.msra.mxu1 %v17180_v37  ;;  %13788 = vmatprep.subr.bf16.mxu0 %v17185_v3  ;;  %v17243_v3 = vld [vmem:[#allocation16 + $0xa30] ss:$24 sps:$4 sm:$0xff]  }
 0x8cc   :  { %13606 = vmatprep.subr.bf16.mxu1 %v17188_v9 }
 0x8ce   :  { %13789 = vmatpush1.bf16.msra.mxu0 %v17183_v30  ;;  %v17246_v30 = vld [vmem:[#allocation16 + $0x1478] ss:$24 sps:$4 sm:$0xff]  }
 0x8cf   :  { %13607 = vmatpush1.bf16.msra.mxu1 %v17186_v36  ;;  %13790 = vmatprep.subr.bf16.mxu0 %v17191_v5  ;;  %v17251_v36 = vld [vmem:[#allocation16 + $0xa64] ss:$24 sps:$4 sm:$0xff]  }
 0x8d0   :  { %13608 = vmatprep.subr.bf16.mxu1 %v17194_v6 }
 0x8d2   :  { %13791 = vmatpush1.bf16.msra.mxu0 %v17189_v4 }
 0x8d3   :  { %13609 = vmatpush1.bf16.msra.mxu1 %v17192_v7  ;;  %13792 = vmatprep.subr.bf16.mxu0 %v17197_v46 }
 0x8d4   :  { %13610 = vmatprep.subr.bf16.mxu1 %v17200_v18  ;;  %v17254_v18 = vld [vmem:[#allocation16 + $0x14ac] ss:$24 sps:$4 sm:$0xff]  }
 0x8d6   :  { %13793 = vmatpush1.bf16.msra.mxu0 %v17195_v11 }
 0x8d7   :  { %13611 = vmatpush1.bf16.msra.mxu1 %v17198_v53  ;;  %13794 = vmatprep.subr.bf16.mxu0 %v17203_v58  ;;  %v17249_v58 = vld [vmem:[#allocation16 + $0xa60] ss:$24 sps:$4 sm:$0xff]  }
 0x8d8   :  { %13612 = vmatprep.subr.bf16.mxu1 %v17206_v63 }
 0x8da   :  { %13795 = vmatpush1.bf16.msra.mxu0 %v17201_v52  ;;  %v17252_v52 = vld [vmem:[#allocation16 + $0x14a8] ss:$24 sps:$4 sm:$0xff]  }
 0x8db   :  { %13613 = vmatpush1.bf16.msra.mxu1 %v17204_v22  ;;  %13805 = vmatprep.subr.bf16.mxu0 %v17209_v25  ;;  %v17257_v22 = vld [vmem:[#allocation16 + $0xa94] ss:$24 sps:$4 sm:$0xff]  }
 0x8dc   :  { %13614 = vmatprep.subr.bf16.mxu1 %v17212_v26  ;;  %v17260_v26 = vld [vmem:[#allocation16 + $0x14dc] ss:$24 sps:$4 sm:$0xff]  }
 0x8dd   :  { %13797 = vmatmul.mubr.bf16.vlgmr.msra.gmra.mrb[24].mxu0 %v18246_v34  ;;  %v17225_v34 = vld [vmem:[#allocation16 + $0x9a0] ss:$24 sps:$4 sm:$0xff]  }
 0x8de   :  { %13806 = vmatpush1.bf16.msra.mxu0 %v17207_v24  ;;  %13837 = vmatprep.mubr.bf16.mxu0 %v18259_v54  ;;  %v17228_v54 = vld [vmem:[#allocation16 + $0x13e8] ss:$24 sps:$4 sm:$0xff]  }
 0x8df   :  { %13615 = vmatpush1.bf16.msra.mxu1 %v17210_v42  ;;  %13807 = vmatprep.subr.bf16.mxu0 %v17215_v15  ;;  %v17255_v24 = vld [vmem:[#allocation16 + $0xa90] ss:$24 sps:$4 sm:$0xff]   ;;  %v17263_v15 = vld [vmem:[#allocation16 + $0xac4] ss:$24 sps:$4 sm:$0xff]  }
 0x8e0   :  { %13616 = vmatprep.subr.bf16.mxu1 %v17218_v35  ;;  %v17258_v42 = vld [vmem:[#allocation16 + $0x14d8] ss:$24 sps:$4 sm:$0xff]   ;;  %v17266_v35 = vld [vmem:[#allocation16 + $0x150c] ss:$24 sps:$4 sm:$0xff]  }
 0x8e2   :  { %13808 = vmatpush1.bf16.msra.mxu0 %v17213_v38  ;;  %v17261_v38 = vld [vmem:[#allocation16 + $0xac0] ss:$24 sps:$4 sm:$0xff]  }
 0x8e3   :  { %13617 = vmatpush1.bf16.msra.mxu1 %v17216_v1  ;;  %13809 = vmatprep.subr.bf16.mxu0 %v17221_v17  ;;  %v17264_v17 = vld [vmem:[#allocation16 + $0x1508] ss:$24 sps:$4 sm:$0xff]  }
 0x8e4   :  { %13618 = vmatprep.subr.bf16.mxu1 %v17224_v39 }
 0x8e6   :  { %13810 = vmatpush1.bf16.msra.mxu0 %v17219_v19 }
 0x8e7   :  { %13619 = vmatpush1.bf16.msra.mxu1 %v17222_v21  ;;  %13811 = vmatprep.subr.bf16.mxu0 %v17227_v43  ;;  %v17269_v21 = vld [vmem:[#allocation16 + $0xaf4] ss:$24 sps:$4 sm:$0xff]  }
 0x8e8   :  { %13620 = vmatprep.subr.bf16.mxu1 %v17230_v44  ;;  %v17272_v43 = vld [vmem:[#allocation16 + $0x153c] ss:$24 sps:$4 sm:$0xff]  }
 0x8ea   :  { %13812 = vmatpush1.bf16.msra.mxu0 %v17225_v34  ;;  %v17267_v34 = vld [vmem:[#allocation16 + $0xaf0] ss:$24 sps:$4 sm:$0xff]  }
 0x8eb   :  { %13621 = vmatpush1.bf16.msra.mxu1 %v17228_v54  ;;  %13813 = vmatprep.subr.bf16.mxu0 %v17233_v33  ;;  %v17270_v33 = vld [vmem:[#allocation16 + $0x1538] ss:$24 sps:$4 sm:$0xff]  }
 0x8ec   :  { %13622 = vmatprep.subr.bf16.mxu1 %v17236_v50  ;;  %v17275_v50 = vld [vmem:[#allocation16 + $0xb24] ss:$24 sps:$4 sm:$0xff]  }
 0x8ee   :  { %13814 = vmatpush1.bf16.msra.mxu0 %v17231_v51 }
 0x8ef   :  { %13623 = vmatpush1.bf16.msra.mxu1 %v17234_v8  ;;  %13815 = vmatprep.subr.bf16.mxu0 %v17239_v57  ;;  %v17278_v57 = vld [vmem:[#allocation16 + $0x156c] ss:$24 sps:$4 sm:$0xff]  }
 0x8f0   :  { %v13347_v0 = vpop.f32.mrb[20].mxu0  ;;  %13624 = vmatprep.subr.bf16.mxu1 %v17242_v56 }
 0x8f1   :  { %v18351_v2 = vadd.f32 %v13347_v0, %v9159_v61  ;;  %v13349_v37 = vpop.f32.mrb[21].mxu0  ;;  %v17273_v61 = vld [vmem:[#allocation16 + $0xb20] ss:$24 sps:$4 sm:$0xff]  }
 0x8f2   :  { %v18353_v9 = vadd.f32 %v13349_v37, %v9163_v20  ;;  %13816 = vmatpush1.bf16.msra.mxu0 %v17237_v10  ;;  %v13351_v29 = vpop.f32.mrb[22].mxu0  ;;  %v17276_v10 = vld [vmem:[#allocation16 + $0x1568] ss:$24 sps:$4 sm:$0xff]   ;;  %v17281_v20 = vld [vmem:[#allocation16 + $0xb54] ss:$24 sps:$4 sm:$0xff]  }
 0x8f3   :  { %v15993_v5 = vmul.f32 -1.442695, %v18351_v2  ;;  %v14070_v31 = vand.u32 2147483647, %v18351_v2  ;;  %13625 = vmatpush1.bf16.msra.mxu1 %v17240_v62  ;;  %v13352_v6 = vpop.f32.mrb[23].mxu0  ;;  %13817 = vmatprep.subr.bf16.mxu0 %v17245_v47 }
 0x8f4   :  { %v15994_v4 = vmul.f32 -1.442695, %v18353_v9  ;;  %v14071_v7 = vand.u32 2147483647, %v18353_v9  ;;  %v14124_v46 = vcombine.low %v18351_v2, %v18353_v9  ;;  %13626 = vmatprep.subr.bf16.mxu1 %v17248_v14  ;;  %v17284_v62 = vld [vmem:[#allocation16 + $0x159c] ss:$24 sps:$4 sm:$0xff]  }
 0x8f5   :  { %17522 = vpow2.f32 %v15993_v5  ;;  %v14076_v11 = vsub.f32 0.0, %v14070_v31  ;;  %v17279_v47 = vld [vmem:[#allocation16 + $0xb50] ss:$24 sps:$4 sm:$0xff]   ;;  %v17287_v14 = vld [vmem:[#allocation16 + $0xb84] ss:$24 sps:$4 sm:$0xff]  }
 0x8f6   :  { %17524 = vpow2.f32 %v15994_v4  ;;  %v14077_v53 = vsub.f32 0.0, %v14071_v7  ;;  %13818 = vmatpush1.bf16.msra.mxu0 %v17243_v3  ;;  %v17282_v0 = vld [vmem:[#allocation16 + $0x1598] ss:$24 sps:$4 sm:$0xff]   ;;  %v17290_v3 = vld [vmem:[#allocation16 + $0x15cc] ss:$24 sps:$4 sm:$0xff]  }
 0x8f7   :  { %v14082_v63 = vmul.f32 1.442695, %v14076_v11  ;;  %13627 = vmatpush1.bf16.msra.mxu1 %v17246_v30  ;;  %13819 = vmatprep.subr.bf16.mxu0 %v17251_v36  ;;  %v17285_v36 = vld [vmem:[#allocation16 + $0xb80] ss:$24 sps:$4 sm:$0xff]   ;;  %v17293_v31 = vld [vmem:[#allocation16 + $0xbb4] ss:$24 sps:$4 sm:$0xff]  }
 0x8f8   :  { %v14084_v25 = vmul.f32 1.442695, %v14077_v53  ;;  %13628 = vmatprep.subr.bf16.mxu1 %v17254_v18  ;;  %v17288_v5 = vld [vmem:[#allocation16 + $0x15c8] ss:$24 sps:$4 sm:$0xff]   ;;  %v17296_v4 = vld [vmem:[#allocation16 + $0x15fc] ss:$24 sps:$4 sm:$0xff]  }
 0x8f9   :  { %17526 = vpow2.f32 %v14082_v63  ;;  %v14064_v18 = vmax.f32 %v18351_v2, 0.0  ;;  %v14065_v53 = vmax.f32 %v18353_v9, 0.0  ;;  %v17291_v63 = vld [vmem:[#allocation16 + $0xbb0] ss:$24 sps:$4 sm:$0xff]   ;;  %v17314_v2 = vld [vmem:[#allocation16 + $0x168c] ss:$24 sps:$4 sm:$0xff]  }
 0x8fa   :  { %17528 = vpow2.f32 %v14084_v25  ;;  %13820 = vmatpush1.bf16.msra.mxu0 %v17249_v58  ;;  %v17294_v25 = vld [vmem:[#allocation16 + $0x15f8] ss:$24 sps:$4 sm:$0xff]  }
 0x8fb   :  { %13629 = vmatpush1.bf16.msra.mxu1 %v17252_v52  ;;  %13821 = vmatprep.subr.bf16.mxu0 %v17257_v22  ;;  %v14061_v22 = vld [vmem:[%s18421_s2] sm:$0xff]  ;;  %v17309_v9 = vld [vmem:[#allocation16 + $0xc40] ss:$24 sps:$4 sm:$0xff]  }
 0x8fc   :  { %13630 = vmatprep.subr.bf16.mxu1 %v17260_v26  ;;  %v17299_v26 = vld [vmem:[#allocation16 + $0xbe4] ss:$24 sps:$4 sm:$0xff]  }
 0x8fe   :  { %13822 = vmatpush1.bf16.msra.mxu0 %v17255_v24 }
 0x8ff   :  { %v17523_v1 = vpop.eup %17522  ;;  %13631 = vmatpush1.bf16.msra.mxu1 %v17258_v42  ;;  %13823 = vmatprep.subr.bf16.mxu0 %v17263_v15  ;;  %v17302_v42 = vld [vmem:[#allocation16 + $0x162c] ss:$24 sps:$4 sm:$0xff]   ;;  %v14130_v15 = vmul.f32 %v14124_v46, %v14061_v22  ;;  %v17312_v46 = vld [vmem:[#allocation16 + $0x1688] ss:$24 sps:$4 sm:$0xff]  }
 0x900   :  { %v17525_v39 = vpop.eup %17524  ;;  %v14028_v19 = vadd.f32 1.0, %v17523_v1  ;;  %13641 = vmatprep.subr.bf16.mxu1 %v17266_v35  ;;  %v17300_v1 = vld [vmem:[#allocation16 + $0x1628] ss:$24 sps:$4 sm:$0xff]  }
 0x901   :  { %v14029_v44 = vadd.f32 1.0, %v17525_v39  ;;  %v17308_v39 = vld [vmem:[#allocation16 + $0x165c] ss:$24 sps:$4 sm:$0xff]   ;;  %v17363_v22 = vld [vmem:[#allocation16 + $0xe20] ss:$24 sps:$4 sm:$0xff]  }
 0x902   :  { %17530 = vrcp.f32 %v14028_v19  ;;  %13633 = vmatmul.mubr.bf16.vlgmr.msra.gmra.mrb[28].mxu1 %v18313_v60  ;;  %13824 = vmatpush1.bf16.msra.mxu0 %v17261_v38  ;;  %v17297_v38 = vld [vmem:[#allocation16 + $0xbe0] ss:$24 sps:$4 sm:$0xff]  }
 0x903   :  { %v17527_v54 = vpop.eup %17526  ;;  %17532 = vrcp.f32 %v14029_v44  ;;  %13642 = vmatpush1.bf16.msra.mxu1 %v17264_v17  ;;  %13673 = vmatprep.mubr.bf16.mxu1 %v18326_v16  ;;  %v17305_v17 = vld [vmem:[#allocation16 + $0xc14] ss:$24 sps:$4 sm:$0xff]   ;;  %v17311_v44 = vld [vmem:[#allocation16 + $0xc44] ss:$24 sps:$4 sm:$0xff]  }
 0x904   :  { %v17529_v51 = vpop.eup %17528  ;;  %v14094_v8 = vadd.f32 1.0, %v17527_v54  ;;  %13825 = vmatprep.subr.bf16.mxu0 %v17269_v21  ;;  %13643 = vmatprep.subr.bf16.mxu1 %v17272_v43  ;;  %v17303_v21 = vld [vmem:[#allocation16 + $0xc10] ss:$24 sps:$4 sm:$0xff]   ;;  %v17320_v54 = vld [vmem:[#allocation16 + $0x16bc] ss:$24 sps:$4 sm:$0xff]  }
 0x905   :  { %v14095_v56 = vadd.f32 1.0, %v17529_v51  ;;  %v17306_v43 = vld [vmem:[#allocation16 + $0x1658] ss:$24 sps:$4 sm:$0xff]   ;;  %v17323_v51 = vld [vmem:[#allocation16 + $0xca4] ss:$24 sps:$4 sm:$0xff]  }
 0x906   :  { %17534 = vlog2.f32 %v14094_v8  ;;  %13826 = vmatpush1.bf16.msra.mxu0 %v17267_v34  ;;  %v17317_v34 = vld [vmem:[#allocation16 + $0xc74] ss:$24 sps:$4 sm:$0xff]  }
 0x907   :  { %17536 = vlog2.f32 %v14095_v56  ;;  %13644 = vmatpush1.bf16.msra.mxu1 %v17270_v33  ;;  %13827 = vmatprep.subr.bf16.mxu0 %v17275_v50  ;;  %v17315_v33 = vld [vmem:[#allocation16 + $0xc70] ss:$24 sps:$4 sm:$0xff]   ;;  %v17326_v8 = vld [vmem:[#allocation16 + $0x16ec] ss:$24 sps:$4 sm:$0xff]   ;;  %v17332_v56 = vld [vmem:[#allocation16 + $0x171c] ss:$24 sps:$4 sm:$0xff]  }
 0x908   :  { %13645 = vmatprep.subr.bf16.mxu1 %v17278_v57  ;;  %v17318_v50 = vld [vmem:[#allocation16 + $0x16b8] ss:$24 sps:$4 sm:$0xff]   ;;  %v17329_v57 = vld [vmem:[#allocation16 + $0xcd4] ss:$24 sps:$4 sm:$0xff]  }
 0x90a   :  { %13828 = vmatpush1.bf16.msra.mxu0 %v17273_v61  ;;  %v17327_v61 = vld [vmem:[#allocation16 + $0xcd0] ss:$24 sps:$4 sm:$0xff]  }
 0x90b   :  { %13646 = vmatpush1.bf16.msra.mxu1 %v17276_v10  ;;  %13829 = vmatprep.subr.bf16.mxu0 %v17281_v20  ;;  %v17330_v10 = vld [vmem:[#allocation16 + $0x1718] ss:$24 sps:$4 sm:$0xff]   ;;  %v17335_v20 = vld [vmem:[#allocation16 + $0xd04] ss:$24 sps:$4 sm:$0xff]  }
 0x90c   :  { %v17531_v37 = vpop.eup %17530  ;;  %13647 = vmatprep.subr.bf16.mxu1 %v17284_v62  ;;  %v17338_v62 = vld [vmem:[#allocation16 + $0x174c] ss:$24 sps:$4 sm:$0xff]  }
 0x90d   :  { %v17533_v29 = vpop.eup %17532 }
 0x90e   :  { %v14052_v30 = vcombine.low %v17531_v37, %v17533_v29  ;;  %13830 = vmatpush1.bf16.msra.mxu0 %v17279_v47  ;;  %v17333_v47 = vld [vmem:[#allocation16 + $0xd00] ss:$24 sps:$4 sm:$0xff]   ;;  %v17344_v37 = vld [vmem:[#allocation16 + $0x177c] ss:$24 sps:$4 sm:$0xff]  }
 0x90f   :  { %13648 = vmatpush1.bf16.msra.mxu1 %v17282_v0  ;;  %13831 = vmatprep.subr.bf16.mxu0 %v17287_v14  ;;  %v17336_v0 = vld [vmem:[#allocation16 + $0x1748] ss:$24 sps:$4 sm:$0xff]   ;;  %v17341_v14 = vld [vmem:[#allocation16 + $0xd34] ss:$24 sps:$4 sm:$0xff]   ;;  %v17342_v29 = vld [vmem:[#allocation16 + $0x1778] ss:$24 sps:$4 sm:$0xff]  }
 0x910   :  { %v17535_v6 = vpop.eup %17534  ;;  %14058 = vst [vmem:[%s18431_s12] sm:$0xff] %v14052_v30  ;;  %13649 = vmatprep.subr.bf16.mxu1 %v17290_v3  ;;  %v17339_v3 = vld [vmem:[#allocation16 + $0xd30] ss:$24 sps:$4 sm:$0xff]   ;;  %v17347_v30 = vld [vmem:[#allocation16 + $0xd64] ss:$24 sps:$4 sm:$0xff]  }
 0x911   :  { %v17537_v7 = vpop.eup %17536  ;;  %v14101_v11 = vmul.f32 0.6931472, %v17535_v6  ;;  %v17353_v6 = vld [vmem:[#allocation16 + $0xd94] ss:$24 sps:$4 sm:$0xff]  }
 0x912   :  { %v14103_v58 = vmul.f32 0.6931472, %v17537_v7  ;;  %13832 = vmatpush1.bf16.msra.mxu0 %v17285_v36  ;;  %v17350_v36 = vld [vmem:[#allocation16 + $0x17ac] ss:$24 sps:$4 sm:$0xff]   ;;  %v17351_v7 = vld [vmem:[#allocation16 + $0xd90] ss:$24 sps:$4 sm:$0xff]  }
 0x913   :  { %v14112_v52 = vadd.f32 %v14101_v11, %v14064_v18  ;;  %13650 = vmatpush1.bf16.msra.mxu1 %v17288_v5  ;;  %13833 = vmatprep.subr.bf16.mxu0 %v17293_v31  ;;  %v17345_v5 = vld [vmem:[#allocation16 + $0xd60] ss:$24 sps:$4 sm:$0xff]   ;;  %v17359_v11 = vld [vmem:[#allocation16 + $0xdc4] ss:$24 sps:$4 sm:$0xff]  }
 0x914   :  { %v14113_v24 = vadd.f32 %v14103_v58, %v14065_v53  ;;  %13651 = vmatprep.subr.bf16.mxu1 %v17296_v4  ;;  %v17348_v31 = vld [vmem:[#allocation16 + $0x17a8] ss:$24 sps:$4 sm:$0xff]   ;;  %v17356_v4 = vld [vmem:[#allocation16 + $0x17dc] ss:$24 sps:$4 sm:$0xff]   ;;  %v17354_v18 = vld [vmem:[#allocation16 + $0x17d8] ss:$24 sps:$4 sm:$0xff]  }
 0x915   :  { %v17357_v53 = vld [vmem:[#allocation16 + $0xdc0] ss:$24 sps:$4 sm:$0xff]   ;;  %v17362_v58 = vld [vmem:[#allocation16 + $0xdf4] ss:$24 sps:$4 sm:$0xff]  }
 0x916   :  { %v14139_v35 = vcombine.low %v14112_v52, %v14113_v24  ;;  %13834 = vmatpush1.bf16.msra.mxu0 %v17291_v63  ;;  %v17360_v63 = vld [vmem:[#allocation16 + $0xdf0] ss:$24 sps:$4 sm:$0xff]   ;;  %v17365_v52 = vld [vmem:[#allocation16 + $0xe24] ss:$24 sps:$4 sm:$0xff]  }
 0x917   :  { %13652 = vmatpush1.bf16.msra.mxu1 %v17294_v25  ;;  %13835 = vmatprep.subr.bf16.mxu0 %v17299_v26  ;;  %v17368_v25 = vld [vmem:[#allocation16 + $0xe54] ss:$24 sps:$4 sm:$0xff]   ;;  %v17366_v26 = vld [vmem:[#allocation16 + $0xe50] ss:$24 sps:$4 sm:$0xff]   ;;  %v17371_v24 = vld [vmem:[#allocation16 + $0xe84] ss:$24 sps:$4 sm:$0xff]  }
 0x918   :  { %13653 = vmatprep.subr.bf16.mxu1 %v17302_v42  ;;  %v18374_v19 = vsub.f32 %v14130_v15, %v14139_v35  ;;  %v17369_v42 = vld [vmem:[#allocation16 + $0xe80] ss:$24 sps:$4 sm:$0xff]   ;;  %v17374_v15 = vld [vmem:[#allocation16 + $0xeb4] ss:$24 sps:$4 sm:$0xff]   ;;  %v17372_v35 = vld [vmem:[#allocation16 + $0xeb0] ss:$24 sps:$4 sm:$0xff]  }
 0x91a   :  { %13836 = vmatpush1.bf16.msra.mxu0 %v17297_v38  ;;  %v17377_v38 = vld [vmem:[#allocation16 + $0xee4] ss:$24 sps:$4 sm:$0xff]  }
 0x91b   :  { %13654 = vmatpush1.bf16.msra.mxu1 %v17300_v1  ;;  %13846 = vmatprep.subr.bf16.mxu0 %v17305_v17  ;;  %v17375_v1 = vld [vmem:[#allocation16 + $0xee0] ss:$24 sps:$4 sm:$0xff]   ;;  %v17380_v17 = vld [vmem:[#allocation16 + $0xf14] ss:$24 sps:$4 sm:$0xff]  }
 0x91c   :  { %13655 = vmatprep.subr.bf16.mxu1 %v17308_v39  ;;  %v17378_v39 = vld [vmem:[#allocation16 + $0xf10] ss:$24 sps:$4 sm:$0xff]  }
 0x91d   :  { %13838 = vmatmul.mubr.bf16.vlgmr.msra.gmra.mrb[24].mxu0 %v18270_v40  ;;  %v17321_v40 = vld [vmem:[#allocation16 + $0xca0] ss:$24 sps:$4 sm:$0xff]  }
 0x91e   :  { %13847 = vmatpush1.bf16.msra.mxu0 %v17303_v21  ;;  %13878 = vmatprep.mubr.bf16.mxu0 %v18273_v48  ;;  %v17324_v48 = vld [vmem:[#allocation16 + $0x16e8] ss:$24 sps:$4 sm:$0xff]   ;;  %v17383_v21 = vld [vmem:[#allocation16 + $0xf44] ss:$24 sps:$4 sm:$0xff]  }
 0x91f   :  { %13656 = vmatpush1.bf16.msra.mxu1 %v17306_v43  ;;  %13848 = vmatprep.subr.bf16.mxu0 %v17311_v44  ;;  %v17381_v43 = vld [vmem:[#allocation16 + $0xf40] ss:$24 sps:$4 sm:$0xff]   ;;  %v17386_v44 = vld [vmem:[#allocation16 + $0xf74] ss:$24 sps:$4 sm:$0xff]  }
 0x920   :  { %13657 = vmatprep.subr.bf16.mxu1 %v17314_v2  ;;  %v17384_v2 = vld [vmem:[#allocation16 + $0xf70] ss:$24 sps:$4 sm:$0xff]  }
 0x922   :  { %13849 = vmatpush1.bf16.msra.mxu0 %v17309_v9  ;;  %v17389_v9 = vld [vmem:[#allocation16 + $0xfa4] ss:$24 sps:$4 sm:$0xff]  }
 0x923   :  { %13658 = vmatpush1.bf16.msra.mxu1 %v17312_v46  ;;  %13850 = vmatprep.subr.bf16.mxu0 %v17317_v34  ;;  %v17387_v46 = vld [vmem:[#allocation16 + $0xfa0] ss:$24 sps:$4 sm:$0xff]   ;;  %v17392_v34 = vld [vmem:[#allocation16 + $0xfd4] ss:$24 sps:$4 sm:$0xff]  }
 0x924   :  { %13659 = vmatprep.subr.bf16.mxu1 %v17320_v54  ;;  %v17390_v54 = vld [vmem:[#allocation16 + $0xfd0] ss:$24 sps:$4 sm:$0xff]  }
 0x926   :  { %13851 = vmatpush1.bf16.msra.mxu0 %v17315_v33  ;;  %v17395_v33 = vld [vmem:[#allocation16 + $0x1004] ss:$24 sps:$4 sm:$0xff]  }
 0x927   :  { %13660 = vmatpush1.bf16.msra.mxu1 %v17318_v50  ;;  %13852 = vmatprep.subr.bf16.mxu0 %v17323_v51  ;;  %v17398_v50 = vld [vmem:[#allocation16 + $0x1034] ss:$24 sps:$4 sm:$0xff]   ;;  %v17401_v51 = vld [vmem:[#allocation16 + $0x1064] ss:$24 sps:$4 sm:$0xff]  }
 0x928   :  { %13661 = vmatprep.subr.bf16.mxu1 %v17326_v8  ;;  %v17399_v8 = vld [vmem:[#allocation16 + $0x1060] ss:$24 sps:$4 sm:$0xff]  }
 0x92a   :  { %13853 = vmatpush1.bf16.msra.mxu0 %v17321_v40  ;;  %v17404_v40 = vld [vmem:[#allocation16 + $0x1094] ss:$24 sps:$4 sm:$0xff]  }
 0x92b   :  { %13662 = vmatpush1.bf16.msra.mxu1 %v17324_v48  ;;  %13854 = vmatprep.subr.bf16.mxu0 %v17329_v57  ;;  %v17402_v48 = vld [vmem:[#allocation16 + $0x1090] ss:$24 sps:$4 sm:$0xff]   ;;  %v17407_v57 = vld [vmem:[#allocation16 + $0x10c4] ss:$24 sps:$4 sm:$0xff]  }
 0x92c   :  { %13663 = vmatprep.subr.bf16.mxu1 %v17332_v56  ;;  %v17405_v56 = vld [vmem:[#allocation16 + $0x10c0] ss:$24 sps:$4 sm:$0xff]  }
 0x92e   :  { %13855 = vmatpush1.bf16.msra.mxu0 %v17327_v61  ;;  %v17410_v61 = vld [vmem:[#allocation16 + $0x10f4] ss:$24 sps:$4 sm:$0xff]  }
 0x92f   :  { %13664 = vmatpush1.bf16.msra.mxu1 %v17330_v10  ;;  %13856 = vmatprep.subr.bf16.mxu0 %v17335_v20  ;;  %v17408_v10 = vld [vmem:[#allocation16 + $0x10f0] ss:$24 sps:$4 sm:$0xff]   ;;  %v17413_v20 = vld [vmem:[#allocation16 + $0x1124] ss:$24 sps:$4 sm:$0xff]  }
 0x930   :  { %13665 = vmatprep.subr.bf16.mxu1 %v17338_v62  ;;  %v17411_v62 = vld [vmem:[#allocation16 + $0x1120] ss:$24 sps:$4 sm:$0xff]  }
 0x932   :  { %13857 = vmatpush1.bf16.msra.mxu0 %v17333_v47  ;;  %v17416_v47 = vld [vmem:[#allocation16 + $0x1154] ss:$24 sps:$4 sm:$0xff]  }
 0x933   :  { %13666 = vmatpush1.bf16.msra.mxu1 %v17336_v0  ;;  %13858 = vmatprep.subr.bf16.mxu0 %v17341_v14  ;;  %v17414_v0 = vld [vmem:[#allocation16 + $0x1150] ss:$24 sps:$4 sm:$0xff]   ;;  %v17419_v14 = vld [vmem:[#allocation16 + $0x1184] ss:$24 sps:$4 sm:$0xff]  }
 0x934   :  { %13667 = vmatprep.subr.bf16.mxu1 %v17344_v37  ;;  %v17417_v37 = vld [vmem:[#allocation16 + $0x1180] ss:$24 sps:$4 sm:$0xff]  }
 0x936   :  { %13859 = vmatpush1.bf16.msra.mxu0 %v17339_v3  ;;  %v17422_v3 = vld [vmem:[#allocation16 + $0x11b4] ss:$24 sps:$4 sm:$0xff]  }
 0x937   :  { %13668 = vmatpush1.bf16.msra.mxu1 %v17342_v29  ;;  %13860 = vmatprep.subr.bf16.mxu0 %v17347_v30  ;;  %v17420_v29 = vld [vmem:[#allocation16 + $0x11b0] ss:$24 sps:$4 sm:$0xff]   ;;  %v17425_v30 = vld [vmem:[#allocation16 + $0x11e4] ss:$24 sps:$4 sm:$0xff]  }
 0x938   :  { %13669 = vmatprep.subr.bf16.mxu1 %v17350_v36  ;;  %v17423_v36 = vld [vmem:[#allocation16 + $0x11e0] ss:$24 sps:$4 sm:$0xff]  }
 0x93a   :  { %13861 = vmatpush1.bf16.msra.mxu0 %v17345_v5  ;;  %v17428_v5 = vld [vmem:[#allocation16 + $0x1214] ss:$24 sps:$4 sm:$0xff]  }
 0x93b   :  { %13670 = vmatpush1.bf16.msra.mxu1 %v17348_v31  ;;  %13862 = vmatprep.subr.bf16.mxu0 %v17353_v6  ;;  %v17426_v31 = vld [vmem:[#allocation16 + $0x1210] ss:$24 sps:$4 sm:$0xff]   ;;  %v17431_v6 = vld [vmem:[#allocation16 + $0x1244] ss:$24 sps:$4 sm:$0xff]  }
 0x93c   :  { %13671 = vmatprep.subr.bf16.mxu1 %v17356_v4  ;;  %v17429_v4 = vld [vmem:[#allocation16 + $0x1240] ss:$24 sps:$4 sm:$0xff]  }
 0x93e   :  { %13863 = vmatpush1.bf16.msra.mxu0 %v17351_v7  ;;  %v17434_v7 = vld [vmem:[#allocation16 + $0x1274] ss:$24 sps:$4 sm:$0xff]  }
 0x93f   :  { %13672 = vmatpush1.bf16.msra.mxu1 %v17354_v18  ;;  %13864 = vmatprep.subr.bf16.mxu0 %v17359_v11  ;;  %v17432_v18 = vld [vmem:[#allocation16 + $0x1270] ss:$24 sps:$4 sm:$0xff]   ;;  %v17437_v11 = vld [vmem:[#allocation16 + $0x12a4] ss:$24 sps:$4 sm:$0xff]  }
 0x942   :  { %13674 = vmatmul.mubr.bf16.vlgmr.msra.gmra.mrb[28].mxu1 %v18328_v59  ;;  %13865 = vmatpush1.bf16.msra.mxu0 %v17357_v53  ;;  %v17435_v53 = vld [vmem:[#allocation16 + $0x12a0] ss:$24 sps:$4 sm:$0xff]  }
 0x943   :  { %13866 = vmatprep.subr.bf16.mxu0 %v17362_v58  ;;  %v17440_v58 = vld [vmem:[#allocation16 + $0x12d4] ss:$24 sps:$4 sm:$0xff]  }
 0x946   :  { %13867 = vmatpush1.bf16.msra.mxu0 %v17360_v63  ;;  %v17438_v63 = vld [vmem:[#allocation16 + $0x12d0] ss:$24 sps:$4 sm:$0xff]  }
 0x947   :  { %13868 = vmatprep.subr.bf16.mxu0 %v17365_v52  ;;  %v17443_v52 = vld [vmem:[#allocation16 + $0x1304] ss:$24 sps:$4 sm:$0xff]  }
 0x94a   :  { %13869 = vmatpush1.bf16.msra.mxu0 %v17363_v22  ;;  %v17446_v22 = vld [vmem:[#allocation16 + $0x1334] ss:$24 sps:$4 sm:$0xff]  }
 0x94b   :  { %13870 = vmatprep.subr.bf16.mxu0 %v17368_v25  ;;  %v17449_v25 = vld [vmem:[#allocation16 + $0x1364] ss:$24 sps:$4 sm:$0xff]  }
 0x94e   :  { %13871 = vmatpush1.bf16.msra.mxu0 %v17366_v26  ;;  %v17447_v26 = vld [vmem:[#allocation16 + $0x1360] ss:$24 sps:$4 sm:$0xff]  }
 0x94f   :  { %13872 = vmatprep.subr.bf16.mxu0 %v17371_v24  ;;  %v17452_v24 = vld [vmem:[#allocation16 + $0x1394] ss:$24 sps:$4 sm:$0xff]  }
 0x952   :  { %13873 = vmatpush1.bf16.msra.mxu0 %v17369_v42  ;;  %v17450_v42 = vld [vmem:[#allocation16 + $0x1390] ss:$24 sps:$4 sm:$0xff]  }
 0x953   :  { %13874 = vmatprep.subr.bf16.mxu0 %v17374_v15  ;;  %v17455_v15 = vld [vmem:[#allocation16 + $0x13c4] ss:$24 sps:$4 sm:$0xff]  }
 0x956   :  { %13875 = vmatpush1.bf16.msra.mxu0 %v17372_v35  ;;  %v17453_v35 = vld [vmem:[#allocation16 + $0x13c0] ss:$24 sps:$4 sm:$0xff]  }
 0x957   :  { %13876 = vmatprep.subr.bf16.mxu0 %v17377_v38  ;;  %v17458_v38 = vld [vmem:[#allocation16 + $0x13f4] ss:$24 sps:$4 sm:$0xff]  }
 0x95a   :  { %13877 = vmatpush1.bf16.msra.mxu0 %v17375_v1  ;;  %v17456_v1 = vld [vmem:[#allocation16 + $0x13f0] ss:$24 sps:$4 sm:$0xff]  }
 0x95b   :  { %13887 = vmatprep.subr.bf16.mxu0 %v17380_v17  ;;  %v17461_v17 = vld [vmem:[#allocation16 + $0x1424] ss:$24 sps:$4 sm:$0xff]  }
 0x95d   :  { %13879 = vmatmul.mubr.bf16.vlgmr.msra.gmra.mrb[24].mxu0 %v18281_v12  ;;  %v17393_v12 = vld [vmem:[#allocation16 + $0x1000] ss:$24 sps:$4 sm:$0xff]  }
 0x95e   :  { %13888 = vmatpush1.bf16.msra.mxu0 %v17378_v39  ;;  %13919 = vmatprep.mubr.bf16.mxu0 %v18297_v13  ;;  %v17396_v13 = vld [vmem:[#allocation16 + $0x1030] ss:$24 sps:$4 sm:$0xff]   ;;  %v17459_v39 = vld [vmem:[#allocation16 + $0x1420] ss:$24 sps:$4 sm:$0xff]  }
 0x95f   :  { %13889 = vmatprep.subr.bf16.mxu0 %v17383_v21  ;;  %v17464_v21 = vld [vmem:[#allocation16 + $0x1454] ss:$24 sps:$4 sm:$0xff]  }
 0x962   :  { %13890 = vmatpush1.bf16.msra.mxu0 %v17381_v43  ;;  %v17462_v43 = vld [vmem:[#allocation16 + $0x1450] ss:$24 sps:$4 sm:$0xff]  }
 0x963   :  { %13891 = vmatprep.subr.bf16.mxu0 %v17386_v44  ;;  %v17467_v44 = vld [vmem:[#allocation16 + $0x1484] ss:$24 sps:$4 sm:$0xff]  }
 0x966   :  { %13892 = vmatpush1.bf16.msra.mxu0 %v17384_v2  ;;  %v17465_v2 = vld [vmem:[#allocation16 + $0x1480] ss:$24 sps:$4 sm:$0xff]  }
 0x967   :  { %13893 = vmatprep.subr.bf16.mxu0 %v17389_v9  ;;  %v17470_v9 = vld [vmem:[#allocation16 + $0x14b4] ss:$24 sps:$4 sm:$0xff]  }
 0x96a   :  { %13894 = vmatpush1.bf16.msra.mxu0 %v17387_v46  ;;  %v17468_v46 = vld [vmem:[#allocation16 + $0x14b0] ss:$24 sps:$4 sm:$0xff]  }
 0x96b   :  { %13895 = vmatprep.subr.bf16.mxu0 %v17392_v34  ;;  %v17473_v34 = vld [vmem:[#allocation16 + $0x14e4] ss:$24 sps:$4 sm:$0xff]  }
 0x96e   :  { %13896 = vmatpush1.bf16.msra.mxu0 %v17390_v54  ;;  %v17471_v54 = vld [vmem:[#allocation16 + $0x14e0] ss:$24 sps:$4 sm:$0xff]  }
 0x96f   :  { %13897 = vmatprep.subr.bf16.mxu0 %v17395_v33  ;;  %v17476_v33 = vld [vmem:[#allocation16 + $0x1514] ss:$24 sps:$4 sm:$0xff]  }
 0x972   :  { %13898 = vmatpush1.bf16.msra.mxu0 %v17393_v12  ;;  %v17474_v12 = vld [vmem:[#allocation16 + $0x1510] ss:$24 sps:$4 sm:$0xff]  }
 0x973   :  { %13899 = vmatprep.subr.bf16.mxu0 %v17398_v50  ;;  %v17479_v50 = vld [vmem:[#allocation16 + $0x1544] ss:$24 sps:$4 sm:$0xff]  }
 0x976   :  { %13900 = vmatpush1.bf16.msra.mxu0 %v17396_v13  ;;  %v17477_v13 = vld [vmem:[#allocation16 + $0x1540] ss:$24 sps:$4 sm:$0xff]  }
 0x977   :  { %13901 = vmatprep.subr.bf16.mxu0 %v17401_v51  ;;  %v17482_v51 = vld [vmem:[#allocation16 + $0x1574] ss:$24 sps:$4 sm:$0xff]  }
 0x97a   :  { %13902 = vmatpush1.bf16.msra.mxu0 %v17399_v8  ;;  %v17480_v8 = vld [vmem:[#allocation16 + $0x1570] ss:$24 sps:$4 sm:$0xff]  }
 0x97b   :  { %13903 = vmatprep.subr.bf16.mxu0 %v17404_v40  ;;  %v17485_v40 = vld [vmem:[#allocation16 + $0x15a4] ss:$24 sps:$4 sm:$0xff]  }
 0x97e   :  { %13904 = vmatpush1.bf16.msra.mxu0 %v17402_v48  ;;  %v17483_v48 = vld [vmem:[#allocation16 + $0x15a0] ss:$24 sps:$4 sm:$0xff]  }
 0x97f   :  { %13905 = vmatprep.subr.bf16.mxu0 %v17407_v57  ;;  %v17488_v57 = vld [vmem:[#allocation16 + $0x15d4] ss:$24 sps:$4 sm:$0xff]  }
 0x982   :  { %13906 = vmatpush1.bf16.msra.mxu0 %v17405_v56  ;;  %v17486_v56 = vld [vmem:[#allocation16 + $0x15d0] ss:$24 sps:$4 sm:$0xff]  }
 0x983   :  { %13907 = vmatprep.subr.bf16.mxu0 %v17410_v61  ;;  %v17491_v61 = vld [vmem:[#allocation16 + $0x1604] ss:$24 sps:$4 sm:$0xff]  }
 0x986   :  { %13908 = vmatpush1.bf16.msra.mxu0 %v17408_v10  ;;  %v17494_v10 = vld [vmem:[#allocation16 + $0x1634] ss:$24 sps:$4 sm:$0xff]  }
 0x987   :  { %13909 = vmatprep.subr.bf16.mxu0 %v17413_v20  ;;  %v17497_v20 = vld [vmem:[#allocation16 + $0x1664] ss:$24 sps:$4 sm:$0xff]  }
 0x98a   :  { %13910 = vmatpush1.bf16.msra.mxu0 %v17411_v62  ;;  %v17495_v62 = vld [vmem:[#allocation16 + $0x1660] ss:$24 sps:$4 sm:$0xff]  }
 0x98b   :  { %13911 = vmatprep.subr.bf16.mxu0 %v17416_v47  ;;  %v17500_v47 = vld [vmem:[#allocation16 + $0x1694] ss:$24 sps:$4 sm:$0xff]  }
 0x98e   :  { %13912 = vmatpush1.bf16.msra.mxu0 %v17414_v0  ;;  %v17498_v0 = vld [vmem:[#allocation16 + $0x1690] ss:$24 sps:$4 sm:$0xff]  }
 0x98f   :  { %13913 = vmatprep.subr.bf16.mxu0 %v17419_v14  ;;  %v17503_v14 = vld [vmem:[#allocation16 + $0x16c4] ss:$24 sps:$4 sm:$0xff]  }
 0x992   :  { %13914 = vmatpush1.bf16.msra.mxu0 %v17417_v37  ;;  %v17501_v37 = vld [vmem:[#allocation16 + $0x16c0] ss:$24 sps:$4 sm:$0xff]  }
 0x993   :  { %13915 = vmatprep.subr.bf16.mxu0 %v17422_v3  ;;  %v17506_v3 = vld [vmem:[#allocation16 + $0x16f4] ss:$24 sps:$4 sm:$0xff]  }
 0x996   :  { %13916 = vmatpush1.bf16.msra.mxu0 %v17420_v29  ;;  %v17504_v29 = vld [vmem:[#allocation16 + $0x16f0] ss:$24 sps:$4 sm:$0xff]  }
 0x997   :  { %13917 = vmatprep.subr.bf16.mxu0 %v17425_v30  ;;  %v17509_v30 = vld [vmem:[#allocation16 + $0x1724] ss:$24 sps:$4 sm:$0xff]  }
 0x99a   :  { %13918 = vmatpush1.bf16.msra.mxu0 %v17423_v36  ;;  %v17507_v36 = vld [vmem:[#allocation16 + $0x1720] ss:$24 sps:$4 sm:$0xff]  }
 0x99b   :  { %13928 = vmatprep.subr.bf16.mxu0 %v17428_v5  ;;  %v17512_v5 = vld [vmem:[#allocation16 + $0x1754] ss:$24 sps:$4 sm:$0xff]  }
 0x99d   :  { %13920 = vmatmul.mubr.bf16.vlgmr.msra.gmra.mrb[24].mxu0 %v18299_v28  ;;  %v17441_v28 = vld [vmem:[#allocation16 + $0x1300] ss:$24 sps:$4 sm:$0xff]  }
 0x99e   :  { %13929 = vmatpush1.bf16.msra.mxu0 %v17426_v31  ;;  %13960 = vmatprep.mubr.bf16.mxu0 %v18302_v49  ;;  %v17444_v49 = vld [vmem:[#allocation16 + $0x1330] ss:$24 sps:$4 sm:$0xff]  }
 0x99f   :  { %13930 = vmatprep.subr.bf16.mxu0 %v17431_v6  ;;  %v17510_v31 = vld [vmem:[#allocation16 + $0x1750] ss:$24 sps:$4 sm:$0xff]   ;;  %v17515_v6 = vld [vmem:[#allocation16 + $0x1784] ss:$24 sps:$4 sm:$0xff]  }
 0x9a2   :  { %13931 = vmatpush1.bf16.msra.mxu0 %v17429_v4  ;;  %v17513_v4 = vld [vmem:[#allocation16 + $0x1780] ss:$24 sps:$4 sm:$0xff]  }
 0x9a3   :  { %13932 = vmatprep.subr.bf16.mxu0 %v17434_v7  ;;  %v17518_v7 = vld [vmem:[#allocation16 + $0x17b4] ss:$24 sps:$4 sm:$0xff]  }
 0x9a6   :  { %13933 = vmatpush1.bf16.msra.mxu0 %v17432_v18  ;;  %v9167_v18 = vrot.slane %v18345_v55, %v18108_v41 }
 0x9a7   :  { %13934 = vmatprep.subr.bf16.mxu0 %v17437_v11  ;;  %v17516_v11 = vld [vmem:[#allocation16 + $0x17b0] ss:$24 sps:$4 sm:$0xff]  }
 0x9aa   :  { %13935 = vmatpush1.bf16.msra.mxu0 %v17435_v53  ;;  %v9171_v53 = vrot.slane %v18345_v55, %v18077_v32 }
 0x9ab   :  { %13936 = vmatprep.subr.bf16.mxu0 %v17440_v58  ;;  %v17521_v58 = vld [vmem:[#allocation16 + $0x17e4] ss:$24 sps:$4 sm:$0xff]  }
 0x9ae   :  { %13937 = vmatpush1.bf16.msra.mxu0 %v17438_v63 }
 0x9af   :  { %13938 = vmatprep.subr.bf16.mxu0 %v17443_v52 }
 0x9b2   :  { %13939 = vmatpush1.bf16.msra.mxu0 %v17441_v28 }
 0x9b3   :  { %13940 = vmatprep.subr.bf16.mxu0 %v17446_v22  ;;  %v17519_v22 = vld [vmem:[#allocation16 + $0x17e0] ss:$24 sps:$4 sm:$0xff]  }
 0x9b6   :  { %13941 = vmatpush1.bf16.msra.mxu0 %v17444_v49 }
 0x9b7   :  { %13942 = vmatprep.subr.bf16.mxu0 %v17449_v25 }
 0x9ba   :  { %13943 = vmatpush1.bf16.msra.mxu0 %v17447_v26 }
 0x9bb   :  { %13944 = vmatprep.subr.bf16.mxu0 %v17452_v24 }
 0x9be   :  { %13945 = vmatpush1.bf16.msra.mxu0 %v17450_v42 }
 0x9bf   :  { %13946 = vmatprep.subr.bf16.mxu0 %v17455_v15 }
 0x9c2   :  { %13947 = vmatpush1.bf16.msra.mxu0 %v17453_v35 }
 0x9c3   :  { %13948 = vmatprep.subr.bf16.mxu0 %v17458_v38 }
 0x9c6   :  { %13949 = vmatpush1.bf16.msra.mxu0 %v17456_v1 }
 0x9c7   :  { %13950 = vmatprep.subr.bf16.mxu0 %v17461_v17 }
 0x9ca   :  { %13951 = vmatpush1.bf16.msra.mxu0 %v17459_v39 }
 0x9cb   :  { %13952 = vmatprep.subr.bf16.mxu0 %v17464_v21 }
 0x9ce   :  { %13953 = vmatpush1.bf16.msra.mxu0 %v17462_v43 }
 0x9cf   :  { %13954 = vmatprep.subr.bf16.mxu0 %v17467_v44 }
 0x9d2   :  { %13955 = vmatpush1.bf16.msra.mxu0 %v17465_v2 }
 0x9d3   :  { %13956 = vmatprep.subr.bf16.mxu0 %v17470_v9 }
 0x9d6   :  { %13957 = vmatpush1.bf16.msra.mxu0 %v17468_v46 }
 0x9d7   :  { %13958 = vmatprep.subr.bf16.mxu0 %v17473_v34 }
 0x9da   :  { %13959 = vmatpush1.bf16.msra.mxu0 %v17471_v54 }
 0x9db   :  { %13969 = vmatprep.subr.bf16.mxu0 %v17476_v33 }
 0x9dd   :  { %13961 = vmatmul.mubr.bf16.vlgmr.msra.gmra.mrb[24].mxu0 %v18313_v60  ;;  %v17489_v60 = vld [vmem:[#allocation16 + $0x1600] ss:$24 sps:$4 sm:$0xff]  }
 0x9de   :  { %13970 = vmatpush1.bf16.msra.mxu0 %v17474_v12  ;;  %14001 = vmatprep.mubr.bf16.mxu0 %v18326_v16  ;;  %v17492_v16 = vld [vmem:[#allocation16 + $0x1630] ss:$24 sps:$4 sm:$0xff]  }
 0x9df   :  { %13971 = vmatprep.subr.bf16.mxu0 %v17479_v50 }
 0x9e2   :  { %13972 = vmatpush1.bf16.msra.mxu0 %v17477_v13 }
 0x9e3   :  { %13973 = vmatprep.subr.bf16.mxu0 %v17482_v51 }
 0x9e6   :  { %13974 = vmatpush1.bf16.msra.mxu0 %v17480_v8 }
 0x9e7   :  { %13975 = vmatprep.subr.bf16.mxu0 %v17485_v40 }
 0x9ea   :  { %13976 = vmatpush1.bf16.msra.mxu0 %v17483_v48  ;;  %v14151_v48 = vcombine.high %v18374_v19, %v18374_v19 }
 0x9eb   :  { %13977 = vmatprep.subr.bf16.mxu0 %v17488_v57 }
 0x9ee   :  { %13978 = vmatpush1.bf16.msra.mxu0 %v17486_v56  ;;  %v14062_v56 = vld [vmem:[%s18421_s2 + $0x8] sm:$0xff] }
 0x9ef   :  { %13979 = vmatprep.subr.bf16.mxu0 %v17491_v61 }
 0x9f2   :  { %13980 = vmatpush1.bf16.msra.mxu0 %v17489_v60 }
 0x9f3   :  { %13981 = vmatprep.subr.bf16.mxu0 %v17494_v10 }
 0x9f6   :  { %13982 = vmatpush1.bf16.msra.mxu0 %v17492_v16  ;;  %v14158_v16 = vsel %vm187_vm1, %v14151_v48, 0.0 }
 0x9f7   :  { %13983 = vmatprep.subr.bf16.mxu0 %v17497_v20 }
 0x9fa   :  { %13984 = vmatpush1.bf16.msra.mxu0 %v17495_v62  ;;  %v14157_v62 = vsel %vm187_vm1, %v18374_v19, 0.0 }
 0x9fb   :  { %13985 = vmatprep.subr.bf16.mxu0 %v17500_v47  ;;  %v14159_v47 = vadd.f32 %v14158_v16, %v14157_v62 }
 0x9fe   :  { %13986 = vmatpush1.bf16.msra.mxu0 %v17498_v0 }
 0x9ff   :  { %13987 = vmatprep.subr.bf16.mxu0 %v17503_v14 }
 0xa02   :  { %13988 = vmatpush1.bf16.msra.mxu0 %v17501_v37 }
 0xa03   :  { %13989 = vmatprep.subr.bf16.mxu0 %v17506_v3 }
 0xa06   :  { %13990 = vmatpush1.bf16.msra.mxu0 %v17504_v29 }
 0xa07   :  { %13991 = vmatprep.subr.bf16.mxu0 %v17509_v30  ;;  %v17573_v30 = vld [vmem:[#allocation2] sm:$0xf] }
 0xa0a   :  { %13992 = vmatpush1.bf16.msra.mxu0 %v17507_v36  ;;  %v14170_v36 = vmul.f32 %v17573_v30, %v17573_v30 }
 0xa0b   :  { %13993 = vmatprep.subr.bf16.mxu0 %v17512_v5 }
 0xa0c   :  { %v14172_v5 = vsel %vm14171_vm4, %v14170_v36, 0.0 }
 0xa0d   :  { %14173 = vadd.xlane.f32.xlu0 %v14172_v5 }
 0xa0e   :  { %13994 = vmatpush1.bf16.msra.mxu0 %v17510_v31  ;;  %v9175_v31 = vrot.slane %v18345_v55, %v18128_v23 }
 0xa0f   :  { %13995 = vmatprep.subr.bf16.mxu0 %v17515_v6  ;;  %v9179_v6 = vrot.slane %v18345_v55, %v18111_v45 }
 0xa12   :  { %13996 = vmatpush1.bf16.msra.mxu0 %v17513_v4 }
 0xa13   :  { %13997 = vmatprep.subr.bf16.mxu0 %v17518_v7 }
 0xa15   :  { %v13675_v63 = vpop.f32.mrb[28].mxu1 }
 0xa16   :  { %v16166_v52 = vadd.f32 %v13675_v63, %v9167_v18  ;;  %v13677_v28 = vpop.f32.mrb[29].mxu1  ;;  %13998 = vmatpush1.bf16.msra.mxu0 %v17516_v11 }
 0xa17   :  { %v16167_v49 = vadd.f32 %v13677_v28, %v9171_v53  ;;  %v13679_v25 = vpop.f32.mrb[30].mxu1  ;;  %13999 = vmatprep.subr.bf16.mxu0 %v17521_v58 }
 0xa18   :  { %v15995_v26 = vmul.f32 -1.442695, %v16166_v52  ;;  %v14072_v24 = vand.u32 2147483647, %v16166_v52  ;;  %v13680_v42 = vpop.f32.mrb[31].mxu1  ;;  %v14066_v13 = vmax.f32 %v16166_v52, 0.0 }
 0xa19   :  { %v15996_v15 = vmul.f32 -1.442695, %v16167_v49  ;;  %v14073_v35 = vand.u32 2147483647, %v16167_v49  ;;  %v14125_v41 = vcombine.low %v16166_v52, %v16167_v49  ;;  %v14067_v8 = vmax.f32 %v16167_v49, 0.0 }
 0xa1a   :  { %17538 = vpow2.f32 %v15995_v26  ;;  %v14078_v38 = vsub.f32 0.0, %v14072_v24  ;;  %14000 = vmatpush1.bf16.msra.mxu0 %v17519_v22 }
 0xa1b   :  { %17540 = vpow2.f32 %v15996_v15  ;;  %v14079_v32 = vsub.f32 0.0, %v14073_v35  ;;  %v14131_v60 = vmul.f32 %v14125_v41, %v14062_v56  ;;  %v14178_v56 = vand.u32 127, %v474_v27 }
 0xa1c   :  { %v14086_v1 = vmul.f32 1.442695, %v14078_v38 }
 0xa1d   :  { %v14088_v17 = vmul.f32 1.442695, %v14079_v32  ;;  %14002 = vmatmul.mubr.bf16.vlgmr.msra.gmra.mrb[24].mxu0 %v18328_v59  ;;  %vm14179_vm5 = vcmp.eq.s32.totalorder %v14178_v56, 0 }
 0xa1e   :  { %17542 = vpow2.f32 %v14086_v1 }
 0xa1f   :  { %17544 = vpow2.f32 %v14088_v17 }
 0xa24   :  { %v17539_v39 = vpop.eup %17538 }
 0xa25   :  { %v17541_v21 = vpop.eup %17540  ;;  %v14030_v43 = vadd.f32 1.0, %v17539_v39 }
 0xa26   :  { %v14031_v44 = vadd.f32 1.0, %v17541_v21 }
 0xa27   :  { %17546 = vrcp.f32 %v14030_v43 }
 0xa28   :  { %v17543_v2 = vpop.eup %17542  ;;  %17548 = vrcp.f32 %v14031_v44 }
 0xa29   :  { %v17545_v9 = vpop.eup %17544  ;;  %v14096_v46 = vadd.f32 1.0, %v17543_v2 }
 0xa2a   :  { %v14097_v34 = vadd.f32 1.0, %v17545_v9 }
 0xa2b   :  { %17550 = vlog2.f32 %v14096_v46  ;;  %v14063_v46 = vld [vmem:[%s18421_s2 + $0x10] sm:$0xff] }
 0xa2c   :  { %17552 = vlog2.f32 %v14097_v34 }
 0xa31   :  { %v17547_v54 = vpop.eup %17546 }
 0xa32   :  { %v17549_v33 = vpop.eup %17548 }
 0xa33   :  { %v14053_v12 = vcombine.low %v17547_v54, %v17549_v33 }
 0xa35   :  { %v17551_v50 = vpop.eup %17550  ;;  %14059 = vst [vmem:[%s18431_s12 + $0x8] sm:$0xff] %v14053_v12 }
 0xa36   :  { %v17553_v59 = vpop.eup %17552  ;;  %v14105_v51 = vmul.f32 0.6931472, %v17551_v50 }
 0xa37   :  { %v14107_v40 = vmul.f32 0.6931472, %v17553_v59 }
 0xa38   :  { %v14114_v57 = vadd.f32 %v14105_v51, %v14066_v13 }
 0xa39   :  { %v14115_v61 = vadd.f32 %v14107_v40, %v14067_v8 }
 0xa3b   :  { %v14140_v10 = vcombine.low %v14114_v57, %v14115_v61 }
 0xa3d   :  { %v14146_v20 = vsub.f32 %v14131_v60, %v14140_v10 }
 0xa3f   :  { %v14152_v0 = vcombine.high %v14146_v20, %v14146_v20  ;;  %v14160_v14 = vsel %vm187_vm1, %v14146_v20, 0.0 }
 0xa40   :  { %v14161_v37 = vadd.f32 %v14160_v14, %v14159_v47 }
 0xa41   :  { %v14162_v3 = vsel %vm187_vm1, %v14152_v0, 0.0 }
 0xa42   :  { %v14163_v29 = vadd.f32 %v14162_v3, %v14161_v37 }
 0xa9a   :  { %v14174_v48 = vpop.xlane.xlu0 %14173 }
 0xa9b   :  { %v14175_v57 = vmul.f32 -0.5, %v14174_v48 }
 0xa9d   :  { %v15999_v61 = vadd.f32 -14.703016, %v14175_v57 }
 0xaf0   :  { %v14003_v19 = vpop.f32.mrb[24].mxu0 }
 0xaf1   :  { %v16168_v4 = vadd.f32 %v14003_v19, %v9175_v31  ;;  %v14005_v7 = vpop.f32.mrb[25].mxu0 }
 0xaf2   :  { %v16169_v18 = vadd.f32 %v14005_v7, %v9179_v6  ;;  %v14007_v11 = vpop.f32.mrb[26].mxu0 }
 0xaf3   :  { %v15997_v53 = vmul.f32 -1.442695, %v16168_v4  ;;  %v14074_v58 = vand.u32 2147483647, %v16168_v4  ;;  %v14008_v63 = vpop.f32.mrb[27].mxu0  ;;  %v14068_v43 = vmax.f32 %v16168_v4, 0.0 }
 0xaf4   :  { %v15998_v52 = vmul.f32 -1.442695, %v16169_v18  ;;  %v14075_v28 = vand.u32 2147483647, %v16169_v18  ;;  %v14126_v22 = vcombine.low %v16168_v4, %v16169_v18  ;;  %v14069_v2 = vmax.f32 %v16169_v18, 0.0 }
 0xaf5   :  { %17554 = vpow2.f32 %v15997_v53  ;;  %v14080_v49 = vsub.f32 0.0, %v14074_v58 }
 0xaf6   :  { %17556 = vpow2.f32 %v15998_v52  ;;  %v14081_v25 = vsub.f32 0.0, %v14075_v28  ;;  %v14132_v33 = vmul.f32 %v14126_v22, %v14063_v46 }
 0xaf7   :  { %v14090_v26 = vmul.f32 1.442695, %v14080_v49 }
 0xaf8   :  { %v14092_v23 = vmul.f32 1.442695, %v14081_v25 }
 0xaf9   :  { %17558 = vpow2.f32 %v14090_v26 }
 0xafa   :  { %17560 = vpow2.f32 %v14092_v23 }
 0xaff   :  { %v17555_v45 = vpop.eup %17554 }
 0xb00   :  { %v17557_v55 = vpop.eup %17556  ;;  %v14032_v24 = vadd.f32 1.0, %v17555_v45 }
 0xb01   :  { %v14033_v42 = vadd.f32 1.0, %v17557_v55 }
 0xb02   :  { %17562 = vrcp.f32 %v14032_v24 }
 0xb03   :  { %v17559_v15 = vpop.eup %17558  ;;  %17564 = vrcp.f32 %v14033_v42 }
 0xb04   :  { %v17561_v35 = vpop.eup %17560  ;;  %v14098_v41 = vadd.f32 1.0, %v17559_v15 }
 0xb05   :  { %v14099_v38 = vadd.f32 1.0, %v17561_v35 }
 0xb06   :  { %17566 = vlog2.f32 %v14098_v41 }
 0xb07   :  { %17568 = vlog2.f32 %v14099_v38 }
 0xb0c   :  { %v17563_v32 = vpop.eup %17562 }
 0xb0d   :  { %v17565_v1 = vpop.eup %17564 }
 0xb0e   :  { %v14054_v17 = vcombine.low %v17563_v32, %v17565_v1 }
 0xb10   :  { %v17567_v39 = vpop.eup %17566  ;;  %14060 = vst [vmem:[%s18431_s12 + $0x10] sm:$0xff] %v14054_v17 }
 0xb11   :  { %v17569_v21 = vpop.eup %17568  ;;  %v14109_v44 = vmul.f32 0.6931472, %v17567_v39 }
 0xb12   :  { %v14111_v9 = vmul.f32 0.6931472, %v17569_v21 }
 0xb13   :  { %v14116_v34 = vadd.f32 %v14109_v44, %v14068_v43 }
 0xb14   :  { %v14117_v54 = vadd.f32 %v14111_v9, %v14069_v2 }
 0xb16   :  { %v14141_v12 = vcombine.low %v14116_v34, %v14117_v54 }
 0xb18   :  { %v14147_v50 = vsub.f32 %v14132_v33, %v14141_v12 }
 0xb1a   :  { %v14153_v59 = vcombine.high %v14147_v50, %v14147_v50  ;;  %v14164_v13 = vsel %vm187_vm1, %v14147_v50, 0.0 }
 0xb1b   :  { %v14165_v51 = vadd.f32 %v14164_v13, %v14163_v29 }
 0xb1c   :  { %v14166_v8 = vsel %vm187_vm1, %v14153_v59, 0.0 }
 0xb1d   :  { %v14167_v40 = vadd.f32 %v14166_v8, %v14165_v51 }
 0xb1f   :  { %14168 = vadd.xlane.f32.xlu0 %v14167_v40 }
 0xbac   :  { %v14169_v60 = vpop.xlane.xlu0 %14168 }
 0xbad   :  { %v14180_v10 = vsel %vm14179_vm5, %v14169_v60, %v15999_v61 }
 0xbae   :  { %14182 = vst.msk [vmem:[%s18432_s13] sm:$0xf] %vm14181_vm6, %v14180_v10 }
 0xbaf   :  { %14191 = vsyncpa [#allocation3], 1 }
 0xbb0   :  { %14192 = vsyncpa [#allocation5], 1 }
 0xbb1   :  { %14193 = vsyncpa [#allocation8], 1 }
 0xbb2   :  { %14194 = vsyncpa [#allocation11], 1 }
 0xbb3   :  { %14195 = vsyncpa [#allocation14], 1 }
 0xbb4   :  { %14196 = vsyncpa [#allocation17], 1 }

</bundles_post_ra>
